<compile_context>
chip_gen: v7x
topology: tpu7x:2x2x1
jax: 0.10.0
libtpu: 0.0.40
codegen_flags: <defaults>
</compile_context>

<pallas_src>
import jax
import jax.numpy as jnp
from jax.experimental import pallas as pl
from jax.experimental.pallas import tpu as pltpu


# ----------------------------- hyper-params (small, synthetic) ----------------
B = 2            # batch
T = 256          # wav samples per window
HOP = 8          # mfcc hop size -> T_MEL = T // HOP
T_MEL = T // HOP
N_MFCC = 13
N_COND = 3 * N_MFCC      # mfcc + delta + delta-delta = 39 conditioning channels
N_QUANT = 256            # mu-law quantization levels
N_RES = 32               # residual channels
N_GATE = 32              # gate/filter channels
N_SKIP = 64              # skip channels
N_POST = 64              # post-net hidden
DILATIONS = (1, 2, 4, 8) # dilated conv stack (kernel size 2, causal)
N_LAYERS = len(DILATIONS)

# lane-dense packed layouts used inside the fused kernel
SLAB = 128               # state slab lanes: [0:32]=x, [32:96]=skip_sum, [96:128]=0
CAUG = 64                # cond  slab lanes: [0:39]=mel, [39]=1 (bias lane), [40:64]=0
F_LO = 0                 # filter pre-activation lives in gate-slab lanes [0:32]
G_LO = 64                # gate   pre-activation lives in gate-slab lanes [64:96]


# ----------------------------- fused Pallas kernel -----------------------------
def fused_wavenet_kernel(state_ref, caug_ref,
                         wcur_ref, wprev_ref, wcond_ref, wout_ref,
                         w1_ref, b1_ref, w2_ref, b2_ref,
                         out_ref):
    """Whole WaveNet stack + post-net for one batch element (T rows)."""
    state = state_ref[0]          # (T, 128) f32 : [x | skip_sum | 0]
    caug = caug_ref[0]            # (T, 64)  f32 : [cond | 1 | 0]

    # time-index difference (t - s), shared by all per-layer shift matrices
    t_row = jax.lax.broadcasted_iota(jnp.int32, (T, T), 0)
    t_col = jax.lax.broadcasted_iota(jnp.int32, (T, T), 1)
    t_diff = t_row - t_col

    # lane rotate-by-64 as a permutation matmul: brings the gate lanes [64:96]
    # onto the filter lanes [0:32] so tanh(f)*sigmoid(g) is a full-width multiply.
    l_row = jax.lax.broadcasted_iota(jnp.int32, (SLAB, SLAB), 0)
    l_col = jax.lax.broadcasted_iota(jnp.int32, (SLAB, SLAB), 1)
    rot64 = jnp.where((l_row + 64 == l_col) | (l_col + 64 == l_row),
                      1.0, 0.0).astype(jnp.float32)

    for li, dil in enumerate(DILATIONS):
        # causal dilation shift as a banded permutation matmul:
        #   shifted[t] = state[t - dil], zero rows for t < dil (causal pad).
        shift_m = jnp.where(t_diff == dil, 1.0, 0.0).astype(jnp.float32)
        shifted = jnp.dot(shift_m, state, preferred_element_type=jnp.float32)

        # fused gate projection; filter -> lanes [0:32], gate -> lanes [64:96];
        # conv biases are folded in via the ones-lane of `caug`.
        gates = (jnp.dot(state, wcur_ref[li], preferred_element_type=jnp.float32)
                 + jnp.dot(shifted, wprev_ref[li], preferred_element_type=jnp.float32)
                 + jnp.dot(caug, wcond_ref[li], preferred_element_type=jnp.float32))
        g_rot = jnp.dot(gates, rot64, preferred_element_type=jnp.float32)
        z = jnp.tanh(gates) * jax.nn.sigmoid(g_rot)   # lanes [0:32] = tanh(f)*sig(g)

        # residual add + skip accumulate in ONE lane-dense update:
        # wout rows [32:128] are zero (kills the dont-care lanes of z);
        # cols [0:32] -> residual into x, cols [32:96] -> skip_sum.
        state = state + jnp.dot(z, wout_ref[li], preferred_element_type=jnp.float32)

    # post-net: relu -> 1x1 -> relu -> 1x1 -> logits.
    # w1 is pre-padded so only the skip lanes [32:96] of the state contribute.
    h = jnp.dot(jnp.maximum(state, 0.0), w1_ref[...],
                preferred_element_type=jnp.float32) + b1_ref[...]
    h = jnp.maximum(h, 0.0)
    logits = jnp.dot(h, w2_ref[...], preferred_element_type=jnp.float32) + b2_ref[...]
    out_ref[0] = logits.astype(out_ref.dtype)


def run_fused_wavenet(state0, caug, packed, post):
    act_spec = lambda c: pl.BlockSpec((1, T, c), lambda b: (b, 0, 0))
    w3_spec = lambda s: pl.BlockSpec(s, lambda b: (0, 0, 0))
    w2_spec = lambda s: pl.BlockSpec(s, lambda b: (0, 0))
    return pl.pallas_call(
        fused_wavenet_kernel,
        out_shape=jax.ShapeDtypeStruct((B, T, N_QUANT), jnp.float32),
        grid=(B,),
        in_specs=[
            act_spec(SLAB),                         # state0
            act_spec(CAUG),                         # conditioning slab
            w3_spec((N_LAYERS, SLAB, SLAB)),        # wcur  (current tap, packed)
            w3_spec((N_LAYERS, SLAB, SLAB)),        # wprev (dilated tap, packed)
            w3_spec((N_LAYERS, CAUG, SLAB)),        # wcond (+ folded biases)
            w3_spec((N_LAYERS, SLAB, SLAB)),        # wout  (wres | wskip, packed)
            w2_spec((SLAB, N_POST)),                # w1 (padded to state lanes)
            w2_spec((1, N_POST)),                   # b1
            w2_spec((N_POST, N_QUANT)),             # w2
            w2_spec((1, N_QUANT)),                  # b2
        ],
        out_specs=act_spec(N_QUANT),
        compiler_params=pltpu.CompilerParams(
            dimension_semantics=("parallel",)),     # 2 steps -> both v7x TCs
    )(state0, caug, packed["wcur"], packed["wprev"], packed["wcond"],
      packed["wout"], post["w1p"], post["b1"], post["w2"], post["b2"])


# ----------------------------- parameter init (deterministic) ------------------
def init_params(key):
    def dense(key, shape):
        fan_in = shape[0]
        return (jax.random.normal(key, shape, jnp.float32)
                * (1.0 / jnp.sqrt(jnp.float32(fan_in))))

    keys = jax.random.split(key, 3 + N_LAYERS)
    params = {
        "embed": jax.random.normal(keys[0], (N_QUANT, N_RES), jnp.float32) * 0.1,
        "post": {
            "w1": dense(jax.random.fold_in(keys[1], 0), (N_SKIP, N_POST)),
            "b1": jnp.zeros((1, N_POST), jnp.float32),
            "w2": dense(jax.random.fold_in(keys[1], 1), (N_POST, N_QUANT)),
            "b2": jnp.zeros((1, N_QUANT), jnp.float32),
        },
        "layers": [],
    }
    for li in range(N_LAYERS):
        k = keys[3 + li]
        params["layers"].append({
            "wf0": dense(jax.random.fold_in(k, 0), (N_RES, N_GATE)),
            "wf1": dense(jax.random.fold_in(k, 1), (N_RES, N_GATE)),
            "wcf": dense(jax.random.fold_in(k, 2), (N_COND, N_GATE)),
            "bf": jnp.zeros((1, N_GATE), jnp.float32),
            "wg0": dense(jax.random.fold_in(k, 3), (N_RES, N_GATE)),
            "wg1": dense(jax.random.fold_in(k, 4), (N_RES, N_GATE)),
            "wcg": dense(jax.random.fold_in(k, 5), (N_COND, N_GATE)),
            "bg": jnp.zeros((1, N_GATE), jnp.float32),
            "wres": dense(jax.random.fold_in(k, 6), (N_GATE, N_RES)),
            "wskip": dense(jax.random.fold_in(k, 7), (N_GATE, N_SKIP)),
        })
    return params


def pack_params(params):
    """Pack per-layer weights into the lane-dense layouts the kernel expects."""
    wcur = jnp.zeros((N_LAYERS, SLAB, SLAB), jnp.float32)
    wprev = jnp.zeros((N_LAYERS, SLAB, SLAB), jnp.float32)
    wcond = jnp.zeros((N_LAYERS, CAUG, SLAB), jnp.float32)
    wout = jnp.zeros((N_LAYERS, SLAB, SLAB), jnp.float32)
    for li, layer in enumerate(params["layers"]):
        # gate projections: rows = state lanes (only x lanes [0:32] are nonzero)
        wcur = wcur.at[li, 0:N_RES, F_LO:F_LO + N_GATE].set(layer["wf0"])
        wcur = wcur.at[li, 0:N_RES, G_LO:G_LO + N_GATE].set(layer["wg0"])
        wprev = wprev.at[li, 0:N_RES, F_LO:F_LO + N_GATE].set(layer["wf1"])
        wprev = wprev.at[li, 0:N_RES, G_LO:G_LO + N_GATE].set(layer["wg1"])
        # conditioning projection + biases folded via the ones-lane (row N_COND)
        wcond = wcond.at[li, 0:N_COND, F_LO:F_LO + N_GATE].set(layer["wcf"])
        wcond = wcond.at[li, 0:N_COND, G_LO:G_LO + N_GATE].set(layer["wcg"])
        wcond = wcond.at[li, N_COND, F_LO:F_LO + N_GATE].set(layer["bf"][0])
        wcond = wcond.at[li, N_COND, G_LO:G_LO + N_GATE].set(layer["bg"][0])
        # output projection: z lanes [0:32] -> residual lanes [0:32] + skip [32:96]
        wout = wout.at[li, 0:N_GATE, 0:N_RES].set(layer["wres"])
        wout = wout.at[li, 0:N_GATE, N_RES:N_RES + N_SKIP].set(layer["wskip"])
    w1p = jnp.zeros((SLAB, N_POST), jnp.float32)
    w1p = w1p.at[N_RES:N_RES + N_SKIP, :].set(params["post"]["w1"])
    packed = {"wcur": wcur, "wprev": wprev, "wcond": wcond, "wout": wout}
    post = {"w1p": w1p, "b1": params["post"]["b1"],
            "w2": params["post"]["w2"], "b2": params["post"]["b2"]}
    return packed, post


# ----------------------------- forward (MfccInverter.forward) ------------------
@jax.jit
def mfcc_inverter_forward(params, wav, mel, voice, jitter):
    """wav: (B, T) int32 mu-law indices; mel: (B, N_COND, T_MEL) float32 (NCW);
    voice: (B,) int32 (unused — model has no global conditioning);
    jitter: (B, T_MEL) int32 frame-permutation indices.
    Returns logits (B, N_QUANT, T) in PyTorch NCW convention."""
    del voice  # MfccInverter does not use global (speaker) conditioning.

    # jitter: permute mel frames along time (glue).
    mel_j = jnp.take_along_axis(mel, jitter[:, None, :], axis=2)   # (B, N_COND, T_MEL)

    # local conditioning upsample to sample rate (nearest-neighbour).
    # TODO(synk): the reference model uses a learned transposed-conv upsampler.
    cond = jnp.repeat(mel_j, HOP, axis=2)                          # (B, N_COND, T)
    cond = jnp.transpose(cond, (0, 2, 1))                          # (B, T, N_COND)

    # wav embedding (equivalent to one-hot + 1x1 conv) — glue gather.
    x = jnp.take(params["embed"], wav, axis=0)                     # (B, T, N_RES)

    # lane-dense state slab [x | skip_sum=0 | pad] and conditioning slab
    # [cond | 1 (bias lane) | 0], built once in XLA glue.
    state0 = jnp.pad(x, ((0, 0), (0, 0), (0, SLAB - N_RES)))       # (B, T, 128)
    caug = jnp.concatenate(
        [cond, jnp.ones((B, T, 1), jnp.float32),
         jnp.zeros((B, T, CAUG - N_COND - 1), jnp.float32)], axis=-1)  # (B, T, 64)

    packed, post = pack_params(params)
    logits = run_fused_wavenet(state0, caug, packed, post)         # (B, T, N_QUANT)
    # TODO(synk): the real WaveNet trims the output to the valid receptive-field
    # window (trim_dec_out geometry); left-padded causal convs keep T here.
    return jnp.transpose(logits, (0, 2, 1))                        # (B, N_QUANT, T)


# ----------------------------- demo --------------------------------------------
if __name__ == "__main__":
    key = jax.random.PRNGKey(0)
    k_param, k_wav, k_mel = jax.random.split(key, 3)

    params = init_params(k_param)

    wav = jax.random.randint(k_wav, (B, T), 0, N_QUANT, dtype=jnp.int32)
    mel = jax.random.normal(k_mel, (B, N_COND, T_MEL), jnp.float32)
    voice = jnp.zeros((B,), jnp.int32)
    jitter = jnp.tile(jnp.arange(T_MEL, dtype=jnp.int32)[None, :], (B, 1))

    logits = mfcc_inverter_forward(params, wav, mel, voice, jitter)
    jax.block_until_ready(logits)

    assert logits.shape == (B, N_QUANT, T)
    assert logits.dtype == jnp.float32
    assert bool(jnp.all(jnp.isfinite(logits)))
    print("KERNEL_OK")
</pallas_src>

<mosaic_0001>
module attributes {stable_mosaic.version = 11 : i64} {
  func.func @fused_wavenet_kernel(%arg0: i32, %arg1: memref<1x256x128xf32, #tpu.memory_space<vmem>>, %arg2: memref<1x256x64xf32, #tpu.memory_space<vmem>>, %arg3: memref<4x128x128xf32, #tpu.memory_space<vmem>>, %arg4: memref<4x128x128xf32, #tpu.memory_space<vmem>>, %arg5: memref<4x64x128xf32, #tpu.memory_space<vmem>>, %arg6: memref<4x128x128xf32, #tpu.memory_space<vmem>>, %arg7: memref<128x64xf32, #tpu.memory_space<vmem>>, %arg8: memref<1x64xf32, #tpu.memory_space<vmem>>, %arg9: memref<64x256xf32, #tpu.memory_space<vmem>>, %arg10: memref<1x256xf32, #tpu.memory_space<vmem>>, %arg11: memref<1x256x256xf32, #tpu.memory_space<vmem>>) attributes {dimension_semantics = [#tpu.dimension_semantics<parallel>], iteration_bounds = array<i64: 2>, scalar_prefetch = 0 : i64, scratch_operands = 0 : i64, tpu.core_type = #tpu.core_type<tc>, window_params = [{transform_indices = @transform_0, window_bounds = array<i64: 1, 256, 128>}, {transform_indices = @transform_1, window_bounds = array<i64: 1, 256, 64>}, {pipeline_mode = #tpu.pipeline_mode<synchronous>, transform_indices = @transform_2, window_bounds = array<i64: 4, 128, 128>}, {pipeline_mode = #tpu.pipeline_mode<synchronous>, transform_indices = @transform_3, window_bounds = array<i64: 4, 128, 128>}, {pipeline_mode = #tpu.pipeline_mode<synchronous>, transform_indices = @transform_4, window_bounds = array<i64: 4, 64, 128>}, {pipeline_mode = #tpu.pipeline_mode<synchronous>, transform_indices = @transform_5, window_bounds = array<i64: 4, 128, 128>}, {pipeline_mode = #tpu.pipeline_mode<synchronous>, transform_indices = @transform_6, window_bounds = array<i64: 128, 64>}, {pipeline_mode = #tpu.pipeline_mode<synchronous>, transform_indices = @transform_7, window_bounds = array<i64: 1, 64>}, {pipeline_mode = #tpu.pipeline_mode<synchronous>, transform_indices = @transform_8, window_bounds = array<i64: 64, 256>}, {pipeline_mode = #tpu.pipeline_mode<synchronous>, transform_indices = @transform_9, window_bounds = array<i64: 1, 256>}, {transform_indices = @transform_10, window_bounds = array<i64: 1, 256, 256>}]} {
    %c0 = arith.constant 0 : index
    %c0_0 = arith.constant 0 : index
    %c0_1 = arith.constant 0 : index
    %0 = vector.load %arg1[%c0, %c0_0, %c0_1] : memref<1x256x128xf32, #tpu.memory_space<vmem>>, vector<1x256x128xf32>
    %1 = vector.shape_cast %0 : vector<1x256x128xf32> to vector<256x128xf32>
    %c0_2 = arith.constant 0 : index
    %c0_3 = arith.constant 0 : index
    %c0_4 = arith.constant 0 : index
    %2 = vector.load %arg2[%c0_2, %c0_3, %c0_4] : memref<1x256x64xf32, #tpu.memory_space<vmem>>, vector<1x256x64xf32>
    %3 = vector.shape_cast %2 : vector<1x256x64xf32> to vector<256x64xf32>
    %4 = tpu.iota {dimensions = array<i32: 0>} : vector<256x256xi32>
    %5 = tpu.iota {dimensions = array<i32: 1>} : vector<256x256xi32>
    %6 = arith.subi %4, %5 : vector<256x256xi32>
    %7 = tpu.iota {dimensions = array<i32: 0>} : vector<128x128xi32>
    %8 = tpu.iota {dimensions = array<i32: 1>} : vector<128x128xi32>
    %c64_i32 = arith.constant 64 : i32
    %9 = vector.broadcast %c64_i32 : i32 to vector<128x128xi32>
    %10 = arith.addi %7, %9 : vector<128x128xi32>
    %11 = arith.cmpi eq, %10, %8 : vector<128x128xi32>
    %c64_i32_5 = arith.constant 64 : i32
    %12 = vector.broadcast %c64_i32_5 : i32 to vector<128x128xi32>
    %13 = arith.addi %8, %12 : vector<128x128xi32>
    %14 = arith.cmpi eq, %13, %7 : vector<128x128xi32>
    %15 = arith.ori %11, %14 : vector<128x128xi1>
    %cst = arith.constant 1.000000e+00 : f32
    %cst_6 = arith.constant 0.000000e+00 : f32
    %16 = vector.broadcast %cst : f32 to vector<128x128xf32>
    %17 = vector.broadcast %cst_6 : f32 to vector<128x128xf32>
    %18 = arith.select %15, %16, %17 : vector<128x128xi1>, vector<128x128xf32>
    %c1_i32 = arith.constant 1 : i32
    %19 = vector.broadcast %c1_i32 : i32 to vector<256x256xi32>
    %20 = arith.cmpi eq, %6, %19 : vector<256x256xi32>
    %cst_7 = arith.constant 1.000000e+00 : f32
    %cst_8 = arith.constant 0.000000e+00 : f32
    %21 = vector.broadcast %cst_7 : f32 to vector<256x256xf32>
    %22 = vector.broadcast %cst_8 : f32 to vector<256x256xf32>
    %23 = arith.select %20, %21, %22 : vector<256x256xi1>, vector<256x256xf32>
    %cst_9 = arith.constant dense<0.000000e+00> : vector<256x128xf32>
    %24 = tpu.matmul %23, %1, %cst_9 {dimension_numbers = #tpu.dot_dimension_numbers<[1], [0], [0], [1], [0, 0, 1, 1], [], []>} : vector<256x256xf32>, vector<256x128xf32>, vector<256x128xf32> -> vector<256x128xf32>
    %c0_10 = arith.constant 0 : index
    %c0_11 = arith.constant 0 : index
    %c0_12 = arith.constant 0 : index
    %25 = vector.load %arg3[%c0_10, %c0_11, %c0_12] : memref<4x128x128xf32, #tpu.memory_space<vmem>>, vector<1x128x128xf32>
    %26 = vector.shape_cast %25 : vector<1x128x128xf32> to vector<128x128xf32>
    %cst_13 = arith.constant dense<0.000000e+00> : vector<256x128xf32>
    %27 = tpu.matmul %1, %26, %cst_13 {dimension_numbers = #tpu.dot_dimension_numbers<[1], [0], [0], [1], [0, 0, 1, 1], [], []>} : vector<256x128xf32>, vector<128x128xf32>, vector<256x128xf32> -> vector<256x128xf32>
    %c0_14 = arith.constant 0 : index
    %c0_15 = arith.constant 0 : index
    %c0_16 = arith.constant 0 : index
    %28 = vector.load %arg4[%c0_14, %c0_15, %c0_16] : memref<4x128x128xf32, #tpu.memory_space<vmem>>, vector<1x128x128xf32>
    %29 = vector.shape_cast %28 : vector<1x128x128xf32> to vector<128x128xf32>
    %cst_17 = arith.constant dense<0.000000e+00> : vector<256x128xf32>
    %30 = tpu.matmul %24, %29, %cst_17 {dimension_numbers = #tpu.dot_dimension_numbers<[1], [0], [0], [1], [0, 0, 1, 1], [], []>} : vector<256x128xf32>, vector<128x128xf32>, vector<256x128xf32> -> vector<256x128xf32>
    %31 = arith.addf %27, %30 : vector<256x128xf32>
    %c0_18 = arith.constant 0 : index
    %c0_19 = arith.constant 0 : index
    %c0_20 = arith.constant 0 : index
    %32 = vector.load %arg5[%c0_18, %c0_19, %c0_20] : memref<4x64x128xf32, #tpu.memory_space<vmem>>, vector<1x64x128xf32>
    %33 = vector.shape_cast %32 : vector<1x64x128xf32> to vector<64x128xf32>
    %cst_21 = arith.constant dense<0.000000e+00> : vector<256x128xf32>
    %34 = tpu.matmul %3, %33, %cst_21 {dimension_numbers = #tpu.dot_dimension_numbers<[1], [0], [0], [1], [0, 0, 1, 1], [], []>} : vector<256x64xf32>, vector<64x128xf32>, vector<256x128xf32> -> vector<256x128xf32>
    %35 = arith.addf %31, %34 : vector<256x128xf32>
    %cst_22 = arith.constant dense<0.000000e+00> : vector<256x128xf32>
    %36 = tpu.matmul %35, %18, %cst_22 {dimension_numbers = #tpu.dot_dimension_numbers<[1], [0], [0], [1], [0, 0, 1, 1], [], []>} : vector<256x128xf32>, vector<128x128xf32>, vector<256x128xf32> -> vector<256x128xf32>
    %37 = math.tanh %35 : vector<256x128xf32>
    %38 = arith.negf %36 : vector<256x128xf32>
    %39 = math.exp %38 : vector<256x128xf32>
    %cst_23 = arith.constant 1.000000e+00 : f32
    %40 = vector.broadcast %cst_23 : f32 to vector<256x128xf32>
    %41 = arith.addf %40, %39 : vector<256x128xf32>
    %42 = arith.divf %40, %41 : vector<256x128xf32>
    %43 = arith.mulf %37, %42 : vector<256x128xf32>
    %c0_24 = arith.constant 0 : index
    %c0_25 = arith.constant 0 : index
    %c0_26 = arith.constant 0 : index
    %44 = vector.load %arg6[%c0_24, %c0_25, %c0_26] : memref<4x128x128xf32, #tpu.memory_space<vmem>>, vector<1x128x128xf32>
    %45 = vector.shape_cast %44 : vector<1x128x128xf32> to vector<128x128xf32>
    %cst_27 = arith.constant dense<0.000000e+00> : vector<256x128xf32>
    %46 = tpu.matmul %43, %45, %cst_27 {dimension_numbers = #tpu.dot_dimension_numbers<[1], [0], [0], [1], [0, 0, 1, 1], [], []>} : vector<256x128xf32>, vector<128x128xf32>, vector<256x128xf32> -> vector<256x128xf32>
    %47 = arith.addf %1, %46 : vector<256x128xf32>
    %c2_i32 = arith.constant 2 : i32
    %48 = vector.broadcast %c2_i32 : i32 to vector<256x256xi32>
    %49 = arith.cmpi eq, %6, %48 : vector<256x256xi32>
    %cst_28 = arith.constant 1.000000e+00 : f32
    %cst_29 = arith.constant 0.000000e+00 : f32
    %50 = vector.broadcast %cst_28 : f32 to vector<256x256xf32>
    %51 = vector.broadcast %cst_29 : f32 to vector<256x256xf32>
    %52 = arith.select %49, %50, %51 : vector<256x256xi1>, vector<256x256xf32>
    %cst_30 = arith.constant dense<0.000000e+00> : vector<256x128xf32>
    %53 = tpu.matmul %52, %47, %cst_30 {dimension_numbers = #tpu.dot_dimension_numbers<[1], [0], [0], [1], [0, 0, 1, 1], [], []>} : vector<256x256xf32>, vector<256x128xf32>, vector<256x128xf32> -> vector<256x128xf32>
    %c1 = arith.constant 1 : index
    %c0_31 = arith.constant 0 : index
    %c0_32 = arith.constant 0 : index
    %54 = vector.load %arg3[%c1, %c0_31, %c0_32] : memref<4x128x128xf32, #tpu.memory_space<vmem>>, vector<1x128x128xf32>
    %55 = vector.shape_cast %54 : vector<1x128x128xf32> to vector<128x128xf32>
    %cst_33 = arith.constant dense<0.000000e+00> : vector<256x128xf32>
    %56 = tpu.matmul %47, %55, %cst_33 {dimension_numbers = #tpu.dot_dimension_numbers<[1], [0], [0], [1], [0, 0, 1, 1], [], []>} : vector<256x128xf32>, vector<128x128xf32>, vector<256x128xf32> -> vector<256x128xf32>
    %c1_34 = arith.constant 1 : index
    %c0_35 = arith.constant 0 : index
    %c0_36 = arith.constant 0 : index
    %57 = vector.load %arg4[%c1_34, %c0_35, %c0_36] : memref<4x128x128xf32, #tpu.memory_space<vmem>>, vector<1x128x128xf32>
    %58 = vector.shape_cast %57 : vector<1x128x128xf32> to vector<128x128xf32>
    %cst_37 = arith.constant dense<0.000000e+00> : vector<256x128xf32>
    %59 = tpu.matmul %53, %58, %cst_37 {dimension_numbers = #tpu.dot_dimension_numbers<[1], [0], [0], [1], [0, 0, 1, 1], [], []>} : vector<256x128xf32>, vector<128x128xf32>, vector<256x128xf32> -> vector<256x128xf32>
    %60 = arith.addf %56, %59 : vector<256x128xf32>
    %c1_38 = arith.constant 1 : index
    %c0_39 = arith.constant 0 : index
    %c0_40 = arith.constant 0 : index
    %61 = vector.load %arg5[%c1_38, %c0_39, %c0_40] : memref<4x64x128xf32, #tpu.memory_space<vmem>>, vector<1x64x128xf32>
    %62 = vector.shape_cast %61 : vector<1x64x128xf32> to vector<64x128xf32>
    %cst_41 = arith.constant dense<0.000000e+00> : vector<256x128xf32>
    %63 = tpu.matmul %3, %62, %cst_41 {dimension_numbers = #tpu.dot_dimension_numbers<[1], [0], [0], [1], [0, 0, 1, 1], [], []>} : vector<256x64xf32>, vector<64x128xf32>, vector<256x128xf32> -> vector<256x128xf32>
    %64 = arith.addf %60, %63 : vector<256x128xf32>
    %cst_42 = arith.constant dense<0.000000e+00> : vector<256x128xf32>
    %65 = tpu.matmul %64, %18, %cst_42 {dimension_numbers = #tpu.dot_dimension_numbers<[1], [0], [0], [1], [0, 0, 1, 1], [], []>} : vector<256x128xf32>, vector<128x128xf32>, vector<256x128xf32> -> vector<256x128xf32>
    %66 = math.tanh %64 : vector<256x128xf32>
    %67 = arith.negf %65 : vector<256x128xf32>
    %68 = math.exp %67 : vector<256x128xf32>
    %cst_43 = arith.constant 1.000000e+00 : f32
    %69 = vector.broadcast %cst_43 : f32 to vector<256x128xf32>
    %70 = arith.addf %69, %68 : vector<256x128xf32>
    %71 = arith.divf %69, %70 : vector<256x128xf32>
    %72 = arith.mulf %66, %71 : vector<256x128xf32>
    %c1_44 = arith.constant 1 : index
    %c0_45 = arith.constant 0 : index
    %c0_46 = arith.constant 0 : index
    %73 = vector.load %arg6[%c1_44, %c0_45, %c0_46] : memref<4x128x128xf32, #tpu.memory_space<vmem>>, vector<1x128x128xf32>
    %74 = vector.shape_cast %73 : vector<1x128x128xf32> to vector<128x128xf32>
    %cst_47 = arith.constant dense<0.000000e+00> : vector<256x128xf32>
    %75 = tpu.matmul %72, %74, %cst_47 {dimension_numbers = #tpu.dot_dimension_numbers<[1], [0], [0], [1], [0, 0, 1, 1], [], []>} : vector<256x128xf32>, vector<128x128xf32>, vector<256x128xf32> -> vector<256x128xf32>
    %76 = arith.addf %47, %75 : vector<256x128xf32>
    %c4_i32 = arith.constant 4 : i32
    %77 = vector.broadcast %c4_i32 : i32 to vector<256x256xi32>
    %78 = arith.cmpi eq, %6, %77 : vector<256x256xi32>
    %cst_48 = arith.constant 1.000000e+00 : f32
    %cst_49 = arith.constant 0.000000e+00 : f32
    %79 = vector.broadcast %cst_48 : f32 to vector<256x256xf32>
    %80 = vector.broadcast %cst_49 : f32 to vector<256x256xf32>
    %81 = arith.select %78, %79, %80 : vector<256x256xi1>, vector<256x256xf32>
    %cst_50 = arith.constant dense<0.000000e+00> : vector<256x128xf32>
    %82 = tpu.matmul %81, %76, %cst_50 {dimension_numbers = #tpu.dot_dimension_numbers<[1], [0], [0], [1], [0, 0, 1, 1], [], []>} : vector<256x256xf32>, vector<256x128xf32>, vector<256x128xf32> -> vector<256x128xf32>
    %c2 = arith.constant 2 : index
    %c0_51 = arith.constant 0 : index
    %c0_52 = arith.constant 0 : index
    %83 = vector.load %arg3[%c2, %c0_51, %c0_52] : memref<4x128x128xf32, #tpu.memory_space<vmem>>, vector<1x128x128xf32>
    %84 = vector.shape_cast %83 : vector<1x128x128xf32> to vector<128x128xf32>
    %cst_53 = arith.constant dense<0.000000e+00> : vector<256x128xf32>
    %85 = tpu.matmul %76, %84, %cst_53 {dimension_numbers = #tpu.dot_dimension_numbers<[1], [0], [0], [1], [0, 0, 1, 1], [], []>} : vector<256x128xf32>, vector<128x128xf32>, vector<256x128xf32> -> vector<256x128xf32>
    %c2_54 = arith.constant 2 : index
    %c0_55 = arith.constant 0 : index
    %c0_56 = arith.constant 0 : index
    %86 = vector.load %arg4[%c2_54, %c0_55, %c0_56] : memref<4x128x128xf32, #tpu.memory_space<vmem>>, vector<1x128x128xf32>
    %87 = vector.shape_cast %86 : vector<1x128x128xf32> to vector<128x128xf32>
    %cst_57 = arith.constant dense<0.000000e+00> : vector<256x128xf32>
    %88 = tpu.matmul %82, %87, %cst_57 {dimension_numbers = #tpu.dot_dimension_numbers<[1], [0], [0], [1], [0, 0, 1, 1], [], []>} : vector<256x128xf32>, vector<128x128xf32>, vector<256x128xf32> -> vector<256x128xf32>
    %89 = arith.addf %85, %88 : vector<256x128xf32>
    %c2_58 = arith.constant 2 : index
    %c0_59 = arith.constant 0 : index
    %c0_60 = arith.constant 0 : index
    %90 = vector.load %arg5[%c2_58, %c0_59, %c0_60] : memref<4x64x128xf32, #tpu.memory_space<vmem>>, vector<1x64x128xf32>
    %91 = vector.shape_cast %90 : vector<1x64x128xf32> to vector<64x128xf32>
    %cst_61 = arith.constant dense<0.000000e+00> : vector<256x128xf32>
    %92 = tpu.matmul %3, %91, %cst_61 {dimension_numbers = #tpu.dot_dimension_numbers<[1], [0], [0], [1], [0, 0, 1, 1], [], []>} : vector<256x64xf32>, vector<64x128xf32>, vector<256x128xf32> -> vector<256x128xf32>
    %93 = arith.addf %89, %92 : vector<256x128xf32>
    %cst_62 = arith.constant dense<0.000000e+00> : vector<256x128xf32>
    %94 = tpu.matmul %93, %18, %cst_62 {dimension_numbers = #tpu.dot_dimension_numbers<[1], [0], [0], [1], [0, 0, 1, 1], [], []>} : vector<256x128xf32>, vector<128x128xf32>, vector<256x128xf32> -> vector<256x128xf32>
    %95 = math.tanh %93 : vector<256x128xf32>
    %96 = arith.negf %94 : vector<256x128xf32>
    %97 = math.exp %96 : vector<256x128xf32>
    %cst_63 = arith.constant 1.000000e+00 : f32
    %98 = vector.broadcast %cst_63 : f32 to vector<256x128xf32>
    %99 = arith.addf %98, %97 : vector<256x128xf32>
    %100 = arith.divf %98, %99 : vector<256x128xf32>
    %101 = arith.mulf %95, %100 : vector<256x128xf32>
    %c2_64 = arith.constant 2 : index
    %c0_65 = arith.constant 0 : index
    %c0_66 = arith.constant 0 : index
    %102 = vector.load %arg6[%c2_64, %c0_65, %c0_66] : memref<4x128x128xf32, #tpu.memory_space<vmem>>, vector<1x128x128xf32>
    %103 = vector.shape_cast %102 : vector<1x128x128xf32> to vector<128x128xf32>
    %cst_67 = arith.constant dense<0.000000e+00> : vector<256x128xf32>
    %104 = tpu.matmul %101, %103, %cst_67 {dimension_numbers = #tpu.dot_dimension_numbers<[1], [0], [0], [1], [0, 0, 1, 1], [], []>} : vector<256x128xf32>, vector<128x128xf32>, vector<256x128xf32> -> vector<256x128xf32>
    %105 = arith.addf %76, %104 : vector<256x128xf32>
    %c8_i32 = arith.constant 8 : i32
    %106 = vector.broadcast %c8_i32 : i32 to vector<256x256xi32>
    %107 = arith.cmpi eq, %6, %106 : vector<256x256xi32>
    %cst_68 = arith.constant 1.000000e+00 : f32
    %cst_69 = arith.constant 0.000000e+00 : f32
    %108 = vector.broadcast %cst_68 : f32 to vector<256x256xf32>
    %109 = vector.broadcast %cst_69 : f32 to vector<256x256xf32>
    %110 = arith.select %107, %108, %109 : vector<256x256xi1>, vector<256x256xf32>
    %cst_70 = arith.constant dense<0.000000e+00> : vector<256x128xf32>
    %111 = tpu.matmul %110, %105, %cst_70 {dimension_numbers = #tpu.dot_dimension_numbers<[1], [0], [0], [1], [0, 0, 1, 1], [], []>} : vector<256x256xf32>, vector<256x128xf32>, vector<256x128xf32> -> vector<256x128xf32>
    %c3 = arith.constant 3 : index
    %c0_71 = arith.constant 0 : index
    %c0_72 = arith.constant 0 : index
    %112 = vector.load %arg3[%c3, %c0_71, %c0_72] : memref<4x128x128xf32, #tpu.memory_space<vmem>>, vector<1x128x128xf32>
    %113 = vector.shape_cast %112 : vector<1x128x128xf32> to vector<128x128xf32>
    %cst_73 = arith.constant dense<0.000000e+00> : vector<256x128xf32>
    %114 = tpu.matmul %105, %113, %cst_73 {dimension_numbers = #tpu.dot_dimension_numbers<[1], [0], [0], [1], [0, 0, 1, 1], [], []>} : vector<256x128xf32>, vector<128x128xf32>, vector<256x128xf32> -> vector<256x128xf32>
    %c3_74 = arith.constant 3 : index
    %c0_75 = arith.constant 0 : index
    %c0_76 = arith.constant 0 : index
    %115 = vector.load %arg4[%c3_74, %c0_75, %c0_76] : memref<4x128x128xf32, #tpu.memory_space<vmem>>, vector<1x128x128xf32>
    %116 = vector.shape_cast %115 : vector<1x128x128xf32> to vector<128x128xf32>
    %cst_77 = arith.constant dense<0.000000e+00> : vector<256x128xf32>
    %117 = tpu.matmul %111, %116, %cst_77 {dimension_numbers = #tpu.dot_dimension_numbers<[1], [0], [0], [1], [0, 0, 1, 1], [], []>} : vector<256x128xf32>, vector<128x128xf32>, vector<256x128xf32> -> vector<256x128xf32>
    %118 = arith.addf %114, %117 : vector<256x128xf32>
    %c3_78 = arith.constant 3 : index
    %c0_79 = arith.constant 0 : index
    %c0_80 = arith.constant 0 : index
    %119 = vector.load %arg5[%c3_78, %c0_79, %c0_80] : memref<4x64x128xf32, #tpu.memory_space<vmem>>, vector<1x64x128xf32>
    %120 = vector.shape_cast %119 : vector<1x64x128xf32> to vector<64x128xf32>
    %cst_81 = arith.constant dense<0.000000e+00> : vector<256x128xf32>
    %121 = tpu.matmul %3, %120, %cst_81 {dimension_numbers = #tpu.dot_dimension_numbers<[1], [0], [0], [1], [0, 0, 1, 1], [], []>} : vector<256x64xf32>, vector<64x128xf32>, vector<256x128xf32> -> vector<256x128xf32>
    %122 = arith.addf %118, %121 : vector<256x128xf32>
    %cst_82 = arith.constant dense<0.000000e+00> : vector<256x128xf32>
    %123 = tpu.matmul %122, %18, %cst_82 {dimension_numbers = #tpu.dot_dimension_numbers<[1], [0], [0], [1], [0, 0, 1, 1], [], []>} : vector<256x128xf32>, vector<128x128xf32>, vector<256x128xf32> -> vector<256x128xf32>
    %124 = math.tanh %122 : vector<256x128xf32>
    %125 = arith.negf %123 : vector<256x128xf32>
    %126 = math.exp %125 : vector<256x128xf32>
    %cst_83 = arith.constant 1.000000e+00 : f32
    %127 = vector.broadcast %cst_83 : f32 to vector<256x128xf32>
    %128 = arith.addf %127, %126 : vector<256x128xf32>
    %129 = arith.divf %127, %128 : vector<256x128xf32>
    %130 = arith.mulf %124, %129 : vector<256x128xf32>
    %c3_84 = arith.constant 3 : index
    %c0_85 = arith.constant 0 : index
    %c0_86 = arith.constant 0 : index
    %131 = vector.load %arg6[%c3_84, %c0_85, %c0_86] : memref<4x128x128xf32, #tpu.memory_space<vmem>>, vector<1x128x128xf32>
    %132 = vector.shape_cast %131 : vector<1x128x128xf32> to vector<128x128xf32>
    %cst_87 = arith.constant dense<0.000000e+00> : vector<256x128xf32>
    %133 = tpu.matmul %130, %132, %cst_87 {dimension_numbers = #tpu.dot_dimension_numbers<[1], [0], [0], [1], [0, 0, 1, 1], [], []>} : vector<256x128xf32>, vector<128x128xf32>, vector<256x128xf32> -> vector<256x128xf32>
    %134 = arith.addf %105, %133 : vector<256x128xf32>
    %cst_88 = arith.constant 0.000000e+00 : f32
    %135 = vector.broadcast %cst_88 : f32 to vector<256x128xf32>
    %136 = arith.maximumf %134, %135 : vector<256x128xf32>
    %c0_89 = arith.constant 0 : index
    %c0_90 = arith.constant 0 : index
    %137 = vector.load %arg7[%c0_89, %c0_90] : memref<128x64xf32, #tpu.memory_space<vmem>>, vector<128x64xf32>
    %cst_91 = arith.constant dense<0.000000e+00> : vector<256x64xf32>
    %138 = tpu.matmul %136, %137, %cst_91 {dimension_numbers = #tpu.dot_dimension_numbers<[1], [0], [0], [1], [0, 0, 1, 1], [], []>} : vector<256x128xf32>, vector<128x64xf32>, vector<256x64xf32> -> vector<256x64xf32>
    %c0_92 = arith.constant 0 : index
    %c0_93 = arith.constant 0 : index
    %139 = vector.load %arg8[%c0_92, %c0_93] : memref<1x64xf32, #tpu.memory_space<vmem>>, vector<1x64xf32>
    %140 = vector.broadcast %139 : vector<1x64xf32> to vector<256x64xf32>
    %141 = arith.addf %138, %140 : vector<256x64xf32>
    %cst_94 = arith.constant 0.000000e+00 : f32
    %142 = vector.broadcast %cst_94 : f32 to vector<256x64xf32>
    %143 = arith.maximumf %141, %142 : vector<256x64xf32>
    %c0_95 = arith.constant 0 : index
    %c0_96 = arith.constant 0 : index
    %144 = vector.load %arg9[%c0_95, %c0_96] : memref<64x256xf32, #tpu.memory_space<vmem>>, vector<64x256xf32>
    %cst_97 = arith.constant dense<0.000000e+00> : vector<256x256xf32>
    %145 = tpu.matmul %143, %144, %cst_97 {dimension_numbers = #tpu.dot_dimension_numbers<[1], [0], [0], [1], [0, 0, 1, 1], [], []>} : vector<256x64xf32>, vector<64x256xf32>, vector<256x256xf32> -> vector<256x256xf32>
    %c0_98 = arith.constant 0 : index
    %c0_99 = arith.constant 0 : index
    %146 = vector.load %arg10[%c0_98, %c0_99] : memref<1x256xf32, #tpu.memory_space<vmem>>, vector<1x256xf32>
    %147 = vector.broadcast %146 : vector<1x256xf32> to vector<256x256xf32>
    %148 = arith.addf %145, %147 : vector<256x256xf32>
    %c0_100 = arith.constant 0 : index
    %c0_101 = arith.constant 0 : index
    %c0_102 = arith.constant 0 : index
    %149 = vector.load %arg11[%c0_100, %c0_101, %c0_102] : memref<1x256x256xf32, #tpu.memory_space<vmem>>, vector<1x256x256xf32>
    %150 = vector.shape_cast %149 : vector<1x256x256xf32> to vector<256x256xf32>
    %151 = vector.shape_cast %148 : vector<256x256xf32> to vector<1x256x256xf32>
    tpu.vector_store %arg11[%c0_100, %c0_101, %c0_102], %151 {strides = array<i32>} : memref<1x256x256xf32, #tpu.memory_space<vmem>>, vector<1x256x256xf32>,
    return
  }
  func.func @transform_0(%arg0: i32) -> (i32, i32, i32) {
    %c0_i32 = arith.constant 0 : i32
    %c0_i32_0 = arith.constant 0 : i32
    %c0_i32_1 = arith.constant 0 : i32
    return %arg0, %c0_i32, %c0_i32_0 : i32, i32, i32
  }
  func.func @transform_1(%arg0: i32) -> (i32, i32, i32) {
    %c0_i32 = arith.constant 0 : i32
    %c0_i32_0 = arith.constant 0 : i32
    %c0_i32_1 = arith.constant 0 : i32
    return %arg0, %c0_i32, %c0_i32_0 : i32, i32, i32
  }
  func.func @transform_2(%arg0: i32) -> (i32, i32, i32) {
    %c0_i32 = arith.constant 0 : i32
    %c0_i32_0 = arith.constant 0 : i32
    %c0_i32_1 = arith.constant 0 : i32
    %c0_i32_2 = arith.constant 0 : i32
    return %c0_i32, %c0_i32_0, %c0_i32_1 : i32, i32, i32
  }
  func.func @transform_3(%arg0: i32) -> (i32, i32, i32) {
    %c0_i32 = arith.constant 0 : i32
    %c0_i32_0 = arith.constant 0 : i32
    %c0_i32_1 = arith.constant 0 : i32
    %c0_i32_2 = arith.constant 0 : i32
    return %c0_i32, %c0_i32_0, %c0_i32_1 : i32, i32, i32
  }
  func.func @transform_4(%arg0: i32) -> (i32, i32, i32) {
    %c0_i32 = arith.constant 0 : i32
    %c0_i32_0 = arith.constant 0 : i32
    %c0_i32_1 = arith.constant 0 : i32
    %c0_i32_2 = arith.constant 0 : i32
    return %c0_i32, %c0_i32_0, %c0_i32_1 : i32, i32, i32
  }
  func.func @transform_5(%arg0: i32) -> (i32, i32, i32) {
    %c0_i32 = arith.constant 0 : i32
    %c0_i32_0 = arith.constant 0 : i32
    %c0_i32_1 = arith.constant 0 : i32
    %c0_i32_2 = arith.constant 0 : i32
    return %c0_i32, %c0_i32_0, %c0_i32_1 : i32, i32, i32
  }
  func.func @transform_6(%arg0: i32) -> (i32, i32) {
    %c0_i32 = arith.constant 0 : i32
    %c0_i32_0 = arith.constant 0 : i32
    %c0_i32_1 = arith.constant 0 : i32
    return %c0_i32, %c0_i32_0 : i32, i32
  }
  func.func @transform_7(%arg0: i32) -> (i32, i32) {
    %c0_i32 = arith.constant 0 : i32
    %c0_i32_0 = arith.constant 0 : i32
    %c0_i32_1 = arith.constant 0 : i32
    return %c0_i32, %c0_i32_0 : i32, i32
  }
  func.func @transform_8(%arg0: i32) -> (i32, i32) {
    %c0_i32 = arith.constant 0 : i32
    %c0_i32_0 = arith.constant 0 : i32
    %c0_i32_1 = arith.constant 0 : i32
    return %c0_i32, %c0_i32_0 : i32, i32
  }
  func.func @transform_9(%arg0: i32) -> (i32, i32) {
    %c0_i32 = arith.constant 0 : i32
    %c0_i32_0 = arith.constant 0 : i32
    %c0_i32_1 = arith.constant 0 : i32
    return %c0_i32, %c0_i32_0 : i32, i32
  }
  func.func @transform_10(%arg0: i32) -> (i32, i32, i32) {
    %c0_i32 = arith.constant 0 : i32
    %c0_i32_0 = arith.constant 0 : i32
    %c0_i32_1 = arith.constant 0 : i32
    return %arg0, %c0_i32, %c0_i32_0 : i32, i32, i32
  }
}

</mosaic_0001>

<bundles_post_ra>
// kernel: mfcc_inverter_forward.1
= control target key start
LH: loop header
LB: loop body
LE: loop exit
PB: predicated region body
PF: predicated region fallthrough
CT: control target
= control target key end

     0   :  { %s14311_s13 = smov 0   ;;  %s18071_s0 = inlined_call_operand.vmem [shape: f32[2,256,128], index: 0, kind: input, shape index: {}]   ;;  %s18072_s1 = inlined_call_operand.vmem [shape: f32[2,256,64], index: 1, kind: input, shape index: {}]   ;;  %s18073_s2 = inlined_call_operand.vmem [shape: f32[4,128,128], index: 2, kind: input, shape index: {}]   ;;  %s18074_s3 = inlined_call_operand.vmem [shape: f32[4,128,128], index: 3, kind: input, shape index: {}]   ;;  %s18075_s4 = inlined_call_operand.vmem [shape: f32[4,64,128], index: 4, kind: input, shape index: {}]   ;;  %s18076_s5 = inlined_call_operand.vmem [shape: f32[4,128,128], index: 5, kind: input, shape index: {}]   ;;  %s18077_s6 = inlined_call_operand.vmem [shape: f32[128,64], index: 6, kind: input, shape index: {}]   ;;  %s18078_s7 = inlined_call_operand.vmem [shape: f32[1,64], index: 7, kind: input, shape index: {}]   ;;  %s18079_s8 = inlined_call_operand.vmem [shape: f32[64,256], index: 8, kind: input, shape index: {}]   ;;  %s18080_s9 = inlined_call_operand.vmem [shape: f32[1,256], index: 9, kind: input, shape index: {}]   ;;  %s18081_s10 = inlined_call_operand.vmem [shape: f32[2,256,256], index: 10, kind: output, shape index: {}]  }
   0x1 LB: > { %s8973_s14 = sadd.s32 4294967295, %s14250_s13   ;;  %p8977_p0 = scmp.ge.s32.totalorder %s14250_s13, 1  ;;  %s14250_s13 = sphi %s14311_s13, %s20_s13  }
   0x2   : > { %p322_p1 = scmp.lt.s32.totalorder %s14250_s13, 3 }
   0x4   : > { %p323_p2 = pnand %p8977_p0, %p322_p1 }
   0x6   : > { %326 = sbr.rel (%p323_p2) target bundleno = 5124 (0x1404), region = 60 }
   0xd   : > { %p365_p3 = scmp.lt.s32.totalorder %s8973_s14, 1  ;;  %v18082_v0 = vmov 0.0|0.0   ;;  %v18104_v1 = vmov 0.0   ;;  %v444_v44 = vlaneseq  ;;  %v993_v55 = vld [vmem:[%s18074_s3] sm:$0xff]  ;;  %v994_v56 = vld [vmem:[%s18074_s3 + $0x8] sm:$0xff]  ;;  %v995_v57 = vld [vmem:[%s18074_s3 + $0x10] sm:$0xff] }
   0xe   : > { %12232 = vmatprep.subr.bf16.mxu0 %v18082_v0  ;;  %816 = vmatprep.mubr.f32.mxu0 %v18104_v1  ;;  %v12280_v60 = vpack.c.bf16 %v994_v56, %v993_v55  ;;  %v996_v61 = vld [vmem:[%s18074_s3 + $0x18] sm:$0xff]  ;;  %v997_v63 = vld [vmem:[%s18074_s3 + $0x20] sm:$0xff] }
   0xf   : > { %s18531_s14 = smov (!%p365_p3, %s8973_s14), 1  ;;  %v14464_v48 = vshrl.u32 %v444_v44, 7  ;;  %v14466_v49 = vand.u32 127, %v444_v44  ;;  %v12284_v62 = vpack.c.bf16 %v996_v61, %v995_v57  ;;  %v1006_v61 = vld [vmem:[%s18074_s3 + $0x68] sm:$0xff] }
  0x10   : > { %s9637_s15 = sshll.u32 %s18531_s14, 8  ;;  %12281 = vmatprep.subr.bf16.mxu1 %v12280_v60  ;;  %s9639_s28 = sshll.u32 %s18531_s14, 9 }
  0x11   : > { %s14329_s18 = scalar_lea.vmem %s18071_s0, %s9637_s15  ;;  %18241 = vst [vmem:[#allocation2_spill] sm:$0xff] %v14464_v48  ;;  %v14479_v53 = vsub.s32 %v14464_v48, %v14466_v49  ;;  %v14482_v54 = vadd.s32 8, %v14464_v48  ;;  %v14500_v59 = vadd.s32 16, %v14464_v48  ;;  %12283 = vmatpush3.bf16.msra.mxu1 %v12280_v60  ;;  %v14567_v56 = vadd.s32 48, %v14464_v48  ;;  %v1005_v60 = vld [vmem:[%s18074_s3 + $0x60] sm:$0xff]  ;;  %s15032_s21 = scalar_lea.vmem %s18072_s1, %s9637_s15 }
  0x12   : > { %v14332_v2 = vld [vmem:[%s14329_s18] sm:$0xff]  ;;  %v14335_v3 = vld [vmem:[%s14329_s18 + $0x8] sm:$0xff]  ;;  %v14338_v4 = vld [vmem:[%s14329_s18 + $0x10] sm:$0xff]  ;;  %12285 = vmatprep.subr.bf16.mxu1 %v12284_v62  ;;  %s17938_s30 = scalar_lea.vmem %s18081_s10, %s9639_s28 }
  0x13   : > { %v12233_v5 = vpack.c.bf16 %v14335_v3, %v14332_v2  ;;  %v14343_v6 = vld [vmem:[%s14329_s18 + $0x18] sm:$0xff]  ;;  %v14349_v8 = vld [vmem:[%s14329_s18 + $0x20] sm:$0xff]  ;;  %v14352_v9 = vld [vmem:[%s14329_s18 + $0x28] sm:$0xff]  ;;  %18242 = vst [vmem:[#allocation3_spill] sm:$0xff] %v14479_v53  ;;  %vm624_vm0 = vcmp.eq.s32.totalorder %v14479_v53, 1  ;;  %v14497_v58 = vsub.s32 %v14482_v54, %v14466_v49 }
  0x14   : > { %v12236_v7 = vpack.c.bf16 %v14343_v6, %v14338_v4  ;;  %v12239_v10 = vpack.c.bf16 %v14352_v9, %v14349_v8  ;;  %v14358_v11 = vld [vmem:[%s14329_s18 + $0x30] sm:$0xff]  ;;  %v14361_v12 = vld [vmem:[%s14329_s18 + $0x38] sm:$0xff]  ;;  %v14367_v14 = vld [vmem:[%s14329_s18 + $0x40] sm:$0xff] }
  0x15   : > { %12234 = vmatpush1.bf16.msra.mxu0 %v12233_v5  ;;  %v12242_v13 = vpack.c.bf16 %v14361_v12, %v14358_v11  ;;  %v14370_v15 = vld [vmem:[%s14329_s18 + $0x48] sm:$0xff]  ;;  %v14376_v17 = vld [vmem:[%s14329_s18 + $0x50] sm:$0xff]  ;;  %v14379_v18 = vld [vmem:[%s14329_s18 + $0x58] sm:$0xff]  ;;  %18243 = vst [vmem:[#allocation4_spill] sm:$0xff] %v14497_v58  ;;  %vm626_vm1 = vcmp.eq.s32.totalorder %v14497_v58, 1  ;;  %12287 = vmatpush3.bf16.msra.mxu1 %v12284_v62  ;;  %v14580_v62 = vsub.s32 %v14567_v56, %v14466_v49  ;;  %v470_v58 = vadd.s32 200, %v14464_v48 }
  0x16   : > { %12235 = vmatprep.subr.bf16.mxu0 %v18082_v0  ;;  %v12245_v16 = vpack.c.bf16 %v14370_v15, %v14367_v14  ;;  %v12248_v19 = vpack.c.bf16 %v14379_v18, %v14376_v17  ;;  %v14385_v20 = vld [vmem:[%s14329_s18 + $0x60] sm:$0xff]  ;;  %v14388_v21 = vld [vmem:[%s14329_s18 + $0x68] sm:$0xff]  ;;  %v14394_v23 = vld [vmem:[%s14329_s18 + $0x70] sm:$0xff] }
  0x17   : > { %v12251_v22 = vpack.c.bf16 %v14388_v21, %v14385_v20  ;;  %v14397_v24 = vld [vmem:[%s14329_s18 + $0x78] sm:$0xff]  ;;  %v14403_v26 = vld [vmem:[%s14329_s18 + $0x80] sm:$0xff]  ;;  %v14406_v27 = vld [vmem:[%s14329_s18 + $0x88] sm:$0xff]  ;;  %18248 = vst [vmem:[#allocation9_spill] sm:$0xff] %v14580_v62  ;;  %vm636_vm6 = vcmp.eq.s32.totalorder %v14580_v62, 1 }
  0x18   : > { %v12254_v25 = vpack.c.bf16 %v14397_v24, %v14394_v23  ;;  %v12257_v28 = vpack.c.bf16 %v14406_v27, %v14403_v26  ;;  %v14412_v29 = vld [vmem:[%s14329_s18 + $0x90] sm:$0xff]  ;;  %v14415_v30 = vld [vmem:[%s14329_s18 + $0x98] sm:$0xff]  ;;  %v14421_v32 = vld [vmem:[%s14329_s18 + $0xa0] sm:$0xff] }
  0x19   : > { %12237 = vmatpush1.bf16.msra.mxu0 %v12236_v7  ;;  %v12260_v31 = vpack.c.bf16 %v14415_v30, %v14412_v29  ;;  %v14424_v33 = vld [vmem:[%s14329_s18 + $0xa8] sm:$0xff]  ;;  %v14430_v35 = vld [vmem:[%s14329_s18 + $0xb0] sm:$0xff]  ;;  %v14433_v36 = vld [vmem:[%s14329_s18 + $0xb8] sm:$0xff]  ;;  %v18136_v7 = vmov 1.0  }
  0x1a   : > { %12238 = vmatprep.subr.bf16.mxu0 %v18082_v0  ;;  %v12263_v34 = vpack.c.bf16 %v14424_v33, %v14421_v32  ;;  %v12266_v37 = vpack.c.bf16 %v14433_v36, %v14430_v35  ;;  %v14439_v38 = vld [vmem:[%s14329_s18 + $0xc0] sm:$0xff]  ;;  %v14442_v39 = vld [vmem:[%s14329_s18 + $0xc8] sm:$0xff]  ;;  %v14448_v41 = vld [vmem:[%s14329_s18 + $0xd0] sm:$0xff] }
  0x1b   : > { %v12269_v40 = vpack.c.bf16 %v14442_v39, %v14439_v38  ;;  %v14451_v42 = vld [vmem:[%s14329_s18 + $0xd8] sm:$0xff]  ;;  %v14457_v45 = vld [vmem:[%s14329_s18 + $0xe0] sm:$0xff]  ;;  %v14460_v46 = vld [vmem:[%s14329_s18 + $0xe8] sm:$0xff] }
  0x1c   : > { %v12272_v43 = vpack.c.bf16 %v14451_v42, %v14448_v41  ;;  %v12275_v47 = vpack.c.bf16 %v14460_v46, %v14457_v45  ;;  %v14470_v50 = vld [vmem:[%s14329_s18 + $0xf0] sm:$0xff]  ;;  %v14473_v51 = vld [vmem:[%s14329_s18 + $0xf8] sm:$0xff]  ;;  %v998_v5 = vld [vmem:[%s18074_s3 + $0x28] sm:$0xff] }
  0x1d   : > { %12240 = vmatpush1.bf16.msra.mxu0 %v12239_v10  ;;  %v12278_v52 = vpack.c.bf16 %v14473_v51, %v14470_v50  ;;  %v14516_v10 = vsub.s32 %v14500_v59, %v14466_v49 }
  0x1e   : > { %12241 = vmatprep.subr.bf16.mxu0 %v18082_v0 }
  0x1f   : > { %18244 = vst [vmem:[#allocation5_spill] sm:$0xff] %v14516_v10  ;;  %vm628_vm2 = vcmp.eq.s32.totalorder %v14516_v10, 1 }
  0x21   : > { %12243 = vmatpush1.bf16.msra.mxu0 %v12242_v13  ;;  %v14519_v13 = vadd.s32 24, %v14464_v48 }
  0x22   : > { %12244 = vmatprep.subr.bf16.mxu0 %v18082_v0 }
  0x25   : > { %12246 = vmatpush1.bf16.msra.mxu0 %v12245_v16  ;;  %v12288_v16 = vpack.c.bf16 %v998_v5, %v997_v63  ;;  %v14583_v63 = vadd.s32 56, %v14464_v48  ;;  %v12304_v5 = vpack.c.bf16 %v1006_v61, %v1005_v60  ;;  %v14643_v61 = vadd.s32 104, %v14464_v48 }
  0x26   : > { %12247 = vmatprep.subr.bf16.mxu0 %v18082_v0 }
  0x27   : > { %12289 = vmatprep.subr.bf16.mxu1 %v12288_v16 }
  0x28   : > { %12291 = vmatpush3.bf16.msra.mxu1 %v12288_v16  ;;  %v14590_v16 = vsub.s32 %v14583_v63, %v14466_v49 }
  0x29   : > { %12249 = vmatpush1.bf16.msra.mxu0 %v12248_v19  ;;  %v999_v19 = vld [vmem:[%s18074_s3 + $0x30] sm:$0xff] }
  0x2a   : > { %12250 = vmatprep.subr.bf16.mxu0 %v18082_v0  ;;  %18249 = vst [vmem:[#allocation10_spill] sm:$0xff] %v14590_v16  ;;  %vm638_vm7 = vcmp.eq.s32.totalorder %v14590_v16, 1  ;;  %v462_v16 = vadd.s32 136, %v14464_v48 }
  0x2d   : > { %12252 = vmatpush1.bf16.msra.mxu0 %v12251_v22  ;;  %v1000_v22 = vld [vmem:[%s18074_s3 + $0x38] sm:$0xff] }
  0x2e   : > { %12253 = vmatprep.subr.bf16.mxu0 %v18082_v0 }
  0x31   : > { %12255 = vmatpush1.bf16.msra.mxu0 %v12254_v25  ;;  %v14532_v25 = vsub.s32 %v14519_v13, %v14466_v49 }
  0x32   : > { %12256 = vmatprep.subr.bf16.mxu0 %v18082_v0 }
  0x33   : > { %18245 = vst [vmem:[#allocation6_spill] sm:$0xff] %v14532_v25  ;;  %vm630_vm3 = vcmp.eq.s32.totalorder %v14532_v25, 1 }
  0x35   : > { %12258 = vmatpush1.bf16.msra.mxu0 %v12257_v28  ;;  %v14535_v28 = vadd.s32 32, %v14464_v48 }
  0x36   : > { %12259 = vmatprep.subr.bf16.mxu0 %v18082_v0 }
  0x39   : > { %12261 = vmatpush1.bf16.msra.mxu0 %v12260_v31  ;;  %v12292_v31 = vpack.c.bf16 %v1000_v22, %v999_v19  ;;  %v14593_v19 = vadd.s32 64, %v14464_v48 }
  0x3a   : > { %12262 = vmatprep.subr.bf16.mxu0 %v18082_v0 }
  0x3b   : > { %12293 = vmatprep.subr.bf16.mxu1 %v12292_v31  ;;  %v14600_v22 = vsub.s32 %v14593_v19, %v14466_v49 }
  0x3c   : > { %12295 = vmatpush3.bf16.msra.mxu1 %v12292_v31  ;;  %v14603_v31 = vadd.s32 72, %v14464_v48 }
  0x3d   : > { %12264 = vmatpush1.bf16.msra.mxu0 %v12263_v34  ;;  %v1001_v34 = vld [vmem:[%s18074_s3 + $0x40] sm:$0xff]  ;;  %18250 = vst [vmem:[#allocation11_spill] sm:$0xff] %v14600_v22  ;;  %vm640_vm8 = vcmp.eq.s32.totalorder %v14600_v22, 1 }
  0x3e   : > { %12265 = vmatprep.subr.bf16.mxu0 %v18082_v0 }
  0x41   : > { %12267 = vmatpush1.bf16.msra.mxu0 %v12266_v37  ;;  %v1002_v37 = vld [vmem:[%s18074_s3 + $0x48] sm:$0xff] }
  0x42   : > { %12268 = vmatprep.subr.bf16.mxu0 %v18082_v0  ;;  %v12296_v44 = vpack.c.bf16 %v1002_v37, %v1001_v34  ;;  %v14610_v34 = vsub.s32 %v14603_v31, %v14466_v49  ;;  %v14613_v37 = vadd.s32 80, %v14464_v48 }
  0x44   : > { %12297 = vmatprep.subr.bf16.mxu1 %v12296_v44  ;;  %18251 = vst [vmem:[#allocation12_spill] sm:$0xff] %v14610_v34  ;;  %vm642_vm9 = vcmp.eq.s32.totalorder %v14610_v34, 1  ;;  %v14667_v34 = vadd.s32 128, %v14466_v49 }
  0x45   : > { %12270 = vmatpush1.bf16.msra.mxu0 %v12269_v40  ;;  %v14548_v40 = vsub.s32 %v14535_v28, %v14466_v49  ;;  %12299 = vmatpush3.bf16.msra.mxu1 %v12296_v44  ;;  %v14620_v44 = vsub.s32 %v14613_v37, %v14466_v49 }
  0x46   : > { %12271 = vmatprep.subr.bf16.mxu0 %v18082_v0 }
  0x47   : > { %18246 = vst [vmem:[#allocation7_spill] sm:$0xff] %v14548_v40  ;;  %vm632_vm4 = vcmp.eq.s32.totalorder %v14548_v40, 1  ;;  %18252 = vst [vmem:[#allocation13_spill] sm:$0xff] %v14620_v44  ;;  %vm644_vm10 = vcmp.eq.s32.totalorder %v14620_v44, 1  ;;  %v14663_v44 = vadd.s32 120, %v14464_v48 }
  0x49   : > { %12273 = vmatpush1.bf16.msra.mxu0 %v12272_v43  ;;  %v14551_v43 = vadd.s32 40, %v14464_v48 }
  0x4a   : > { %12274 = vmatprep.subr.bf16.mxu0 %v18082_v0 }
  0x4b   : > { %v14564_v55 = vsub.s32 %v14551_v43, %v14466_v49 }
  0x4d   : > { %12276 = vmatpush1.bf16.msra.mxu0 %v12275_v47  ;;  %v1003_v47 = vld [vmem:[%s18074_s3 + $0x50] sm:$0xff]  ;;  %18247 = vst [vmem:[#allocation8_spill] sm:$0xff] %v14564_v55  ;;  %vm634_vm5 = vcmp.eq.s32.totalorder %v14564_v55, 1  ;;  %v463_v55 = vadd.s32 144, %v14464_v48 }
  0x4e   : > { %12277 = vmatprep.subr.bf16.mxu0 %v18082_v0  ;;  %v14653_v0 = vadd.s32 112, %v14464_v48 }
  0x51   : > { %12279 = vmatpush1.bf16.msra.mxu0 %v12278_v52  ;;  %v1004_v52 = vld [vmem:[%s18074_s3 + $0x58] sm:$0xff] }
  0x52   : > { %v12300_v57 = vpack.c.bf16 %v1004_v52, %v1003_v47  ;;  %v14623_v47 = vadd.s32 88, %v14464_v48 }
  0x54   : > { %8984 = vmatmul.mubr.msk.f32.vlgmr.msra.gmra.mrb[0].mxu0 %vm624_vm0, %v18136_v7  ;;  %12301 = vmatprep.subr.bf16.mxu1 %v12300_v57  ;;  %v14630_v52 = vsub.s32 %v14623_v47, %v14466_v49 }
  0x55   : > { %821 = vmatprep.mubr.f32.mxu0 %v18104_v1  ;;  %12303 = vmatpush3.bf16.msra.mxu1 %v12300_v57  ;;  %v14633_v57 = vadd.s32 96, %v14464_v48 }
  0x56   : > { %12305 = vmatprep.subr.bf16.mxu1 %v12304_v5  ;;  %18253 = vst [vmem:[#allocation14_spill] sm:$0xff] %v14630_v52  ;;  %vm646_vm11 = vcmp.eq.s32.totalorder %v14630_v52, 1  ;;  %v14660_v52 = vsub.s32 %v14653_v0, %v14466_v49 }
  0x57   : > { %v14640_v60 = vsub.s32 %v14633_v57, %v14466_v49 }
  0x58   : > { %8985 = vmatmul.mubr.msk.f32.gmra.mrb[2].mxu0 %vm626_vm1, %v18136_v7  ;;  %18256 = vst [vmem:[#allocation17_spill] sm:$0xff] %v14660_v52  ;;  %vm652_vm14 = vcmp.eq.s32.totalorder %v14660_v52, 1  ;;  %v14688_v52 = vsub.s32 %v462_v16, %v14667_v34 }
  0x59   : > { %826 = vmatprep.mubr.f32.mxu0 %v18104_v1  ;;  %12307 = vmatpush3.bf16.msra.mxu1 %v12304_v5  ;;  %18254 = vst [vmem:[#allocation15_spill] sm:$0xff] %v14640_v60  ;;  %vm648_vm12 = vcmp.eq.s32.totalorder %v14640_v60, 1  ;;  %v14650_v5 = vsub.s32 %v14643_v61, %v14466_v49  ;;  %v461_v60 = vadd.s32 128, %v14464_v48 }
  0x5a   : > { %18260 = vst [vmem:[#allocation21_spill] sm:$0xff] %v14688_v52 }
  0x5b   : > { %18255 = vst [vmem:[#allocation16_spill] sm:$0xff] %v14650_v5  ;;  %vm650_vm13 = vcmp.eq.s32.totalorder %v14650_v5, 1  ;;  %v14674_v5 = vsub.s32 %v14663_v44, %v14466_v49  ;;  %v14677_v22 = vsub.s32 %v461_v60, %v14667_v34  ;;  %v14684_v62 = vsub.s32 %v461_v60, %v14466_v49 }
  0x5c   : > { %8986 = vmatmul.mubr.msk.f32.gmra.mrb[4].mxu0 %vm628_vm2, %v18136_v7  ;;  %vm659_vm2 = vcmp.eq.s32.totalorder %v14688_v52, 1  ;;  %v464_v60 = vadd.s32 152, %v14464_v48  ;;  %v466_v52 = vadd.s32 168, %v14464_v48 }
  0x5d   : > { %831 = vmatprep.mubr.f32.mxu0 %v18104_v1  ;;  %18257 = vst [vmem:[#allocation18_spill] sm:$0xff] %v14674_v5  ;;  %18258 = vst [vmem:[#allocation19_spill] sm:$0xff] %v14677_v22  ;;  %vm654_vm15 = vcmp.eq.s32.totalorder %v14674_v5, 1  ;;  %vm657_vm0 = vcmp.eq.s32.totalorder %v14677_v22, 1  ;;  %vm656_vm1 = vcmp.eq.s32.totalorder %v14684_v62, 1  ;;  %v465_v22 = vadd.s32 160, %v14464_v48 }
  0x5e   : > { %18259 = vst [vmem:[#allocation20_spill] sm:$0xff] %v14684_v62  ;;  %v14703_v16 = vsub.s32 %v464_v60, %v14667_v34  ;;  %v18263_v5 = vmov 0.0   ;;  %v14717_v60 = vsub.s32 %v466_v52, %v14667_v34  ;;  %v1007_v52 = vld [vmem:[%s18074_s3 + $0x70] sm:$0xff]  ;;  %v1008_v62 = vld [vmem:[%s18074_s3 + $0x78] sm:$0xff] }
  0x5f   : > { %v12308_v25 = vpack.c.bf16 %v1008_v62, %v1007_v52  ;;  %v14751_v62 = vsub.s32 %v470_v58, %v14667_v34  ;;  %v472_v52 = vadd.s32 216, %v14464_v48 }
  0x60   : > { %8987 = vmatmul.mubr.msk.f32.gmra.mrb[6].mxu0 %vm630_vm3, %v18136_v7  ;;  %18262 = vst [vmem:[#allocation23_spill] sm:$0xff] %v14703_v16  ;;  %18265 = vst [vmem:[#allocation25_spill] sm:$0xff] %v14717_v60 }
  0x61   : > { %836 = vmatprep.mubr.f32.mxu0 %v18104_v1  ;;  %12309 = vmatprep.subr.bf16.mxu1 %v12308_v25  ;;  %18269 = vst [vmem:[#allocation29_spill] sm:$0xff] %v14751_v62  ;;  %v14765_v58 = vsub.s32 %v472_v52, %v14667_v34 }
  0x62   : > { %12311 = vmatpush3.bf16.msra.mxu1 %v12308_v25 }
  0x63   : > { %18271 = vst [vmem:[#allocation31_spill] sm:$0xff] %v14765_v58 }
  0x64   : > { %8988 = vmatmul.mubr.msk.f32.gmra.mrb[8].mxu0 %vm632_vm4, %v18136_v7  ;;  %vm663_vm4 = vcmp.eq.s32.totalorder %v14703_v16, 1  ;;  %v468_v16 = vadd.s32 184, %v14464_v48 }
  0x65   : > { %841 = vmatprep.mubr.f32.mxu0 %v18104_v1 }
  0x66   : > { %v14737_v40 = vsub.s32 %v468_v16, %v14667_v34  ;;  %v471_v16 = vadd.s32 208, %v14464_v48 }
  0x68   : > { %8989 = vmatmul.mubr.msk.f32.gmra.mrb[10].mxu0 %vm634_vm5, %v18136_v7  ;;  %18267 = vst [vmem:[#allocation27_spill] sm:$0xff] %v14737_v40  ;;  %v14758_v25 = vsub.s32 %v471_v16, %v14667_v34 }
  0x69   : > { %846 = vmatprep.mubr.f32.mxu0 %v18104_v1 }
  0x6a   : > { %18270 = vst [vmem:[#allocation30_spill] sm:$0xff] %v14758_v25 }
  0x6c   : > { %8990 = vmatmul.mubr.msk.f32.gmra.mrb[12].mxu0 %vm636_vm6, %v18136_v7  ;;  %vm667_vm6 = vcmp.eq.s32.totalorder %v14717_v60, 1 }
  0x6d   : > { %851 = vmatprep.mubr.f32.mxu0 %v18104_v1 }
  0x70   : > { %8991 = vmatmul.mubr.msk.f32.gmra.mrb[14].mxu0 %vm638_vm7, %v18136_v7 }
  0x71   : > { %856 = vmatprep.mubr.f32.mxu0 %v18104_v1 }
  0x74   : > { %8992 = vmatmul.mubr.msk.f32.gmra.mrb[16].mxu0 %vm640_vm8, %v18136_v7  ;;  %vm671_vm8 = vcmp.eq.s32.totalorder %v14737_v40, 1 }
  0x75   : > { %861 = vmatprep.mubr.f32.mxu0 %v18104_v1 }
  0x78   : > { %8993 = vmatmul.mubr.msk.f32.gmra.mrb[18].mxu0 %vm642_vm9, %v18136_v7 }
  0x79   : > { %866 = vmatprep.mubr.f32.mxu0 %v18104_v1 }
  0x7c   : > { %8994 = vmatmul.mubr.msk.f32.gmra.mrb[20].mxu0 %vm644_vm10, %v18136_v7  ;;  %vm675_vm10 = vcmp.eq.s32.totalorder %v14751_v62, 1  ;;  %v474_v62 = vadd.s32 232, %v14464_v48 }
  0x7d   : > { %871 = vmatprep.mubr.f32.mxu0 %v18104_v1 }
  0x7e   : > { %v14779_v52 = vsub.s32 %v474_v62, %v14667_v34 }
  0x80   : > { %8995 = vmatmul.mubr.msk.f32.gmra.mrb[22].mxu0 %vm646_vm11, %v18136_v7  ;;  %vm677_vm11 = vcmp.eq.s32.totalorder %v14758_v25, 1  ;;  %18273 = vst [vmem:[#allocation33_spill] sm:$0xff] %v14779_v52  ;;  %v475_v25 = vadd.s32 240, %v14464_v48 }
  0x81   : > { %876 = vmatprep.mubr.f32.mxu0 %v18104_v1 }
  0x84   : > { %8996 = vmatmul.mubr.msk.f32.gmra.mrb[24].mxu0 %vm648_vm12, %v18136_v7  ;;  %vm679_vm12 = vcmp.eq.s32.totalorder %v14765_v58, 1  ;;  %v476_v58 = vadd.s32 248, %v14464_v48 }
  0x85   : > { %881 = vmatprep.mubr.f32.mxu0 %v18104_v1 }
  0x86   : > { %v14793_v62 = vsub.s32 %v476_v58, %v14667_v34 }
  0x88   : > { %8997 = vmatmul.mubr.msk.f32.gmra.mrb[26].mxu0 %vm650_vm13, %v18136_v7  ;;  %18275 = vst [vmem:[#allocation35_spill] sm:$0xff] %v14793_v62 }
  0x89   : > { %886 = vmatprep.mubr.f32.mxu0 %v18104_v1 }
  0x8c   : > { %8998 = vmatmul.mubr.msk.f32.gmra.mrb[28].mxu0 %vm652_vm14, %v18136_v7  ;;  %vm683_vm14 = vcmp.eq.s32.totalorder %v14779_v52, 1 }
  0x8d   : > { %891 = vmatprep.mubr.f32.mxu0 %v18104_v1  ;;  %v14696_v1 = vsub.s32 %v463_v55, %v14667_v34  ;;  %v14710_v55 = vsub.s32 %v465_v22, %v14667_v34 }
  0x8f   : > { %18261 = vst [vmem:[#allocation22_spill] sm:$0xff] %v14696_v1  ;;  %vm661_vm3 = vcmp.eq.s32.totalorder %v14696_v1, 1  ;;  %18264 = vst [vmem:[#allocation24_spill] sm:$0xff] %v14710_v55  ;;  %vm665_vm5 = vcmp.eq.s32.totalorder %v14710_v55, 1  ;;  %v467_v1 = vadd.s32 176, %v14464_v48 }
  0x90   : > { %8999 = vmatmul.mubr.msk.f32.gmra.mrb[30].mxu0 %vm654_vm15, %v18136_v7 }
  0x91   : > { %9000 = vmatprep.mubr.msk.f32.mxu0 %vm657_vm0, %v18136_v7  ;;  %v14724_v22 = vsub.s32 %v467_v1, %v14667_v34  ;;  %v469_v1 = vadd.s32 192, %v14464_v48  ;;  %vm687_vm0 = vcmp.eq.s32.totalorder %v14793_v62, 1  ;;  %v979_v62 = vld [vmem:[%s18073_s2 + $0x10] sm:$0xff] }
  0x93   : > { %18266 = vst [vmem:[#allocation26_spill] sm:$0xff] %v14724_v22  ;;  %vm669_vm7 = vcmp.eq.s32.totalorder %v14724_v22, 1  ;;  %v14744_v10 = vsub.s32 %v469_v1, %v14667_v34  ;;  %v473_v1 = vadd.s32 224, %v14464_v48 }
  0x94   : > { %9001 = vmatmul.mubr.msk.f32.gmra.mrb[32].mxu0 %vm656_vm1, %v18136_v7 }
  0x95   : > { %9002 = vmatprep.mubr.msk.f32.mxu0 %vm659_vm2, %v18136_v7  ;;  %18268 = vst [vmem:[#allocation28_spill] sm:$0xff] %v14744_v10  ;;  %vm673_vm9 = vcmp.eq.s32.totalorder %v14744_v10, 1  ;;  %v14772_v16 = vsub.s32 %v473_v1, %v14667_v34  ;;  %v14786_v1 = vsub.s32 %v475_v25, %v14667_v34  ;;  %v977_v25 = vld [vmem:[%s18073_s2] sm:$0xff]  ;;  %v978_v34 = vld [vmem:[%s18073_s2 + $0x8] sm:$0xff] }
  0x96   : > { %v12312_v58 = vpack.c.bf16 %v978_v34, %v977_v25  ;;  %v981_v10 = vld [vmem:[%s18073_s2 + $0x20] sm:$0xff]  ;;  %v982_v25 = vld [vmem:[%s18073_s2 + $0x28] sm:$0xff] }
  0x97   : > { %18272 = vst [vmem:[#allocation32_spill] sm:$0xff] %v14772_v16  ;;  %vm681_vm13 = vcmp.eq.s32.totalorder %v14772_v16, 1  ;;  %18274 = vst [vmem:[#allocation34_spill] sm:$0xff] %v14786_v1  ;;  %vm685_vm15 = vcmp.eq.s32.totalorder %v14786_v1, 1  ;;  %v12320_v40 = vpack.c.bf16 %v982_v25, %v981_v10  ;;  %v986_v10 = vld [vmem:[%s18073_s2 + $0x48] sm:$0xff] }
  0x98   : > { %902 = vmatmul.mubr.f32.gmra.mrb[34].mxu0 %v18263_v5  ;;  %12313 = vmatprep.subr.bf16.mxu1 %v12312_v58 }
  0x99   : > { %9003 = vmatprep.mubr.msk.f32.mxu0 %vm661_vm3, %v18136_v7  ;;  %vm559_vm3 = vcmp.eq.s32.totalorder %v14593_v19, %v14466_v49 }
  0x9c   : > { %907 = vmatmul.mubr.f32.gmra.mrb[36].mxu0 %v18263_v5 }
  0x9d   : > { %9004 = vmatprep.mubr.msk.f32.mxu0 %vm663_vm4, %v18136_v7 }
  0xa0   : > { %912 = vmatmul.mubr.f32.gmra.mrb[38].mxu0 %v18263_v5 }
  0xa1   : > { %9005 = vmatprep.mubr.msk.f32.mxu0 %vm665_vm5, %v18136_v7 }
  0xa4   : > { %917 = vmatmul.mubr.f32.gmra.mrb[40].mxu0 %v18263_v5 }
  0xa5   : > { %9006 = vmatprep.mubr.msk.f32.mxu0 %vm667_vm6, %v18136_v7 }
  0xa8   : > { %922 = vmatmul.mubr.f32.gmra.mrb[42].mxu0 %v18263_v5 }
  0xa9   : > { %9007 = vmatprep.mubr.msk.f32.mxu0 %vm669_vm7, %v18136_v7 }
  0xac   : > { %927 = vmatmul.mubr.f32.gmra.mrb[44].mxu0 %v18263_v5 }
  0xad   : > { %9008 = vmatprep.mubr.msk.f32.mxu0 %vm671_vm8, %v18136_v7 }
  0xb0   : > { %932 = vmatmul.mubr.f32.gmra.mrb[46].mxu0 %v18263_v5 }
  0xb1   : > { %9009 = vmatprep.mubr.msk.f32.mxu0 %vm673_vm9, %v18136_v7 }
  0xb4   : > { %937 = vmatmul.mubr.f32.gmra.mrb[48].mxu0 %v18263_v5 }
  0xb5   : > { %9010 = vmatprep.mubr.msk.f32.mxu0 %vm675_vm10, %v18136_v7 }
  0xb8   : > { %942 = vmatmul.mubr.f32.gmra.mrb[50].mxu0 %v18263_v5 }
  0xb9   : > { %9011 = vmatprep.mubr.msk.f32.mxu0 %vm677_vm11, %v18136_v7 }
  0xbc   : > { %947 = vmatmul.mubr.f32.gmra.mrb[52].mxu0 %v18263_v5 }
  0xbd   : > { %9012 = vmatprep.mubr.msk.f32.mxu0 %vm679_vm12, %v18136_v7 }
  0xc0   : > { %952 = vmatmul.mubr.f32.gmra.mrb[54].mxu0 %v18263_v5 }
  0xc1   : > { %9013 = vmatprep.mubr.msk.f32.mxu0 %vm681_vm13, %v18136_v7 }
  0xc4   : > { %957 = vmatmul.mubr.f32.gmra.mrb[56].mxu0 %v18263_v5 }
  0xc5   : > { %9014 = vmatprep.mubr.msk.f32.mxu0 %vm683_vm14, %v18136_v7 }
  0xc8   : > { %962 = vmatmul.mubr.f32.gmra.mrb[58].mxu0 %v18263_v5 }
  0xc9   : > { %9015 = vmatprep.mubr.msk.f32.mxu0 %vm685_vm15, %v18136_v7 }
  0xcc   : > { %967 = vmatmul.mubr.f32.gmra.mrb[60].mxu0 %v18263_v5 }
  0xcd   : > { %9016 = vmatprep.mubr.msk.f32.mxu0 %vm687_vm0, %v18136_v7  ;;  %v980_v7 = vld [vmem:[%s18073_s2 + $0x18] sm:$0xff] }
  0xce   : > { %v12316_v52 = vpack.c.bf16 %v980_v7, %v979_v62  ;;  %v984_v7 = vld [vmem:[%s18073_s2 + $0x38] sm:$0xff] }
  0xd0   : > { %972 = vmatmul.mubr.f32.gmra.mrb[62].mxu0 %v18263_v5 }
 0x127   : > { %v818_v48 = vpop.f32.mrb[0].mxu0 }
 0x128   : > { %v820_v1 = vpop.f32.mrb[1].mxu0  ;;  %10648 = vmatprep.mubr.f32.mxu1 %v818_v48  ;;  %v983_v48 = vld [vmem:[%s18073_s2 + $0x30] sm:$0xff] }
 0x129   : > { %v12324_v62 = vpack.c.bf16 %v984_v7, %v983_v48 }
 0x12b   : > { %v823_v16 = vpop.f32.mrb[2].mxu0 }
 0x12c   : > { %v825_v34 = vpop.f32.mrb[3].mxu0  ;;  %10649 = vmatmul.mubr.f32.vlgmr.msra.gmra.mrb[0].mxu1 %v823_v16  ;;  %v985_v16 = vld [vmem:[%s18073_s2 + $0x40] sm:$0xff] }
 0x12d   : > { %12315 = vmatpush3.bf16.msra.mxu1 %v12312_v58  ;;  %v12328_v25 = vpack.c.bf16 %v986_v10, %v985_v16 }
 0x12e   : > { %12317 = vmatprep.subr.bf16.mxu1 %v12316_v52 }
 0x12f   : > { %v828_v22 = vpop.f32.mrb[4].mxu0 }
 0x130   : > { %v830_v1 = vpop.f32.mrb[5].mxu0  ;;  %10651 = vmatprep.mubr.f32.mxu1 %v828_v22  ;;  %v987_v22 = vld [vmem:[%s18073_s2 + $0x50] sm:$0xff] }
 0x131   : > { %12319 = vmatpush3.bf16.msra.mxu1 %v12316_v52  ;;  %v988_v52 = vld [vmem:[%s18073_s2 + $0x58] sm:$0xff] }
 0x132   : > { %12321 = vmatprep.subr.bf16.mxu1 %v12320_v40  ;;  %v12332_v7 = vpack.c.bf16 %v988_v52, %v987_v22 }
 0x133   : > { %v833_v60 = vpop.f32.mrb[6].mxu0 }
 0x134   : > { %v835_v58 = vpop.f32.mrb[7].mxu0  ;;  %10652 = vmatmul.mubr.f32.gmra.mrb[2].mxu1 %v833_v60  ;;  %v990_v60 = vld [vmem:[%s18073_s2 + $0x68] sm:$0xff] }
 0x135   : > { %12323 = vmatpush3.bf16.msra.mxu1 %v12320_v40  ;;  %v989_v40 = vld [vmem:[%s18073_s2 + $0x60] sm:$0xff] }
 0x136   : > { %12325 = vmatprep.subr.bf16.mxu1 %v12324_v62  ;;  %v12336_v10 = vpack.c.bf16 %v990_v60, %v989_v40 }
 0x137   : > { %v838_v34 = vpop.f32.mrb[8].mxu0 }
 0x138   : > { %v840_v48 = vpop.f32.mrb[9].mxu0  ;;  %10654 = vmatprep.mubr.f32.mxu1 %v838_v34  ;;  %v992_v34 = vld [vmem:[%s18073_s2 + $0x78] sm:$0xff] }
 0x139   : > { %12327 = vmatpush3.bf16.msra.mxu1 %v12324_v62  ;;  %v991_v62 = vld [vmem:[%s18073_s2 + $0x70] sm:$0xff] }
 0x13a   : > { %12329 = vmatprep.subr.bf16.mxu1 %v12328_v25  ;;  %v12340_v52 = vpack.c.bf16 %v992_v34, %v991_v62 }
 0x13b   : > { %v843_v1 = vpop.f32.mrb[10].mxu0 }
 0x13c   : > { %v845_v16 = vpop.f32.mrb[11].mxu0  ;;  %10655 = vmatmul.mubr.f32.gmra.mrb[4].mxu1 %v843_v1  ;;  %v1460_v1 = vld [vmem:[%s18075_s4 + $0x8] sm:$0xff] }
 0x13d   : > { %12331 = vmatpush3.bf16.msra.mxu1 %v12328_v25  ;;  %v1459_v25 = vld [vmem:[%s18075_s4] sm:$0xff] }
 0x13e   : > { %12333 = vmatprep.subr.bf16.mxu1 %v12332_v7  ;;  %v14855_v60 = vpack.c.bf16 %v1460_v1, %v1459_v25 }
 0x13f   : > { %v848_v58 = vpop.f32.mrb[12].mxu0 }
 0x140   : > { %v850_v22 = vpop.f32.mrb[13].mxu0  ;;  %10657 = vmatprep.mubr.f32.mxu1 %v848_v58 }
 0x141   : > { %12335 = vmatpush3.bf16.msra.mxu1 %v12332_v7 }
 0x142   : > { %12337 = vmatprep.subr.bf16.mxu1 %v12336_v10 }
 0x143   : > { %v853_v48 = vpop.f32.mrb[14].mxu0 }
 0x144   : > { %v855_v40 = vpop.f32.mrb[15].mxu0  ;;  %10658 = vmatmul.mubr.f32.gmra.mrb[6].mxu1 %v853_v48 }
 0x145   : > { %12339 = vmatpush3.bf16.msra.mxu1 %v12336_v10 }
 0x146   : > { %12341 = vmatprep.subr.bf16.mxu1 %v12340_v52 }
 0x147   : > { %v858_v16 = vpop.f32.mrb[16].mxu0 }
 0x148   : > { %v860_v58 = vpop.f32.mrb[17].mxu0  ;;  %10660 = vmatprep.mubr.f32.mxu1 %v858_v16 }
 0x149   : > { %12343 = vmatpush3.bf16.msra.mxu1 %v12340_v52 }
 0x14a   : > { %12345 = vmatprep.subr.bf16.mxu1 %v14855_v60 }
 0x14b   : > { %v863_v7 = vpop.f32.mrb[18].mxu0 }
 0x14c   : > { %v865_v62 = vpop.f32.mrb[19].mxu0  ;;  %10661 = vmatmul.mubr.f32.gmra.mrb[8].mxu1 %v863_v7 }
 0x14f   : > { %v868_v34 = vpop.f32.mrb[20].mxu0 }
 0x150   : > { %v870_v22 = vpop.f32.mrb[21].mxu0  ;;  %10663 = vmatprep.mubr.f32.mxu1 %v868_v34 }
 0x153   : > { %v873_v53 = vpop.f32.mrb[22].mxu0 }
 0x154   : > { %v875_v55 = vpop.f32.mrb[23].mxu0  ;;  %10664 = vmatmul.mubr.f32.gmra.mrb[10].mxu1 %v873_v53 }
 0x157   : > { %v878_v48 = vpop.f32.mrb[24].mxu0 }
 0x158   : > { %v880_v10 = vpop.f32.mrb[25].mxu0  ;;  %10666 = vmatprep.mubr.f32.mxu1 %v878_v48 }
 0x15b   : > { %v883_v25 = vpop.f32.mrb[26].mxu0 }
 0x15c   : > { %v885_v1 = vpop.f32.mrb[27].mxu0  ;;  %10667 = vmatmul.mubr.f32.gmra.mrb[12].mxu1 %v883_v25 }
 0x15f   : > { %v888_v40 = vpop.f32.mrb[28].mxu0 }
 0x160   : > { %v890_v16 = vpop.f32.mrb[29].mxu0  ;;  %10669 = vmatprep.mubr.f32.mxu1 %v888_v40 }
 0x163   : > { %v893_v52 = vpop.f32.mrb[30].mxu0 }
 0x164   : > { %v895_v58 = vpop.f32.mrb[31].mxu0  ;;  %10670 = vmatmul.mubr.f32.gmra.mrb[14].mxu1 %v893_v52 }
 0x167   : > { %v898_v62 = vpop.f32.mrb[32].mxu0 }
 0x168   : > { %v900_v7 = vpop.f32.mrb[33].mxu0  ;;  %10672 = vmatprep.mubr.f32.mxu1 %v898_v62 }
 0x16b   : > { %v903_v22 = vpop.f32.mrb[34].mxu0 }
 0x16c   : > { %v905_v34 = vpop.f32.mrb[35].mxu0  ;;  %10673 = vmatmul.mubr.f32.gmra.mrb[16].mxu1 %v903_v22 }
 0x16f   : > { %v908_v55 = vpop.f32.mrb[36].mxu0 }
 0x170   : > { %v910_v53 = vpop.f32.mrb[37].mxu0  ;;  %10675 = vmatprep.mubr.f32.mxu1 %v908_v55 }
 0x173   : > { %v913_v10 = vpop.f32.mrb[38].mxu0 }
 0x174   : > { %v915_v48 = vpop.f32.mrb[39].mxu0  ;;  %10676 = vmatmul.mubr.f32.gmra.mrb[18].mxu1 %v913_v10 }
 0x177   : > { %v918_v1 = vpop.f32.mrb[40].mxu0 }
 0x178   : > { %v920_v25 = vpop.f32.mrb[41].mxu0  ;;  %10678 = vmatprep.mubr.f32.mxu1 %v918_v1 }
 0x17b   : > { %v923_v16 = vpop.f32.mrb[42].mxu0 }
 0x17c   : > { %v925_v40 = vpop.f32.mrb[43].mxu0  ;;  %10679 = vmatmul.mubr.f32.gmra.mrb[20].mxu1 %v923_v16 }
 0x17f   : > { %v928_v58 = vpop.f32.mrb[44].mxu0 }
 0x180   : > { %v930_v52 = vpop.f32.mrb[45].mxu0  ;;  %10681 = vmatprep.mubr.f32.mxu1 %v928_v58 }
 0x183   : > { %v933_v7 = vpop.f32.mrb[46].mxu0 }
 0x184   : > { %v935_v62 = vpop.f32.mrb[47].mxu0  ;;  %10682 = vmatmul.mubr.f32.gmra.mrb[22].mxu1 %v933_v7  ;;  %v14859_v7 = vadd.s32 64, %v14466_v49 }
 0x186   : > { %vm586_vm1 = vcmp.eq.s32.totalorder %v14859_v7, %v14613_v37  ;;  %vm587_vm2 = vcmp.eq.s32.totalorder %v14859_v7, %v14623_v47  ;;  %v18156_v37 = vmov 1.0|1.0   ;;  %vm588_vm14 = vcmp.eq.s32.totalorder %v14859_v7, %v14633_v57  ;;  %v1463_v47 = vld [vmem:[%s18075_s4 + $0x20] sm:$0xff] }
 0x187   : > { %v938_v34 = vpop.f32.mrb[48].mxu0  ;;  %vm14882_vm6 = vmpackc.low %vm587_vm2, %vm586_vm1  ;;  %vm589_vm15 = vcmp.eq.s32.totalorder %v14859_v7, %v14643_v61  ;;  %vm590_vm1 = vcmp.eq.s32.totalorder %v14859_v7, %v14653_v0  ;;  %vm591_vm2 = vcmp.eq.s32.totalorder %v14859_v7, %v14663_v44  ;;  %v18288_v61 = vmov 0  ;;  %v1466_v44 = vld [vmem:[%s18075_s4 + $0x38] sm:$0xff] }
 0x188   : > { %v940_v22 = vpop.f32.mrb[49].mxu0  ;;  %10684 = vmatprep.mubr.f32.mxu1 %v938_v34  ;;  %v544_v34 = vadd.s32 64, %v14482_v54  ;;  %v550_v54 = vadd.s32 64, %v14583_v63 }
 0x189   : > { %v545_v22 = vadd.s32 64, %v14500_v59  ;;  %v1461_v59 = vld [vmem:[%s18075_s4 + $0x10] sm:$0xff] }
 0x18a   : > { %vm560_vm4 = vcmp.eq.s32.totalorder %v544_v34, %v14466_v49  ;;  %vm566_vm13 = vcmp.eq.s32.totalorder %v550_v54, %v14466_v49  ;;  %v2304_v34 = vld [vmem:[%s18076_s5 + $0x10] sm:$0xff] }
 0x18b   : > { %v943_v53 = vpop.f32.mrb[50].mxu0  ;;  %vm561_vm5 = vcmp.eq.s32.totalorder %v545_v22, %v14466_v49  ;;  %vm14887_vm7 = vmpackc.low %vm560_vm4, %vm559_vm3  ;;  %v2308_v54 = vld [vmem:[%s18076_s5 + $0x30] sm:$0xff] }
 0x18c   : > { %v945_v55 = vpop.f32.mrb[51].mxu0  ;;  %10685 = vmatmul.mubr.f32.gmra.mrb[24].mxu1 %v943_v53  ;;  %v546_v53 = vadd.s32 64, %v14519_v13  ;;  %v1462_v13 = vld [vmem:[%s18075_s4 + $0x18] sm:$0xff]  ;;  %12361 = vmatprep.subr.msk.bf16.mxu0 %vm14887_vm7, %v18156_v37  ;;  %vm14939_vm4 = vmpackc.low %vm589_vm15, %vm588_vm14 }
 0x18d   : > { %v547_v55 = vadd.s32 64, %v14535_v28  ;;  %v12348_v63 = vpack.c.bf16 %v1462_v13, %v1461_v59  ;;  %12363 = vmatpush3.bf16.msk.msra.mxu0 %vm14887_vm7, %v18156_v37  ;;  %v2310_v13 = vld [vmem:[%s18076_s5 + $0x40] sm:$0xff] }
 0x18e   : > { %vm562_vm8 = vcmp.eq.s32.totalorder %v546_v53, %v14466_v49  ;;  %v2305_v53 = vld [vmem:[%s18076_s5 + $0x18] sm:$0xff] }
 0x18f   : > { %v948_v48 = vpop.f32.mrb[52].mxu0  ;;  %vm563_vm9 = vcmp.eq.s32.totalorder %v547_v55, %v14466_v49  ;;  %vm14898_vm12 = vmpackc.low %vm562_vm8, %vm561_vm5  ;;  %vm585_vm8 = vcmp.eq.s32.totalorder %v14859_v7, %v14603_v31  ;;  %v440_v31 = vld [vmem:[%s15032_s21 + $0xe0] sm:$0xff]  ;;  %v12396_v55 = vpack.c.bf16 %v2305_v53, %v2304_v34 }
 0x190   : > { %v950_v10 = vpop.f32.mrb[53].mxu0  ;;  %10687 = vmatprep.mubr.f32.mxu1 %v948_v48  ;;  %12365 = vmatprep.subr.msk.bf16.mxu0 %vm14898_vm12, %v18156_v37  ;;  %vm14952_vm5 = vmpackc.low %vm591_vm2, %vm590_vm1 }
 0x191   : > { %v548_v10 = vadd.s32 64, %v14551_v43  ;;  %v18276_v43 = vmov 0  ;;  %12367 = vmatpush3.bf16.msk.msra.mxu0 %vm14898_vm12, %v18156_v37 }
 0x192   : > { %v18277_v43 = vsel %vm14882_vm6, 4294967295, %v18276_v43 }
 0x193   : > { %v953_v25 = vpop.f32.mrb[54].mxu0  ;;  %18278 = vst [vmem:[#allocation36_spill] sm:$0xff] %v18277_v43  ;;  %vm564_vm10 = vcmp.eq.s32.totalorder %v548_v10, %v14466_v49  ;;  %v2307_v10 = vld [vmem:[%s18076_s5 + $0x28] sm:$0xff] }
 0x194   : > { %v955_v1 = vpop.f32.mrb[55].mxu0  ;;  %10688 = vmatmul.mubr.f32.gmra.mrb[26].mxu1 %v953_v25  ;;  %v549_v25 = vadd.s32 64, %v14567_v56  ;;  %v18279_v56 = vmov 0  ;;  %vm14916_vm0 = vmpackc.low %vm564_vm10, %vm563_vm9  ;;  %vm584_vm9 = vcmp.eq.s32.totalorder %v14859_v7, %v14593_v19  ;;  %v439_v19 = vld [vmem:[%s15032_s21 + $0xd8] sm:$0xff]  ;;  %v2302_v7 = vld [vmem:[%s18076_s5] sm:$0xff] }
 0x195   : > { %v18280_v56 = vsel %vm14887_vm7, 4294967295, %v18279_v56  ;;  %12369 = vmatprep.subr.msk.bf16.mxu0 %vm14916_vm0, %v18156_v37  ;;  %vm14973_vm10 = vmpackc.low %vm585_vm8, %vm584_vm9 }
 0x196   : > { %18281 = vst [vmem:[#allocation37_spill] sm:$0xff] %v18280_v56  ;;  %vm565_vm11 = vcmp.eq.s32.totalorder %v549_v25, %v14466_v49  ;;  %v1465_v49 = vld [vmem:[%s18075_s4 + $0x30] sm:$0xff]  ;;  %12371 = vmatpush3.bf16.msk.msra.mxu0 %vm14916_vm0, %v18156_v37 }
 0x197   : > { %v958_v40 = vpop.f32.mrb[56].mxu0  ;;  %vm14930_vm3 = vmpackc.low %vm566_vm13, %vm565_vm11  ;;  %v12356_v57 = vpack.c.bf16 %v1466_v44, %v1465_v49  ;;  %vm1467_vm11 = vcmask 523264  }
 0x198   : > { %v960_v16 = vpop.f32.mrb[57].mxu0  ;;  %10690 = vmatprep.mubr.f32.mxu1 %v958_v40  ;;  %v1464_v40 = vld [vmem:[%s18075_s4 + $0x28] sm:$0xff]  ;;  %v18289_v61 = vsel %vm14930_vm3, 4294967295, %v18288_v61  ;;  %12373 = vmatprep.subr.msk.bf16.mxu0 %vm14930_vm3, %v18156_v37 }
 0x199   : > { %v18285_v16 = vmov 0  ;;  %18290 = vst [vmem:[#allocation40_spill] sm:$0xff] %v18289_v61  ;;  %v12352_v0 = vpack.c.bf16 %v1464_v40, %v1463_v47 }
 0x19a   : > { %v18286_v16 = vsel %vm14916_vm0, 4294967295, %v18285_v16  ;;  %12375 = vmatpush3.bf16.msk.msra.mxu0 %vm14930_vm3, %v18156_v37 }
 0x19b   : > { %v963_v52 = vpop.f32.mrb[58].mxu0  ;;  %18287 = vst [vmem:[#allocation39_spill] sm:$0xff] %v18286_v16  ;;  %12377 = vmatprep.subr.msk.bf16.mxu0 %vm14973_vm10, %v18156_v37 }
 0x19c   : > { %v965_v58 = vpop.f32.mrb[59].mxu0  ;;  %10691 = vmatmul.mubr.f32.gmra.mrb[28].mxu1 %v963_v52  ;;  %v442_v52 = vld [vmem:[%s15032_s21 + $0xf0] sm:$0xff] }
 0x19d   : > { %v443_v58 = vld [vmem:[%s15032_s21 + $0xf8] sm:$0xff] }
 0x19e   : > { %12379 = vmatpush3.bf16.msk.msra.mxu0 %vm14973_vm10, %v18156_v37 }
 0x19f   : > { %v968_v62 = vpop.f32.mrb[60].mxu0  ;;  %12381 = vmatprep.subr.msk.bf16.mxu0 %vm14882_vm6, %v18156_v37 }
 0x1a0   : > { %v970_v48 = vpop.f32.mrb[61].mxu0  ;;  %10693 = vmatprep.mubr.f32.mxu1 %v968_v62  ;;  %v2303_v62 = vld [vmem:[%s18076_s5 + $0x8] sm:$0xff] }
 0x1a1   : > { %v12392_v22 = vpack.c.bf16 %v2303_v62, %v2302_v7  ;;  %v2306_v48 = vld [vmem:[%s18076_s5 + $0x20] sm:$0xff]  ;;  %v2316_v7 = vld [vmem:[%s18076_s5 + $0x70] sm:$0xff]  ;;  %v2317_v62 = vld [vmem:[%s18076_s5 + $0x78] sm:$0xff] }
 0x1a2   : > { %12383 = vmatpush3.bf16.msk.msra.mxu0 %vm14882_vm6, %v18156_v37  ;;  %v12400_v25 = vpack.c.bf16 %v2307_v10, %v2306_v48  ;;  %v12420_v34 = vpack.c.bf16 %v2317_v62, %v2316_v7 }
 0x1a3   : > { %v973_v1 = vpop.f32.mrb[62].mxu0  ;;  %12385 = vmatprep.subr.msk.bf16.mxu0 %vm14939_vm4, %v18156_v37 }
 0x1a4   : > { %v975_v28 = vpop.f32.mrb[63].mxu0  ;;  %10694 = vmatmul.mubr.f32.gmra.mrb[30].mxu1 %v973_v1  ;;  %v2309_v1 = vld [vmem:[%s18076_s5 + $0x38] sm:$0xff] }
 0x1a5   : > { %10728 = vmatprep.mubr.f32.mxu1 %v14332_v2  ;;  %v18282_v2 = vmov 0  ;;  %v12404_v59 = vpack.c.bf16 %v2309_v1, %v2308_v54  ;;  %v2311_v28 = vld [vmem:[%s18076_s5 + $0x48] sm:$0xff] }
 0x1a6   : > { %v18283_v2 = vsel %vm14898_vm12, 4294967295, %v18282_v2  ;;  %12387 = vmatpush3.bf16.msk.msra.mxu0 %vm14939_vm4, %v18156_v37 }
 0x1a7   : > { %18284 = vst [vmem:[#allocation38_spill] sm:$0xff] %v18283_v2  ;;  %12389 = vmatprep.subr.msk.bf16.mxu0 %vm14952_vm5, %v18156_v37 }
 0x1a8   : > { %10729 = vmatmul.mubr.f32.vlgmr.msra.gmra.mrb[0].mxu1 %v14335_v3  ;;  %v18291_v3 = vmov 0 }
 0x1a9   : > { %12347 = vmatpush3.bf16.msra.mxu1 %v14855_v60  ;;  %10731 = vmatprep.mubr.f32.mxu1 %v14338_v4  ;;  %v18292_v3 = vsel %vm14939_vm4, 4294967295, %v18291_v3  ;;  %v18294_v4 = vmov 0  ;;  %v441_v60 = vld [vmem:[%s15032_s21 + $0xe8] sm:$0xff] }
 0x1aa   : > { %12349 = vmatprep.subr.bf16.mxu1 %v12348_v63  ;;  %18293 = vst [vmem:[#allocation41_spill] sm:$0xff] %v18292_v3  ;;  %v18295_v4 = vsel %vm14952_vm5, 4294967295, %v18294_v4  ;;  %12391 = vmatpush3.bf16.msk.msra.mxu0 %vm14952_vm5, %v18156_v37 }
 0x1ab   : > { %18296 = vst [vmem:[#allocation42_spill] sm:$0xff] %v18295_v4 }
 0x1ac   : > { %10732 = vmatmul.mubr.f32.gmra.mrb[2].mxu1 %v14343_v6  ;;  %v18297_v6 = vmov 0 }
 0x1ad   : > { %10734 = vmatprep.mubr.f32.mxu1 %v14349_v8  ;;  %12351 = vmatpush3.bf16.msra.mxu1 %v12348_v63  ;;  %v18298_v6 = vsel %vm14973_vm10, 4294967295, %v18297_v6  ;;  %v18300_v8 = vmov 0.0|0.0   ;;  %v12408_v63 = vpack.c.bf16 %v2311_v28, %v2310_v13 }
 0x1ae   : > { %12353 = vmatprep.subr.bf16.mxu1 %v12352_v0  ;;  %18299 = vst [vmem:[#allocation43_spill] sm:$0xff] %v18298_v6  ;;  %12424 = vmatprep.subr.bf16.mxu0 %v18300_v8 }
 0x1b0   : > { %10735 = vmatmul.mubr.f32.gmra.mrb[4].mxu1 %v14352_v9  ;;  %v412_v9 = vld [vmem:[%s15032_s21] sm:$0xff] }
 0x1b1   : > { %10737 = vmatprep.mubr.f32.mxu1 %v14358_v11  ;;  %12355 = vmatpush3.bf16.msra.mxu1 %v12352_v0  ;;  %v413_v11 = vld [vmem:[%s15032_s21 + $0x8] sm:$0xff] }
 0x1b2   : > { %12357 = vmatprep.subr.bf16.mxu1 %v12356_v57 }
 0x1b4   : > { %10738 = vmatmul.mubr.f32.gmra.mrb[6].mxu1 %v14361_v12  ;;  %v414_v12 = vld [vmem:[%s15032_s21 + $0x10] sm:$0xff] }
 0x1b5   : > { %10740 = vmatprep.mubr.f32.mxu1 %v14367_v14  ;;  %12359 = vmatpush3.bf16.msra.mxu1 %v12356_v57  ;;  %v415_v14 = vld [vmem:[%s15032_s21 + $0x18] sm:$0xff] }
 0x1b6   : > { %12393 = vmatprep.subr.bf16.mxu1 %v12392_v22 }
 0x1b8   : > { %10741 = vmatmul.mubr.f32.gmra.mrb[8].mxu1 %v14370_v15  ;;  %v416_v15 = vld [vmem:[%s15032_s21 + $0x20] sm:$0xff] }
 0x1b9   : > { %10743 = vmatprep.mubr.f32.mxu1 %v14376_v17  ;;  %v417_v17 = vld [vmem:[%s15032_s21 + $0x28] sm:$0xff] }
 0x1bc   : > { %10744 = vmatmul.mubr.f32.gmra.mrb[10].mxu1 %v14379_v18  ;;  %v418_v18 = vld [vmem:[%s15032_s21 + $0x30] sm:$0xff] }
 0x1bd   : > { %10746 = vmatprep.mubr.f32.mxu1 %v14385_v20  ;;  %v419_v20 = vld [vmem:[%s15032_s21 + $0x38] sm:$0xff] }
 0x1c0   : > { %10747 = vmatmul.mubr.f32.gmra.mrb[12].mxu1 %v14388_v21  ;;  %v420_v21 = vld [vmem:[%s15032_s21 + $0x40] sm:$0xff] }
 0x1c1   : > { %10749 = vmatprep.mubr.f32.mxu1 %v14394_v23  ;;  %v421_v23 = vld [vmem:[%s15032_s21 + $0x48] sm:$0xff] }
 0x1c4   : > { %10750 = vmatmul.mubr.f32.gmra.mrb[14].mxu1 %v14397_v24  ;;  %v422_v24 = vld [vmem:[%s15032_s21 + $0x50] sm:$0xff] }
 0x1c5   : > { %10752 = vmatprep.mubr.f32.mxu1 %v14403_v26  ;;  %v423_v26 = vld [vmem:[%s15032_s21 + $0x58] sm:$0xff] }
 0x1c8   : > { %10753 = vmatmul.mubr.f32.gmra.mrb[16].mxu1 %v14406_v27  ;;  %v424_v27 = vld [vmem:[%s15032_s21 + $0x60] sm:$0xff] }
 0x1c9   : > { %10755 = vmatprep.mubr.f32.mxu1 %v14412_v29  ;;  %v425_v29 = vld [vmem:[%s15032_s21 + $0x68] sm:$0xff] }
 0x1cc   : > { %10756 = vmatmul.mubr.f32.gmra.mrb[18].mxu1 %v14415_v30  ;;  %v426_v30 = vld [vmem:[%s15032_s21 + $0x70] sm:$0xff] }
 0x1cd   : > { %10758 = vmatprep.mubr.f32.mxu1 %v14421_v32  ;;  %v427_v32 = vld [vmem:[%s15032_s21 + $0x78] sm:$0xff] }
 0x1d0   : > { %10759 = vmatmul.mubr.f32.gmra.mrb[20].mxu1 %v14424_v33  ;;  %v428_v33 = vld [vmem:[%s15032_s21 + $0x80] sm:$0xff] }
 0x1d1   : > { %10761 = vmatprep.mubr.f32.mxu1 %v14430_v35  ;;  %v429_v35 = vld [vmem:[%s15032_s21 + $0x88] sm:$0xff] }
 0x1d4   : > { %10762 = vmatmul.mubr.f32.gmra.mrb[22].mxu1 %v14433_v36  ;;  %v430_v36 = vld [vmem:[%s15032_s21 + $0x90] sm:$0xff] }
 0x1d5   : > { %10764 = vmatprep.mubr.f32.mxu1 %v14439_v38  ;;  %v431_v38 = vld [vmem:[%s15032_s21 + $0x98] sm:$0xff] }
 0x1d8   : > { %10765 = vmatmul.mubr.f32.gmra.mrb[24].mxu1 %v14442_v39  ;;  %v432_v39 = vld [vmem:[%s15032_s21 + $0xa0] sm:$0xff] }
 0x1d9   : > { %10767 = vmatprep.mubr.f32.mxu1 %v14448_v41  ;;  %v433_v41 = vld [vmem:[%s15032_s21 + $0xa8] sm:$0xff] }
 0x1dc   : > { %10768 = vmatmul.mubr.f32.gmra.mrb[26].mxu1 %v14451_v42  ;;  %v434_v42 = vld [vmem:[%s15032_s21 + $0xb0] sm:$0xff] }
 0x1dd   : > { %10770 = vmatprep.mubr.f32.mxu1 %v14457_v45  ;;  %v435_v45 = vld [vmem:[%s15032_s21 + $0xb8] sm:$0xff] }
 0x1e0   : > { %10771 = vmatmul.mubr.f32.gmra.mrb[28].mxu1 %v14460_v46  ;;  %v436_v46 = vld [vmem:[%s15032_s21 + $0xc0] sm:$0xff] }
 0x1e1   : > { %10773 = vmatprep.mubr.f32.mxu1 %v14470_v50  ;;  %v437_v50 = vld [vmem:[%s15032_s21 + $0xc8] sm:$0xff] }
 0x1e4   : > { %10774 = vmatmul.mubr.f32.gmra.mrb[30].mxu1 %v14473_v51  ;;  %v438_v51 = vld [vmem:[%s15032_s21 + $0xd0] sm:$0xff] }
 0x1e5   : > { %10792 = vmatprep.mubr.msk.f32.mxu1 %vm1467_vm11, %v412_v9 }
 0x1e8   : > { %10793 = vmatmul.mubr.msk.f32.vlgmr.msra.gmra.mrb[0].mxu1 %vm1467_vm11, %v413_v11 }
 0x1e9   : > { %10795 = vmatprep.mubr.msk.f32.mxu1 %vm1467_vm11, %v414_v12  ;;  %12395 = vmatpush3.bf16.msra.mxu1 %v12392_v22 }
 0x1ea   : > { %12397 = vmatprep.subr.bf16.mxu1 %v12396_v55 }
 0x1ec   : > { %10796 = vmatmul.mubr.msk.f32.gmra.mrb[2].mxu1 %vm1467_vm11, %v415_v14 }
 0x1ed   : > { %10798 = vmatprep.mubr.msk.f32.mxu1 %vm1467_vm11, %v416_v15  ;;  %12399 = vmatpush3.bf16.msra.mxu1 %v12396_v55 }
 0x1ee   : > { %12401 = vmatprep.subr.bf16.mxu1 %v12400_v25 }
 0x1f0   : > { %10799 = vmatmul.mubr.msk.f32.gmra.mrb[4].mxu1 %vm1467_vm11, %v417_v17 }
 0x1f1   : > { %10801 = vmatprep.mubr.msk.f32.mxu1 %vm1467_vm11, %v418_v18  ;;  %12403 = vmatpush3.bf16.msra.mxu1 %v12400_v25 }
 0x1f2   : > { %12405 = vmatprep.subr.bf16.mxu1 %v12404_v59 }
 0x1f4   : > { %10802 = vmatmul.mubr.msk.f32.gmra.mrb[6].mxu1 %vm1467_vm11, %v419_v20 }
 0x1f5   : > { %10804 = vmatprep.mubr.msk.f32.mxu1 %vm1467_vm11, %v420_v21  ;;  %12407 = vmatpush3.bf16.msra.mxu1 %v12404_v59 }
 0x1f6   : > { %12409 = vmatprep.subr.bf16.mxu1 %v12408_v63 }
 0x1f8   : > { %10805 = vmatmul.mubr.msk.f32.gmra.mrb[8].mxu1 %vm1467_vm11, %v421_v23 }
 0x1f9   : > { %10807 = vmatprep.mubr.msk.f32.mxu1 %vm1467_vm11, %v422_v24  ;;  %12411 = vmatpush3.bf16.msra.mxu1 %v12408_v63 }
 0x1fc   : > { %10808 = vmatmul.mubr.msk.f32.gmra.mrb[10].mxu1 %vm1467_vm11, %v423_v26 }
 0x1fd   : > { %10810 = vmatprep.mubr.msk.f32.mxu1 %vm1467_vm11, %v424_v27 }
 0x200   : > { %10811 = vmatmul.mubr.msk.f32.gmra.mrb[12].mxu1 %vm1467_vm11, %v425_v29 }
 0x201   : > { %10813 = vmatprep.mubr.msk.f32.mxu1 %vm1467_vm11, %v426_v30 }
 0x204   : > { %10814 = vmatmul.mubr.msk.f32.gmra.mrb[14].mxu1 %vm1467_vm11, %v427_v32 }
 0x205   : > { %10816 = vmatprep.mubr.msk.f32.mxu1 %vm1467_vm11, %v428_v33 }
 0x208   : > { %10817 = vmatmul.mubr.msk.f32.gmra.mrb[16].mxu1 %vm1467_vm11, %v429_v35 }
 0x209   : > { %10819 = vmatprep.mubr.msk.f32.mxu1 %vm1467_vm11, %v430_v36 }
 0x20c   : > { %10820 = vmatmul.mubr.msk.f32.gmra.mrb[18].mxu1 %vm1467_vm11, %v431_v38 }
 0x20d   : > { %10822 = vmatprep.mubr.msk.f32.mxu1 %vm1467_vm11, %v432_v39 }
 0x210   : > { %10823 = vmatmul.mubr.msk.f32.gmra.mrb[20].mxu1 %vm1467_vm11, %v433_v41 }
 0x211   : > { %10825 = vmatprep.mubr.msk.f32.mxu1 %vm1467_vm11, %v434_v42 }
 0x214   : > { %10826 = vmatmul.mubr.msk.f32.gmra.mrb[22].mxu1 %vm1467_vm11, %v435_v45 }
 0x215   : > { %10828 = vmatprep.mubr.msk.f32.mxu1 %vm1467_vm11, %v436_v46 }
 0x218   : > { %10829 = vmatmul.mubr.msk.f32.gmra.mrb[24].mxu1 %vm1467_vm11, %v437_v50 }
 0x219   : > { %10831 = vmatprep.mubr.msk.f32.mxu1 %vm1467_vm11, %v438_v51  ;;  %v2312_v51 = vld [vmem:[%s18076_s5 + $0x50] sm:$0xff] }
 0x21c   : > { %10832 = vmatmul.mubr.msk.f32.gmra.mrb[26].mxu1 %vm1467_vm11, %v439_v19  ;;  %v2313_v19 = vld [vmem:[%s18076_s5 + $0x58] sm:$0xff] }
 0x21d   : > { %10834 = vmatprep.mubr.msk.f32.mxu1 %vm1467_vm11, %v440_v31  ;;  %v12412_v31 = vpack.c.bf16 %v2313_v19, %v2312_v51 }
 0x21f   : > { %12413 = vmatprep.subr.bf16.mxu1 %v12412_v31 }
 0x220   : > { %10835 = vmatmul.mubr.msk.f32.gmra.mrb[28].mxu1 %vm1467_vm11, %v441_v60  ;;  %v2314_v60 = vld [vmem:[%s18076_s5 + $0x60] sm:$0xff] }
 0x221   : > { %10837 = vmatprep.mubr.msk.f32.mxu1 %vm1467_vm11, %v442_v52  ;;  %12415 = vmatpush3.bf16.msra.mxu1 %v12412_v31  ;;  %v2315_v52 = vld [vmem:[%s18076_s5 + $0x68] sm:$0xff] }
 0x224   : > { %10838 = vmatmul.mubr.msk.f32.gmra.mrb[30].mxu1 %vm1467_vm11, %v443_v58  ;;  %v12416_v58 = vpack.c.bf16 %v2315_v52, %v2314_v60 }
 0x226   : > { %12417 = vmatprep.subr.bf16.mxu1 %v12416_v58 }
 0x227   : > { %12419 = vmatpush3.bf16.msra.mxu1 %v12416_v58 }
 0x228   : > { %12421 = vmatprep.subr.bf16.mxu1 %v12420_v34 }
 0x22b   : > { %12423 = vmatpush3.bf16.msra.mxu1 %v12420_v34 }
 0x22c   : > { %13048 = vmatprep.subr.bf16.mxu1 %v18300_v8 }
 0x2bb   : > { %v15131_v47 = vpop.f32.mrb[0].mxu1 }
 0x2bc   : > { %v15133_v40 = vpop.f32.mrb[1].mxu1  ;;  %13348 = vtanh.f32 %v15131_v47 }
 0x2bd   : > { %10872 = vmatprep.mubr.f32.mxu0 %v15133_v40  ;;  %13350 = vtanh.f32 %v15133_v40 }
 0x2be   : > { %10873 = vmatmul.mubr.f32.vlgmr.msra.gmra.mrb[64].mxu0 %v15131_v47 }
 0x2bf   : > { %v15137_v0 = vpop.f32.mrb[2].mxu1 }
 0x2c0   : > { %v15139_v49 = vpop.f32.mrb[3].mxu1  ;;  %13352 = vtanh.f32 %v15137_v0 }
 0x2c1   : > { %10875 = vmatprep.mubr.f32.mxu0 %v15139_v49  ;;  %13354 = vtanh.f32 %v15139_v49 }
 0x2c2   : > { %10876 = vmatmul.mubr.f32.gmra.mrb[66].mxu0 %v15137_v0 }
 0x2c3   : > { %v15143_v44 = vpop.f32.mrb[4].mxu1 }
 0x2c4   : > { %v15145_v57 = vpop.f32.mrb[5].mxu1  ;;  %13356 = vtanh.f32 %v15143_v44 }
 0x2c5   : > { %10878 = vmatprep.mubr.f32.mxu0 %v15145_v57  ;;  %13358 = vtanh.f32 %v15145_v57 }
 0x2c6   : > { %10879 = vmatmul.mubr.f32.gmra.mrb[68].mxu0 %v15143_v44  ;;  %v15257_v22 = vpop.eup %13348 }
 0x2c7   : > { %v15149_v9 = vpop.f32.mrb[6].mxu1  ;;  %v15260_v53 = vpop.eup %13350 }
 0x2c8   : > { %v15151_v11 = vpop.f32.mrb[7].mxu1  ;;  %13360 = vtanh.f32 %v15149_v9 }
 0x2c9   : > { %10881 = vmatprep.mubr.f32.mxu0 %v15151_v11  ;;  %13362 = vtanh.f32 %v15151_v11 }
 0x2ca   : > { %10882 = vmatmul.mubr.f32.gmra.mrb[70].mxu0 %v15149_v9  ;;  %v15263_v55 = vpop.eup %13352 }
 0x2cb   : > { %v15155_v12 = vpop.f32.mrb[8].mxu1  ;;  %v15266_v48 = vpop.eup %13354 }
 0x2cc   : > { %v15157_v14 = vpop.f32.mrb[9].mxu1  ;;  %13364 = vtanh.f32 %v15155_v12 }
 0x2cd   : > { %10884 = vmatprep.mubr.f32.mxu0 %v15157_v14  ;;  %13366 = vtanh.f32 %v15157_v14 }
 0x2ce   : > { %10885 = vmatmul.mubr.f32.gmra.mrb[72].mxu0 %v15155_v12  ;;  %v15269_v10 = vpop.eup %13356 }
 0x2cf   : > { %v15161_v15 = vpop.f32.mrb[10].mxu1  ;;  %v15272_v25 = vpop.eup %13358 }
 0x2d0   : > { %v15163_v17 = vpop.f32.mrb[11].mxu1  ;;  %13368 = vtanh.f32 %v15161_v15 }
 0x2d1   : > { %10887 = vmatprep.mubr.f32.mxu0 %v15163_v17  ;;  %13370 = vtanh.f32 %v15163_v17 }
 0x2d2   : > { %10888 = vmatmul.mubr.f32.gmra.mrb[74].mxu0 %v15161_v15  ;;  %v15275_v54 = vpop.eup %13360 }
 0x2d3   : > { %v15167_v18 = vpop.f32.mrb[12].mxu1  ;;  %v15278_v1 = vpop.eup %13362 }
 0x2d4   : > { %v15169_v20 = vpop.f32.mrb[13].mxu1  ;;  %13372 = vtanh.f32 %v15167_v18 }
 0x2d5   : > { %10890 = vmatprep.mubr.f32.mxu0 %v15169_v20  ;;  %13374 = vtanh.f32 %v15169_v20 }
 0x2d6   : > { %10891 = vmatmul.mubr.f32.gmra.mrb[76].mxu0 %v15167_v18  ;;  %v15281_v13 = vpop.eup %13364 }
 0x2d7   : > { %v15173_v21 = vpop.f32.mrb[14].mxu1  ;;  %v15284_v47 = vpop.eup %13366 }
 0x2d8   : > { %v15175_v23 = vpop.f32.mrb[15].mxu1  ;;  %13376 = vtanh.f32 %v15173_v21 }
 0x2d9   : > { %10893 = vmatprep.mubr.f32.mxu0 %v15175_v23  ;;  %13378 = vtanh.f32 %v15175_v23 }
 0x2da   : > { %10894 = vmatmul.mubr.f32.gmra.mrb[78].mxu0 %v15173_v21  ;;  %v15287_v0 = vpop.eup %13368 }
 0x2db   : > { %v15179_v24 = vpop.f32.mrb[16].mxu1  ;;  %v15289_v49 = vpop.eup %13370 }
 0x2dc   : > { %v15181_v26 = vpop.f32.mrb[17].mxu1  ;;  %13380 = vtanh.f32 %v15179_v24 }
 0x2dd   : > { %10896 = vmatprep.mubr.f32.mxu0 %v15181_v26  ;;  %13382 = vtanh.f32 %v15181_v26 }
 0x2de   : > { %10897 = vmatmul.mubr.f32.gmra.mrb[80].mxu0 %v15179_v24  ;;  %v15291_v57 = vpop.eup %13372 }
 0x2df   : > { %v15185_v27 = vpop.f32.mrb[18].mxu1  ;;  %v15294_v12 = vpop.eup %13374 }
 0x2e0   : > { %v15187_v29 = vpop.f32.mrb[19].mxu1  ;;  %13384 = vtanh.f32 %v15185_v27 }
 0x2e1   : > { %10899 = vmatprep.mubr.f32.mxu0 %v15187_v29  ;;  %13386 = vtanh.f32 %v15187_v29 }
 0x2e2   : > { %10900 = vmatmul.mubr.f32.gmra.mrb[82].mxu0 %v15185_v27  ;;  %v15297_v15 = vpop.eup %13376 }
 0x2e3   : > { %v15191_v30 = vpop.f32.mrb[20].mxu1  ;;  %v15299_v17 = vpop.eup %13378 }
 0x2e4   : > { %v15193_v32 = vpop.f32.mrb[21].mxu1 }
 0x2e5   : > { %10902 = vmatprep.mubr.f32.mxu0 %v15193_v32 }
 0x2e6   : > { %10903 = vmatmul.mubr.f32.gmra.mrb[84].mxu0 %v15191_v30  ;;  %v15301_v20 = vpop.eup %13380 }
 0x2e7   : > { %v15197_v33 = vpop.f32.mrb[22].mxu1  ;;  %v15304_v24 = vpop.eup %13382 }
 0x2e8   : > { %v15199_v35 = vpop.f32.mrb[23].mxu1 }
 0x2e9   : > { %10905 = vmatprep.mubr.f32.mxu0 %v15199_v35 }
 0x2ea   : > { %10906 = vmatmul.mubr.f32.gmra.mrb[86].mxu0 %v15197_v33  ;;  %v15307_v27 = vpop.eup %13384 }
 0x2eb   : > { %v15203_v36 = vpop.f32.mrb[24].mxu1  ;;  %v15309_v29 = vpop.eup %13386 }
 0x2ec   : > { %v15205_v38 = vpop.f32.mrb[25].mxu1 }
 0x2ed   : > { %10908 = vmatprep.mubr.f32.mxu0 %v15205_v38 }
 0x2ee   : > { %10909 = vmatmul.mubr.f32.gmra.mrb[88].mxu0 %v15203_v36 }
 0x2ef   : > { %v15209_v39 = vpop.f32.mrb[26].mxu1 }
 0x2f0   : > { %v15211_v41 = vpop.f32.mrb[27].mxu1 }
 0x2f1   : > { %10911 = vmatprep.mubr.f32.mxu0 %v15211_v41 }
 0x2f2   : > { %10912 = vmatmul.mubr.f32.gmra.mrb[90].mxu0 %v15209_v39 }
 0x2f3   : > { %v15215_v42 = vpop.f32.mrb[28].mxu1 }
 0x2f4   : > { %v15217_v45 = vpop.f32.mrb[29].mxu1 }
 0x2f5   : > { %10914 = vmatprep.mubr.f32.mxu0 %v15217_v45 }
 0x2f6   : > { %10915 = vmatmul.mubr.f32.gmra.mrb[92].mxu0 %v15215_v42 }
 0x2f7   : > { %v15221_v46 = vpop.f32.mrb[30].mxu1 }
 0x2f8   : > { %v15223_v50 = vpop.f32.mrb[31].mxu1 }
 0x2f9   : > { %10917 = vmatprep.mubr.f32.mxu0 %v15223_v50 }
 0x2fa   : > { %10918 = vmatmul.mubr.f32.gmra.mrb[94].mxu0 %v15221_v46 }
 0x2fb   : > { %2767 = vmatprep.mubr.f32.mxu0 %v18263_v5 }
 0x391   : > { %v10874_v59 = vpop.f32.mrb[64].mxu0 }
 0x392   : > { %v9066_v28 = vmul.f32 -1.442695, %v10874_v59  ;;  %v1887_v63 = vpop.f32.mrb[65].mxu0 }
 0x393   : > { %v9065_v40 = vmul.f32 -1.442695, %v1887_v63 }
 0x394   : > { %13388 = vpow2.f32 %v9066_v28 }
 0x395   : > { %13390 = vpow2.f32 %v9065_v40  ;;  %v10877_v44 = vpop.f32.mrb[66].mxu0 }
 0x396   : > { %13392 = vtanh.f32 %v15191_v30  ;;  %v9068_v9 = vmul.f32 -1.442695, %v10877_v44  ;;  %v1897_v11 = vpop.f32.mrb[67].mxu0 }
 0x397   : > { %13394 = vtanh.f32 %v15193_v32  ;;  %v9067_v14 = vmul.f32 -1.442695, %v1897_v11 }
 0x398   : > { %13396 = vpow2.f32 %v9068_v9 }
 0x399   : > { %13398 = vpow2.f32 %v9067_v14  ;;  %v10880_v18 = vpop.f32.mrb[68].mxu0 }
 0x39a   : > { %13400 = vtanh.f32 %v15197_v33  ;;  %v9070_v21 = vmul.f32 -1.442695, %v10880_v18  ;;  %v1907_v23 = vpop.f32.mrb[69].mxu0 }
 0x39b   : > { %13402 = vtanh.f32 %v15199_v35  ;;  %v9069_v26 = vmul.f32 -1.442695, %v1907_v23 }
 0x39c   : > { %13404 = vpow2.f32 %v9070_v21 }
 0x39d   : > { %13406 = vpow2.f32 %v9069_v26  ;;  %v10883_v30 = vpop.f32.mrb[70].mxu0 }
 0x39e   : > { %v13389_v32 = vpop.eup %13388  ;;  %13408 = vtanh.f32 %v15203_v36  ;;  %v9072_v51 = vmul.f32 -1.442695, %v10883_v30  ;;  %v1917_v19 = vpop.f32.mrb[71].mxu0 }
 0x39f   : > { %v13391_v33 = vpop.eup %13390  ;;  %13410 = vtanh.f32 %v15205_v38  ;;  %v2175_v31 = vadd.f32 1.0, %v13389_v32  ;;  %v9071_v60 = vmul.f32 -1.442695, %v1917_v19 }
 0x3a0   : > { %v15313_v52 = vpop.eup %13392  ;;  %v2174_v35 = vadd.f32 1.0, %v13391_v33  ;;  %13412 = vpow2.f32 %v9072_v51 }
 0x3a1   : > { %v15315_v58 = vpop.eup %13394  ;;  %13414 = vrcp.f32 %v2175_v31  ;;  %v10886_v7 = vpop.f32.mrb[72].mxu0 }
 0x3a2   : > { %v13397_v62 = vpop.eup %13396  ;;  %13416 = vrcp.f32 %v2174_v35  ;;  %v9074_v34 = vmul.f32 -1.442695, %v10886_v7  ;;  %v1927_v59 = vpop.f32.mrb[73].mxu0 }
 0x3a3   : > { %v13399_v36 = vpop.eup %13398  ;;  %v2177_v28 = vadd.f32 1.0, %v13397_v62  ;;  %13418 = vpow2.f32 %v9071_v60  ;;  %v9073_v63 = vmul.f32 -1.442695, %v1927_v59 }
 0x3a4   : > { %v15317_v40 = vpop.eup %13400  ;;  %v2176_v38 = vadd.f32 1.0, %v13399_v36  ;;  %13420 = vpow2.f32 %v9074_v34 }
 0x3a5   : > { %v15319_v44 = vpop.eup %13402  ;;  %13422 = vrcp.f32 %v2177_v28  ;;  %v10889_v9 = vpop.f32.mrb[74].mxu0 }
 0x3a6   : > { %v13405_v11 = vpop.eup %13404  ;;  %13424 = vrcp.f32 %v2176_v38  ;;  %v9076_v14 = vmul.f32 -1.442695, %v10889_v9  ;;  %v1937_v18 = vpop.f32.mrb[75].mxu0 }
 0x3a7   : > { %v13407_v21 = vpop.eup %13406  ;;  %v2179_v23 = vadd.f32 1.0, %v13405_v11  ;;  %13426 = vpow2.f32 %v9073_v63  ;;  %v9075_v26 = vmul.f32 -1.442695, %v1937_v18 }
 0x3a8   : > { %v15321_v30 = vpop.eup %13408  ;;  %v2178_v32 = vadd.f32 1.0, %v13407_v21  ;;  %13428 = vpow2.f32 %v9076_v14 }
 0x3a9   : > { %v15323_v51 = vpop.eup %13410  ;;  %13430 = vrcp.f32 %v2179_v23  ;;  %v10892_v19 = vpop.f32.mrb[76].mxu0 }
 0x3aa   : > { %v13413_v33 = vpop.eup %13412  ;;  %13432 = vrcp.f32 %v2178_v32  ;;  %v9078_v31 = vmul.f32 -1.442695, %v10892_v19  ;;  %v1947_v60 = vpop.f32.mrb[77].mxu0 }
 0x3ab   : > { %v13415_v35 = vpop.eup %13414  ;;  %v2181_v7 = vadd.f32 1.0, %v13413_v33  ;;  %13434 = vpow2.f32 %v9075_v26  ;;  %v9077_v62 = vmul.f32 -1.442695, %v1947_v60 }
 0x3ac   : > { %v13417_v34 = vpop.eup %13416  ;;  %13436 = vpow2.f32 %v9078_v31  ;;  %v2271_v59 = vmul.f32 %v13415_v35, %v15257_v22 }
 0x3ad   : > { %v13419_v36 = vpop.eup %13418  ;;  %13438 = vrcp.f32 %v2181_v7  ;;  %v10895_v28 = vpop.f32.mrb[78].mxu0  ;;  %v2270_v63 = vmul.f32 %v13417_v34, %v15260_v53 }
 0x3ae   : > { %v13421_v38 = vpop.eup %13420  ;;  %v2180_v9 = vadd.f32 1.0, %v13419_v36  ;;  %13440 = vpow2.f32 %v9077_v62  ;;  %v9080_v11 = vmul.f32 -1.442695, %v10895_v28  ;;  %v1957_v14 = vpop.f32.mrb[79].mxu0 }
 0x3af   : > { %v13423_v18 = vpop.eup %13422  ;;  %13442 = vtanh.f32 %v15209_v39  ;;  %v2183_v21 = vadd.f32 1.0, %v13421_v38  ;;  %v9079_v23 = vmul.f32 -1.442695, %v1957_v14  ;;  %10952 = vmatprep.mubr.f32.mxu1 %v2270_v63 }
 0x3b0   : > { %v13425_v26 = vpop.eup %13424  ;;  %13444 = vrcp.f32 %v2180_v9  ;;  %10953 = vmatmul.mubr.f32.vlgmr.msra.gmra.mrb[32].mxu1 %v2271_v59  ;;  %v2273_v22 = vmul.f32 %v13423_v18, %v15263_v55 }
 0x3b1   : > { %v13427_v32 = vpop.eup %13426  ;;  %13446 = vrcp.f32 %v2183_v21  ;;  %v10898_v19 = vpop.f32.mrb[80].mxu0  ;;  %v2272_v53 = vmul.f32 %v13425_v26, %v15266_v48 }
 0x3b2   : > { %v13429_v33 = vpop.eup %13428  ;;  %v2182_v31 = vadd.f32 1.0, %v13427_v32  ;;  %13448 = vpow2.f32 %v9080_v11  ;;  %v9082_v60 = vmul.f32 -1.442695, %v10898_v19  ;;  %v1967_v35 = vpop.f32.mrb[81].mxu0 }
 0x3b3   : > { %v13431_v7 = vpop.eup %13430  ;;  %v2185_v39 = vadd.f32 1.0, %v13429_v33  ;;  %13450 = vpow2.f32 %v9079_v23  ;;  %v9081_v62 = vmul.f32 -1.442695, %v1967_v35  ;;  %10955 = vmatprep.mubr.f32.mxu1 %v2272_v53 }
 0x3b4   : > { %v13433_v34 = vpop.eup %13432  ;;  %13452 = vrcp.f32 %v2182_v31  ;;  %10956 = vmatmul.mubr.f32.gmra.mrb[34].mxu1 %v2273_v22  ;;  %v2275_v55 = vmul.f32 %v13431_v7, %v15269_v10 }
 0x3b5   : > { %v13435_v59 = vpop.eup %13434  ;;  %13454 = vrcp.f32 %v2185_v39  ;;  %v10901_v36 = vpop.f32.mrb[82].mxu0  ;;  %v2274_v48 = vmul.f32 %v13433_v34, %v15272_v25 }
 0x3b6   : > { %v13437_v28 = vpop.eup %13436  ;;  %v2184_v63 = vadd.f32 1.0, %v13435_v59  ;;  %13456 = vpow2.f32 %v9082_v60  ;;  %v9084_v38 = vmul.f32 -1.442695, %v10901_v36  ;;  %v1977_v9 = vpop.f32.mrb[83].mxu0 }
 0x3b7   : > { %v13439_v11 = vpop.eup %13438  ;;  %v2187_v14 = vadd.f32 1.0, %v13437_v28  ;;  %13458 = vpow2.f32 %v9081_v62  ;;  %10958 = vmatprep.mubr.f32.mxu1 %v2274_v48  ;;  %v9083_v21 = vmul.f32 -1.442695, %v1977_v9 }
 0x3b8   : > { %v13441_v18 = vpop.eup %13440  ;;  %13460 = vrcp.f32 %v2184_v63  ;;  %10959 = vmatmul.mubr.f32.gmra.mrb[36].mxu1 %v2275_v55  ;;  %v2277_v10 = vmul.f32 %v13439_v11, %v15275_v54 }
 0x3b9   : > { %v15333_v23 = vpop.eup %13442  ;;  %13462 = vrcp.f32 %v2187_v14  ;;  %v2186_v26 = vadd.f32 1.0, %v13441_v18  ;;  %v10904_v25 = vpop.f32.mrb[84].mxu0 }
 0x3ba   : > { %v13445_v22 = vpop.eup %13444  ;;  %13464 = vpow2.f32 %v9084_v38  ;;  %v9086_v32 = vmul.f32 -1.442695, %v10904_v25  ;;  %v1987_v19 = vpop.f32.mrb[85].mxu0 }
 0x3bb   : > { %v13447_v53 = vpop.eup %13446  ;;  %13466 = vrcp.f32 %v2186_v26  ;;  %v9085_v33 = vmul.f32 -1.442695, %v1987_v19  ;;  %v2276_v31 = vmul.f32 %v13445_v22, %v15278_v1 }
 0x3bc   : > { %v13449_v60 = vpop.eup %13448  ;;  %13468 = vpow2.f32 %v9083_v21  ;;  %v2279_v35 = vmul.f32 %v13447_v53, %v15281_v13 }
 0x3bd   : > { %v13451_v7 = vpop.eup %13450  ;;  %v2189_v54 = vadd.f32 1.0, %v13449_v60  ;;  %13470 = vpow2.f32 %v9086_v32  ;;  %10961 = vmatprep.mubr.f32.mxu1 %v2276_v31  ;;  %v10907_v39 = vpop.f32.mrb[86].mxu0 }
 0x3be   : > { %v13453_v62 = vpop.eup %13452  ;;  %v2188_v34 = vadd.f32 1.0, %v13451_v7  ;;  %13472 = vpow2.f32 %v9085_v33  ;;  %10962 = vmatmul.mubr.f32.gmra.mrb[38].mxu1 %v2277_v10  ;;  %v9088_v55 = vmul.f32 -1.442695, %v10907_v39  ;;  %v1997_v59 = vpop.f32.mrb[87].mxu0 }
 0x3bf   : > { %v13455_v36 = vpop.eup %13454  ;;  %13474 = vrcp.f32 %v2189_v54  ;;  %v9087_v48 = vmul.f32 -1.442695, %v1997_v59  ;;  %v2278_v1 = vmul.f32 %v13453_v62, %v15284_v47 }
 0x3c0   : > { %v13457_v28 = vpop.eup %13456  ;;  %13476 = vrcp.f32 %v2188_v34  ;;  %v2281_v13 = vmul.f32 %v13455_v36, %v15287_v0 }
 0x3c1   : > { %v13459_v63 = vpop.eup %13458  ;;  %v2191_v38 = vadd.f32 1.0, %v13457_v28  ;;  %13478 = vpow2.f32 %v9088_v55  ;;  %10964 = vmatprep.mubr.f32.mxu1 %v2278_v1  ;;  %v10910_v9 = vpop.f32.mrb[88].mxu0 }
 0x3c2   : > { %v13461_v11 = vpop.eup %13460  ;;  %v2190_v14 = vadd.f32 1.0, %v13459_v63  ;;  %13480 = vpow2.f32 %v9087_v48  ;;  %10965 = vmatmul.mubr.f32.gmra.mrb[40].mxu1 %v2279_v35  ;;  %v9090_v18 = vmul.f32 -1.442695, %v10910_v9  ;;  %v2007_v21 = vpop.f32.mrb[89].mxu0 }
 0x3c3   : > { %v13463_v10 = vpop.eup %13462  ;;  %13482 = vrcp.f32 %v2191_v38  ;;  %v9089_v26 = vmul.f32 -1.442695, %v2007_v21  ;;  %v2280_v47 = vmul.f32 %v13461_v11, %v15289_v49 }
 0x3c4   : > { %v13465_v25 = vpop.eup %13464  ;;  %13484 = vrcp.f32 %v2190_v14  ;;  %v2283_v0 = vmul.f32 %v13463_v10, %v15291_v57 }
 0x3c5   : > { %v13467_v22 = vpop.eup %13466  ;;  %v2193_v32 = vadd.f32 1.0, %v13465_v25  ;;  %13486 = vpow2.f32 %v9090_v18  ;;  %10967 = vmatprep.mubr.f32.mxu1 %v2280_v47  ;;  %v10913_v19 = vpop.f32.mrb[90].mxu0 }
 0x3c6   : > { %v13469_v53 = vpop.eup %13468  ;;  %13488 = vpow2.f32 %v9089_v26  ;;  %10968 = vmatmul.mubr.f32.gmra.mrb[42].mxu1 %v2281_v13  ;;  %v9092_v33 = vmul.f32 -1.442695, %v10913_v19  ;;  %v2017_v31 = vpop.f32.mrb[91].mxu0  ;;  %v2282_v60 = vmul.f32 %v13467_v22, %v15294_v12 }
 0x3c7   : > { %v13471_v35 = vpop.eup %13470  ;;  %13490 = vrcp.f32 %v2193_v32  ;;  %v2192_v7 = vadd.f32 1.0, %v13469_v53  ;;  %v9091_v39 = vmul.f32 -1.442695, %v2017_v31 }
 0x3c8   : > { %v13473_v49 = vpop.eup %13472  ;;  %v2195_v54 = vadd.f32 1.0, %v13471_v35  ;;  %13492 = vpow2.f32 %v9092_v33  ;;  %10970 = vmatprep.mubr.f32.mxu1 %v2282_v60 }
 0x3c9   : > { %v13475_v57 = vpop.eup %13474  ;;  %13494 = vrcp.f32 %v2192_v7  ;;  %v2194_v62 = vadd.f32 1.0, %v13473_v49  ;;  %v10916_v34 = vpop.f32.mrb[92].mxu0 }
 0x3ca   : > { %v13477_v55 = vpop.eup %13476  ;;  %13496 = vrcp.f32 %v2195_v54  ;;  %10971 = vmatmul.mubr.f32.gmra.mrb[44].mxu1 %v2283_v0  ;;  %v9094_v59 = vmul.f32 -1.442695, %v10916_v34  ;;  %v2027_v36 = vpop.f32.mrb[93].mxu0  ;;  %v2285_v48 = vmul.f32 %v13475_v57, %v15297_v15 }
 0x3cb   : > { %v13479_v12 = vpop.eup %13478  ;;  %13498 = vrcp.f32 %v2194_v62  ;;  %v2284_v1 = vmul.f32 %v13477_v55, %v15299_v17  ;;  %v9093_v63 = vmul.f32 -1.442695, %v2027_v36 }
 0x3cc   : > { %v13481_v28 = vpop.eup %13480  ;;  %v2197_v13 = vadd.f32 1.0, %v13479_v12  ;;  %13500 = vpow2.f32 %v9091_v39 }
 0x3cd   : > { %v13483_v38 = vpop.eup %13482  ;;  %v2196_v9 = vadd.f32 1.0, %v13481_v28  ;;  %13502 = vpow2.f32 %v9094_v59  ;;  %10973 = vmatprep.mubr.f32.mxu1 %v2284_v1  ;;  %v10919_v11 = vpop.f32.mrb[94].mxu0 }
 0x3ce   : > { %v13485_v14 = vpop.eup %13484  ;;  %13504 = vrcp.f32 %v2197_v13  ;;  %10974 = vmatmul.mubr.f32.gmra.mrb[46].mxu1 %v2285_v48  ;;  %v9096_v18 = vmul.f32 -1.442695, %v10919_v11  ;;  %v2037_v21 = vpop.f32.mrb[95].mxu0  ;;  %v2287_v15 = vmul.f32 %v13483_v38, %v15301_v20 }
 0x3cf   : > { %v13487_v10 = vpop.eup %13486  ;;  %13506 = vrcp.f32 %v2196_v9  ;;  %v2286_v17 = vmul.f32 %v13485_v14, %v15304_v24  ;;  %v9095_v25 = vmul.f32 -1.442695, %v2037_v21  ;;  %v18301_v21 = vld [vmem:[#allocation24_spill] sm:$0xff] }
 0x3d0   : > { %v13489_v26 = vpop.eup %13488  ;;  %v2199_v47 = vadd.f32 1.0, %v13487_v10  ;;  %13508 = vpow2.f32 %v9093_v63  ;;  %vm2616_vm13 = vcmp.eq.s32.totalorder %v18301_v21, 2  ;;  %v18352_v21 = vld [vmem:[#allocation23_spill] sm:$0xff] }
 0x3d1   : > { %v13491_v0 = vpop.eup %13490  ;;  %v2198_v22 = vadd.f32 1.0, %v13489_v26  ;;  %13510 = vpow2.f32 %v9096_v18  ;;  %10976 = vmatprep.mubr.f32.mxu1 %v2286_v17  ;;  %v14116_v17 = vld [vmem:[%s14329_s18 + $0x8] sm:$0xff] }
 0x3d2   : > { %v13493_v32 = vpop.eup %13492  ;;  %13512 = vrcp.f32 %v2199_v47  ;;  %10977 = vmatmul.mubr.f32.gmra.mrb[48].mxu1 %v2287_v15  ;;  %v2289_v19 = vmul.f32 %v13491_v0, %v15307_v27  ;;  %v18302_v15 = vmov 1.0  }
 0x3d3   : > { %v13495_v53 = vpop.eup %13494  ;;  %13514 = vrcp.f32 %v2198_v22  ;;  %v2201_v20 = vadd.f32 1.0, %v13493_v32 }
 0x3d4   : > { %v13497_v33 = vpop.eup %13496  ;;  %13516 = vpow2.f32 %v9095_v25  ;;  %v2288_v24 = vmul.f32 %v13495_v53, %v15309_v29  ;;  %v14117_v25 = vld [vmem:[%s14329_s18] sm:$0xff] }
 0x3d5   : > { %v13499_v31 = vpop.eup %13498  ;;  %13518 = vrcp.f32 %v2201_v20  ;;  %v2291_v60 = vmul.f32 %v13497_v33, %v15313_v52  ;;  %v14119_v33 = vld [vmem:[%s14329_s18 + $0x10] sm:$0xff] }
 0x3d6   : > { %v13501_v35 = vpop.eup %13500  ;;  %10979 = vmatprep.mubr.f32.mxu1 %v2288_v24  ;;  %v2290_v7 = vmul.f32 %v13499_v31, %v15315_v58  ;;  %13520 = vtanh.f32 %v15211_v41 }
 0x3d7   : > { %v13503_v49 = vpop.eup %13502  ;;  %v2200_v54 = vadd.f32 1.0, %v13501_v35  ;;  %10980 = vmatmul.mubr.f32.gmra.mrb[50].mxu1 %v2289_v19  ;;  %13522 = vtanh.f32 %v15215_v42  ;;  %v14118_v19 = vld [vmem:[%s14329_s18 + $0x18] sm:$0xff]  ;;  %v14120_v35 = vld [vmem:[%s14329_s18 + $0x28] sm:$0xff] }
 0x3d8   : > { %v13505_v27 = vpop.eup %13504  ;;  %v2203_v39 = vadd.f32 1.0, %v13503_v49  ;;  %10982 = vmatprep.mubr.f32.mxu1 %v2290_v7 }
 0x3d9   : > { %v13507_v57 = vpop.eup %13506  ;;  %13524 = vrcp.f32 %v2200_v54  ;;  %v2293_v29 = vmul.f32 %v13505_v27, %v15317_v40  ;;  %v14121_v54 = vld [vmem:[%s14329_s18 + $0x20] sm:$0xff] }
 0x3da   : > { %v13509_v62 = vpop.eup %13508  ;;  %13526 = vrcp.f32 %v2203_v39  ;;  %v2292_v52 = vmul.f32 %v13507_v57, %v15319_v44 }
 0x3db   : > { %v13511_v34 = vpop.eup %13510  ;;  %13528 = vtanh.f32 %v15217_v45  ;;  %v2202_v58 = vadd.f32 1.0, %v13509_v62  ;;  %10983 = vmatmul.mubr.f32.gmra.mrb[52].mxu1 %v2291_v60 }
 0x3dc   : > { %v13513_v41 = vpop.eup %13512  ;;  %13530 = vtanh.f32 %v15221_v46  ;;  %v2205_v55 = vadd.f32 1.0, %v13511_v34  ;;  %10985 = vmatprep.mubr.f32.mxu1 %v2292_v52  ;;  %v14123_v34 = vld [vmem:[%s14329_s18 + $0x30] sm:$0xff] }
 0x3dd   : > { %v13515_v42 = vpop.eup %13514  ;;  %13532 = vrcp.f32 %v2202_v58  ;;  %v2295_v59 = vmul.f32 %v13513_v41, %v15321_v30 }
 0x3de   : > { %v13517_v36 = vpop.eup %13516  ;;  %13534 = vrcp.f32 %v2205_v55  ;;  %v2294_v40 = vmul.f32 %v13515_v42, %v15323_v51  ;;  %v14124_v42 = vld [vmem:[%s14329_s18 + $0x48] sm:$0xff] }
 0x3df   : > { %v13519_v48 = vpop.eup %13518  ;;  %v2204_v44 = vadd.f32 1.0, %v13517_v36  ;;  %10986 = vmatmul.mubr.f32.gmra.mrb[54].mxu1 %v2293_v29  ;;  %13536 = vtanh.f32 %v15223_v50  ;;  %v14122_v29 = vld [vmem:[%s14329_s18 + $0x38] sm:$0xff] }
 0x3e0   : > { %10988 = vmatprep.mubr.f32.mxu1 %v2294_v40  ;;  %v2297_v45 = vmul.f32 %v13519_v48, %v15333_v23  ;;  %v13521_v12 = vpop.eup %13520  ;;  %v14125_v40 = vld [vmem:[%s14329_s18 + $0x40] sm:$0xff] }
 0x3e1   : > { %13538 = vrcp.f32 %v2204_v44  ;;  %v13523_v46 = vpop.eup %13522 }
 0x3e3   : > { %v13525_v1 = vpop.eup %13524  ;;  %10989 = vmatmul.mubr.f32.gmra.mrb[56].mxu1 %v2295_v59 }
 0x3e4   : > { %v13527_v28 = vpop.eup %13526  ;;  %v2296_v13 = vmul.f32 %v13525_v1, %v13521_v12  ;;  %v14126_v12 = vld [vmem:[%s14329_s18 + $0x58] sm:$0xff] }
 0x3e5   : > { %v13529_v30 = vpop.eup %13528  ;;  %v2299_v63 = vmul.f32 %v13527_v28, %v13523_v46  ;;  %v14127_v28 = vld [vmem:[%s14329_s18 + $0x50] sm:$0xff] }
 0x3e6   : > { %v13531_v38 = vpop.eup %13530  ;;  %10991 = vmatprep.mubr.f32.mxu1 %v2296_v13 }
 0x3e7   : > { %v13533_v51 = vpop.eup %13532  ;;  %10992 = vmatmul.mubr.f32.gmra.mrb[58].mxu1 %v2297_v45 }
 0x3e8   : > { %v13535_v9 = vpop.eup %13534  ;;  %v2298_v50 = vmul.f32 %v13533_v51, %v13529_v30 }
 0x3e9   : > { %v2301_v11 = vmul.f32 %v13535_v9, %v13531_v38  ;;  %v13537_v14 = vpop.eup %13536  ;;  %v14128_v38 = vld [vmem:[%s14329_s18 + $0x68] sm:$0xff] }
 0x3ea   : > { %10994 = vmatprep.mubr.f32.mxu1 %v2298_v50  ;;  %v14129_v50 = vld [vmem:[%s14329_s18 + $0x60] sm:$0xff] }
 0x3eb   : > { %v13539_v23 = vpop.eup %13538  ;;  %10995 = vmatmul.mubr.f32.gmra.mrb[60].mxu1 %v2299_v63 }
 0x3ec   : > { %v2300_v18 = vmul.f32 %v13539_v23, %v13537_v14 }
 0x3ee   : > { %10997 = vmatprep.mubr.f32.mxu1 %v2300_v18  ;;  %v14130_v18 = vld [vmem:[%s14329_s18 + $0x78] sm:$0xff] }
 0x3ef   : > { %10998 = vmatmul.mubr.f32.gmra.mrb[62].mxu1 %v2301_v11 }
 0x3f0   : > { %9118 = vmatprep.mubr.msk.f32.mxu1 %vm2616_vm13, %v18302_v15 }
 0x483   : > { %v10954_v10 = vpop.f32.mrb[32].mxu1 }
 0x484   : > { %v15363_v26 = vadd.f32 %v14116_v17, %v10954_v10  ;;  %v2384_v47 = vpop.f32.mrb[33].mxu1 }
 0x485   : > { %v15366_v0 = vadd.f32 %v14117_v25, %v2384_v47  ;;  %v14131_v47 = vld [vmem:[%s14329_s18 + $0x70] sm:$0xff] }
 0x487   : > { %v10957_v22 = vpop.f32.mrb[34].mxu1  ;;  %v12425_v32 = vpack.c.bf16 %v15363_v26, %v15366_v0 }
 0x488   : > { %v15371_v53 = vadd.f32 %v14118_v19, %v10957_v22  ;;  %v2394_v20 = vpop.f32.mrb[35].mxu1  ;;  %v14132_v19 = vld [vmem:[%s14329_s18 + $0x88] sm:$0xff] }
 0x489   : > { %v15374_v24 = vadd.f32 %v14119_v33, %v2394_v20  ;;  %12426 = vmatpush1.bf16.msra.mxu0 %v12425_v32  ;;  %13064 = vmatpush1.bf16.msra.mxu1 %v12425_v32 }
 0x48a   : > { %12427 = vmatprep.subr.bf16.mxu0 %v18300_v8  ;;  %13049 = vmatprep.subr.bf16.mxu1 %v18300_v8 }
 0x48b   : > { %v10960_v31 = vpop.f32.mrb[36].mxu1  ;;  %v12428_v60 = vpack.c.bf16 %v15371_v53, %v15374_v24 }
 0x48c   : > { %v15381_v7 = vadd.f32 %v14120_v35, %v10960_v31  ;;  %v2404_v49 = vpop.f32.mrb[37].mxu1  ;;  %v14133_v31 = vld [vmem:[%s14329_s18 + $0x80] sm:$0xff] }
 0x48d   : > { %v15384_v27 = vadd.f32 %v14121_v54, %v2404_v49  ;;  %12429 = vmatpush1.bf16.msra.mxu0 %v12428_v60  ;;  %13065 = vmatpush1.bf16.msra.mxu1 %v12428_v60  ;;  %v14134_v54 = vld [vmem:[%s14329_s18 + $0x98] sm:$0xff] }
 0x48e   : > { %12430 = vmatprep.subr.bf16.mxu0 %v18300_v8  ;;  %13050 = vmatprep.subr.bf16.mxu1 %v18300_v8 }
 0x48f   : > { %v12431_v39 = vpack.c.bf16 %v15381_v7, %v15384_v27 }
 0x491   : > { %v10963_v57 = vpop.f32.mrb[38].mxu1  ;;  %12432 = vmatpush1.bf16.msra.mxu0 %v12431_v39  ;;  %13066 = vmatpush1.bf16.msra.mxu1 %v12431_v39 }
 0x492   : > { %v15391_v62 = vadd.f32 %v14122_v29, %v10963_v57  ;;  %v2414_v52 = vpop.f32.mrb[39].mxu1  ;;  %12433 = vmatprep.subr.bf16.mxu0 %v18300_v8  ;;  %13051 = vmatprep.subr.bf16.mxu1 %v18300_v8  ;;  %v14135_v29 = vld [vmem:[%s14329_s18 + $0x90] sm:$0xff] }
 0x493   : > { %v15396_v58 = vadd.f32 %v14123_v34, %v2414_v52 }
 0x495   : > { %v10966_v41 = vpop.f32.mrb[40].mxu1  ;;  %v12434_v55 = vpack.c.bf16 %v15391_v62, %v15396_v58 }
 0x496   : > { %v15401_v59 = vadd.f32 %v14124_v42, %v10966_v41  ;;  %v2424_v36 = vpop.f32.mrb[41].mxu1 }
 0x497   : > { %v15404_v48 = vadd.f32 %v14125_v40, %v2424_v36  ;;  %12435 = vmatpush1.bf16.msra.mxu0 %v12434_v55  ;;  %13067 = vmatpush1.bf16.msra.mxu1 %v12434_v55  ;;  %v14136_v55 = vld [vmem:[%s14329_s18 + $0xa8] sm:$0xff]  ;;  %v14137_v40 = vld [vmem:[%s14329_s18 + $0xa0] sm:$0xff] }
 0x498   : > { %12436 = vmatprep.subr.bf16.mxu0 %v18300_v8  ;;  %13052 = vmatprep.subr.bf16.mxu1 %v18300_v8 }
 0x499   : > { %v10969_v44 = vpop.f32.mrb[42].mxu1  ;;  %v12437_v45 = vpack.c.bf16 %v15401_v59, %v15404_v48 }
 0x49a   : > { %v15411_v46 = vadd.f32 %v14126_v12, %v10969_v44  ;;  %v2434_v1 = vpop.f32.mrb[43].mxu1 }
 0x49b   : > { %v15414_v13 = vadd.f32 %v14127_v28, %v2434_v1  ;;  %12438 = vmatpush1.bf16.msra.mxu0 %v12437_v45  ;;  %13068 = vmatpush1.bf16.msra.mxu1 %v12437_v45  ;;  %v14138_v1 = vld [vmem:[%s14329_s18 + $0xb8] sm:$0xff] }
 0x49c   : > { %12439 = vmatprep.subr.bf16.mxu0 %v18300_v8  ;;  %13053 = vmatprep.subr.bf16.mxu1 %v18300_v8 }
 0x49d   : > { %v10972_v30 = vpop.f32.mrb[44].mxu1  ;;  %v12440_v63 = vpack.c.bf16 %v15411_v46, %v15414_v13 }
 0x49e   : > { %v15421_v51 = vadd.f32 %v14128_v38, %v10972_v30  ;;  %v2444_v9 = vpop.f32.mrb[45].mxu1 }
 0x49f   : > { %v15424_v11 = vadd.f32 %v14129_v50, %v2444_v9  ;;  %12441 = vmatpush1.bf16.msra.mxu0 %v12440_v63  ;;  %13069 = vmatpush1.bf16.msra.mxu1 %v12440_v63  ;;  %v14139_v63 = vld [vmem:[%s14329_s18 + $0xb0] sm:$0xff] }
 0x4a0   : > { %12442 = vmatprep.subr.bf16.mxu0 %v18300_v8  ;;  %13054 = vmatprep.subr.bf16.mxu1 %v18300_v8 }
 0x4a1   : > { %v10975_v14 = vpop.f32.mrb[46].mxu1  ;;  %v12443_v23 = vpack.c.bf16 %v15421_v51, %v15424_v11 }
 0x4a2   : > { %v15431_v10 = vadd.f32 %v14130_v18, %v10975_v14  ;;  %v2454_v17 = vpop.f32.mrb[47].mxu1  ;;  %v14140_v14 = vld [vmem:[%s14329_s18 + $0xc8] sm:$0xff] }
 0x4a3   : > { %v15434_v25 = vadd.f32 %v14131_v47, %v2454_v17  ;;  %12444 = vmatpush1.bf16.msra.mxu0 %v12443_v23  ;;  %13070 = vmatpush1.bf16.msra.mxu1 %v12443_v23  ;;  %v14141_v17 = vld [vmem:[%s14329_s18 + $0xc0] sm:$0xff] }
 0x4a4   : > { %18303 = vst [vmem:[#allocation44_spill] sm:$0xff] %v15431_v10  ;;  %12445 = vmatprep.subr.bf16.mxu0 %v18300_v8  ;;  %13055 = vmatprep.subr.bf16.mxu1 %v18300_v8 }
 0x4a5   : > { %18304 = vst [vmem:[#allocation45_spill] sm:$0xff] %v15434_v25  ;;  %v10978_v22 = vpop.f32.mrb[48].mxu1  ;;  %v12446_v32 = vpack.c.bf16 %v15431_v10, %v15434_v25 }
 0x4a6   : > { %v15441_v20 = vadd.f32 %v14132_v19, %v10978_v22  ;;  %v2464_v33 = vpop.f32.mrb[49].mxu1  ;;  %v14142_v19 = vld [vmem:[%s14329_s18 + $0xd8] sm:$0xff] }
 0x4a7   : > { %v15444_v60 = vadd.f32 %v14133_v31, %v2464_v33  ;;  %12447 = vmatpush1.bf16.msra.mxu0 %v12446_v32  ;;  %13071 = vmatpush1.bf16.msra.mxu1 %v12446_v32 }
 0x4a8   : > { %18305 = vst [vmem:[#allocation46_spill] sm:$0xff] %v15441_v20  ;;  %12448 = vmatprep.subr.bf16.mxu0 %v18300_v8  ;;  %13056 = vmatprep.subr.bf16.mxu1 %v18300_v8 }
 0x4a9   : > { %18306 = vst [vmem:[#allocation47_spill] sm:$0xff] %v15444_v60  ;;  %v12449_v35 = vpack.c.bf16 %v15441_v20, %v15444_v60 }
 0x4aa   : > { %v10981_v49 = vpop.f32.mrb[50].mxu1 }
 0x4ab   : > { %v15451_v39 = vadd.f32 %v14134_v54, %v10981_v49  ;;  %v2474_v57 = vpop.f32.mrb[51].mxu1  ;;  %12450 = vmatpush1.bf16.msra.mxu0 %v12449_v35  ;;  %13072 = vmatpush1.bf16.msra.mxu1 %v12449_v35  ;;  %v14143_v35 = vld [vmem:[%s14329_s18 + $0xd0] sm:$0xff] }
 0x4ac   : > { %v15454_v52 = vadd.f32 %v14135_v29, %v2474_v57  ;;  %12451 = vmatprep.subr.bf16.mxu0 %v18300_v8  ;;  %13057 = vmatprep.subr.bf16.mxu1 %v18300_v8  ;;  %v14144_v29 = vld [vmem:[%s14329_s18 + $0xe8] sm:$0xff] }
 0x4ad   : > { %18307 = vst [vmem:[#allocation48_spill] sm:$0xff] %v15451_v39 }
 0x4ae   : > { %18308 = vst [vmem:[#allocation49_spill] sm:$0xff] %v15454_v52  ;;  %v10984_v34 = vpop.f32.mrb[52].mxu1  ;;  %v12452_v41 = vpack.c.bf16 %v15451_v39, %v15454_v52 }
 0x4af   : > { %v15461_v42 = vadd.f32 %v14136_v55, %v10984_v34  ;;  %v2484_v36 = vpop.f32.mrb[53].mxu1  ;;  %v14145_v55 = vld [vmem:[%s14329_s18 + $0xe0] sm:$0xff] }
 0x4b0   : > { %v15464_v44 = vadd.f32 %v14137_v40, %v2484_v36  ;;  %12453 = vmatpush1.bf16.msra.mxu0 %v12452_v41  ;;  %13073 = vmatpush1.bf16.msra.mxu1 %v12452_v41 }
 0x4b1   : > { %18309 = vst [vmem:[#allocation50_spill] sm:$0xff] %v15461_v42  ;;  %12454 = vmatprep.subr.bf16.mxu0 %v18300_v8  ;;  %13058 = vmatprep.subr.bf16.mxu1 %v18300_v8 }
 0x4b2   : > { %18310 = vst [vmem:[#allocation51_spill] sm:$0xff] %v15464_v44  ;;  %v10987_v45 = vpop.f32.mrb[54].mxu1  ;;  %v12455_v12 = vpack.c.bf16 %v15461_v42, %v15464_v44 }
 0x4b3   : > { %v15471_v28 = vadd.f32 %v14138_v1, %v10987_v45  ;;  %v2494_v30 = vpop.f32.mrb[55].mxu1  ;;  %v9147_v1 = vld [vmem:[%s18074_s3 + $0x88] sm:$0xff] }
 0x4b4   : > { %v15474_v38 = vadd.f32 %v14139_v63, %v2494_v30  ;;  %12456 = vmatpush1.bf16.msra.mxu0 %v12455_v12  ;;  %13074 = vmatpush1.bf16.msra.mxu1 %v12455_v12  ;;  %v9146_v12 = vld [vmem:[%s18074_s3 + $0x80] sm:$0xff]  ;;  %v14146_v30 = vld [vmem:[%s14329_s18 + $0xf8] sm:$0xff] }
 0x4b5   : > { %18311 = vst [vmem:[#allocation52_spill] sm:$0xff] %v15471_v28  ;;  %12457 = vmatprep.subr.bf16.mxu0 %v18300_v8  ;;  %13059 = vmatprep.subr.bf16.mxu1 %v18300_v8 }
 0x4b6   : > { %18312 = vst [vmem:[#allocation53_spill] sm:$0xff] %v15474_v38  ;;  %v10990_v9 = vpop.f32.mrb[56].mxu1  ;;  %v12458_v50 = vpack.c.bf16 %v15471_v28, %v15474_v38 }
 0x4b7   : > { %v15481_v23 = vadd.f32 %v14140_v14, %v10990_v9  ;;  %v2504_v18 = vpop.f32.mrb[57].mxu1 }
 0x4b8   : > { %v15484_v47 = vadd.f32 %v14141_v17, %v2504_v18  ;;  %12459 = vmatpush1.bf16.msra.mxu0 %v12458_v50  ;;  %13075 = vmatpush1.bf16.msra.mxu1 %v12458_v50  ;;  %v14147_v50 = vld [vmem:[%s14329_s18 + $0xf0] sm:$0xff]  ;;  %v12472_v18 = vpack.c.bf16 %v9147_v1, %v9146_v12  ;;  %v18325_v12 = vld [vmem:[#allocation5_spill] sm:$0xff]  ;;  %v18326_v1 = vld [vmem:[#allocation27_spill] sm:$0xff] }
 0x4b9   : > { %18313 = vst [vmem:[#allocation54_spill] sm:$0xff] %v15481_v23  ;;  %12460 = vmatprep.subr.bf16.mxu0 %v18300_v8  ;;  %13060 = vmatprep.subr.bf16.mxu1 %v18300_v8  ;;  %vm2579_vm8 = vcmp.eq.s32.totalorder %v18325_v12, 2  ;;  %vm2622_vm9 = vcmp.eq.s32.totalorder %v18326_v1, 2  ;;  %v18349_v1 = vld [vmem:[#allocation20_spill] sm:$0xff] }
 0x4ba   : > { %18314 = vst [vmem:[#allocation55_spill] sm:$0xff] %v15484_v47  ;;  %v12461_v22 = vpack.c.bf16 %v15481_v23, %v15484_v47  ;;  %v10993_v32 = vpop.f32.mrb[58].mxu1 }
 0x4bb   : > { %v15491_v33 = vadd.f32 %v14142_v19, %v10993_v32  ;;  %v2514_v31 = vpop.f32.mrb[59].mxu1  ;;  %v9149_v32 = vld [vmem:[%s18074_s3 + $0x98] sm:$0xff]  ;;  %v18321_v19 = vld [vmem:[#allocation3_spill] sm:$0xff] }
 0x4bc   : > { %v15494_v49 = vadd.f32 %v14143_v35, %v2514_v31  ;;  %12462 = vmatpush1.bf16.msra.mxu0 %v12461_v22  ;;  %13076 = vmatpush1.bf16.msra.mxu1 %v12461_v22  ;;  %v9148_v22 = vld [vmem:[%s18074_s3 + $0x90] sm:$0xff]  ;;  %vm2575_vm14 = vcmp.eq.s32.totalorder %v18321_v19, 2  ;;  %v18322_v31 = vld [vmem:[#allocation25_spill] sm:$0xff] }
 0x4bd   : > { %18315 = vst [vmem:[#allocation56_spill] sm:$0xff] %v15491_v33  ;;  %12463 = vmatprep.subr.bf16.mxu0 %v18300_v8  ;;  %13061 = vmatprep.subr.bf16.mxu1 %v18300_v8  ;;  %vm2618_vm15 = vcmp.eq.s32.totalorder %v18322_v31, 2  ;;  %v12476_v35 = vpack.c.bf16 %v9149_v32, %v9148_v22  ;;  %v9156_v32 = vld [vmem:[%s18074_s3 + $0xd0] sm:$0xff]  ;;  %v18351_v31 = vld [vmem:[#allocation22_spill] sm:$0xff] }
 0x4be   : > { %18316 = vst [vmem:[#allocation57_spill] sm:$0xff] %v15494_v49  ;;  %v12464_v54 = vpack.c.bf16 %v15491_v33, %v15494_v49  ;;  %v10996_v57 = vpop.f32.mrb[60].mxu1 }
 0x4bf   : > { %v15501_v34 = vadd.f32 %v14144_v29, %v10996_v57  ;;  %v2524_v41 = vpop.f32.mrb[61].mxu1  ;;  %v9151_v57 = vld [vmem:[%s18074_s3 + $0xa8] sm:$0xff]  ;;  %v18323_v29 = vld [vmem:[#allocation4_spill] sm:$0xff] }
 0x4c0   : > { %v15504_v36 = vadd.f32 %v14145_v55, %v2524_v41  ;;  %12465 = vmatpush1.bf16.msra.mxu0 %v12464_v54  ;;  %13077 = vmatpush1.bf16.msra.mxu1 %v12464_v54  ;;  %v9150_v54 = vld [vmem:[%s18074_s3 + $0xa0] sm:$0xff]  ;;  %vm2577_vm1 = vcmp.eq.s32.totalorder %v18323_v29, 2 }
 0x4c1   : > { %18317 = vst [vmem:[#allocation58_spill] sm:$0xff] %v15501_v34  ;;  %12466 = vmatprep.subr.bf16.mxu0 %v18300_v8  ;;  %13062 = vmatprep.subr.bf16.mxu1 %v18300_v8  ;;  %v18324_v41 = vld [vmem:[#allocation26_spill] sm:$0xff]  ;;  %v12480_v55 = vpack.c.bf16 %v9151_v57, %v9150_v54  ;;  %v18329_v54 = vld [vmem:[#allocation7_spill] sm:$0xff]  ;;  %v18330_v57 = vld [vmem:[#allocation29_spill] sm:$0xff] }
 0x4c2   : > { %18318 = vst [vmem:[#allocation59_spill] sm:$0xff] %v15504_v36  ;;  %v12467_v40 = vpack.c.bf16 %v15501_v34, %v15504_v36  ;;  %v10999_v45 = vpop.f32.mrb[62].mxu1  ;;  %vm2620_vm2 = vcmp.eq.s32.totalorder %v18324_v41, 2  ;;  %v18350_v41 = vld [vmem:[#allocation21_spill] sm:$0xff] }
 0x4c3   : > { %v15517_v63 = vadd.f32 %v14146_v30, %v10999_v45  ;;  %v2534_v9 = vpop.f32.mrb[63].mxu1  ;;  %v9153_v45 = vld [vmem:[%s18074_s3 + $0xb8] sm:$0xff] }
 0x4c4   : > { %v15520_v14 = vadd.f32 %v14147_v50, %v2534_v9  ;;  %12468 = vmatpush1.bf16.msra.mxu0 %v12467_v40  ;;  %13078 = vmatpush1.bf16.msra.mxu1 %v12467_v40  ;;  %v9152_v40 = vld [vmem:[%s18074_s3 + $0xb0] sm:$0xff]  ;;  %v9154_v9 = vld [vmem:[%s18074_s3 + $0xc0] sm:$0xff]  ;;  %v9155_v50 = vld [vmem:[%s18074_s3 + $0xc8] sm:$0xff] }
 0x4c5   : > { %18319 = vst [vmem:[#allocation60_spill] sm:$0xff] %v15517_v63  ;;  %12469 = vmatprep.subr.bf16.mxu0 %v18300_v8  ;;  %13063 = vmatprep.subr.bf16.mxu1 %v18300_v8  ;;  %v12484_v30 = vpack.c.bf16 %v9153_v45, %v9152_v40  ;;  %v12488_v22 = vpack.c.bf16 %v9155_v50, %v9154_v9  ;;  %v9158_v40 = vld [vmem:[%s18074_s3 + $0xe0] sm:$0xff]  ;;  %v9159_v45 = vld [vmem:[%s18074_s3 + $0xe8] sm:$0xff] }
 0x4c6   : > { %18320 = vst [vmem:[#allocation61_spill] sm:$0xff] %v15520_v14  ;;  %v12470_v17 = vpack.c.bf16 %v15517_v63, %v15520_v14  ;;  %v18332_v9 = vld [vmem:[#allocation30_spill] sm:$0xff]  ;;  %v12496_v50 = vpack.c.bf16 %v9159_v45, %v9158_v40  ;;  %v18337_v40 = vld [vmem:[#allocation11_spill] sm:$0xff]  ;;  %v18338_v45 = vld [vmem:[#allocation33_spill] sm:$0xff] }
 0x4c8   : > { %12471 = vmatpush1.bf16.msra.mxu0 %v12470_v17  ;;  %13079 = vmatpush1.bf16.msra.mxu1 %v12470_v17  ;;  %v18328_v17 = vld [vmem:[#allocation28_spill] sm:$0xff] }
 0x4c9   : > { %12473 = vmatprep.subr.bf16.mxu1 %v12472_v18  ;;  %12553 = vmatprep.subr.msk.bf16.mxu0 %vm14887_vm7, %v18156_v37 }
 0x4cb   : > { %9097 = vmatmul.mubr.msk.f32.vlgmr.msra.gmra.mrb[96].mxu0 %vm2575_vm14, %v18302_v15  ;;  %2868 = vmatmul.mubr.f32.vlgmr.msra.gmra.mrb[64].mxu1 %v18263_v5  ;;  %vm2624_vm14 = vcmp.eq.s32.totalorder %v18328_v17, 2  ;;  %v18348_v17 = vld [vmem:[#allocation19_spill] sm:$0xff] }
 0x4cc   : > { %2772 = vmatprep.mubr.f32.mxu0 %v18263_v5  ;;  %9119 = vmatprep.mubr.msk.f32.mxu1 %vm2618_vm15, %v18302_v15  ;;  %vm2583_vm15 = vcmp.eq.s32.totalorder %v18329_v54, 2 }
 0x4cd   : > { %12475 = vmatpush3.bf16.msra.mxu1 %v12472_v18  ;;  %12555 = vmatpush3.bf16.msk.msra.mxu0 %vm14887_vm7, %v18156_v37  ;;  %v18327_v18 = vld [vmem:[#allocation6_spill] sm:$0xff] }
 0x4ce   : > { %12477 = vmatprep.subr.bf16.mxu1 %v12476_v35  ;;  %12557 = vmatprep.subr.msk.bf16.mxu0 %vm14898_vm12, %v18156_v37  ;;  %vm2581_vm13 = vcmp.eq.s32.totalorder %v18327_v18, 2 }
 0x4cf   : > { %9098 = vmatmul.mubr.msk.f32.gmra.mrb[98].mxu0 %vm2577_vm1, %v18302_v15  ;;  %2873 = vmatmul.mubr.f32.gmra.mrb[66].mxu1 %v18263_v5  ;;  %vm2626_vm1 = vcmp.eq.s32.totalorder %v18330_v57, 2  ;;  %v18347_v57 = vld [vmem:[#allocation18_spill] sm:$0xff] }
 0x4d0   : > { %2777 = vmatprep.mubr.f32.mxu0 %v18263_v5  ;;  %9120 = vmatprep.mubr.msk.f32.mxu1 %vm2620_vm2, %v18302_v15 }
 0x4d1   : > { %12479 = vmatpush3.bf16.msra.mxu1 %v12476_v35  ;;  %12559 = vmatpush3.bf16.msk.msra.mxu0 %vm14898_vm12, %v18156_v37  ;;  %v9157_v35 = vld [vmem:[%s18074_s3 + $0xd8] sm:$0xff] }
 0x4d2   : > { %12481 = vmatprep.subr.bf16.mxu1 %v12480_v55  ;;  %12561 = vmatprep.subr.msk.bf16.mxu0 %vm14916_vm0, %v18156_v37 }
 0x4d3   : > { %9099 = vmatmul.mubr.msk.f32.gmra.mrb[100].mxu0 %vm2579_vm8, %v18302_v15  ;;  %2878 = vmatmul.mubr.f32.gmra.mrb[68].mxu1 %v18263_v5  ;;  %vm2628_vm8 = vcmp.eq.s32.totalorder %v18332_v9, 2  ;;  %v18346_v9 = vld [vmem:[#allocation17_spill] sm:$0xff] }
 0x4d4   : > { %2782 = vmatprep.mubr.f32.mxu0 %v18263_v5  ;;  %9121 = vmatprep.mubr.msk.f32.mxu1 %vm2622_vm9, %v18302_v15 }
 0x4d5   : > { %12483 = vmatpush3.bf16.msra.mxu1 %v12480_v55  ;;  %12563 = vmatpush3.bf16.msk.msra.mxu0 %vm14916_vm0, %v18156_v37  ;;  %v12492_v55 = vpack.c.bf16 %v9157_v35, %v9156_v32  ;;  %v18333_v32 = vld [vmem:[#allocation9_spill] sm:$0xff]  ;;  %v18335_v35 = vld [vmem:[#allocation10_spill] sm:$0xff] }
 0x4d6   : > { %12485 = vmatprep.subr.bf16.mxu1 %v12484_v30  ;;  %12565 = vmatprep.subr.msk.bf16.mxu0 %vm14930_vm3, %v18156_v37  ;;  %vm2587_vm9 = vcmp.eq.s32.totalorder %v18333_v32, 2 }
 0x4d7   : > { %9100 = vmatmul.mubr.msk.f32.gmra.mrb[102].mxu0 %vm2581_vm13, %v18302_v15  ;;  %2883 = vmatmul.mubr.f32.gmra.mrb[70].mxu1 %v18263_v5 }
 0x4d8   : > { %2787 = vmatprep.mubr.f32.mxu0 %v18263_v5  ;;  %9122 = vmatprep.mubr.msk.f32.mxu1 %vm2624_vm14, %v18302_v15  ;;  %vm2589_vm14 = vcmp.eq.s32.totalorder %v18335_v35, 2 }
 0x4d9   : > { %12487 = vmatpush3.bf16.msra.mxu1 %v12484_v30  ;;  %12567 = vmatpush3.bf16.msk.msra.mxu0 %vm14930_vm3, %v18156_v37  ;;  %v18331_v30 = vld [vmem:[#allocation8_spill] sm:$0xff] }
 0x4da   : > { %12489 = vmatprep.subr.bf16.mxu1 %v12488_v22  ;;  %12569 = vmatprep.subr.msk.bf16.mxu0 %vm14973_vm10, %v18156_v37  ;;  %vm2585_vm2 = vcmp.eq.s32.totalorder %v18331_v30, 2 }
 0x4db   : > { %9101 = vmatmul.mubr.msk.f32.gmra.mrb[104].mxu0 %vm2583_vm15, %v18302_v15  ;;  %2888 = vmatmul.mubr.f32.gmra.mrb[72].mxu1 %v18263_v5 }
 0x4dc   : > { %2792 = vmatprep.mubr.f32.mxu0 %v18263_v5  ;;  %9123 = vmatprep.mubr.msk.f32.mxu1 %vm2626_vm1, %v18302_v15  ;;  %vm2591_vm1 = vcmp.eq.s32.totalorder %v18337_v40, 2 }
 0x4dd   : > { %12491 = vmatpush3.bf16.msra.mxu1 %v12488_v22  ;;  %12571 = vmatpush3.bf16.msk.msra.mxu0 %vm14973_vm10, %v18156_v37  ;;  %v18334_v22 = vld [vmem:[#allocation31_spill] sm:$0xff] }
 0x4de   : > { %12493 = vmatprep.subr.bf16.mxu1 %v12492_v55  ;;  %12573 = vmatprep.subr.msk.bf16.mxu0 %vm14882_vm6, %v18156_v37  ;;  %vm2630_vm13 = vcmp.eq.s32.totalorder %v18334_v22, 2  ;;  %v18343_v22 = vld [vmem:[#allocation14_spill] sm:$0xff] }
 0x4df   : > { %9102 = vmatmul.mubr.msk.f32.gmra.mrb[106].mxu0 %vm2585_vm2, %v18302_v15  ;;  %2893 = vmatmul.mubr.f32.gmra.mrb[74].mxu1 %v18263_v5  ;;  %vm2634_vm2 = vcmp.eq.s32.totalorder %v18338_v45, 2  ;;  %v18341_v45 = vld [vmem:[#allocation13_spill] sm:$0xff] }
 0x4e0   : > { %2797 = vmatprep.mubr.f32.mxu0 %v18263_v5  ;;  %9124 = vmatprep.mubr.msk.f32.mxu1 %vm2628_vm8, %v18302_v15 }
 0x4e1   : > { %12495 = vmatpush3.bf16.msra.mxu1 %v12492_v55  ;;  %12575 = vmatpush3.bf16.msk.msra.mxu0 %vm14882_vm6, %v18156_v37  ;;  %v18336_v55 = vld [vmem:[#allocation32_spill] sm:$0xff] }
 0x4e2   : > { %12497 = vmatprep.subr.bf16.mxu1 %v12496_v50  ;;  %12577 = vmatprep.subr.msk.bf16.mxu0 %vm14939_vm4, %v18156_v37  ;;  %vm2632_vm15 = vcmp.eq.s32.totalorder %v18336_v55, 2  ;;  %v18340_v55 = vld [vmem:[#allocation34_spill] sm:$0xff] }
 0x4e3   : > { %9103 = vmatmul.mubr.msk.f32.gmra.mrb[108].mxu0 %vm2587_vm9, %v18302_v15  ;;  %2898 = vmatmul.mubr.f32.gmra.mrb[76].mxu1 %v18263_v5  ;;  %vm2636_vm9 = vcmp.eq.s32.totalorder %v18340_v55, 2  ;;  %v18344_v55 = vld [vmem:[#allocation15_spill] sm:$0xff] }
 0x4e4   : > { %2802 = vmatprep.mubr.f32.mxu0 %v18263_v5  ;;  %9125 = vmatprep.mubr.msk.f32.mxu1 %vm2630_vm13, %v18302_v15  ;;  %vm2595_vm13 = vcmp.eq.s32.totalorder %v18341_v45, 2 }
 0x4e5   : > { %12499 = vmatpush3.bf16.msra.mxu1 %v12496_v50  ;;  %12579 = vmatpush3.bf16.msk.msra.mxu0 %vm14939_vm4, %v18156_v37  ;;  %v18339_v50 = vld [vmem:[#allocation12_spill] sm:$0xff] }
 0x4e6   : > { %12581 = vmatprep.subr.msk.bf16.mxu0 %vm14952_vm5, %v18156_v37  ;;  %vm2593_vm8 = vcmp.eq.s32.totalorder %v18339_v50, 2 }
 0x4e7   : > { %9104 = vmatmul.mubr.msk.f32.gmra.mrb[110].mxu0 %vm2589_vm14, %v18302_v15  ;;  %2903 = vmatmul.mubr.f32.gmra.mrb[78].mxu1 %v18263_v5 }
 0x4e8   : > { %2807 = vmatprep.mubr.f32.mxu0 %v18263_v5  ;;  %9126 = vmatprep.mubr.msk.f32.mxu1 %vm2632_vm15, %v18302_v15  ;;  %vm2597_vm15 = vcmp.eq.s32.totalorder %v18343_v22, 2 }
 0x4e9   : > { %12583 = vmatpush3.bf16.msk.msra.mxu0 %vm14952_vm5, %v18156_v37  ;;  %v18342_v37 = vld [vmem:[#allocation35_spill] sm:$0xff] }
 0x4ea   : > { %vm2638_vm14 = vcmp.eq.s32.totalorder %v18342_v37, 2  ;;  %v18345_v37 = vld [vmem:[#allocation16_spill] sm:$0xff] }
 0x4eb   : > { %9105 = vmatmul.mubr.msk.f32.gmra.mrb[112].mxu0 %vm2591_vm1, %v18302_v15  ;;  %2908 = vmatmul.mubr.f32.gmra.mrb[80].mxu1 %v18263_v5  ;;  %vm2599_vm1 = vcmp.eq.s32.totalorder %v18344_v55, 2 }
 0x4ec   : > { %2812 = vmatprep.mubr.f32.mxu0 %v18263_v5  ;;  %9127 = vmatprep.mubr.msk.f32.mxu1 %vm2634_vm2, %v18302_v15  ;;  %vm2601_vm2 = vcmp.eq.s32.totalorder %v18345_v37, 2  ;;  %v9132_v37 = vld [vmem:[%s18073_s2 + $0x90] sm:$0xff] }
 0x4ef   : > { %9106 = vmatmul.mubr.msk.f32.gmra.mrb[114].mxu0 %vm2593_vm8, %v18302_v15  ;;  %2913 = vmatmul.mubr.f32.gmra.mrb[82].mxu1 %v18263_v5  ;;  %vm2603_vm8 = vcmp.eq.s32.totalorder %v18346_v9, 2 }
 0x4f0   : > { %2817 = vmatprep.mubr.f32.mxu0 %v18263_v5  ;;  %9128 = vmatprep.mubr.msk.f32.mxu1 %vm2636_vm9, %v18302_v15  ;;  %vm2605_vm9 = vcmp.eq.s32.totalorder %v18347_v57, 2 }
 0x4f3   : > { %9107 = vmatmul.mubr.msk.f32.gmra.mrb[116].mxu0 %vm2595_vm13, %v18302_v15  ;;  %2918 = vmatmul.mubr.f32.gmra.mrb[84].mxu1 %v18263_v5  ;;  %vm2608_vm13 = vcmp.eq.s32.totalorder %v18348_v17, 2  ;;  %v9131_v17 = vld [vmem:[%s18073_s2 + $0x88] sm:$0xff] }
 0x4f4   : > { %2822 = vmatprep.mubr.f32.mxu0 %v18263_v5  ;;  %9129 = vmatprep.mubr.msk.f32.mxu1 %vm2638_vm14, %v18302_v15  ;;  %vm2607_vm14 = vcmp.eq.s32.totalorder %v18349_v1, 2 }
 0x4f7   : > { %9108 = vmatmul.mubr.msk.f32.gmra.mrb[118].mxu0 %vm2597_vm15, %v18302_v15  ;;  %2923 = vmatmul.mubr.f32.gmra.mrb[86].mxu1 %v18263_v5  ;;  %vm2610_vm15 = vcmp.eq.s32.totalorder %v18350_v41, 2  ;;  %v9160_v41 = vld [vmem:[%s18074_s3 + $0xf0] sm:$0xff] }
 0x4f8   : > { %2827 = vmatprep.mubr.f32.mxu0 %v18263_v5 }
 0x4fb   : > { %9109 = vmatmul.mubr.msk.f32.gmra.mrb[120].mxu0 %vm2599_vm1, %v18302_v15  ;;  %vm2612_vm1 = vcmp.eq.s32.totalorder %v18351_v31, 2  ;;  %v9161_v31 = vld [vmem:[%s18074_s3 + $0xf8] sm:$0xff] }
 0x4fc   : > { %2832 = vmatprep.mubr.f32.mxu0 %v18263_v5  ;;  %v12500_v1 = vpack.c.bf16 %v9161_v31, %v9160_v41  ;;  %v9133_v31 = vld [vmem:[%s18073_s2 + $0x98] sm:$0xff] }
 0x4fd   : > { %v12508_v22 = vpack.c.bf16 %v9133_v31, %v9132_v37  ;;  %v9136_v37 = vld [vmem:[%s18073_s2 + $0xb0] sm:$0xff]  ;;  %v9137_v31 = vld [vmem:[%s18073_s2 + $0xb8] sm:$0xff] }
 0x4fe   : > { %12501 = vmatprep.subr.bf16.mxu1 %v12500_v1 }
 0x4ff   : > { %9110 = vmatmul.mubr.msk.f32.gmra.mrb[122].mxu0 %vm2601_vm2, %v18302_v15  ;;  %vm2614_vm2 = vcmp.eq.s32.totalorder %v18352_v21, 2  ;;  %12503 = vmatpush3.bf16.msra.mxu1 %v12500_v1  ;;  %v9130_v21 = vld [vmem:[%s18073_s2 + $0x80] sm:$0xff] }
 0x500   : > { %2837 = vmatprep.mubr.f32.mxu0 %v18263_v5  ;;  %v12504_v57 = vpack.c.bf16 %v9131_v17, %v9130_v21  ;;  %v9134_v21 = vld [vmem:[%s18073_s2 + $0xa0] sm:$0xff]  ;;  %v9135_v17 = vld [vmem:[%s18073_s2 + $0xa8] sm:$0xff] }
 0x502   : > { %12505 = vmatprep.subr.bf16.mxu1 %v12504_v57 }
 0x503   : > { %9111 = vmatmul.mubr.msk.f32.gmra.mrb[124].mxu0 %vm2603_vm8, %v18302_v15 }
 0x504   : > { %2842 = vmatprep.mubr.f32.mxu0 %v18263_v5 }
 0x507   : > { %9112 = vmatmul.mubr.msk.f32.gmra.mrb[126].mxu0 %vm2605_vm9, %v18302_v15 }
 0x508   : > { %9113 = vmatprep.mubr.msk.f32.mxu0 %vm2608_vm13, %v18302_v15 }
 0x50b   : > { %9114 = vmatmul.mubr.msk.f32.gmra.mrb[128].mxu0 %vm2607_vm14, %v18302_v15 }
 0x50c   : > { %9115 = vmatprep.mubr.msk.f32.mxu0 %vm2610_vm15, %v18302_v15 }
 0x50f   : > { %2853 = vmatmul.mubr.f32.gmra.mrb[130].mxu0 %v18263_v5 }
 0x510   : > { %9116 = vmatprep.mubr.msk.f32.mxu0 %vm2612_vm1, %v18302_v15 }
 0x513   : > { %2858 = vmatmul.mubr.f32.gmra.mrb[132].mxu0 %v18263_v5 }
 0x514   : > { %9117 = vmatprep.mubr.msk.f32.mxu0 %vm2614_vm2, %v18302_v15 }
 0x517   : > { %2863 = vmatmul.mubr.f32.gmra.mrb[134].mxu0 %v18263_v5 }
 0x59e   : > { %v2769_v9 = vpop.f32.mrb[96].mxu0  ;;  %v15722_v41 = vpop.f32.mrb[64].mxu1 }
 0x59f   : > { %v2771_v1 = vpop.f32.mrb[97].mxu0  ;;  %11032 = vmatprep.mubr.f32.mxu1 %v2769_v9  ;;  %v2871_v55 = vpop.f32.mrb[65].mxu1 }
 0x5a0   : > { %v12512_v1 = vpack.c.bf16 %v9135_v17, %v9134_v21  ;;  %v9139_v21 = vld [vmem:[%s18073_s2 + $0xc8] sm:$0xff] }
 0x5a2   : > { %v2774_v45 = vpop.f32.mrb[98].mxu0  ;;  %v15730_v50 = vpop.f32.mrb[66].mxu1 }
 0x5a3   : > { %v2776_v40 = vpop.f32.mrb[99].mxu0  ;;  %11033 = vmatmul.mubr.f32.vlgmr.msra.gmra.mrb[88].mxu1 %v2774_v45  ;;  %v2876_v4 = vpop.f32.mrb[67].mxu1  ;;  %v9138_v45 = vld [vmem:[%s18073_s2 + $0xc0] sm:$0xff] }
 0x5a4   : > { %12507 = vmatpush3.bf16.msra.mxu1 %v12504_v57  ;;  %v12516_v4 = vpack.c.bf16 %v9137_v31, %v9136_v37  ;;  %v9141_v37 = vld [vmem:[%s18073_s2 + $0xd8] sm:$0xff] }
 0x5a5   : > { %12509 = vmatprep.subr.bf16.mxu1 %v12508_v22 }
 0x5a6   : > { %v2779_v9 = vpop.f32.mrb[100].mxu0  ;;  %v15732_v55 = vpop.f32.mrb[68].mxu1 }
 0x5a7   : > { %v2781_v35 = vpop.f32.mrb[101].mxu0  ;;  %11035 = vmatprep.mubr.f32.mxu1 %v2779_v9  ;;  %v2881_v3 = vpop.f32.mrb[69].mxu1  ;;  %v9140_v9 = vld [vmem:[%s18073_s2 + $0xd0] sm:$0xff] }
 0x5a8   : > { %12511 = vmatpush3.bf16.msra.mxu1 %v12508_v22  ;;  %v12520_v3 = vpack.c.bf16 %v9139_v21, %v9138_v45  ;;  %v9142_v45 = vld [vmem:[%s18073_s2 + $0xe0] sm:$0xff]  ;;  %v9143_v21 = vld [vmem:[%s18073_s2 + $0xe8] sm:$0xff] }
 0x5a9   : > { %12513 = vmatprep.subr.bf16.mxu1 %v12512_v1 }
 0x5aa   : > { %v2784_v57 = vpop.f32.mrb[102].mxu0  ;;  %v15740_v40 = vpop.f32.mrb[70].mxu1 }
 0x5ab   : > { %v2786_v17 = vpop.f32.mrb[103].mxu0  ;;  %11036 = vmatmul.mubr.f32.gmra.mrb[90].mxu1 %v2784_v57  ;;  %v2886_v32 = vpop.f32.mrb[71].mxu1 }
 0x5ac   : > { %12515 = vmatpush3.bf16.msra.mxu1 %v12512_v1  ;;  %v12524_v32 = vpack.c.bf16 %v9141_v37, %v9140_v9  ;;  %v9144_v9 = vld [vmem:[%s18073_s2 + $0xf0] sm:$0xff]  ;;  %v9145_v37 = vld [vmem:[%s18073_s2 + $0xf8] sm:$0xff] }
 0x5ad   : > { %12517 = vmatprep.subr.bf16.mxu1 %v12516_v4 }
 0x5ae   : > { %v2789_v22 = vpop.f32.mrb[104].mxu0  ;;  %v15748_v35 = vpop.f32.mrb[72].mxu1 }
 0x5af   : > { %v2791_v31 = vpop.f32.mrb[105].mxu0  ;;  %11038 = vmatprep.mubr.f32.mxu1 %v2789_v22  ;;  %v2891_v43 = vpop.f32.mrb[73].mxu1 }
 0x5b0   : > { %12519 = vmatpush3.bf16.msra.mxu1 %v12516_v4  ;;  %v12528_v43 = vpack.c.bf16 %v9143_v21, %v9142_v45  ;;  %v9162_v45 = vld [vmem:[%s18075_s4 + $0x40] sm:$0xff]  ;;  %v9163_v21 = vld [vmem:[%s18075_s4 + $0x48] sm:$0xff] }
 0x5b1   : > { %12521 = vmatprep.subr.bf16.mxu1 %v12520_v3 }
 0x5b2   : > { %v2794_v1 = vpop.f32.mrb[106].mxu0  ;;  %v15756_v57 = vpop.f32.mrb[74].mxu1 }
 0x5b3   : > { %v2796_v17 = vpop.f32.mrb[107].mxu0  ;;  %11039 = vmatmul.mubr.f32.gmra.mrb[92].mxu1 %v2794_v1  ;;  %v2896_v30 = vpop.f32.mrb[75].mxu1 }
 0x5b4   : > { %12523 = vmatpush3.bf16.msra.mxu1 %v12520_v3  ;;  %v12532_v30 = vpack.c.bf16 %v9145_v37, %v9144_v9 }
 0x5b5   : > { %12525 = vmatprep.subr.bf16.mxu1 %v12524_v32 }
 0x5b6   : > { %v2799_v4 = vpop.f32.mrb[108].mxu0  ;;  %v15764_v22 = vpop.f32.mrb[76].mxu1 }
 0x5b7   : > { %v2801_v31 = vpop.f32.mrb[109].mxu0  ;;  %11041 = vmatprep.mubr.f32.mxu1 %v2799_v4  ;;  %v2901_v6 = vpop.f32.mrb[77].mxu1  ;;  %v15778_v4 = vpack.c.bf16 %v9163_v21, %v9162_v45 }
 0x5b8   : > { %12527 = vmatpush3.bf16.msra.mxu1 %v12524_v32 }
 0x5b9   : > { %12529 = vmatprep.subr.bf16.mxu1 %v12528_v43 }
 0x5ba   : > { %v2804_v3 = vpop.f32.mrb[110].mxu0  ;;  %v2904_v1 = vpop.f32.mrb[78].mxu1 }
 0x5bb   : > { %v2806_v17 = vpop.f32.mrb[111].mxu0  ;;  %11042 = vmatmul.mubr.f32.gmra.mrb[94].mxu1 %v2804_v3  ;;  %v2906_v54 = vpop.f32.mrb[79].mxu1 }
 0x5bc   : > { %12531 = vmatpush3.bf16.msra.mxu1 %v12528_v43 }
 0x5bd   : > { %12533 = vmatprep.subr.bf16.mxu1 %v12532_v30 }
 0x5be   : > { %v2809_v6 = vpop.f32.mrb[112].mxu0  ;;  %v2909_v32 = vpop.f32.mrb[80].mxu1 }
 0x5bf   : > { %v2811_v9 = vpop.f32.mrb[113].mxu0  ;;  %11044 = vmatprep.mubr.f32.mxu1 %v2809_v6  ;;  %v2911_v37 = vpop.f32.mrb[81].mxu1 }
 0x5c0   : > { %12535 = vmatpush3.bf16.msra.mxu1 %v12532_v30 }
 0x5c1   : > { %12537 = vmatprep.subr.bf16.mxu1 %v15778_v4 }
 0x5c2   : > { %v2814_v31 = vpop.f32.mrb[114].mxu0  ;;  %v2914_v61 = vpop.f32.mrb[82].mxu1 }
 0x5c3   : > { %v2816_v18 = vpop.f32.mrb[115].mxu0  ;;  %11045 = vmatmul.mubr.f32.gmra.mrb[96].mxu1 %v2814_v31  ;;  %v2916_v16 = vpop.f32.mrb[83].mxu1 }
 0x5c6   : > { %v2819_v17 = vpop.f32.mrb[116].mxu0  ;;  %v2919_v3 = vpop.f32.mrb[84].mxu1 }
 0x5c7   : > { %v2821_v54 = vpop.f32.mrb[117].mxu0  ;;  %11047 = vmatprep.mubr.f32.mxu1 %v2819_v17  ;;  %v2921_v43 = vpop.f32.mrb[85].mxu1 }
 0x5ca   : > { %v2824_v45 = vpop.f32.mrb[118].mxu0  ;;  %v2924_v21 = vpop.f32.mrb[86].mxu1 }
 0x5cb   : > { %v2826_v12 = vpop.f32.mrb[119].mxu0  ;;  %11048 = vmatmul.mubr.f32.gmra.mrb[98].mxu1 %v2824_v45  ;;  %v2926_v9 = vpop.f32.mrb[87].mxu1 }
 0x5ce   : > { %v2829_v6 = vpop.f32.mrb[120].mxu0 }
 0x5cf   : > { %v2831_v37 = vpop.f32.mrb[121].mxu0  ;;  %11050 = vmatprep.mubr.f32.mxu1 %v2829_v6 }
 0x5d0   : > { %v14155_v37 = vld [vmem:[%s15032_s21 + $0x38] sm:$0xff] }
 0x5d2   : > { %v2834_v30 = vpop.f32.mrb[122].mxu0 }
 0x5d3   : > { %v2836_v2 = vpop.f32.mrb[123].mxu0  ;;  %11051 = vmatmul.mubr.f32.gmra.mrb[100].mxu1 %v2834_v30  ;;  %v14156_v30 = vld [vmem:[%s15032_s21 + $0x40] sm:$0xff] }
 0x5d4   : > { %v9164_v2 = vld [vmem:[%s18075_s4 + $0x50] sm:$0xff] }
 0x5d6   : > { %v2839_v29 = vpop.f32.mrb[124].mxu0 }
 0x5d7   : > { %v2841_v18 = vpop.f32.mrb[125].mxu0  ;;  %11053 = vmatprep.mubr.f32.mxu1 %v2839_v29 }
 0x5d8   : > { %v14157_v18 = vld [vmem:[%s15032_s21 + $0x48] sm:$0xff] }
 0x5da   : > { %v2844_v16 = vpop.f32.mrb[126].mxu0 }
 0x5db   : > { %v2846_v31 = vpop.f32.mrb[127].mxu0  ;;  %11054 = vmatmul.mubr.f32.gmra.mrb[102].mxu1 %v2844_v16  ;;  %v14158_v16 = vld [vmem:[%s15032_s21 + $0x50] sm:$0xff] }
 0x5dc   : > { %v14159_v31 = vld [vmem:[%s15032_s21 + $0x58] sm:$0xff] }
 0x5de   : > { %v2849_v54 = vpop.f32.mrb[128].mxu0 }
 0x5df   : > { %v2851_v17 = vpop.f32.mrb[129].mxu0  ;;  %11056 = vmatprep.mubr.f32.mxu1 %v2849_v54  ;;  %v14160_v54 = vld [vmem:[%s15032_s21 + $0x60] sm:$0xff] }
 0x5e0   : > { %v14161_v17 = vld [vmem:[%s15032_s21 + $0x68] sm:$0xff] }
 0x5e2   : > { %v2854_v43 = vpop.f32.mrb[130].mxu0 }
 0x5e3   : > { %v2856_v15 = vpop.f32.mrb[131].mxu0  ;;  %11057 = vmatmul.mubr.f32.gmra.mrb[104].mxu1 %v2854_v43  ;;  %v14162_v43 = vld [vmem:[%s15032_s21 + $0x70] sm:$0xff] }
 0x5e4   : > { %v9165_v15 = vld [vmem:[%s18075_s4 + $0x58] sm:$0xff] }
 0x5e5   : > { %v12540_v29 = vpack.c.bf16 %v9165_v15, %v9164_v2  ;;  %v14167_v2 = vld [vmem:[%s15032_s21 + $0x98] sm:$0xff]  ;;  %v14168_v15 = vld [vmem:[%s15032_s21 + $0xa0] sm:$0xff] }
 0x5e6   : > { %v2859_v12 = vpop.f32.mrb[132].mxu0 }
 0x5e7   : > { %v2861_v45 = vpop.f32.mrb[133].mxu0  ;;  %11059 = vmatprep.mubr.f32.mxu1 %v2859_v12  ;;  %v14163_v12 = vld [vmem:[%s15032_s21 + $0x78] sm:$0xff] }
 0x5e8   : > { %v14164_v45 = vld [vmem:[%s15032_s21 + $0x80] sm:$0xff] }
 0x5ea   : > { %v2864_v9 = vpop.f32.mrb[134].mxu0 }
 0x5eb   : > { %v2866_v6 = vpop.f32.mrb[135].mxu0  ;;  %11060 = vmatmul.mubr.f32.gmra.mrb[106].mxu1 %v2864_v9  ;;  %v14165_v9 = vld [vmem:[%s15032_s21 + $0x88] sm:$0xff] }
 0x5ec   : > { %11062 = vmatprep.mubr.f32.mxu1 %v15722_v41  ;;  %v14166_v6 = vld [vmem:[%s15032_s21 + $0x90] sm:$0xff] }
 0x5ef   : > { %11063 = vmatmul.mubr.f32.gmra.mrb[108].mxu1 %v15730_v50  ;;  %v9166_v50 = vld [vmem:[%s18075_s4 + $0x60] sm:$0xff] }
 0x5f0   : > { %11065 = vmatprep.mubr.f32.mxu1 %v15732_v55  ;;  %v9168_v55 = vld [vmem:[%s18075_s4 + $0x70] sm:$0xff] }
 0x5f3   : > { %11066 = vmatmul.mubr.f32.gmra.mrb[110].mxu1 %v15740_v40  ;;  %v9169_v40 = vld [vmem:[%s18075_s4 + $0x78] sm:$0xff] }
 0x5f4   : > { %11068 = vmatprep.mubr.f32.mxu1 %v15748_v35  ;;  %v12548_v35 = vpack.c.bf16 %v9169_v40, %v9168_v55  ;;  %v14173_v55 = vld [vmem:[%s15032_s21 + $0xc8] sm:$0xff]  ;;  %v14174_v40 = vld [vmem:[%s15032_s21 + $0xd0] sm:$0xff] }
 0x5f7   : > { %11069 = vmatmul.mubr.f32.gmra.mrb[112].mxu1 %v15756_v57  ;;  %v14148_v57 = vld [vmem:[%s15032_s21] sm:$0xff] }
 0x5f8   : > { %11071 = vmatprep.mubr.f32.mxu1 %v15764_v22  ;;  %v14149_v22 = vld [vmem:[%s15032_s21 + $0x8] sm:$0xff] }
 0x5fb   : > { %11072 = vmatmul.mubr.f32.gmra.mrb[114].mxu1 %v2904_v1  ;;  %v14150_v1 = vld [vmem:[%s15032_s21 + $0x10] sm:$0xff] }
 0x5fc   : > { %11074 = vmatprep.mubr.f32.mxu1 %v2909_v32  ;;  %v14152_v32 = vld [vmem:[%s15032_s21 + $0x20] sm:$0xff] }
 0x5ff   : > { %11075 = vmatmul.mubr.f32.gmra.mrb[116].mxu1 %v2914_v61  ;;  %v9167_v61 = vld [vmem:[%s18075_s4 + $0x68] sm:$0xff] }
 0x600   : > { %11077 = vmatprep.mubr.f32.mxu1 %v2919_v3  ;;  %v12544_v41 = vpack.c.bf16 %v9167_v61, %v9166_v50  ;;  %v14153_v3 = vld [vmem:[%s15032_s21 + $0x28] sm:$0xff]  ;;  %v14170_v50 = vld [vmem:[%s15032_s21 + $0xb0] sm:$0xff]  ;;  %v14171_v61 = vld [vmem:[%s15032_s21 + $0xb8] sm:$0xff] }
 0x603   : > { %11078 = vmatmul.mubr.f32.gmra.mrb[118].mxu1 %v2924_v21  ;;  %v14154_v21 = vld [vmem:[%s15032_s21 + $0x30] sm:$0xff] }
 0x604   : > { %11112 = vmatprep.mubr.f32.mxu1 %v15366_v0 }
 0x607   : > { %11113 = vmatmul.mubr.f32.vlgmr.msra.gmra.mrb[88].mxu1 %v15363_v26 }
 0x608   : > { %11115 = vmatprep.mubr.f32.mxu1 %v15374_v24  ;;  %12539 = vmatpush3.bf16.msra.mxu1 %v15778_v4  ;;  %v14151_v4 = vld [vmem:[%s15032_s21 + $0x18] sm:$0xff] }
 0x609   : > { %12541 = vmatprep.subr.bf16.mxu1 %v12540_v29 }
 0x60b   : > { %11116 = vmatmul.mubr.f32.gmra.mrb[90].mxu1 %v15371_v53 }
 0x60c   : > { %11118 = vmatprep.mubr.f32.mxu1 %v15384_v27  ;;  %12543 = vmatpush3.bf16.msra.mxu1 %v12540_v29  ;;  %v14169_v29 = vld [vmem:[%s15032_s21 + $0xa8] sm:$0xff] }
 0x60d   : > { %12545 = vmatprep.subr.bf16.mxu1 %v12544_v41 }
 0x60f   : > { %11119 = vmatmul.mubr.f32.gmra.mrb[92].mxu1 %v15381_v7 }
 0x610   : > { %11121 = vmatprep.mubr.f32.mxu1 %v15396_v58  ;;  %12547 = vmatpush3.bf16.msra.mxu1 %v12544_v41  ;;  %v14172_v41 = vld [vmem:[%s15032_s21 + $0xc0] sm:$0xff] }
 0x611   : > { %12549 = vmatprep.subr.bf16.mxu1 %v12548_v35 }
 0x613   : > { %11122 = vmatmul.mubr.f32.gmra.mrb[94].mxu1 %v15391_v62 }
 0x614   : > { %11124 = vmatprep.mubr.f32.mxu1 %v15404_v48  ;;  %12551 = vmatpush3.bf16.msra.mxu1 %v12548_v35  ;;  %v14175_v35 = vld [vmem:[%s15032_s21 + $0xd8] sm:$0xff] }
 0x615   : > { %12616 = vmatprep.subr.bf16.mxu1 %v18300_v8 }
 0x617   : > { %11125 = vmatmul.mubr.f32.gmra.mrb[96].mxu1 %v15401_v59 }
 0x618   : > { %11127 = vmatprep.mubr.f32.mxu1 %v15414_v13 }
 0x61b   : > { %11128 = vmatmul.mubr.f32.gmra.mrb[98].mxu1 %v15411_v46 }
 0x61c   : > { %11130 = vmatprep.mubr.f32.mxu1 %v15424_v11 }
 0x61f   : > { %11131 = vmatmul.mubr.f32.gmra.mrb[100].mxu1 %v15421_v51 }
 0x620   : > { %11133 = vmatprep.mubr.f32.mxu1 %v15434_v25 }
 0x623   : > { %11134 = vmatmul.mubr.f32.gmra.mrb[102].mxu1 %v15431_v10 }
 0x624   : > { %11136 = vmatprep.mubr.f32.mxu1 %v15444_v60 }
 0x627   : > { %11137 = vmatmul.mubr.f32.gmra.mrb[104].mxu1 %v15441_v20 }
 0x628   : > { %11139 = vmatprep.mubr.f32.mxu1 %v15454_v52 }
 0x62b   : > { %11140 = vmatmul.mubr.f32.gmra.mrb[106].mxu1 %v15451_v39 }
 0x62c   : > { %11142 = vmatprep.mubr.f32.mxu1 %v15464_v44 }
 0x62f   : > { %11143 = vmatmul.mubr.f32.gmra.mrb[108].mxu1 %v15461_v42 }
 0x630   : > { %11145 = vmatprep.mubr.f32.mxu1 %v15474_v38 }
 0x633   : > { %11146 = vmatmul.mubr.f32.gmra.mrb[110].mxu1 %v15471_v28 }
 0x634   : > { %11148 = vmatprep.mubr.f32.mxu1 %v15484_v47 }
 0x637   : > { %11149 = vmatmul.mubr.f32.gmra.mrb[112].mxu1 %v15481_v23  ;;  %v9264_v23 = vld [vmem:[%s18076_s5 + $0xf0] sm:$0xff] }
 0x638   : > { %11151 = vmatprep.mubr.f32.mxu1 %v15494_v49  ;;  %v9262_v49 = vld [vmem:[%s18076_s5 + $0xe0] sm:$0xff] }
 0x63b   : > { %11152 = vmatmul.mubr.f32.gmra.mrb[114].mxu1 %v15491_v33  ;;  %v9263_v33 = vld [vmem:[%s18076_s5 + $0xe8] sm:$0xff] }
 0x63c   : > { %11154 = vmatprep.mubr.f32.mxu1 %v15504_v36  ;;  %v9261_v36 = vld [vmem:[%s18076_s5 + $0xd8] sm:$0xff]  ;;  %v12608_v47 = vpack.c.bf16 %v9263_v33, %v9262_v49 }
 0x63f   : > { %11155 = vmatmul.mubr.f32.gmra.mrb[116].mxu1 %v15501_v34 }
 0x640   : > { %11157 = vmatprep.mubr.f32.mxu1 %v15520_v14 }
 0x643   : > { %11158 = vmatmul.mubr.f32.gmra.mrb[118].mxu1 %v15517_v63  ;;  %v9260_v63 = vld [vmem:[%s18076_s5 + $0xd0] sm:$0xff] }
 0x644   : > { %11176 = vmatprep.mubr.msk.f32.mxu1 %vm1467_vm11, %v14148_v57  ;;  %v14176_v57 = vld [vmem:[%s15032_s21 + $0xe0] sm:$0xff]  ;;  %v12604_v34 = vpack.c.bf16 %v9261_v36, %v9260_v63  ;;  %v9265_v36 = vld [vmem:[%s18076_s5 + $0xf8] sm:$0xff] }
 0x647   : > { %11177 = vmatmul.mubr.msk.f32.vlgmr.msra.gmra.mrb[88].mxu1 %vm1467_vm11, %v14149_v22  ;;  %v14177_v22 = vld [vmem:[%s15032_s21 + $0xe8] sm:$0xff] }
 0x648   : > { %11179 = vmatprep.mubr.msk.f32.mxu1 %vm1467_vm11, %v14150_v1  ;;  %v14178_v1 = vld [vmem:[%s15032_s21 + $0xf0] sm:$0xff] }
 0x64b   : > { %11180 = vmatmul.mubr.msk.f32.gmra.mrb[90].mxu1 %vm1467_vm11, %v14151_v4  ;;  %v14179_v4 = vld [vmem:[%s15032_s21 + $0xf8] sm:$0xff] }
 0x64c   : > { %11182 = vmatprep.mubr.msk.f32.mxu1 %vm1467_vm11, %v14152_v32  ;;  %v9250_v32 = vld [vmem:[%s18076_s5 + $0x80] sm:$0xff] }
 0x64f   : > { %11183 = vmatmul.mubr.msk.f32.gmra.mrb[92].mxu1 %vm1467_vm11, %v14153_v3  ;;  %v9251_v3 = vld [vmem:[%s18076_s5 + $0x88] sm:$0xff] }
 0x650   : > { %11185 = vmatprep.mubr.msk.f32.mxu1 %vm1467_vm11, %v14154_v21  ;;  %v12584_v21 = vpack.c.bf16 %v9251_v3, %v9250_v32 }
 0x652   : > { %12585 = vmatprep.subr.bf16.mxu0 %v12584_v21 }
 0x653   : > { %11186 = vmatmul.mubr.msk.f32.gmra.mrb[94].mxu1 %vm1467_vm11, %v14155_v37  ;;  %v9252_v37 = vld [vmem:[%s18076_s5 + $0x90] sm:$0xff] }
 0x654   : > { %11188 = vmatprep.mubr.msk.f32.mxu1 %vm1467_vm11, %v14156_v30  ;;  %v9253_v30 = vld [vmem:[%s18076_s5 + $0x98] sm:$0xff] }
 0x657   : > { %11189 = vmatmul.mubr.msk.f32.gmra.mrb[96].mxu1 %vm1467_vm11, %v14157_v18 }
 0x658   : > { %11191 = vmatprep.mubr.msk.f32.mxu1 %vm1467_vm11, %v14158_v16 }
 0x65b   : > { %11192 = vmatmul.mubr.msk.f32.gmra.mrb[98].mxu1 %vm1467_vm11, %v14159_v31  ;;  %v12588_v31 = vpack.c.bf16 %v9253_v30, %v9252_v37 }
 0x65c   : > { %11194 = vmatprep.mubr.msk.f32.mxu1 %vm1467_vm11, %v14160_v54  ;;  %v9254_v54 = vld [vmem:[%s18076_s5 + $0xa0] sm:$0xff] }
 0x65f   : > { %11195 = vmatmul.mubr.msk.f32.gmra.mrb[100].mxu1 %vm1467_vm11, %v14161_v17  ;;  %v9255_v17 = vld [vmem:[%s18076_s5 + $0xa8] sm:$0xff] }
 0x660   : > { %11197 = vmatprep.mubr.msk.f32.mxu1 %vm1467_vm11, %v14162_v43 }
 0x663   : > { %11198 = vmatmul.mubr.msk.f32.gmra.mrb[102].mxu1 %vm1467_vm11, %v14163_v12 }
 0x664   : > { %11200 = vmatprep.mubr.msk.f32.mxu1 %vm1467_vm11, %v14164_v45  ;;  %v12592_v45 = vpack.c.bf16 %v9255_v17, %v9254_v54 }
 0x667   : > { %11201 = vmatmul.mubr.msk.f32.gmra.mrb[104].mxu1 %vm1467_vm11, %v14165_v9  ;;  %v9256_v9 = vld [vmem:[%s18076_s5 + $0xb0] sm:$0xff] }
 0x668   : > { %11203 = vmatprep.mubr.msk.f32.mxu1 %vm1467_vm11, %v14166_v6  ;;  %v9257_v6 = vld [vmem:[%s18076_s5 + $0xb8] sm:$0xff] }
 0x66b   : > { %11204 = vmatmul.mubr.msk.f32.gmra.mrb[106].mxu1 %vm1467_vm11, %v14167_v2 }
 0x66c   : > { %11206 = vmatprep.mubr.msk.f32.mxu1 %vm1467_vm11, %v14168_v15 }
 0x66f   : > { %11207 = vmatmul.mubr.msk.f32.gmra.mrb[108].mxu1 %vm1467_vm11, %v14169_v29  ;;  %v12596_v29 = vpack.c.bf16 %v9257_v6, %v9256_v9 }
 0x670   : > { %11209 = vmatprep.mubr.msk.f32.mxu1 %vm1467_vm11, %v14170_v50  ;;  %v9258_v50 = vld [vmem:[%s18076_s5 + $0xc0] sm:$0xff] }
 0x673   : > { %11210 = vmatmul.mubr.msk.f32.gmra.mrb[110].mxu1 %vm1467_vm11, %v14171_v61  ;;  %v9259_v61 = vld [vmem:[%s18076_s5 + $0xc8] sm:$0xff] }
 0x674   : > { %11212 = vmatprep.mubr.msk.f32.mxu1 %vm1467_vm11, %v14172_v41 }
 0x677   : > { %11213 = vmatmul.mubr.msk.f32.gmra.mrb[112].mxu1 %vm1467_vm11, %v14173_v55 }
 0x678   : > { %11215 = vmatprep.mubr.msk.f32.mxu1 %vm1467_vm11, %v14174_v40  ;;  %v12600_v40 = vpack.c.bf16 %v9259_v61, %v9258_v50 }
 0x67b   : > { %11216 = vmatmul.mubr.msk.f32.gmra.mrb[114].mxu1 %vm1467_vm11, %v14175_v35 }
 0x67c   : > { %11218 = vmatprep.mubr.msk.f32.mxu1 %vm1467_vm11, %v14176_v57 }
 0x67f   : > { %11219 = vmatmul.mubr.msk.f32.gmra.mrb[116].mxu1 %vm1467_vm11, %v14177_v22 }
 0x680   : > { %11221 = vmatprep.mubr.msk.f32.mxu1 %vm1467_vm11, %v14178_v1 }
 0x683   : > { %11222 = vmatmul.mubr.msk.f32.gmra.mrb[118].mxu1 %vm1467_vm11, %v14179_v4 }
 0x684   : > { %4625 = vmatprep.mubr.f32.mxu1 %v18263_v5 }
 0x71a   : > { %v15917_v18 = vpop.f32.mrb[88].mxu1 }
 0x71b   : > { %v15919_v16 = vpop.f32.mrb[89].mxu1  ;;  %13540 = vtanh.f32 %v15917_v18 }
 0x71c   : > { %11256 = vmatprep.mubr.f32.mxu0 %v15919_v16  ;;  %13542 = vtanh.f32 %v15919_v16 }
 0x71d   : > { %11257 = vmatmul.mubr.f32.vlgmr.msra.gmra.mrb[136].mxu0 %v15917_v18 }
 0x71e   : > { %v15929_v43 = vpop.f32.mrb[90].mxu1  ;;  %12587 = vmatpush3.bf16.msra.mxu0 %v12584_v21 }
 0x71f   : > { %v15931_v12 = vpop.f32.mrb[91].mxu1  ;;  %12589 = vmatprep.subr.bf16.mxu0 %v12588_v31  ;;  %13544 = vtanh.f32 %v15929_v43 }
 0x720   : > { %11259 = vmatprep.mubr.f32.mxu0 %v15931_v12  ;;  %13546 = vtanh.f32 %v15931_v12 }
 0x721   : > { %11260 = vmatmul.mubr.f32.gmra.mrb[138].mxu0 %v15929_v43 }
 0x722   : > { %v15941_v2 = vpop.f32.mrb[92].mxu1  ;;  %12591 = vmatpush3.bf16.msra.mxu0 %v12588_v31 }
 0x723   : > { %v15943_v15 = vpop.f32.mrb[93].mxu1  ;;  %12593 = vmatprep.subr.bf16.mxu0 %v12592_v45  ;;  %13548 = vtanh.f32 %v15941_v2 }
 0x724   : > { %11262 = vmatprep.mubr.f32.mxu0 %v15943_v15  ;;  %13550 = vtanh.f32 %v15943_v15 }
 0x725   : > { %11263 = vmatmul.mubr.f32.gmra.mrb[140].mxu0 %v15941_v2 }
 0x726   : > { %v15953_v41 = vpop.f32.mrb[94].mxu1  ;;  %12595 = vmatpush3.bf16.msra.mxu0 %v12592_v45 }
 0x727   : > { %v15955_v55 = vpop.f32.mrb[95].mxu1  ;;  %12597 = vmatprep.subr.bf16.mxu0 %v12596_v29  ;;  %13552 = vtanh.f32 %v15953_v41 }
 0x728   : > { %11265 = vmatprep.mubr.f32.mxu0 %v15955_v55  ;;  %13554 = vtanh.f32 %v15955_v55 }
 0x729   : > { %11266 = vmatmul.mubr.f32.gmra.mrb[142].mxu0 %v15953_v41 }
 0x72a   : > { %v15959_v35 = vpop.f32.mrb[96].mxu1  ;;  %12599 = vmatpush3.bf16.msra.mxu0 %v12596_v29 }
 0x72b   : > { %v15961_v57 = vpop.f32.mrb[97].mxu1  ;;  %12601 = vmatprep.subr.bf16.mxu0 %v12600_v40  ;;  %13556 = vtanh.f32 %v15959_v35 }
 0x72c   : > { %11268 = vmatprep.mubr.f32.mxu0 %v15961_v57  ;;  %13558 = vtanh.f32 %v15961_v57 }
 0x72d   : > { %11269 = vmatmul.mubr.f32.gmra.mrb[144].mxu0 %v15959_v35 }
 0x72e   : > { %v15965_v22 = vpop.f32.mrb[98].mxu1  ;;  %12603 = vmatpush3.bf16.msra.mxu0 %v12600_v40 }
 0x72f   : > { %v15967_v1 = vpop.f32.mrb[99].mxu1  ;;  %12605 = vmatprep.subr.bf16.mxu0 %v12604_v34  ;;  %13560 = vtanh.f32 %v15965_v22 }
 0x730   : > { %11271 = vmatprep.mubr.f32.mxu0 %v15967_v1  ;;  %13562 = vtanh.f32 %v15967_v1 }
 0x731   : > { %11272 = vmatmul.mubr.f32.gmra.mrb[146].mxu0 %v15965_v22 }
 0x732   : > { %v15971_v4 = vpop.f32.mrb[100].mxu1  ;;  %12607 = vmatpush3.bf16.msra.mxu0 %v12604_v34  ;;  %v12612_v34 = vpack.c.bf16 %v9265_v36, %v9264_v23  ;;  %v16059_v23 = vpop.eup %13540 }
 0x733   : > { %v15973_v32 = vpop.f32.mrb[101].mxu1  ;;  %12609 = vmatprep.subr.bf16.mxu0 %v12608_v47  ;;  %13564 = vtanh.f32 %v15971_v4 }
 0x734   : > { %11274 = vmatprep.mubr.f32.mxu0 %v15973_v32  ;;  %13566 = vtanh.f32 %v15973_v32 }
 0x735   : > { %11275 = vmatmul.mubr.f32.gmra.mrb[148].mxu0 %v15971_v4 }
 0x736   : > { %v15977_v3 = vpop.f32.mrb[102].mxu1  ;;  %12611 = vmatpush3.bf16.msra.mxu0 %v12608_v47  ;;  %v16062_v47 = vpop.eup %13542 }
 0x737   : > { %v15979_v21 = vpop.f32.mrb[103].mxu1  ;;  %12613 = vmatprep.subr.bf16.mxu0 %v12612_v34  ;;  %v16065_v33 = vpop.eup %13544  ;;  %13568 = vtanh.f32 %v15977_v3 }
 0x738   : > { %11277 = vmatprep.mubr.f32.mxu0 %v15979_v21  ;;  %v16068_v49 = vpop.eup %13546  ;;  %13570 = vtanh.f32 %v15979_v21 }
 0x739   : > { %11278 = vmatmul.mubr.f32.gmra.mrb[150].mxu0 %v15977_v3  ;;  %v16071_v63 = vpop.eup %13548 }
 0x73a   : > { %v15983_v37 = vpop.f32.mrb[104].mxu1  ;;  %12615 = vmatpush3.bf16.msra.mxu0 %v12612_v34  ;;  %v16074_v18 = vpop.eup %13550 }
 0x73b   : > { %v15985_v30 = vpop.f32.mrb[105].mxu1  ;;  %v16077_v16 = vpop.eup %13552  ;;  %13572 = vtanh.f32 %v15983_v37 }
 0x73c   : > { %11280 = vmatprep.mubr.f32.mxu0 %v15985_v30  ;;  %v16080_v43 = vpop.eup %13554  ;;  %13574 = vtanh.f32 %v15985_v30 }
 0x73d   : > { %11281 = vmatmul.mubr.f32.gmra.mrb[152].mxu0 %v15983_v37  ;;  %v16083_v2 = vpop.eup %13556 }
 0x73e   : > { %v15989_v31 = vpop.f32.mrb[106].mxu1  ;;  %v16086_v55 = vpop.eup %13558 }
 0x73f   : > { %v15991_v54 = vpop.f32.mrb[107].mxu1  ;;  %13576 = vtanh.f32 %v15989_v31  ;;  %v16089_v57 = vpop.eup %13560 }
 0x740   : > { %11283 = vmatprep.mubr.f32.mxu0 %v15991_v54  ;;  %13578 = vtanh.f32 %v15991_v54  ;;  %v16091_v22 = vpop.eup %13562 }
 0x741   : > { %11284 = vmatmul.mubr.f32.gmra.mrb[154].mxu0 %v15989_v31  ;;  %v16093_v4 = vpop.eup %13564 }
 0x742   : > { %v15995_v17 = vpop.f32.mrb[108].mxu1  ;;  %v16096_v21 = vpop.eup %13566 }
 0x743   : > { %v15997_v45 = vpop.f32.mrb[109].mxu1  ;;  %v16099_v30 = vpop.eup %13568 }
 0x744   : > { %11286 = vmatprep.mubr.f32.mxu0 %v15997_v45  ;;  %v16101_v31 = vpop.eup %13570 }
 0x745   : > { %11287 = vmatmul.mubr.f32.gmra.mrb[156].mxu0 %v15995_v17  ;;  %v16103_v36 = vpop.eup %13572 }
 0x746   : > { %v16001_v9 = vpop.f32.mrb[110].mxu1 }
 0x747   : > { %v16003_v6 = vpop.f32.mrb[111].mxu1 }
 0x748   : > { %11289 = vmatprep.mubr.f32.mxu0 %v16003_v6 }
 0x749   : > { %11290 = vmatmul.mubr.f32.gmra.mrb[158].mxu0 %v16001_v9 }
 0x74a   : > { %v16007_v29 = vpop.f32.mrb[112].mxu1 }
 0x74b   : > { %v16009_v50 = vpop.f32.mrb[113].mxu1 }
 0x74c   : > { %11292 = vmatprep.mubr.f32.mxu0 %v16009_v50 }
 0x74d   : > { %11293 = vmatmul.mubr.f32.gmra.mrb[160].mxu0 %v16007_v29 }
 0x74e   : > { %v16013_v61 = vpop.f32.mrb[114].mxu1 }
 0x74f   : > { %v16015_v40 = vpop.f32.mrb[115].mxu1 }
 0x750   : > { %11295 = vmatprep.mubr.f32.mxu0 %v16015_v40 }
 0x751   : > { %11296 = vmatmul.mubr.f32.gmra.mrb[162].mxu0 %v16013_v61 }
 0x752   : > { %v16019_v5 = vpop.f32.mrb[116].mxu1 }
 0x753   : > { %v16021_v56 = vpop.f32.mrb[117].mxu1 }
 0x754   : > { %11298 = vmatprep.mubr.f32.mxu0 %v16021_v56 }
 0x755   : > { %11299 = vmatmul.mubr.f32.gmra.mrb[164].mxu0 %v16019_v5 }
 0x756   : > { %v16025_v19 = vpop.f32.mrb[118].mxu1 }
 0x757   : > { %v16027_v14 = vpop.f32.mrb[119].mxu1 }
 0x758   : > { %11301 = vmatprep.mubr.f32.mxu0 %v16027_v14 }
 0x759   : > { %11302 = vmatmul.mubr.f32.gmra.mrb[166].mxu0 %v16025_v19 }
 0x7f0   : > { %v11258_v12 = vpop.f32.mrb[136].mxu0 }
 0x7f1   : > { %v9219_v15 = vmul.f32 -1.442695, %v11258_v12  ;;  %v3744_v41 = vpop.f32.mrb[137].mxu0  ;;  %v16106_v12 = vpop.eup %13574 }
 0x7f2   : > { %v9218_v35 = vmul.f32 -1.442695, %v3744_v41 }
 0x7f3   : > { %13580 = vpow2.f32 %v9219_v15 }
 0x7f4   : > { %13582 = vpow2.f32 %v9218_v35  ;;  %v11261_v1 = vpop.f32.mrb[138].mxu0 }
 0x7f5   : > { %13584 = vtanh.f32 %v15995_v17  ;;  %v9221_v32 = vmul.f32 -1.442695, %v11261_v1  ;;  %v3754_v3 = vpop.f32.mrb[139].mxu0 }
 0x7f6   : > { %13586 = vtanh.f32 %v15997_v45  ;;  %v9220_v37 = vmul.f32 -1.442695, %v3754_v3  ;;  %v16109_v45 = vpop.eup %13576 }
 0x7f7   : > { %13588 = vpow2.f32 %v9221_v32  ;;  %v16111_v41 = vpop.eup %13578 }
 0x7f8   : > { %13590 = vpow2.f32 %v9220_v37  ;;  %v11264_v54 = vpop.f32.mrb[140].mxu0 }
 0x7f9   : > { %13592 = vtanh.f32 %v16001_v9  ;;  %v9223_v34 = vmul.f32 -1.442695, %v11264_v54  ;;  %v3764_v17 = vpop.f32.mrb[141].mxu0 }
 0x7fa   : > { %13594 = vtanh.f32 %v16003_v6  ;;  %v9222_v15 = vmul.f32 -1.442695, %v3764_v17 }
 0x7fb   : > { %13596 = vpow2.f32 %v9223_v34 }
 0x7fc   : > { %13598 = vpow2.f32 %v9222_v15  ;;  %v11267_v35 = vpop.f32.mrb[142].mxu0 }
 0x7fd   : > { %v13581_v1 = vpop.eup %13580  ;;  %13600 = vtanh.f32 %v16007_v29  ;;  %v9225_v32 = vmul.f32 -1.442695, %v11267_v35  ;;  %v3774_v3 = vpop.f32.mrb[143].mxu0 }
 0x7fe   : > { %v13583_v9 = vpop.eup %13582  ;;  %13602 = vtanh.f32 %v16009_v50  ;;  %v4032_v37 = vadd.f32 1.0, %v13581_v1  ;;  %v9224_v54 = vmul.f32 -1.442695, %v3774_v3 }
 0x7ff   : > { %v16115_v38 = vpop.eup %13584  ;;  %v4031_v6 = vadd.f32 1.0, %v13583_v9  ;;  %13604 = vpow2.f32 %v9225_v32 }
 0x800   : > { %v16117_v17 = vpop.eup %13586  ;;  %13606 = vrcp.f32 %v4032_v37  ;;  %v11270_v34 = vpop.f32.mrb[144].mxu0 }
 0x801   : > { %v13589_v15 = vpop.eup %13588  ;;  %13608 = vrcp.f32 %v4031_v6  ;;  %v9227_v28 = vmul.f32 -1.442695, %v11270_v34  ;;  %v3784_v44 = vpop.f32.mrb[145].mxu0 }
 0x802   : > { %v13591_v29 = vpop.eup %13590  ;;  %v4034_v35 = vadd.f32 1.0, %v13589_v15  ;;  %13610 = vpow2.f32 %v9224_v54  ;;  %v9226_v42 = vmul.f32 -1.442695, %v3784_v44 }
 0x803   : > { %v16119_v52 = vpop.eup %13592  ;;  %v4033_v50 = vadd.f32 1.0, %v13591_v29  ;;  %13612 = vpow2.f32 %v9227_v28 }
 0x804   : > { %v16121_v1 = vpop.eup %13594  ;;  %13614 = vrcp.f32 %v4034_v35  ;;  %v11273_v32 = vpop.f32.mrb[146].mxu0 }
 0x805   : > { %v13597_v3 = vpop.eup %13596  ;;  %13616 = vrcp.f32 %v4033_v50  ;;  %v9229_v9 = vmul.f32 -1.442695, %v11273_v32  ;;  %v3794_v37 = vpop.f32.mrb[147].mxu0 }
 0x806   : > { %v13599_v39 = vpop.eup %13598  ;;  %v4036_v6 = vadd.f32 1.0, %v13597_v3  ;;  %13618 = vpow2.f32 %v9226_v42  ;;  %v9228_v34 = vmul.f32 -1.442695, %v3794_v37 }
 0x807   : > { %v16123_v60 = vpop.eup %13600  ;;  %v4035_v54 = vadd.f32 1.0, %v13599_v39  ;;  %13620 = vpow2.f32 %v9229_v9 }
 0x808   : > { %v16125_v44 = vpop.eup %13602  ;;  %13622 = vrcp.f32 %v4036_v6  ;;  %v11276_v28 = vpop.f32.mrb[148].mxu0 }
 0x809   : > { %v13605_v15 = vpop.eup %13604  ;;  %13624 = vrcp.f32 %v4035_v54  ;;  %v9231_v29 = vmul.f32 -1.442695, %v11276_v28  ;;  %v3804_v35 = vpop.f32.mrb[149].mxu0 }
 0x80a   : > { %v13607_v20 = vpop.eup %13606  ;;  %v4038_v50 = vadd.f32 1.0, %v13605_v15  ;;  %13626 = vpow2.f32 %v9228_v34  ;;  %v9230_v32 = vmul.f32 -1.442695, %v3804_v35 }
 0x80b   : > { %v13609_v25 = vpop.eup %13608  ;;  %13628 = vpow2.f32 %v9231_v29  ;;  %v4128_v42 = vmul.f32 %v13607_v20, %v16059_v23 }
 0x80c   : > { %v13611_v3 = vpop.eup %13610  ;;  %13630 = vrcp.f32 %v4038_v50  ;;  %v11279_v39 = vpop.f32.mrb[150].mxu0  ;;  %v4127_v9 = vmul.f32 %v13609_v25, %v16062_v47 }
 0x80d   : > { %v13613_v37 = vpop.eup %13612  ;;  %v4037_v6 = vadd.f32 1.0, %v13611_v3  ;;  %13632 = vpow2.f32 %v9230_v32  ;;  %v9233_v10 = vmul.f32 -1.442695, %v11279_v39  ;;  %v3814_v54 = vpop.f32.mrb[151].mxu0 }
 0x80e   : > { %v13615_v28 = vpop.eup %13614  ;;  %13634 = vtanh.f32 %v16013_v61  ;;  %v4040_v15 = vadd.f32 1.0, %v13613_v37  ;;  %v9232_v34 = vmul.f32 -1.442695, %v3814_v54  ;;  %11336 = vmatprep.mubr.f32.mxu0 %v4127_v9 }
 0x80f   : > { %v13617_v35 = vpop.eup %13616  ;;  %13636 = vrcp.f32 %v4037_v6  ;;  %11337 = vmatmul.mubr.f32.vlgmr.msra.gmra.mrb[168].mxu0 %v4128_v42  ;;  %v4130_v20 = vmul.f32 %v13615_v28, %v16065_v33 }
 0x810   : > { %v13619_v23 = vpop.eup %13618  ;;  %13638 = vrcp.f32 %v4040_v15  ;;  %v11282_v29 = vpop.f32.mrb[152].mxu0  ;;  %v4129_v25 = vmul.f32 %v13617_v35, %v16068_v49 }
 0x811   : > { %v13621_v47 = vpop.eup %13620  ;;  %v4039_v50 = vadd.f32 1.0, %v13619_v23  ;;  %13640 = vpow2.f32 %v9233_v10  ;;  %v9235_v32 = vmul.f32 -1.442695, %v11282_v29  ;;  %v3824_v3 = vpop.f32.mrb[153].mxu0 }
 0x812   : > { %v13623_v39 = vpop.eup %13622  ;;  %v4042_v61 = vadd.f32 1.0, %v13621_v47  ;;  %13642 = vpow2.f32 %v9232_v34  ;;  %v9234_v37 = vmul.f32 -1.442695, %v3824_v3  ;;  %11339 = vmatprep.mubr.f32.mxu0 %v4129_v25 }
 0x813   : > { %v13625_v9 = vpop.eup %13624  ;;  %13644 = vrcp.f32 %v4039_v50  ;;  %11340 = vmatmul.mubr.f32.gmra.mrb[170].mxu0 %v4130_v20  ;;  %v4132_v33 = vmul.f32 %v13623_v39, %v16071_v63 }
 0x814   : > { %v13627_v42 = vpop.eup %13626  ;;  %13646 = vrcp.f32 %v4042_v61  ;;  %v11285_v6 = vpop.f32.mrb[154].mxu0  ;;  %v4131_v49 = vmul.f32 %v13625_v9, %v16074_v18 }
 0x815   : > { %v13629_v54 = vpop.eup %13628  ;;  %v4041_v28 = vadd.f32 1.0, %v13627_v42  ;;  %13648 = vpow2.f32 %v9235_v32  ;;  %v9237_v10 = vmul.f32 -1.442695, %v11285_v6  ;;  %v3834_v15 = vpop.f32.mrb[155].mxu0 }
 0x816   : > { %v13631_v35 = vpop.eup %13630  ;;  %v4044_v23 = vadd.f32 1.0, %v13629_v54  ;;  %13650 = vpow2.f32 %v9234_v37  ;;  %11342 = vmatprep.mubr.f32.mxu0 %v4131_v49  ;;  %v9236_v29 = vmul.f32 -1.442695, %v3834_v15 }
 0x817   : > { %v13633_v34 = vpop.eup %13632  ;;  %13652 = vrcp.f32 %v4041_v28  ;;  %11343 = vmatmul.mubr.f32.gmra.mrb[172].mxu0 %v4132_v33  ;;  %v4134_v63 = vmul.f32 %v13631_v35, %v16077_v16 }
 0x818   : > { %v16135_v20 = vpop.eup %13634  ;;  %13654 = vrcp.f32 %v4044_v23  ;;  %v4043_v25 = vadd.f32 1.0, %v13633_v34  ;;  %v11288_v18 = vpop.f32.mrb[156].mxu0 }
 0x819   : > { %v13637_v47 = vpop.eup %13636  ;;  %13656 = vpow2.f32 %v9237_v10  ;;  %v9239_v50 = vmul.f32 -1.442695, %v11288_v18  ;;  %v3844_v32 = vpop.f32.mrb[157].mxu0 }
 0x81a   : > { %v13639_v3 = vpop.eup %13638  ;;  %13658 = vrcp.f32 %v4043_v25  ;;  %v9238_v39 = vmul.f32 -1.442695, %v3844_v32  ;;  %v4133_v61 = vmul.f32 %v13637_v47, %v16080_v43 }
 0x81b   : > { %v13641_v37 = vpop.eup %13640  ;;  %13660 = vpow2.f32 %v9236_v29  ;;  %v4136_v9 = vmul.f32 %v13639_v3, %v16083_v2 }
 0x81c   : > { %v13643_v33 = vpop.eup %13642  ;;  %v4046_v16 = vadd.f32 1.0, %v13641_v37  ;;  %13662 = vpow2.f32 %v9239_v50  ;;  %11345 = vmatprep.mubr.f32.mxu0 %v4133_v61  ;;  %v11291_v42 = vpop.f32.mrb[158].mxu0 }
 0x81d   : > { %v13645_v6 = vpop.eup %13644  ;;  %v4045_v49 = vadd.f32 1.0, %v13643_v33  ;;  %13664 = vpow2.f32 %v9238_v39  ;;  %11346 = vmatmul.mubr.f32.gmra.mrb[174].mxu0 %v4134_v63  ;;  %v9241_v54 = vmul.f32 -1.442695, %v11291_v42  ;;  %v3854_v28 = vpop.f32.mrb[159].mxu0 }
 0x81e   : > { %v13647_v10 = vpop.eup %13646  ;;  %13666 = vrcp.f32 %v4046_v16  ;;  %v9240_v15 = vmul.f32 -1.442695, %v3854_v28  ;;  %v4135_v43 = vmul.f32 %v13645_v6, %v16086_v55 }
 0x81f   : > { %v13649_v35 = vpop.eup %13648  ;;  %13668 = vrcp.f32 %v4045_v49  ;;  %v4138_v2 = vmul.f32 %v13647_v10, %v16089_v57 }
 0x820   : > { %v13651_v23 = vpop.eup %13650  ;;  %v4048_v34 = vadd.f32 1.0, %v13649_v35  ;;  %13670 = vpow2.f32 %v9241_v54  ;;  %11348 = vmatprep.mubr.f32.mxu0 %v4135_v43  ;;  %v11294_v29 = vpop.f32.mrb[160].mxu0 }
 0x821   : > { %v13653_v25 = vpop.eup %13652  ;;  %v4047_v18 = vadd.f32 1.0, %v13651_v23  ;;  %13672 = vpow2.f32 %v9240_v15  ;;  %11349 = vmatmul.mubr.f32.gmra.mrb[176].mxu0 %v4136_v9  ;;  %v9243_v63 = vmul.f32 -1.442695, %v11294_v29  ;;  %v3864_v47 = vpop.f32.mrb[161].mxu0 }
 0x822   : > { %v13655_v50 = vpop.eup %13654  ;;  %13674 = vrcp.f32 %v4048_v34  ;;  %v9242_v32 = vmul.f32 -1.442695, %v3864_v47  ;;  %v4137_v55 = vmul.f32 %v13653_v25, %v16091_v22 }
 0x823   : > { %v13657_v3 = vpop.eup %13656  ;;  %13676 = vrcp.f32 %v4047_v18  ;;  %v4140_v57 = vmul.f32 %v13655_v50, %v16093_v4 }
 0x824   : > { %v13659_v39 = vpop.eup %13658  ;;  %v4050_v61 = vadd.f32 1.0, %v13657_v3  ;;  %13678 = vpow2.f32 %v9243_v63  ;;  %11351 = vmatprep.mubr.f32.mxu0 %v4137_v55  ;;  %v11297_v37 = vpop.f32.mrb[162].mxu0 }
 0x825   : > { %v13661_v33 = vpop.eup %13660  ;;  %13680 = vpow2.f32 %v9242_v32  ;;  %11352 = vmatmul.mubr.f32.gmra.mrb[178].mxu0 %v4138_v2  ;;  %v9245_v9 = vmul.f32 -1.442695, %v11297_v37  ;;  %v3874_v16 = vpop.f32.mrb[163].mxu0  ;;  %v4139_v42 = vmul.f32 %v13659_v39, %v16096_v21 }
 0x826   : > { %v13663_v6 = vpop.eup %13662  ;;  %13682 = vrcp.f32 %v4050_v61  ;;  %v4049_v49 = vadd.f32 1.0, %v13661_v33  ;;  %v9244_v28 = vmul.f32 -1.442695, %v3874_v16 }
 0x827   : > { %v13665_v22 = vpop.eup %13664  ;;  %v4052_v54 = vadd.f32 1.0, %v13663_v6  ;;  %13684 = vpow2.f32 %v9245_v9  ;;  %11354 = vmatprep.mubr.f32.mxu0 %v4139_v42 }
 0x828   : > { %v13667_v4 = vpop.eup %13666  ;;  %13686 = vrcp.f32 %v4049_v49  ;;  %v4051_v10 = vadd.f32 1.0, %v13665_v22  ;;  %v11300_v15 = vpop.f32.mrb[164].mxu0 }
 0x829   : > { %v13669_v43 = vpop.eup %13668  ;;  %13688 = vrcp.f32 %v4052_v54  ;;  %11355 = vmatmul.mubr.f32.gmra.mrb[180].mxu0 %v4140_v57  ;;  %v9247_v35 = vmul.f32 -1.442695, %v11300_v15  ;;  %v3884_v2 = vpop.f32.mrb[165].mxu0  ;;  %v4142_v23 = vmul.f32 %v13667_v4, %v16099_v30 }
 0x82a   : > { %v13671_v21 = vpop.eup %13670  ;;  %13690 = vrcp.f32 %v4051_v10  ;;  %v4141_v34 = vmul.f32 %v13669_v43, %v16101_v31  ;;  %v9246_v18 = vmul.f32 -1.442695, %v3884_v2 }
 0x82b   : > { %v13673_v29 = vpop.eup %13672  ;;  %v4054_v25 = vadd.f32 1.0, %v13671_v21  ;;  %13692 = vpow2.f32 %v9244_v28 }
 0x82c   : > { %v13675_v63 = vpop.eup %13674  ;;  %v4053_v47 = vadd.f32 1.0, %v13673_v29  ;;  %13694 = vpow2.f32 %v9247_v35  ;;  %11357 = vmatprep.mubr.f32.mxu0 %v4141_v34  ;;  %v11303_v50 = vpop.f32.mrb[166].mxu0 }
 0x82d   : > { %v13677_v32 = vpop.eup %13676  ;;  %13696 = vrcp.f32 %v4054_v25  ;;  %11358 = vmatmul.mubr.f32.gmra.mrb[182].mxu0 %v4142_v23  ;;  %v9249_v55 = vmul.f32 -1.442695, %v11303_v50  ;;  %v3894_v3 = vpop.f32.mrb[167].mxu0  ;;  %v4144_v30 = vmul.f32 %v13675_v63, %v16103_v36 }
 0x82e   : > { %v13679_v57 = vpop.eup %13678  ;;  %13698 = vrcp.f32 %v4053_v47  ;;  %v4143_v31 = vmul.f32 %v13677_v32, %v16106_v12  ;;  %v9248_v37 = vmul.f32 -1.442695, %v3894_v3 }
 0x82f   : > { %v13681_v39 = vpop.eup %13680  ;;  %v4056_v61 = vadd.f32 1.0, %v13679_v57  ;;  %13700 = vpow2.f32 %v9246_v18 }
 0x830   : > { %v13683_v33 = vpop.eup %13682  ;;  %v4055_v9 = vadd.f32 1.0, %v13681_v39  ;;  %13702 = vpow2.f32 %v9249_v55  ;;  %11360 = vmatprep.mubr.f32.mxu0 %v4143_v31 }
 0x831   : > { %v13685_v16 = vpop.eup %13684  ;;  %13704 = vrcp.f32 %v4056_v61  ;;  %11361 = vmatmul.mubr.f32.gmra.mrb[184].mxu0 %v4144_v30  ;;  %v4146_v42 = vmul.f32 %v13683_v33, %v16109_v45 }
 0x832   : > { %v13687_v6 = vpop.eup %13686  ;;  %13706 = vrcp.f32 %v4055_v9  ;;  %v4058_v36 = vadd.f32 1.0, %v13685_v16 }
 0x833   : > { %v13689_v49 = vpop.eup %13688  ;;  %13708 = vpow2.f32 %v9248_v37  ;;  %v4145_v12 = vmul.f32 %v13687_v6, %v16111_v41 }
 0x834   : > { %v13691_v22 = vpop.eup %13690  ;;  %13710 = vrcp.f32 %v4058_v36  ;;  %v4148_v54 = vmul.f32 %v13689_v49, %v16115_v38 }
 0x835   : > { %v13693_v28 = vpop.eup %13692  ;;  %11363 = vmatprep.mubr.f32.mxu0 %v4145_v12  ;;  %v4147_v4 = vmul.f32 %v13691_v22, %v16117_v17  ;;  %13712 = vtanh.f32 %v16015_v40 }
 0x836   : > { %v13695_v10 = vpop.eup %13694  ;;  %v4057_v15 = vadd.f32 1.0, %v13693_v28  ;;  %11364 = vmatmul.mubr.f32.gmra.mrb[186].mxu0 %v4146_v42  ;;  %13714 = vtanh.f32 %v16019_v5 }
 0x837   : > { %v13697_v45 = vpop.eup %13696  ;;  %v4060_v43 = vadd.f32 1.0, %v13695_v10  ;;  %11366 = vmatprep.mubr.f32.mxu0 %v4147_v4 }
 0x838   : > { %v13699_v35 = vpop.eup %13698  ;;  %13716 = vrcp.f32 %v4057_v15  ;;  %v4150_v41 = vmul.f32 %v13697_v45, %v16119_v52 }
 0x839   : > { %v13701_v2 = vpop.eup %13700  ;;  %13718 = vrcp.f32 %v4060_v43  ;;  %v4149_v38 = vmul.f32 %v13699_v35, %v16121_v1 }
 0x83a   : > { %v13703_v23 = vpop.eup %13702  ;;  %13720 = vtanh.f32 %v16021_v56  ;;  %v4059_v17 = vadd.f32 1.0, %v13701_v2  ;;  %11367 = vmatmul.mubr.f32.gmra.mrb[188].mxu0 %v4148_v54 }
 0x83b   : > { %v13705_v40 = vpop.eup %13704  ;;  %13722 = vtanh.f32 %v16025_v19  ;;  %v4062_v21 = vadd.f32 1.0, %v13703_v23  ;;  %11369 = vmatprep.mubr.f32.mxu0 %v4149_v38 }
 0x83c   : > { %v13707_v5 = vpop.eup %13706  ;;  %13724 = vrcp.f32 %v4059_v17  ;;  %v4152_v34 = vmul.f32 %v13705_v40, %v16123_v60  ;;  %v18353_v17 = vld [vmem:[#allocation44_spill] sm:$0xff] }
 0x83d   : > { %v13709_v29 = vpop.eup %13708  ;;  %13726 = vrcp.f32 %v4062_v21  ;;  %v4151_v52 = vmul.f32 %v13707_v5, %v16125_v44  ;;  %v18355_v5 = vld [vmem:[#allocation45_spill] sm:$0xff] }
 0x83e   : > { %v13711_v25 = vpop.eup %13710  ;;  %v4061_v1 = vadd.f32 1.0, %v13709_v29  ;;  %11370 = vmatmul.mubr.f32.gmra.mrb[190].mxu0 %v4150_v41  ;;  %13728 = vtanh.f32 %v16027_v14  ;;  %v18357_v29 = vld [vmem:[#allocation46_spill] sm:$0xff] }
 0x83f   : > { %11372 = vmatprep.mubr.f32.mxu0 %v4151_v52  ;;  %v4154_v56 = vmul.f32 %v13711_v25, %v16135_v20  ;;  %v13713_v18 = vpop.eup %13712 }
 0x840   : > { %13730 = vrcp.f32 %v4061_v1  ;;  %v13715_v19 = vpop.eup %13714  ;;  %v18359_v1 = vld [vmem:[#allocation47_spill] sm:$0xff] }
 0x842   : > { %v13717_v63 = vpop.eup %13716  ;;  %11373 = vmatmul.mubr.f32.gmra.mrb[192].mxu0 %v4152_v34 }
 0x843   : > { %v13719_v47 = vpop.eup %13718  ;;  %v4153_v50 = vmul.f32 %v13717_v63, %v13713_v18  ;;  %v18361_v63 = vld [vmem:[#allocation48_spill] sm:$0xff] }
 0x844   : > { %v13721_v60 = vpop.eup %13720  ;;  %v4156_v32 = vmul.f32 %v13719_v47, %v13715_v19 }
 0x845   : > { %v13723_v55 = vpop.eup %13722  ;;  %11375 = vmatprep.mubr.f32.mxu0 %v4153_v50 }
 0x846   : > { %v13725_v44 = vpop.eup %13724  ;;  %11376 = vmatmul.mubr.f32.gmra.mrb[194].mxu0 %v4154_v56 }
 0x847   : > { %v13727_v3 = vpop.eup %13726  ;;  %v4155_v30 = vmul.f32 %v13725_v44, %v13721_v60  ;;  %v18363_v60 = vld [vmem:[#allocation49_spill] sm:$0xff] }
 0x848   : > { %v4158_v57 = vmul.f32 %v13727_v3, %v13723_v55  ;;  %v13729_v14 = vpop.eup %13728  ;;  %v18365_v3 = vld [vmem:[#allocation50_spill] sm:$0xff] }
 0x849   : > { %11378 = vmatprep.mubr.f32.mxu0 %v4155_v30 }
 0x84a   : > { %v13731_v31 = vpop.eup %13730  ;;  %11379 = vmatmul.mubr.f32.gmra.mrb[196].mxu0 %v4156_v32 }
 0x84b   : > { %v4157_v20 = vmul.f32 %v13731_v31, %v13729_v14  ;;  %v18367_v14 = vld [vmem:[#allocation51_spill] sm:$0xff] }
 0x84d   : > { %11381 = vmatprep.mubr.f32.mxu0 %v4157_v20 }
 0x84e   : > { %11382 = vmatmul.mubr.f32.gmra.mrb[198].mxu0 %v4158_v57 }
 0x8e2   : > { %v11338_v39 = vpop.f32.mrb[168].mxu0 }
 0x8e3   : > { %v16163_v61 = vadd.f32 %v11338_v39, %v15363_v26  ;;  %v4242_v37 = vpop.f32.mrb[169].mxu0 }
 0x8e4   : > { %v16166_v33 = vadd.f32 %v4242_v37, %v15366_v0  ;;  %v18369_v37 = vld [vmem:[#allocation52_spill] sm:$0xff] }
 0x8e6   : > { %v12617_v9 = vpack.c.bf16 %v16163_v61, %v16166_v33  ;;  %v11341_v16 = vpop.f32.mrb[170].mxu0 }
 0x8e7   : > { %v16171_v42 = vadd.f32 %v11341_v16, %v15371_v53  ;;  %v4252_v6 = vpop.f32.mrb[171].mxu0 }
 0x8e8   : > { %v16174_v36 = vadd.f32 %v4252_v6, %v15374_v24  ;;  %12618 = vmatpush1.bf16.msra.mxu1 %v12617_v9  ;;  %v18371_v6 = vld [vmem:[#allocation53_spill] sm:$0xff] }
 0x8e9   : > { %12619 = vmatprep.subr.bf16.mxu1 %v18300_v8 }
 0x8ea   : > { %v12620_v26 = vpack.c.bf16 %v16171_v42, %v16174_v36  ;;  %v11344_v49 = vpop.f32.mrb[172].mxu0 }
 0x8eb   : > { %v16180_v0 = vadd.f32 %v11344_v49, %v15381_v7  ;;  %v4262_v12 = vpop.f32.mrb[173].mxu0 }
 0x8ec   : > { %v16183_v22 = vadd.f32 %v4262_v12, %v15384_v27  ;;  %12621 = vmatpush1.bf16.msra.mxu1 %v12620_v26 }
 0x8ed   : > { %12622 = vmatprep.subr.bf16.mxu1 %v18300_v8 }
 0x8ee   : > { %v12623_v53 = vpack.c.bf16 %v16180_v0, %v16183_v22 }
 0x8f0   : > { %v11347_v24 = vpop.f32.mrb[174].mxu0  ;;  %12624 = vmatpush1.bf16.msra.mxu1 %v12623_v53  ;;  %v18373_v53 = vld [vmem:[#allocation54_spill] sm:$0xff] }
 0x8f1   : > { %v16189_v54 = vadd.f32 %v11347_v24, %v15391_v62  ;;  %v4272_v28 = vpop.f32.mrb[175].mxu0  ;;  %12625 = vmatprep.subr.bf16.mxu1 %v18300_v8 }
 0x8f2   : > { %v16193_v7 = vadd.f32 %v4272_v28, %v15396_v58 }
 0x8f4   : > { %v12626_v27 = vpack.c.bf16 %v16189_v54, %v16193_v7  ;;  %v11350_v4 = vpop.f32.mrb[176].mxu0 }
 0x8f5   : > { %v16198_v10 = vadd.f32 %v11350_v4, %v15401_v59  ;;  %v4282_v15 = vpop.f32.mrb[177].mxu0 }
 0x8f6   : > { %v16201_v45 = vadd.f32 %v4282_v15, %v15404_v48  ;;  %12627 = vmatpush1.bf16.msra.mxu1 %v12626_v27  ;;  %v18375_v27 = vld [vmem:[#allocation55_spill] sm:$0xff] }
 0x8f7   : > { %12628 = vmatprep.subr.bf16.mxu1 %v18300_v8 }
 0x8f8   : > { %v12629_v62 = vpack.c.bf16 %v16198_v10, %v16201_v45  ;;  %v11353_v43 = vpop.f32.mrb[178].mxu0 }
 0x8f9   : > { %v16207_v58 = vadd.f32 %v11353_v43, %v15411_v46  ;;  %v4292_v35 = vpop.f32.mrb[179].mxu0  ;;  %v18377_v43 = vld [vmem:[#allocation56_spill] sm:$0xff] }
 0x8fa   : > { %v16210_v41 = vadd.f32 %v4292_v35, %v15414_v13  ;;  %12630 = vmatpush1.bf16.msra.mxu1 %v12629_v62 }
 0x8fb   : > { %12631 = vmatprep.subr.bf16.mxu1 %v18300_v8 }
 0x8fc   : > { %v12632_v59 = vpack.c.bf16 %v16207_v58, %v16210_v41  ;;  %v11356_v48 = vpop.f32.mrb[180].mxu0 }
 0x8fd   : > { %v16216_v2 = vadd.f32 %v11356_v48, %v15421_v51  ;;  %v4302_v38 = vpop.f32.mrb[181].mxu0  ;;  %v18379_v48 = vld [vmem:[#allocation57_spill] sm:$0xff] }
 0x8fe   : > { %v16219_v23 = vadd.f32 %v4302_v38, %v15424_v11  ;;  %12633 = vmatpush1.bf16.msra.mxu1 %v12632_v59 }
 0x8ff   : > { %12634 = vmatprep.subr.bf16.mxu1 %v18300_v8 }
 0x900   : > { %v12635_v46 = vpack.c.bf16 %v16216_v2, %v16219_v23  ;;  %v11359_v13 = vpop.f32.mrb[182].mxu0 }
 0x901   : > { %v16225_v40 = vadd.f32 %v11359_v13, %v18353_v17  ;;  %v4312_v21 = vpop.f32.mrb[183].mxu0  ;;  %v18381_v17 = vld [vmem:[#allocation58_spill] sm:$0xff] }
 0x902   : > { %v16228_v34 = vadd.f32 %v4312_v21, %v18355_v5  ;;  %12636 = vmatpush1.bf16.msra.mxu1 %v12635_v46 }
 0x903   : > { %18354 = vst [vmem:[#allocation44_spill] sm:$0xff] %v16225_v40  ;;  %12637 = vmatprep.subr.bf16.mxu1 %v18300_v8 }
 0x904   : > { %18356 = vst [vmem:[#allocation45_spill] sm:$0xff] %v16228_v34  ;;  %v12638_v51 = vpack.c.bf16 %v16225_v40, %v16228_v34  ;;  %v11362_v11 = vpop.f32.mrb[184].mxu0 }
 0x905   : > { %v16234_v52 = vadd.f32 %v11362_v11, %v18357_v29  ;;  %v4322_v25 = vpop.f32.mrb[185].mxu0 }
 0x906   : > { %v16237_v56 = vadd.f32 %v4322_v25, %v18359_v1  ;;  %12639 = vmatpush1.bf16.msra.mxu1 %v12638_v51  ;;  %v18383_v51 = vld [vmem:[#allocation59_spill] sm:$0xff]  ;;  %v18385_v1 = vld [vmem:[#allocation60_spill] sm:$0xff] }
 0x907   : > { %18358 = vst [vmem:[#allocation46_spill] sm:$0xff] %v16234_v52  ;;  %12640 = vmatprep.subr.bf16.mxu1 %v18300_v8 }
 0x908   : > { %18360 = vst [vmem:[#allocation47_spill] sm:$0xff] %v16237_v56  ;;  %v12641_v18 = vpack.c.bf16 %v16234_v52, %v16237_v56 }
 0x909   : > { %v11365_v19 = vpop.f32.mrb[186].mxu0 }
 0x90a   : > { %v16243_v47 = vadd.f32 %v11365_v19, %v18361_v63  ;;  %v4332_v50 = vpop.f32.mrb[187].mxu0  ;;  %12642 = vmatpush1.bf16.msra.mxu1 %v12641_v18  ;;  %v18387_v63 = vld [vmem:[#allocation61_spill] sm:$0xff] }
 0x90b   : > { %v16246_v32 = vadd.f32 %v4332_v50, %v18363_v60  ;;  %12643 = vmatprep.subr.bf16.mxu1 %v18300_v8 }
 0x90c   : > { %18362 = vst [vmem:[#allocation48_spill] sm:$0xff] %v16243_v47 }
 0x90d   : > { %18364 = vst [vmem:[#allocation49_spill] sm:$0xff] %v16246_v32  ;;  %v12644_v55 = vpack.c.bf16 %v16243_v47, %v16246_v32  ;;  %v11368_v44 = vpop.f32.mrb[188].mxu0 }
 0x90e   : > { %v16252_v30 = vadd.f32 %v11368_v44, %v18365_v3  ;;  %v4342_v57 = vpop.f32.mrb[189].mxu0  ;;  %v9316_v44 = vld [vmem:[%s18074_s3 + $0x108] sm:$0xff]  ;;  %v9317_v3 = vld [vmem:[%s18074_s3 + $0x110] sm:$0xff] }
 0x90f   : > { %v16255_v31 = vadd.f32 %v4342_v57, %v18367_v14  ;;  %12645 = vmatpush1.bf16.msra.mxu1 %v12644_v55  ;;  %v9315_v55 = vld [vmem:[%s18074_s3 + $0x100] sm:$0xff]  ;;  %v18389_v57 = vld [vmem:[#allocation3_spill] sm:$0xff] }
 0x910   : > { %18366 = vst [vmem:[#allocation50_spill] sm:$0xff] %v16252_v30  ;;  %12646 = vmatprep.subr.bf16.mxu1 %v18300_v8  ;;  %vm4433_vm8 = vcmp.eq.s32.totalorder %v18389_v57, 4  ;;  %v12664_v14 = vpack.c.bf16 %v9316_v44, %v9315_v55  ;;  %v9328_v55 = vld [vmem:[%s18074_s3 + $0x168] sm:$0xff] }
 0x911   : > { %18368 = vst [vmem:[#allocation51_spill] sm:$0xff] %v16255_v31  ;;  %v12647_v20 = vpack.c.bf16 %v16252_v30, %v16255_v31  ;;  %v11371_v39 = vpop.f32.mrb[190].mxu0 }
 0x912   : > { %v16261_v9 = vadd.f32 %v11371_v39, %v18369_v37  ;;  %v4352_v16 = vpop.f32.mrb[191].mxu0  ;;  %v9319_v37 = vld [vmem:[%s18074_s3 + $0x120] sm:$0xff]  ;;  %12665 = vmatprep.subr.bf16.mxu0 %v12664_v14 }
 0x913   : > { %v16264_v26 = vadd.f32 %v4352_v16, %v18371_v6  ;;  %12648 = vmatpush1.bf16.msra.mxu1 %v12647_v20  ;;  %v9318_v20 = vld [vmem:[%s18074_s3 + $0x118] sm:$0xff]  ;;  %v9320_v16 = vld [vmem:[%s18074_s3 + $0x128] sm:$0xff]  ;;  %v18390_v6 = vmov 1.0|1.0   ;;  %12667 = vmatpush3.bf16.msra.mxu0 %v12664_v14 }
 0x914   : > { %18370 = vst [vmem:[#allocation52_spill] sm:$0xff] %v16261_v9  ;;  %12649 = vmatprep.subr.bf16.mxu1 %v18300_v8  ;;  %v12668_v39 = vpack.c.bf16 %v9318_v20, %v9317_v3  ;;  %v18402_v3 = vld [vmem:[#allocation8_spill] sm:$0xff]  ;;  %v18404_v20 = vld [vmem:[#allocation9_spill] sm:$0xff] }
 0x915   : > { %18372 = vst [vmem:[#allocation53_spill] sm:$0xff] %v16264_v26  ;;  %v12650_v49 = vpack.c.bf16 %v16261_v9, %v16264_v26  ;;  %v11374_v12 = vpop.f32.mrb[192].mxu0  ;;  %vm4443_vm1 = vcmp.eq.s32.totalorder %v18402_v3, 4  ;;  %vm4445_vm2 = vcmp.eq.s32.totalorder %v18404_v20, 4 }
 0x916   : > { %v16270_v24 = vadd.f32 %v11374_v12, %v18373_v53  ;;  %v4362_v28 = vpop.f32.mrb[193].mxu0  ;;  %v18392_v12 = vmov 1.0   ;;  %v18393_v53 = vmov 0.0   ;;  %12669 = vmatprep.subr.bf16.mxu0 %v12668_v39 }
 0x917   : > { %v16273_v4 = vadd.f32 %v4362_v28, %v18375_v27  ;;  %12651 = vmatpush1.bf16.msra.mxu1 %v12650_v49  ;;  %v18394_v28 = vld [vmem:[#allocation4_spill] sm:$0xff]  ;;  %v12672_v27 = vpack.c.bf16 %v9320_v16, %v9319_v37  ;;  %12671 = vmatpush3.bf16.msra.mxu0 %v12668_v39  ;;  %v18406_v37 = vld [vmem:[#allocation10_spill] sm:$0xff] }
 0x918   : > { %18374 = vst [vmem:[#allocation54_spill] sm:$0xff] %v16270_v24  ;;  %12652 = vmatprep.subr.bf16.mxu1 %v18300_v8  ;;  %vm4435_vm9 = vcmp.eq.s32.totalorder %v18394_v28, 4 }
 0x919   : > { %18376 = vst [vmem:[#allocation55_spill] sm:$0xff] %v16273_v4  ;;  %v12653_v15 = vpack.c.bf16 %v16270_v24, %v16273_v4  ;;  %v11377_v62 = vpop.f32.mrb[194].mxu0  ;;  %12673 = vmatprep.subr.bf16.mxu0 %v12672_v27 }
 0x91a   : > { %v16279_v35 = vadd.f32 %v11377_v62, %v18377_v43  ;;  %v4372_v59 = vpop.f32.mrb[195].mxu0  ;;  %v9322_v62 = vld [vmem:[%s18074_s3 + $0x138] sm:$0xff] }
 0x91b   : > { %v16282_v38 = vadd.f32 %v4372_v59, %v18379_v48  ;;  %12654 = vmatpush1.bf16.msra.mxu1 %v12653_v15  ;;  %v9321_v15 = vld [vmem:[%s18074_s3 + $0x130] sm:$0xff]  ;;  %v18396_v59 = vld [vmem:[#allocation5_spill] sm:$0xff]  ;;  %12675 = vmatpush3.bf16.msra.mxu0 %v12672_v27  ;;  %v18408_v27 = vld [vmem:[#allocation11_spill] sm:$0xff] }
 0x91c   : > { %18378 = vst [vmem:[#allocation56_spill] sm:$0xff] %v16279_v35  ;;  %12655 = vmatprep.subr.bf16.mxu1 %v18300_v8  ;;  %vm4437_vm13 = vcmp.eq.s32.totalorder %v18396_v59, 4  ;;  %v12676_v48 = vpack.c.bf16 %v9322_v62, %v9321_v15  ;;  %v18409_v15 = vld [vmem:[#allocation12_spill] sm:$0xff]  ;;  %v18410_v62 = vld [vmem:[#allocation13_spill] sm:$0xff] }
 0x91d   : > { %18380 = vst [vmem:[#allocation57_spill] sm:$0xff] %v16282_v38  ;;  %v12656_v46 = vpack.c.bf16 %v16279_v35, %v16282_v38  ;;  %v11380_v13 = vpop.f32.mrb[196].mxu0 }
 0x91e   : > { %v16288_v21 = vadd.f32 %v11380_v13, %v18381_v17  ;;  %v4382_v5 = vpop.f32.mrb[197].mxu0  ;;  %v9324_v13 = vld [vmem:[%s18074_s3 + $0x148] sm:$0xff]  ;;  %12677 = vmatprep.subr.bf16.mxu0 %v12676_v48 }
 0x91f   : > { %v16291_v11 = vadd.f32 %v4382_v5, %v18383_v51  ;;  %12657 = vmatpush1.bf16.msra.mxu1 %v12656_v46  ;;  %v9323_v46 = vld [vmem:[%s18074_s3 + $0x140] sm:$0xff]  ;;  %12679 = vmatpush3.bf16.msra.mxu0 %v12676_v48 }
 0x920   : > { %18382 = vst [vmem:[#allocation58_spill] sm:$0xff] %v16288_v21  ;;  %12658 = vmatprep.subr.bf16.mxu1 %v18300_v8  ;;  %v18398_v5 = vld [vmem:[#allocation6_spill] sm:$0xff]  ;;  %v12680_v51 = vpack.c.bf16 %v9324_v13, %v9323_v46  ;;  %v18412_v46 = vld [vmem:[#allocation15_spill] sm:$0xff]  ;;  %v18413_v13 = vld [vmem:[#allocation16_spill] sm:$0xff] }
 0x921   : > { %18384 = vst [vmem:[#allocation59_spill] sm:$0xff] %v16291_v11  ;;  %v12659_v29 = vpack.c.bf16 %v16288_v21, %v16291_v11  ;;  %v11383_v25 = vpop.f32.mrb[198].mxu0  ;;  %vm4439_vm14 = vcmp.eq.s32.totalorder %v18398_v5, 4  ;;  %v18411_v48 = vld [vmem:[#allocation14_spill] sm:$0xff] }
 0x922   : > { %v16297_v18 = vadd.f32 %v11383_v25, %v18385_v1  ;;  %v4392_v19 = vpop.f32.mrb[199].mxu0  ;;  %v9326_v25 = vld [vmem:[%s18074_s3 + $0x158] sm:$0xff]  ;;  %12681 = vmatprep.subr.bf16.mxu0 %v12680_v51 }
 0x923   : > { %v16300_v50 = vadd.f32 %v4392_v19, %v18387_v63  ;;  %12660 = vmatpush1.bf16.msra.mxu1 %v12659_v29  ;;  %v9325_v29 = vld [vmem:[%s18074_s3 + $0x150] sm:$0xff]  ;;  %v18400_v19 = vld [vmem:[#allocation7_spill] sm:$0xff]  ;;  %12683 = vmatpush3.bf16.msra.mxu0 %v12680_v51  ;;  %v18414_v51 = vld [vmem:[#allocation17_spill] sm:$0xff] }
 0x924   : > { %18386 = vst [vmem:[#allocation60_spill] sm:$0xff] %v16297_v18  ;;  %12661 = vmatprep.subr.bf16.mxu1 %v18300_v8  ;;  %vm4441_vm15 = vcmp.eq.s32.totalorder %v18400_v19, 4  ;;  %v12684_v63 = vpack.c.bf16 %v9326_v25, %v9325_v29  ;;  %v18415_v29 = vld [vmem:[#allocation18_spill] sm:$0xff]  ;;  %v18416_v25 = vld [vmem:[#allocation19_spill] sm:$0xff] }
 0x925   : > { %18388 = vst [vmem:[#allocation61_spill] sm:$0xff] %v16300_v50  ;;  %v12662_v60 = vpack.c.bf16 %v16297_v18, %v16300_v50 }
 0x926   : > { %12685 = vmatprep.subr.bf16.mxu0 %v12684_v63 }
 0x927   : > { %12663 = vmatpush1.bf16.msra.mxu1 %v12662_v60  ;;  %v9327_v60 = vld [vmem:[%s18074_s3 + $0x160] sm:$0xff]  ;;  %12687 = vmatpush3.bf16.msra.mxu0 %v12684_v63  ;;  %v18417_v63 = vld [vmem:[#allocation20_spill] sm:$0xff] }
 0x928   : > { %12745 = vmatprep.subr.msk.bf16.mxu1 %vm14887_vm7, %v18390_v6  ;;  %v12688_v57 = vpack.c.bf16 %v9328_v55, %v9327_v60  ;;  %v18418_v60 = vld [vmem:[#allocation21_spill] sm:$0xff]  ;;  %v18419_v55 = vld [vmem:[#allocation22_spill] sm:$0xff] }
 0x92a   : > { %9266 = vmatmul.mubr.msk.f32.vlgmr.msra.gmra.mrb[120].mxu1 %vm4433_vm8, %v18392_v12  ;;  %12689 = vmatprep.subr.bf16.mxu0 %v12688_v57  ;;  %vm4447_vm8 = vcmp.eq.s32.totalorder %v18406_v37, 4 }
 0x92b   : > { %4630 = vmatprep.mubr.f32.mxu1 %v18393_v53  ;;  %12747 = vmatpush3.bf16.msk.msra.mxu1 %vm14887_vm7, %v18390_v6 }
 0x92c   : > { %12749 = vmatprep.subr.msk.bf16.mxu1 %vm14898_vm12, %v18390_v6  ;;  %12691 = vmatpush3.bf16.msra.mxu0 %v12688_v57  ;;  %v18420_v57 = vld [vmem:[#allocation23_spill] sm:$0xff] }
 0x92e   : > { %9267 = vmatmul.mubr.msk.f32.gmra.mrb[122].mxu1 %vm4435_vm9, %v18392_v12  ;;  %vm4449_vm9 = vcmp.eq.s32.totalorder %v18408_v27, 4 }
 0x92f   : > { %4635 = vmatprep.mubr.f32.mxu1 %v18393_v53  ;;  %12751 = vmatpush3.bf16.msk.msra.mxu1 %vm14898_vm12, %v18390_v6 }
 0x930   : > { %12753 = vmatprep.subr.msk.bf16.mxu1 %vm14916_vm0, %v18390_v6 }
 0x932   : > { %9268 = vmatmul.mubr.msk.f32.gmra.mrb[124].mxu1 %vm4437_vm13, %v18392_v12  ;;  %vm4451_vm13 = vcmp.eq.s32.totalorder %v18409_v15, 4 }
 0x933   : > { %4640 = vmatprep.mubr.f32.mxu1 %v18393_v53  ;;  %12755 = vmatpush3.bf16.msk.msra.mxu1 %vm14916_vm0, %v18390_v6 }
 0x934   : > { %12757 = vmatprep.subr.msk.bf16.mxu1 %vm14930_vm3, %v18390_v6 }
 0x936   : > { %9269 = vmatmul.mubr.msk.f32.gmra.mrb[126].mxu1 %vm4439_vm14, %v18392_v12  ;;  %vm4453_vm14 = vcmp.eq.s32.totalorder %v18410_v62, 4 }
 0x937   : > { %4645 = vmatprep.mubr.f32.mxu1 %v18393_v53  ;;  %12759 = vmatpush3.bf16.msk.msra.mxu1 %vm14930_vm3, %v18390_v6 }
 0x938   : > { %12761 = vmatprep.subr.msk.bf16.mxu1 %vm14973_vm10, %v18390_v6 }
 0x93a   : > { %9270 = vmatmul.mubr.msk.f32.gmra.mrb[128].mxu1 %vm4441_vm15, %v18392_v12  ;;  %vm4455_vm15 = vcmp.eq.s32.totalorder %v18411_v48, 4  ;;  %v9303_v48 = vld [vmem:[%s18073_s2 + $0x120] sm:$0xff] }
 0x93b   : > { %4650 = vmatprep.mubr.f32.mxu1 %v18393_v53  ;;  %12763 = vmatpush3.bf16.msk.msra.mxu1 %vm14973_vm10, %v18390_v6 }
 0x93c   : > { %12765 = vmatprep.subr.msk.bf16.mxu1 %vm14882_vm6, %v18390_v6 }
 0x93e   : > { %9271 = vmatmul.mubr.msk.f32.gmra.mrb[130].mxu1 %vm4443_vm1, %v18392_v12  ;;  %vm4457_vm1 = vcmp.eq.s32.totalorder %v18412_v46, 4 }
 0x93f   : > { %4655 = vmatprep.mubr.f32.mxu1 %v18393_v53  ;;  %12767 = vmatpush3.bf16.msk.msra.mxu1 %vm14882_vm6, %v18390_v6 }
 0x940   : > { %12769 = vmatprep.subr.msk.bf16.mxu1 %vm14939_vm4, %v18390_v6 }
 0x942   : > { %9272 = vmatmul.mubr.msk.f32.gmra.mrb[132].mxu1 %vm4445_vm2, %v18392_v12  ;;  %vm4459_vm2 = vcmp.eq.s32.totalorder %v18413_v13, 4 }
 0x943   : > { %4660 = vmatprep.mubr.f32.mxu1 %v18393_v53  ;;  %12771 = vmatpush3.bf16.msk.msra.mxu1 %vm14939_vm4, %v18390_v6 }
 0x944   : > { %12773 = vmatprep.subr.msk.bf16.mxu1 %vm14952_vm5, %v18390_v6 }
 0x946   : > { %9273 = vmatmul.mubr.msk.f32.gmra.mrb[134].mxu1 %vm4447_vm8, %v18392_v12  ;;  %vm4461_vm8 = vcmp.eq.s32.totalorder %v18414_v51, 4 }
 0x947   : > { %4665 = vmatprep.mubr.f32.mxu1 %v18393_v53  ;;  %12775 = vmatpush3.bf16.msk.msra.mxu1 %vm14952_vm5, %v18390_v6 }
 0x94a   : > { %9274 = vmatmul.mubr.msk.f32.gmra.mrb[136].mxu1 %vm4449_vm9, %v18392_v12  ;;  %vm4463_vm9 = vcmp.eq.s32.totalorder %v18415_v29, 4  ;;  %v18425_v29 = vld [vmem:[#allocation28_spill] sm:$0xff] }
 0x94b   : > { %4670 = vmatprep.mubr.f32.mxu1 %v18393_v53 }
 0x94e   : > { %9275 = vmatmul.mubr.msk.f32.gmra.mrb[138].mxu1 %vm4451_vm13, %v18392_v12  ;;  %vm4466_vm13 = vcmp.eq.s32.totalorder %v18416_v25, 4  ;;  %v18421_v25 = vld [vmem:[#allocation24_spill] sm:$0xff] }
 0x94f   : > { %4675 = vmatprep.mubr.f32.mxu1 %v18393_v53 }
 0x952   : > { %9276 = vmatmul.mubr.msk.f32.gmra.mrb[140].mxu1 %vm4453_vm14, %v18392_v12  ;;  %vm4465_vm14 = vcmp.eq.s32.totalorder %v18417_v63, 4  ;;  %v18423_v63 = vld [vmem:[#allocation26_spill] sm:$0xff] }
 0x953   : > { %4680 = vmatprep.mubr.f32.mxu1 %v18393_v53 }
 0x956   : > { %9277 = vmatmul.mubr.msk.f32.gmra.mrb[142].mxu1 %vm4455_vm15, %v18392_v12  ;;  %vm4468_vm15 = vcmp.eq.s32.totalorder %v18418_v60, 4  ;;  %v18422_v60 = vld [vmem:[#allocation25_spill] sm:$0xff] }
 0x957   : > { %4685 = vmatprep.mubr.f32.mxu1 %v18393_v53 }
 0x95a   : > { %9278 = vmatmul.mubr.msk.f32.gmra.mrb[144].mxu1 %vm4457_vm1, %v18392_v12  ;;  %vm4470_vm1 = vcmp.eq.s32.totalorder %v18419_v55, 4  ;;  %v9330_v55 = vld [vmem:[%s18074_s3 + $0x178] sm:$0xff] }
 0x95b   : > { %4690 = vmatprep.mubr.f32.mxu1 %v18393_v53 }
 0x95e   : > { %9279 = vmatmul.mubr.msk.f32.gmra.mrb[146].mxu1 %vm4459_vm2, %v18392_v12  ;;  %vm4472_vm2 = vcmp.eq.s32.totalorder %v18420_v57, 4  ;;  %v9329_v57 = vld [vmem:[%s18074_s3 + $0x170] sm:$0xff] }
 0x95f   : > { %4695 = vmatprep.mubr.f32.mxu1 %v18393_v53 }
 0x962   : > { %9280 = vmatmul.mubr.msk.f32.gmra.mrb[148].mxu1 %vm4461_vm8, %v18392_v12  ;;  %vm4474_vm8 = vcmp.eq.s32.totalorder %v18421_v25, 4  ;;  %v12692_v25 = vpack.c.bf16 %v9330_v55, %v9329_v57  ;;  %v18427_v55 = vld [vmem:[#allocation30_spill] sm:$0xff]  ;;  %v18428_v57 = vld [vmem:[#allocation31_spill] sm:$0xff] }
 0x963   : > { %4700 = vmatprep.mubr.f32.mxu1 %v18393_v53 }
 0x964   : > { %12693 = vmatprep.subr.bf16.mxu0 %v12692_v25 }
 0x965   : > { %12695 = vmatpush3.bf16.msra.mxu0 %v12692_v25  ;;  %v18429_v25 = vld [vmem:[#allocation32_spill] sm:$0xff] }
 0x966   : > { %9281 = vmatmul.mubr.msk.f32.gmra.mrb[150].mxu1 %vm4463_vm9, %v18392_v12  ;;  %vm4476_vm9 = vcmp.eq.s32.totalorder %v18422_v60, 4  ;;  %v18424_v60 = vld [vmem:[#allocation27_spill] sm:$0xff] }
 0x967   : > { %9282 = vmatprep.mubr.msk.f32.mxu1 %vm4466_vm13, %v18392_v12  ;;  %vm4478_vm13 = vcmp.eq.s32.totalorder %v18423_v63, 4  ;;  %v18426_v63 = vld [vmem:[#allocation29_spill] sm:$0xff] }
 0x96a   : > { %9283 = vmatmul.mubr.msk.f32.gmra.mrb[152].mxu1 %vm4465_vm14, %v18392_v12  ;;  %vm4480_vm14 = vcmp.eq.s32.totalorder %v18424_v60, 4  ;;  %v9302_v60 = vld [vmem:[%s18073_s2 + $0x118] sm:$0xff] }
 0x96b   : > { %9284 = vmatprep.mubr.msk.f32.mxu1 %vm4468_vm15, %v18392_v12  ;;  %vm4482_vm15 = vcmp.eq.s32.totalorder %v18425_v29, 4 }
 0x96e   : > { %4711 = vmatmul.mubr.f32.gmra.mrb[154].mxu1 %v18393_v53 }
 0x96f   : > { %9285 = vmatprep.mubr.msk.f32.mxu1 %vm4470_vm1, %v18392_v12  ;;  %vm4484_vm1 = vcmp.eq.s32.totalorder %v18426_v63, 4  ;;  %v18430_v63 = vld [vmem:[#allocation33_spill] sm:$0xff] }
 0x972   : > { %4716 = vmatmul.mubr.f32.gmra.mrb[156].mxu1 %v18393_v53 }
 0x973   : > { %9286 = vmatprep.mubr.msk.f32.mxu1 %vm4472_vm2, %v18392_v12  ;;  %vm4486_vm2 = vcmp.eq.s32.totalorder %v18427_v55, 4  ;;  %v18431_v55 = vld [vmem:[#allocation34_spill] sm:$0xff] }
 0x976   : > { %4721 = vmatmul.mubr.f32.gmra.mrb[158].mxu1 %v18393_v53 }
 0x977   : > { %9287 = vmatprep.mubr.msk.f32.mxu1 %vm4474_vm8, %v18392_v12  ;;  %vm4488_vm8 = vcmp.eq.s32.totalorder %v18428_v57, 4  ;;  %v18432_v57 = vld [vmem:[#allocation35_spill] sm:$0xff] }
 0x97a   : > { %4726 = vmatmul.mubr.f32.gmra.mrb[160].mxu1 %v18393_v53 }
 0x97b   : > { %9288 = vmatprep.mubr.msk.f32.mxu1 %vm4476_vm9, %v18392_v12  ;;  %vm4490_vm9 = vcmp.eq.s32.totalorder %v18429_v25, 4 }
 0x97e   : > { %4731 = vmatmul.mubr.f32.gmra.mrb[162].mxu1 %v18393_v53 }
 0x97f   : > { %9289 = vmatprep.mubr.msk.f32.mxu1 %vm4478_vm13, %v18392_v12  ;;  %vm4492_vm13 = vcmp.eq.s32.totalorder %v18430_v63, 4  ;;  %v9299_v63 = vld [vmem:[%s18073_s2 + $0x100] sm:$0xff] }
 0x982   : > { %4736 = vmatmul.mubr.f32.gmra.mrb[164].mxu1 %v18393_v53 }
 0x983   : > { %9290 = vmatprep.mubr.msk.f32.mxu1 %vm4480_vm14, %v18392_v12  ;;  %vm4494_vm14 = vcmp.eq.s32.totalorder %v18431_v55, 4  ;;  %v9300_v55 = vld [vmem:[%s18073_s2 + $0x108] sm:$0xff] }
 0x984   : > { %v12696_v25 = vpack.c.bf16 %v9300_v55, %v9299_v63  ;;  %v9304_v63 = vld [vmem:[%s18073_s2 + $0x128] sm:$0xff] }
 0x985   : > { %v12704_v62 = vpack.c.bf16 %v9304_v63, %v9303_v48  ;;  %v9308_v48 = vld [vmem:[%s18073_s2 + $0x148] sm:$0xff] }
 0x986   : > { %4741 = vmatmul.mubr.f32.gmra.mrb[166].mxu1 %v18393_v53  ;;  %12697 = vmatprep.subr.bf16.mxu0 %v12696_v25 }
 0x987   : > { %9291 = vmatprep.mubr.msk.f32.mxu1 %vm4482_vm15, %v18392_v12  ;;  %vm4496_vm15 = vcmp.eq.s32.totalorder %v18432_v57, 4  ;;  %v9301_v57 = vld [vmem:[%s18073_s2 + $0x110] sm:$0xff] }
 0x988   : > { %v12700_v13 = vpack.c.bf16 %v9302_v60, %v9301_v57 }
 0x98a   : > { %4746 = vmatmul.mubr.f32.gmra.mrb[168].mxu1 %v18393_v53 }
 0x98b   : > { %9292 = vmatprep.mubr.msk.f32.mxu1 %vm4484_vm1, %v18392_v12 }
 0x98e   : > { %4751 = vmatmul.mubr.f32.gmra.mrb[170].mxu1 %v18393_v53 }
 0x98f   : > { %9293 = vmatprep.mubr.msk.f32.mxu1 %vm4486_vm2, %v18392_v12 }
 0x992   : > { %4756 = vmatmul.mubr.f32.gmra.mrb[172].mxu1 %v18393_v53 }
 0x993   : > { %9294 = vmatprep.mubr.msk.f32.mxu1 %vm4488_vm8, %v18392_v12 }
 0x996   : > { %4761 = vmatmul.mubr.f32.gmra.mrb[174].mxu1 %v18393_v53 }
 0x997   : > { %9295 = vmatprep.mubr.msk.f32.mxu1 %vm4490_vm9, %v18392_v12 }
 0x99a   : > { %4766 = vmatmul.mubr.f32.gmra.mrb[176].mxu1 %v18393_v53 }
 0x99b   : > { %9296 = vmatprep.mubr.msk.f32.mxu1 %vm4492_vm13, %v18392_v12 }
 0x99e   : > { %4771 = vmatmul.mubr.f32.gmra.mrb[178].mxu1 %v18393_v53 }
 0x99f   : > { %9297 = vmatprep.mubr.msk.f32.mxu1 %vm4494_vm14, %v18392_v12 }
 0x9a2   : > { %4776 = vmatmul.mubr.f32.gmra.mrb[180].mxu1 %v18393_v53 }
 0x9a3   : > { %9298 = vmatprep.mubr.msk.f32.mxu1 %vm4496_vm15, %v18392_v12 }
 0x9a6   : > { %4781 = vmatmul.mubr.f32.gmra.mrb[182].mxu1 %v18393_v53 }
 0x9fd   : > { %v4627_v29 = vpop.f32.mrb[120].mxu1 }
 0x9fe   : > { %v4629_v51 = vpop.f32.mrb[121].mxu1  ;;  %11416 = vmatprep.mubr.f32.mxu0 %v4627_v29  ;;  %v9306_v29 = vld [vmem:[%s18073_s2 + $0x138] sm:$0xff] }
 0x9ff   : > { %v9305_v51 = vld [vmem:[%s18073_s2 + $0x130] sm:$0xff] }
 0xa00   : > { %v12708_v57 = vpack.c.bf16 %v9306_v29, %v9305_v51 }
 0xa01   : > { %v4632_v46 = vpop.f32.mrb[122].mxu1 }
 0xa02   : > { %v4634_v55 = vpop.f32.mrb[123].mxu1  ;;  %11417 = vmatmul.mubr.f32.vlgmr.msra.gmra.mrb[200].mxu0 %v4632_v46  ;;  %v9307_v46 = vld [vmem:[%s18073_s2 + $0x140] sm:$0xff] }
 0xa03   : > { %12699 = vmatpush3.bf16.msra.mxu0 %v12696_v25  ;;  %v12712_v63 = vpack.c.bf16 %v9308_v48, %v9307_v46 }
 0xa04   : > { %12701 = vmatprep.subr.bf16.mxu0 %v12700_v13 }
 0xa05   : > { %v4637_v15 = vpop.f32.mrb[124].mxu1 }
 0xa06   : > { %v4639_v60 = vpop.f32.mrb[125].mxu1  ;;  %11419 = vmatprep.mubr.f32.mxu0 %v4637_v15  ;;  %v9309_v15 = vld [vmem:[%s18073_s2 + $0x150] sm:$0xff] }
 0xa07   : > { %12703 = vmatpush3.bf16.msra.mxu0 %v12700_v13  ;;  %v9310_v13 = vld [vmem:[%s18073_s2 + $0x158] sm:$0xff] }
 0xa08   : > { %12705 = vmatprep.subr.bf16.mxu0 %v12704_v62  ;;  %v12716_v29 = vpack.c.bf16 %v9310_v13, %v9309_v15 }
 0xa09   : > { %v4642_v27 = vpop.f32.mrb[126].mxu1 }
 0xa0a   : > { %v4644_v25 = vpop.f32.mrb[127].mxu1  ;;  %11420 = vmatmul.mubr.f32.gmra.mrb[202].mxu0 %v4642_v27  ;;  %v9311_v27 = vld [vmem:[%s18073_s2 + $0x160] sm:$0xff] }
 0xa0b   : > { %12707 = vmatpush3.bf16.msra.mxu0 %v12704_v62  ;;  %v9312_v62 = vld [vmem:[%s18073_s2 + $0x168] sm:$0xff] }
 0xa0c   : > { %12709 = vmatprep.subr.bf16.mxu0 %v12708_v57  ;;  %v12720_v48 = vpack.c.bf16 %v9312_v62, %v9311_v27 }
 0xa0d   : > { %v4647_v55 = vpop.f32.mrb[128].mxu1 }
 0xa0e   : > { %v4649_v51 = vpop.f32.mrb[129].mxu1  ;;  %11422 = vmatprep.mubr.f32.mxu0 %v4647_v55  ;;  %v9314_v55 = vld [vmem:[%s18073_s2 + $0x178] sm:$0xff] }
 0xa0f   : > { %12711 = vmatpush3.bf16.msra.mxu0 %v12708_v57  ;;  %v9313_v57 = vld [vmem:[%s18073_s2 + $0x170] sm:$0xff] }
 0xa10   : > { %12713 = vmatprep.subr.bf16.mxu0 %v12712_v63  ;;  %v12724_v13 = vpack.c.bf16 %v9314_v55, %v9313_v57 }
 0xa11   : > { %v4652_v60 = vpop.f32.mrb[130].mxu1 }
 0xa12   : > { %v4654_v46 = vpop.f32.mrb[131].mxu1  ;;  %11423 = vmatmul.mubr.f32.gmra.mrb[204].mxu0 %v4652_v60  ;;  %v9332_v60 = vld [vmem:[%s18075_s4 + $0x88] sm:$0xff] }
 0xa13   : > { %12715 = vmatpush3.bf16.msra.mxu0 %v12712_v63  ;;  %v9331_v63 = vld [vmem:[%s18075_s4 + $0x80] sm:$0xff] }
 0xa14   : > { %12717 = vmatprep.subr.bf16.mxu0 %v12716_v29  ;;  %v16551_v62 = vpack.c.bf16 %v9332_v60, %v9331_v63 }
 0xa15   : > { %v4657_v25 = vpop.f32.mrb[132].mxu1 }
 0xa16   : > { %v4659_v15 = vpop.f32.mrb[133].mxu1  ;;  %11425 = vmatprep.mubr.f32.mxu0 %v4657_v25 }
 0xa17   : > { %12719 = vmatpush3.bf16.msra.mxu0 %v12716_v29 }
 0xa18   : > { %12721 = vmatprep.subr.bf16.mxu0 %v12720_v48 }
 0xa19   : > { %v4662_v51 = vpop.f32.mrb[134].mxu1 }
 0xa1a   : > { %v4664_v27 = vpop.f32.mrb[135].mxu1  ;;  %11426 = vmatmul.mubr.f32.gmra.mrb[206].mxu0 %v4662_v51 }
 0xa1b   : > { %12723 = vmatpush3.bf16.msra.mxu0 %v12720_v48 }
 0xa1c   : > { %12725 = vmatprep.subr.bf16.mxu0 %v12724_v13 }
 0xa1d   : > { %v4667_v46 = vpop.f32.mrb[136].mxu1 }
 0xa1e   : > { %v4669_v25 = vpop.f32.mrb[137].mxu1  ;;  %11428 = vmatprep.mubr.f32.mxu0 %v4667_v46 }
 0xa1f   : > { %12727 = vmatpush3.bf16.msra.mxu0 %v12724_v13 }
 0xa20   : > { %12729 = vmatprep.subr.bf16.mxu0 %v16551_v62 }
 0xa21   : > { %v4672_v29 = vpop.f32.mrb[138].mxu1 }
 0xa22   : > { %v4674_v57 = vpop.f32.mrb[139].mxu1  ;;  %11429 = vmatmul.mubr.f32.gmra.mrb[208].mxu0 %v4672_v29 }
 0xa25   : > { %v4677_v55 = vpop.f32.mrb[140].mxu1 }
 0xa26   : > { %v4679_v15 = vpop.f32.mrb[141].mxu1  ;;  %11431 = vmatprep.mubr.f32.mxu0 %v4677_v55 }
 0xa29   : > { %v4682_v16 = vpop.f32.mrb[142].mxu1 }
 0xa2a   : > { %v4684_v37 = vpop.f32.mrb[143].mxu1  ;;  %11432 = vmatmul.mubr.f32.gmra.mrb[210].mxu0 %v4682_v16 }
 0xa2d   : > { %v4687_v51 = vpop.f32.mrb[144].mxu1 }
 0xa2e   : > { %v4689_v48 = vpop.f32.mrb[145].mxu1  ;;  %11434 = vmatprep.mubr.f32.mxu0 %v4687_v51 }
 0xa31   : > { %v4692_v63 = vpop.f32.mrb[146].mxu1 }
 0xa32   : > { %v4694_v60 = vpop.f32.mrb[147].mxu1  ;;  %11435 = vmatmul.mubr.f32.gmra.mrb[212].mxu0 %v4692_v63 }
 0xa35   : > { %v4697_v27 = vpop.f32.mrb[148].mxu1 }
 0xa36   : > { %v4699_v46 = vpop.f32.mrb[149].mxu1  ;;  %11437 = vmatprep.mubr.f32.mxu0 %v4697_v27 }
 0xa39   : > { %v4702_v13 = vpop.f32.mrb[150].mxu1 }
 0xa3a   : > { %v4704_v25 = vpop.f32.mrb[151].mxu1  ;;  %11438 = vmatmul.mubr.f32.gmra.mrb[214].mxu0 %v4702_v13 }
 0xa3d   : > { %v4707_v57 = vpop.f32.mrb[152].mxu1 }
 0xa3e   : > { %v4709_v29 = vpop.f32.mrb[153].mxu1  ;;  %11440 = vmatprep.mubr.f32.mxu0 %v4707_v57 }
 0xa41   : > { %v4712_v15 = vpop.f32.mrb[154].mxu1 }
 0xa42   : > { %v4714_v55 = vpop.f32.mrb[155].mxu1  ;;  %11441 = vmatmul.mubr.f32.gmra.mrb[216].mxu0 %v4712_v15 }
 0xa45   : > { %v4717_v37 = vpop.f32.mrb[156].mxu1 }
 0xa46   : > { %v4719_v16 = vpop.f32.mrb[157].mxu1  ;;  %11443 = vmatprep.mubr.f32.mxu0 %v4717_v37 }
 0xa49   : > { %v4722_v48 = vpop.f32.mrb[158].mxu1 }
 0xa4a   : > { %v4724_v51 = vpop.f32.mrb[159].mxu1  ;;  %11444 = vmatmul.mubr.f32.gmra.mrb[218].mxu0 %v4722_v48 }
 0xa4d   : > { %v4727_v60 = vpop.f32.mrb[160].mxu1 }
 0xa4e   : > { %v4729_v63 = vpop.f32.mrb[161].mxu1  ;;  %11446 = vmatprep.mubr.f32.mxu0 %v4727_v60 }
 0xa51   : > { %v4732_v46 = vpop.f32.mrb[162].mxu1 }
 0xa52   : > { %v4734_v27 = vpop.f32.mrb[163].mxu1  ;;  %11447 = vmatmul.mubr.f32.gmra.mrb[220].mxu0 %v4732_v46 }
 0xa55   : > { %v4737_v25 = vpop.f32.mrb[164].mxu1 }
 0xa56   : > { %v4739_v13 = vpop.f32.mrb[165].mxu1  ;;  %11449 = vmatprep.mubr.f32.mxu0 %v4737_v25 }
 0xa59   : > { %v4742_v29 = vpop.f32.mrb[166].mxu1 }
 0xa5a   : > { %v4744_v57 = vpop.f32.mrb[167].mxu1  ;;  %11450 = vmatmul.mubr.f32.gmra.mrb[222].mxu0 %v4742_v29 }
 0xa5d   : > { %v4747_v55 = vpop.f32.mrb[168].mxu1 }
 0xa5e   : > { %v4749_v15 = vpop.f32.mrb[169].mxu1  ;;  %11452 = vmatprep.mubr.f32.mxu0 %v4747_v55  ;;  %v9333_v55 = vld [vmem:[%s18075_s4 + $0x90] sm:$0xff] }
 0xa61   : > { %v4752_v16 = vpop.f32.mrb[170].mxu1 }
 0xa62   : > { %v4754_v37 = vpop.f32.mrb[171].mxu1  ;;  %11453 = vmatmul.mubr.f32.gmra.mrb[224].mxu0 %v4752_v16  ;;  %v9334_v16 = vld [vmem:[%s18075_s4 + $0x98] sm:$0xff] }
 0xa65   : > { %v4757_v51 = vpop.f32.mrb[172].mxu1 }
 0xa66   : > { %v4759_v48 = vpop.f32.mrb[173].mxu1  ;;  %11455 = vmatprep.mubr.f32.mxu0 %v4757_v51  ;;  %v12732_v51 = vpack.c.bf16 %v9334_v16, %v9333_v55  ;;  %v14185_v55 = vld [vmem:[%s15032_s21 + $0x28] sm:$0xff]  ;;  %v14186_v16 = vld [vmem:[%s15032_s21 + $0x30] sm:$0xff] }
 0xa67   : > { %v9335_v48 = vld [vmem:[%s18075_s4 + $0xa0] sm:$0xff] }
 0xa69   : > { %v4762_v63 = vpop.f32.mrb[174].mxu1 }
 0xa6a   : > { %v4764_v60 = vpop.f32.mrb[175].mxu1  ;;  %11456 = vmatmul.mubr.f32.gmra.mrb[226].mxu0 %v4762_v63  ;;  %v9336_v63 = vld [vmem:[%s18075_s4 + $0xa8] sm:$0xff] }
 0xa6b   : > { %v12736_v60 = vpack.c.bf16 %v9336_v63, %v9335_v48  ;;  %v14189_v48 = vld [vmem:[%s15032_s21 + $0x48] sm:$0xff]  ;;  %v14190_v63 = vld [vmem:[%s15032_s21 + $0x50] sm:$0xff] }
 0xa6d   : > { %v4767_v27 = vpop.f32.mrb[176].mxu1 }
 0xa6e   : > { %v4769_v46 = vpop.f32.mrb[177].mxu1  ;;  %11458 = vmatprep.mubr.f32.mxu0 %v4767_v27  ;;  %v9337_v27 = vld [vmem:[%s18075_s4 + $0xb0] sm:$0xff] }
 0xa6f   : > { %v9338_v46 = vld [vmem:[%s18075_s4 + $0xb8] sm:$0xff] }
 0xa71   : > { %v4772_v13 = vpop.f32.mrb[178].mxu1 }
 0xa72   : > { %v4774_v25 = vpop.f32.mrb[179].mxu1  ;;  %11459 = vmatmul.mubr.f32.gmra.mrb[228].mxu0 %v4772_v13  ;;  %v12740_v13 = vpack.c.bf16 %v9338_v46, %v9337_v27  ;;  %v14192_v27 = vld [vmem:[%s15032_s21 + $0x60] sm:$0xff]  ;;  %v14193_v46 = vld [vmem:[%s15032_s21 + $0x68] sm:$0xff] }
 0xa73   : > { %v14181_v25 = vld [vmem:[%s15032_s21 + $0x8] sm:$0xff] }
 0xa75   : > { %v4777_v57 = vpop.f32.mrb[180].mxu1 }
 0xa76   : > { %v4779_v29 = vpop.f32.mrb[181].mxu1  ;;  %11461 = vmatprep.mubr.f32.mxu0 %v4777_v57  ;;  %v14182_v57 = vld [vmem:[%s15032_s21 + $0x10] sm:$0xff] }
 0xa77   : > { %v14183_v29 = vld [vmem:[%s15032_s21 + $0x18] sm:$0xff] }
 0xa79   : > { %v4782_v15 = vpop.f32.mrb[182].mxu1 }
 0xa7a   : > { %v4784_v37 = vpop.f32.mrb[183].mxu1  ;;  %11462 = vmatmul.mubr.f32.gmra.mrb[230].mxu0 %v4782_v15  ;;  %v14184_v15 = vld [vmem:[%s15032_s21 + $0x20] sm:$0xff] }
 0xa7b   : > { %11496 = vmatprep.mubr.f32.mxu0 %v16166_v33  ;;  %v14187_v37 = vld [vmem:[%s15032_s21 + $0x38] sm:$0xff] }
 0xa7e   : > { %11497 = vmatmul.mubr.f32.vlgmr.msra.gmra.mrb[200].mxu0 %v16163_v61 }
 0xa7f   : > { %11499 = vmatprep.mubr.f32.mxu0 %v16174_v36  ;;  %12731 = vmatpush3.bf16.msra.mxu0 %v16551_v62  ;;  %v14180_v62 = vld [vmem:[%s15032_s21] sm:$0xff] }
 0xa80   : > { %12733 = vmatprep.subr.bf16.mxu0 %v12732_v51 }
 0xa82   : > { %11500 = vmatmul.mubr.f32.gmra.mrb[202].mxu0 %v16171_v42 }
 0xa83   : > { %11502 = vmatprep.mubr.f32.mxu0 %v16183_v22  ;;  %12735 = vmatpush3.bf16.msra.mxu0 %v12732_v51  ;;  %v14188_v51 = vld [vmem:[%s15032_s21 + $0x40] sm:$0xff] }
 0xa84   : > { %12737 = vmatprep.subr.bf16.mxu0 %v12736_v60 }
 0xa86   : > { %11503 = vmatmul.mubr.f32.gmra.mrb[204].mxu0 %v16180_v0 }
 0xa87   : > { %11505 = vmatprep.mubr.f32.mxu0 %v16193_v7  ;;  %12739 = vmatpush3.bf16.msra.mxu0 %v12736_v60  ;;  %v14191_v60 = vld [vmem:[%s15032_s21 + $0x58] sm:$0xff] }
 0xa88   : > { %12741 = vmatprep.subr.bf16.mxu0 %v12740_v13 }
 0xa8a   : > { %11506 = vmatmul.mubr.f32.gmra.mrb[206].mxu0 %v16189_v54 }
 0xa8b   : > { %11508 = vmatprep.mubr.f32.mxu0 %v16201_v45  ;;  %12743 = vmatpush3.bf16.msra.mxu0 %v12740_v13  ;;  %v14194_v13 = vld [vmem:[%s15032_s21 + $0x70] sm:$0xff] }
 0xa8c   : > { %12808 = vmatprep.subr.bf16.mxu0 %v18300_v8 }
 0xa8e   : > { %11509 = vmatmul.mubr.f32.gmra.mrb[208].mxu0 %v16198_v10 }
 0xa8f   : > { %11511 = vmatprep.mubr.f32.mxu0 %v16210_v41 }
 0xa92   : > { %11512 = vmatmul.mubr.f32.gmra.mrb[210].mxu0 %v16207_v58 }
 0xa93   : > { %11514 = vmatprep.mubr.f32.mxu0 %v16219_v23 }
 0xa96   : > { %11515 = vmatmul.mubr.f32.gmra.mrb[212].mxu0 %v16216_v2 }
 0xa97   : > { %11517 = vmatprep.mubr.f32.mxu0 %v16228_v34 }
 0xa9a   : > { %11518 = vmatmul.mubr.f32.gmra.mrb[214].mxu0 %v16225_v40 }
 0xa9b   : > { %11520 = vmatprep.mubr.f32.mxu0 %v16237_v56 }
 0xa9e   : > { %11521 = vmatmul.mubr.f32.gmra.mrb[216].mxu0 %v16234_v52 }
 0xa9f   : > { %11523 = vmatprep.mubr.f32.mxu0 %v16246_v32 }
 0xaa2   : > { %11524 = vmatmul.mubr.f32.gmra.mrb[218].mxu0 %v16243_v47 }
 0xaa3   : > { %11526 = vmatprep.mubr.f32.mxu0 %v16255_v31 }
 0xaa6   : > { %11527 = vmatmul.mubr.f32.gmra.mrb[220].mxu0 %v16252_v30 }
 0xaa7   : > { %11529 = vmatprep.mubr.f32.mxu0 %v16264_v26 }
 0xaaa   : > { %11530 = vmatmul.mubr.f32.gmra.mrb[222].mxu0 %v16261_v9 }
 0xaab   : > { %11532 = vmatprep.mubr.f32.mxu0 %v16273_v4 }
 0xaae   : > { %11533 = vmatmul.mubr.f32.gmra.mrb[224].mxu0 %v16270_v24  ;;  %v9433_v24 = vld [vmem:[%s18076_s5 + $0x170] sm:$0xff] }
 0xaaf   : > { %11535 = vmatprep.mubr.f32.mxu0 %v16282_v38  ;;  %v9431_v38 = vld [vmem:[%s18076_s5 + $0x160] sm:$0xff] }
 0xab2   : > { %11536 = vmatmul.mubr.f32.gmra.mrb[226].mxu0 %v16279_v35  ;;  %v9432_v35 = vld [vmem:[%s18076_s5 + $0x168] sm:$0xff] }
 0xab3   : > { %11538 = vmatprep.mubr.f32.mxu0 %v16291_v11  ;;  %v9430_v11 = vld [vmem:[%s18076_s5 + $0x158] sm:$0xff]  ;;  %v12800_v4 = vpack.c.bf16 %v9432_v35, %v9431_v38 }
 0xab6   : > { %11539 = vmatmul.mubr.f32.gmra.mrb[228].mxu0 %v16288_v21 }
 0xab7   : > { %11541 = vmatprep.mubr.f32.mxu0 %v16300_v50 }
 0xaba   : > { %11542 = vmatmul.mubr.f32.gmra.mrb[230].mxu0 %v16297_v18  ;;  %v9429_v18 = vld [vmem:[%s18076_s5 + $0x150] sm:$0xff] }
 0xabb   : > { %11560 = vmatprep.mubr.msk.f32.mxu0 %vm1467_vm11, %v14180_v62  ;;  %v14195_v62 = vld [vmem:[%s15032_s21 + $0x78] sm:$0xff]  ;;  %v12796_v21 = vpack.c.bf16 %v9430_v11, %v9429_v18 }
 0xabc   : > { %v9434_v11 = vld [vmem:[%s18076_s5 + $0x178] sm:$0xff] }
 0xabe   : > { %11561 = vmatmul.mubr.msk.f32.vlgmr.msra.gmra.mrb[200].mxu0 %vm1467_vm11, %v14181_v25  ;;  %v14196_v25 = vld [vmem:[%s15032_s21 + $0x80] sm:$0xff] }
 0xabf   : > { %11563 = vmatprep.mubr.msk.f32.mxu0 %vm1467_vm11, %v14182_v57  ;;  %v14197_v57 = vld [vmem:[%s15032_s21 + $0x88] sm:$0xff] }
 0xac2   : > { %11564 = vmatmul.mubr.msk.f32.gmra.mrb[202].mxu0 %vm1467_vm11, %v14183_v29  ;;  %v14198_v29 = vld [vmem:[%s15032_s21 + $0x90] sm:$0xff] }
 0xac3   : > { %11566 = vmatprep.mubr.msk.f32.mxu0 %vm1467_vm11, %v14184_v15  ;;  %v14199_v15 = vld [vmem:[%s15032_s21 + $0x98] sm:$0xff] }
 0xac6   : > { %11567 = vmatmul.mubr.msk.f32.gmra.mrb[204].mxu0 %vm1467_vm11, %v14185_v55  ;;  %v14200_v55 = vld [vmem:[%s15032_s21 + $0xa0] sm:$0xff] }
 0xac7   : > { %11569 = vmatprep.mubr.msk.f32.mxu0 %vm1467_vm11, %v14186_v16  ;;  %v14201_v16 = vld [vmem:[%s15032_s21 + $0xa8] sm:$0xff] }
 0xaca   : > { %11570 = vmatmul.mubr.msk.f32.gmra.mrb[206].mxu0 %vm1467_vm11, %v14187_v37  ;;  %v14202_v37 = vld [vmem:[%s15032_s21 + $0xb0] sm:$0xff] }
 0xacb   : > { %11572 = vmatprep.mubr.msk.f32.mxu0 %vm1467_vm11, %v14188_v51  ;;  %v14203_v51 = vld [vmem:[%s15032_s21 + $0xb8] sm:$0xff] }
 0xace   : > { %11573 = vmatmul.mubr.msk.f32.gmra.mrb[208].mxu0 %vm1467_vm11, %v14189_v48  ;;  %v14204_v48 = vld [vmem:[%s15032_s21 + $0xc0] sm:$0xff] }
 0xacf   : > { %11575 = vmatprep.mubr.msk.f32.mxu0 %vm1467_vm11, %v14190_v63  ;;  %v14205_v63 = vld [vmem:[%s15032_s21 + $0xc8] sm:$0xff] }
 0xad2   : > { %11576 = vmatmul.mubr.msk.f32.gmra.mrb[210].mxu0 %vm1467_vm11, %v14191_v60  ;;  %v14206_v60 = vld [vmem:[%s15032_s21 + $0xd0] sm:$0xff] }
 0xad3   : > { %11578 = vmatprep.mubr.msk.f32.mxu0 %vm1467_vm11, %v14192_v27  ;;  %v14207_v27 = vld [vmem:[%s15032_s21 + $0xd8] sm:$0xff] }
 0xad6   : > { %11579 = vmatmul.mubr.msk.f32.gmra.mrb[212].mxu0 %vm1467_vm11, %v14193_v46  ;;  %v14208_v46 = vld [vmem:[%s15032_s21 + $0xe0] sm:$0xff] }
 0xad7   : > { %11581 = vmatprep.mubr.msk.f32.mxu0 %vm1467_vm11, %v14194_v13  ;;  %v14209_v13 = vld [vmem:[%s15032_s21 + $0xe8] sm:$0xff] }
 0xada   : > { %11582 = vmatmul.mubr.msk.f32.gmra.mrb[214].mxu0 %vm1467_vm11, %v14195_v62  ;;  %v14210_v62 = vld [vmem:[%s15032_s21 + $0xf0] sm:$0xff] }
 0xadb   : > { %11584 = vmatprep.mubr.msk.f32.mxu0 %vm1467_vm11, %v14196_v25  ;;  %v14211_v25 = vld [vmem:[%s15032_s21 + $0xf8] sm:$0xff] }
 0xade   : > { %11585 = vmatmul.mubr.msk.f32.gmra.mrb[216].mxu0 %vm1467_vm11, %v14197_v57  ;;  %v9419_v57 = vld [vmem:[%s18076_s5 + $0x100] sm:$0xff] }
 0xadf   : > { %11587 = vmatprep.mubr.msk.f32.mxu0 %vm1467_vm11, %v14198_v29  ;;  %v9420_v29 = vld [vmem:[%s18076_s5 + $0x108] sm:$0xff] }
 0xae2   : > { %11588 = vmatmul.mubr.msk.f32.gmra.mrb[218].mxu0 %vm1467_vm11, %v14199_v15  ;;  %v12776_v15 = vpack.c.bf16 %v9420_v29, %v9419_v57 }
 0xae3   : > { %11590 = vmatprep.mubr.msk.f32.mxu0 %vm1467_vm11, %v14200_v55  ;;  %v9421_v55 = vld [vmem:[%s18076_s5 + $0x110] sm:$0xff] }
 0xae4   : > { %12777 = vmatprep.subr.bf16.mxu1 %v12776_v15 }
 0xae6   : > { %11591 = vmatmul.mubr.msk.f32.gmra.mrb[220].mxu0 %vm1467_vm11, %v14201_v16  ;;  %v9422_v16 = vld [vmem:[%s18076_s5 + $0x118] sm:$0xff] }
 0xae7   : > { %11593 = vmatprep.mubr.msk.f32.mxu0 %vm1467_vm11, %v14202_v37 }
 0xaea   : > { %11594 = vmatmul.mubr.msk.f32.gmra.mrb[222].mxu0 %vm1467_vm11, %v14203_v51 }
 0xaeb   : > { %11596 = vmatprep.mubr.msk.f32.mxu0 %vm1467_vm11, %v14204_v48  ;;  %v12780_v48 = vpack.c.bf16 %v9422_v16, %v9421_v55  ;;  %v9427_v55 = vld [vmem:[%s18076_s5 + $0x140] sm:$0xff]  ;;  %v9428_v16 = vld [vmem:[%s18076_s5 + $0x148] sm:$0xff] }
 0xaee   : > { %11597 = vmatmul.mubr.msk.f32.gmra.mrb[224].mxu0 %vm1467_vm11, %v14205_v63  ;;  %v9423_v63 = vld [vmem:[%s18076_s5 + $0x120] sm:$0xff] }
 0xaef   : > { %11599 = vmatprep.mubr.msk.f32.mxu0 %vm1467_vm11, %v14206_v60  ;;  %v9424_v60 = vld [vmem:[%s18076_s5 + $0x128] sm:$0xff] }
 0xaf2   : > { %11600 = vmatmul.mubr.msk.f32.gmra.mrb[226].mxu0 %vm1467_vm11, %v14207_v27 }
 0xaf3   : > { %11602 = vmatprep.mubr.msk.f32.mxu0 %vm1467_vm11, %v14208_v46 }
 0xaf6   : > { %11603 = vmatmul.mubr.msk.f32.gmra.mrb[228].mxu0 %vm1467_vm11, %v14209_v13  ;;  %v12784_v13 = vpack.c.bf16 %v9424_v60, %v9423_v63  ;;  %v12792_v60 = vpack.c.bf16 %v9428_v16, %v9427_v55 }
 0xaf7   : > { %11605 = vmatprep.mubr.msk.f32.mxu0 %vm1467_vm11, %v14210_v62  ;;  %v9425_v62 = vld [vmem:[%s18076_s5 + $0x130] sm:$0xff] }
 0xafa   : > { %11606 = vmatmul.mubr.msk.f32.gmra.mrb[230].mxu0 %vm1467_vm11, %v14211_v25  ;;  %v9426_v25 = vld [vmem:[%s18076_s5 + $0x138] sm:$0xff] }
 0xafb   : > { %6483 = vmatprep.mubr.f32.mxu0 %v18393_v53 }
 0xb91   : > { %v16683_v37 = vpop.f32.mrb[200].mxu0 }
 0xb92   : > { %v16685_v51 = vpop.f32.mrb[201].mxu0  ;;  %13732 = vtanh.f32 %v16683_v37 }
 0xb93   : > { %11640 = vmatprep.mubr.f32.mxu1 %v16685_v51  ;;  %13734 = vtanh.f32 %v16685_v51 }
 0xb94   : > { %11641 = vmatmul.mubr.f32.vlgmr.msra.gmra.mrb[184].mxu1 %v16683_v37 }
 0xb95   : > { %v16695_v27 = vpop.f32.mrb[202].mxu0  ;;  %12779 = vmatpush3.bf16.msra.mxu1 %v12776_v15  ;;  %v12788_v15 = vpack.c.bf16 %v9426_v25, %v9425_v62 }
 0xb96   : > { %v16697_v46 = vpop.f32.mrb[203].mxu0  ;;  %12781 = vmatprep.subr.bf16.mxu1 %v12780_v48  ;;  %13736 = vtanh.f32 %v16695_v27 }
 0xb97   : > { %11643 = vmatprep.mubr.f32.mxu1 %v16697_v46  ;;  %13738 = vtanh.f32 %v16697_v46 }
 0xb98   : > { %11644 = vmatmul.mubr.f32.gmra.mrb[186].mxu1 %v16695_v27 }
 0xb99   : > { %v16707_v57 = vpop.f32.mrb[204].mxu0  ;;  %12783 = vmatpush3.bf16.msra.mxu1 %v12780_v48 }
 0xb9a   : > { %v16709_v29 = vpop.f32.mrb[205].mxu0  ;;  %12785 = vmatprep.subr.bf16.mxu1 %v12784_v13  ;;  %13740 = vtanh.f32 %v16707_v57 }
 0xb9b   : > { %11646 = vmatprep.mubr.f32.mxu1 %v16709_v29  ;;  %13742 = vtanh.f32 %v16709_v29 }
 0xb9c   : > { %11647 = vmatmul.mubr.f32.gmra.mrb[188].mxu1 %v16707_v57 }
 0xb9d   : > { %v16719_v63 = vpop.f32.mrb[206].mxu0  ;;  %12787 = vmatpush3.bf16.msra.mxu1 %v12784_v13 }
 0xb9e   : > { %v16721_v48 = vpop.f32.mrb[207].mxu0  ;;  %12789 = vmatprep.subr.bf16.mxu1 %v12788_v15  ;;  %13744 = vtanh.f32 %v16719_v63 }
 0xb9f   : > { %11649 = vmatprep.mubr.f32.mxu1 %v16721_v48  ;;  %13746 = vtanh.f32 %v16721_v48 }
 0xba0   : > { %11650 = vmatmul.mubr.f32.gmra.mrb[190].mxu1 %v16719_v63 }
 0xba1   : > { %v16725_v62 = vpop.f32.mrb[208].mxu0  ;;  %12791 = vmatpush3.bf16.msra.mxu1 %v12788_v15 }
 0xba2   : > { %v16727_v25 = vpop.f32.mrb[209].mxu0  ;;  %12793 = vmatprep.subr.bf16.mxu1 %v12792_v60  ;;  %13748 = vtanh.f32 %v16725_v62 }
 0xba3   : > { %11652 = vmatprep.mubr.f32.mxu1 %v16727_v25  ;;  %13750 = vtanh.f32 %v16727_v25 }
 0xba4   : > { %11653 = vmatmul.mubr.f32.gmra.mrb[192].mxu1 %v16725_v62 }
 0xba5   : > { %v16731_v39 = vpop.f32.mrb[210].mxu0  ;;  %12795 = vmatpush3.bf16.msra.mxu1 %v12792_v60 }
 0xba6   : > { %v16733_v13 = vpop.f32.mrb[211].mxu0  ;;  %12797 = vmatprep.subr.bf16.mxu1 %v12796_v21  ;;  %13752 = vtanh.f32 %v16731_v39 }
 0xba7   : > { %11655 = vmatprep.mubr.f32.mxu1 %v16733_v13  ;;  %13754 = vtanh.f32 %v16733_v13 }
 0xba8   : > { %11656 = vmatmul.mubr.f32.gmra.mrb[194].mxu1 %v16731_v39 }
 0xba9   : > { %v16737_v55 = vpop.f32.mrb[212].mxu0  ;;  %12799 = vmatpush3.bf16.msra.mxu1 %v12796_v21  ;;  %v12804_v21 = vpack.c.bf16 %v9434_v11, %v9433_v24  ;;  %v16825_v24 = vpop.eup %13732 }
 0xbaa   : > { %v16739_v16 = vpop.f32.mrb[213].mxu0  ;;  %12801 = vmatprep.subr.bf16.mxu1 %v12800_v4  ;;  %13756 = vtanh.f32 %v16737_v55 }
 0xbab   : > { %11658 = vmatprep.mubr.f32.mxu1 %v16739_v16  ;;  %13758 = vtanh.f32 %v16739_v16 }
 0xbac   : > { %11659 = vmatmul.mubr.f32.gmra.mrb[196].mxu1 %v16737_v55 }
 0xbad   : > { %v16743_v15 = vpop.f32.mrb[214].mxu0  ;;  %12803 = vmatpush3.bf16.msra.mxu1 %v12800_v4  ;;  %v16828_v4 = vpop.eup %13734 }
 0xbae   : > { %v16745_v20 = vpop.f32.mrb[215].mxu0  ;;  %12805 = vmatprep.subr.bf16.mxu1 %v12804_v21  ;;  %v16831_v35 = vpop.eup %13736  ;;  %13760 = vtanh.f32 %v16743_v15 }
 0xbaf   : > { %11661 = vmatprep.mubr.f32.mxu1 %v16745_v20  ;;  %v16834_v38 = vpop.eup %13738  ;;  %13762 = vtanh.f32 %v16745_v20 }
 0xbb0   : > { %11662 = vmatmul.mubr.f32.gmra.mrb[198].mxu1 %v16743_v15  ;;  %v16837_v18 = vpop.eup %13740 }
 0xbb1   : > { %v16749_v60 = vpop.f32.mrb[216].mxu0  ;;  %12807 = vmatpush3.bf16.msra.mxu1 %v12804_v21  ;;  %v16840_v37 = vpop.eup %13742 }
 0xbb2   : > { %v16751_v14 = vpop.f32.mrb[217].mxu0  ;;  %v16843_v39 = vpop.eup %13744  ;;  %13764 = vtanh.f32 %v16749_v60 }
 0xbb3   : > { %11664 = vmatprep.mubr.f32.mxu1 %v16751_v14  ;;  %v16846_v51 = vpop.eup %13746  ;;  %13766 = vtanh.f32 %v16751_v14 }
 0xbb4   : > { %11665 = vmatmul.mubr.f32.gmra.mrb[200].mxu1 %v16749_v60  ;;  %v16849_v46 = vpop.eup %13748 }
 0xbb5   : > { %v16755_v3 = vpop.f32.mrb[218].mxu0  ;;  %v16852_v63 = vpop.eup %13750 }
 0xbb6   : > { %v16757_v44 = vpop.f32.mrb[219].mxu0  ;;  %13768 = vtanh.f32 %v16755_v3  ;;  %v16855_v48 = vpop.eup %13752 }
 0xbb7   : > { %11667 = vmatprep.mubr.f32.mxu1 %v16757_v44  ;;  %13770 = vtanh.f32 %v16757_v44  ;;  %v16857_v62 = vpop.eup %13754 }
 0xbb8   : > { %11668 = vmatmul.mubr.f32.gmra.mrb[202].mxu1 %v16755_v3  ;;  %v16859_v14 = vpop.eup %13756 }
 0xbb9   : > { %v16761_v19 = vpop.f32.mrb[220].mxu0  ;;  %v16862_v55 = vpop.eup %13758 }
 0xbba   : > { %v16763_v1 = vpop.f32.mrb[221].mxu0  ;;  %v16865_v44 = vpop.eup %13760 }
 0xbbb   : > { %11670 = vmatprep.mubr.f32.mxu1 %v16763_v1  ;;  %v16867_v15 = vpop.eup %13762 }
 0xbbc   : > { %11671 = vmatmul.mubr.f32.gmra.mrb[204].mxu1 %v16761_v19  ;;  %v16869_v11 = vpop.eup %13764 }
 0xbbd   : > { %v16767_v5 = vpop.f32.mrb[222].mxu0 }
 0xbbe   : > { %v16769_v17 = vpop.f32.mrb[223].mxu0 }
 0xbbf   : > { %11673 = vmatprep.mubr.f32.mxu1 %v16769_v17 }
 0xbc0   : > { %11674 = vmatmul.mubr.f32.gmra.mrb[206].mxu1 %v16767_v5 }
 0xbc1   : > { %v16773_v59 = vpop.f32.mrb[224].mxu0 }
 0xbc2   : > { %v16775_v12 = vpop.f32.mrb[225].mxu0 }
 0xbc3   : > { %11676 = vmatprep.mubr.f32.mxu1 %v16775_v12 }
 0xbc4   : > { %11677 = vmatmul.mubr.f32.gmra.mrb[208].mxu1 %v16773_v59 }
 0xbc5   : > { %v16779_v43 = vpop.f32.mrb[226].mxu0 }
 0xbc6   : > { %v16781_v28 = vpop.f32.mrb[227].mxu0 }
 0xbc7   : > { %11679 = vmatprep.mubr.f32.mxu1 %v16781_v28 }
 0xbc8   : > { %11680 = vmatmul.mubr.f32.gmra.mrb[210].mxu1 %v16779_v43 }
 0xbc9   : > { %v16785_v53 = vpop.f32.mrb[228].mxu0 }
 0xbca   : > { %v16787_v49 = vpop.f32.mrb[229].mxu0 }
 0xbcb   : > { %11682 = vmatprep.mubr.f32.mxu1 %v16787_v49 }
 0xbcc   : > { %11683 = vmatmul.mubr.f32.gmra.mrb[212].mxu1 %v16785_v53 }
 0xbcd   : > { %v16791_v6 = vpop.f32.mrb[230].mxu0 }
 0xbce   : > { %v16793_v50 = vpop.f32.mrb[231].mxu0 }
 0xbcf   : > { %11685 = vmatprep.mubr.f32.mxu1 %v16793_v50 }
 0xbd0   : > { %11686 = vmatmul.mubr.f32.gmra.mrb[214].mxu1 %v16791_v6 }
 0xc67   : > { %v11642_v27 = vpop.f32.mrb[184].mxu1 }
 0xc68   : > { %v9388_v57 = vmul.f32 -1.442695, %v11642_v27  ;;  %v5602_v29 = vpop.f32.mrb[185].mxu1  ;;  %v16872_v27 = vpop.eup %13766 }
 0xc69   : > { %v9387_v20 = vmul.f32 -1.442695, %v5602_v29 }
 0xc6a   : > { %13772 = vpow2.f32 %v9388_v57 }
 0xc6b   : > { %13774 = vpow2.f32 %v9387_v20  ;;  %v11645_v25 = vpop.f32.mrb[186].mxu1 }
 0xc6c   : > { %13776 = vtanh.f32 %v16761_v19  ;;  %v9390_v13 = vmul.f32 -1.442695, %v11645_v25  ;;  %v5612_v3 = vpop.f32.mrb[187].mxu1 }
 0xc6d   : > { %13778 = vtanh.f32 %v16763_v1  ;;  %v9389_v16 = vmul.f32 -1.442695, %v5612_v3  ;;  %v16875_v1 = vpop.eup %13768 }
 0xc6e   : > { %13780 = vpow2.f32 %v9390_v13  ;;  %v16877_v29 = vpop.eup %13770 }
 0xc6f   : > { %13782 = vpow2.f32 %v9389_v16  ;;  %v11648_v60 = vpop.f32.mrb[188].mxu1 }
 0xc70   : > { %13784 = vtanh.f32 %v16767_v5  ;;  %v9392_v21 = vmul.f32 -1.442695, %v11648_v60  ;;  %v5622_v19 = vpop.f32.mrb[189].mxu1 }
 0xc71   : > { %13786 = vtanh.f32 %v16769_v17  ;;  %v9391_v57 = vmul.f32 -1.442695, %v5622_v19 }
 0xc72   : > { %13788 = vpow2.f32 %v9392_v21 }
 0xc73   : > { %13790 = vpow2.f32 %v9391_v57  ;;  %v11651_v20 = vpop.f32.mrb[190].mxu1 }
 0xc74   : > { %v13773_v25 = vpop.eup %13772  ;;  %13792 = vtanh.f32 %v16773_v59  ;;  %v9394_v13 = vmul.f32 -1.442695, %v11651_v20  ;;  %v5632_v3 = vpop.f32.mrb[191].mxu1 }
 0xc75   : > { %v13775_v5 = vpop.eup %13774  ;;  %13794 = vtanh.f32 %v16775_v12  ;;  %v5890_v16 = vadd.f32 1.0, %v13773_v25  ;;  %v9393_v60 = vmul.f32 -1.442695, %v5632_v3 }
 0xc76   : > { %v16881_v26 = vpop.eup %13776  ;;  %v5889_v17 = vadd.f32 1.0, %v13775_v5  ;;  %13796 = vpow2.f32 %v9394_v13 }
 0xc77   : > { %v16883_v19 = vpop.eup %13778  ;;  %13798 = vrcp.f32 %v5890_v16  ;;  %v11654_v21 = vpop.f32.mrb[192].mxu1 }
 0xc78   : > { %v13781_v57 = vpop.eup %13780  ;;  %13800 = vrcp.f32 %v5889_v17  ;;  %v9396_v9 = vmul.f32 -1.442695, %v11654_v21  ;;  %v5642_v31 = vpop.f32.mrb[193].mxu1 }
 0xc79   : > { %v13783_v59 = vpop.eup %13782  ;;  %v5892_v20 = vadd.f32 1.0, %v13781_v57  ;;  %13802 = vpow2.f32 %v9393_v60  ;;  %v9395_v30 = vmul.f32 -1.442695, %v5642_v31 }
 0xc7a   : > { %v16885_v32 = vpop.eup %13784  ;;  %v5891_v12 = vadd.f32 1.0, %v13783_v59  ;;  %13804 = vpow2.f32 %v9396_v9 }
 0xc7b   : > { %v16887_v25 = vpop.eup %13786  ;;  %13806 = vrcp.f32 %v5892_v20  ;;  %v11657_v13 = vpop.f32.mrb[194].mxu1 }
 0xc7c   : > { %v13789_v3 = vpop.eup %13788  ;;  %13808 = vrcp.f32 %v5891_v12  ;;  %v9398_v5 = vmul.f32 -1.442695, %v11657_v13  ;;  %v5652_v16 = vpop.f32.mrb[195].mxu1 }
 0xc7d   : > { %v13791_v47 = vpop.eup %13790  ;;  %v5894_v17 = vadd.f32 1.0, %v13789_v3  ;;  %13810 = vpow2.f32 %v9395_v30  ;;  %v9397_v21 = vmul.f32 -1.442695, %v5652_v16 }
 0xc7e   : > { %v16889_v56 = vpop.eup %13792  ;;  %v5893_v60 = vadd.f32 1.0, %v13791_v47  ;;  %13812 = vpow2.f32 %v9398_v5 }
 0xc7f   : > { %v16891_v31 = vpop.eup %13794  ;;  %13814 = vrcp.f32 %v5894_v17  ;;  %v11660_v9 = vpop.f32.mrb[196].mxu1 }
 0xc80   : > { %v13797_v57 = vpop.eup %13796  ;;  %13816 = vrcp.f32 %v5893_v60  ;;  %v9400_v59 = vmul.f32 -1.442695, %v11660_v9  ;;  %v5662_v20 = vpop.f32.mrb[197].mxu1 }
 0xc81   : > { %v13799_v52 = vpop.eup %13798  ;;  %v5896_v12 = vadd.f32 1.0, %v13797_v57  ;;  %13818 = vpow2.f32 %v9397_v21  ;;  %v9399_v13 = vmul.f32 -1.442695, %v5662_v20 }
 0xc82   : > { %v13801_v34 = vpop.eup %13800  ;;  %13820 = vpow2.f32 %v9400_v59  ;;  %v5986_v30 = vmul.f32 %v13799_v52, %v16825_v24 }
 0xc83   : > { %v13803_v3 = vpop.eup %13802  ;;  %13822 = vrcp.f32 %v5896_v12  ;;  %v11663_v47 = vpop.f32.mrb[198].mxu1  ;;  %v5985_v5 = vmul.f32 %v13801_v34, %v16828_v4 }
 0xc84   : > { %v13805_v16 = vpop.eup %13804  ;;  %v5895_v17 = vadd.f32 1.0, %v13803_v3  ;;  %13824 = vpow2.f32 %v9399_v13  ;;  %v9402_v40 = vmul.f32 -1.442695, %v11663_v47  ;;  %v5672_v60 = vpop.f32.mrb[199].mxu1 }
 0xc85   : > { %v13807_v9 = vpop.eup %13806  ;;  %13826 = vtanh.f32 %v16779_v43  ;;  %v5898_v57 = vadd.f32 1.0, %v13805_v16  ;;  %v9401_v21 = vmul.f32 -1.442695, %v5672_v60  ;;  %11720 = vmatprep.mubr.f32.mxu1 %v5985_v5 }
 0xc86   : > { %v13809_v20 = vpop.eup %13808  ;;  %13828 = vrcp.f32 %v5895_v17  ;;  %11721 = vmatmul.mubr.f32.vlgmr.msra.gmra.mrb[216].mxu1 %v5986_v30  ;;  %v5988_v52 = vmul.f32 %v13807_v9, %v16831_v35 }
 0xc87   : > { %v13811_v24 = vpop.eup %13810  ;;  %13830 = vrcp.f32 %v5898_v57  ;;  %v11666_v59 = vpop.f32.mrb[200].mxu1  ;;  %v5987_v34 = vmul.f32 %v13809_v20, %v16834_v38 }
 0xc88   : > { %v13813_v4 = vpop.eup %13812  ;;  %v5897_v12 = vadd.f32 1.0, %v13811_v24  ;;  %13832 = vpow2.f32 %v9402_v40  ;;  %v9404_v13 = vmul.f32 -1.442695, %v11666_v59  ;;  %v5682_v3 = vpop.f32.mrb[201].mxu1 }
 0xc89   : > { %v13815_v47 = vpop.eup %13814  ;;  %v5900_v43 = vadd.f32 1.0, %v13813_v4  ;;  %13834 = vpow2.f32 %v9401_v21  ;;  %v9403_v16 = vmul.f32 -1.442695, %v5682_v3  ;;  %11723 = vmatprep.mubr.f32.mxu1 %v5987_v34 }
 0xc8a   : > { %v13817_v5 = vpop.eup %13816  ;;  %13836 = vrcp.f32 %v5897_v12  ;;  %11724 = vmatmul.mubr.f32.gmra.mrb[218].mxu1 %v5988_v52  ;;  %v5990_v35 = vmul.f32 %v13815_v47, %v16837_v18 }
 0xc8b   : > { %v13819_v30 = vpop.eup %13818  ;;  %13838 = vrcp.f32 %v5900_v43  ;;  %v11669_v17 = vpop.f32.mrb[202].mxu1  ;;  %v5989_v38 = vmul.f32 %v13817_v5, %v16840_v37 }
 0xc8c   : > { %v13821_v60 = vpop.eup %13820  ;;  %v5899_v9 = vadd.f32 1.0, %v13819_v30  ;;  %13840 = vpow2.f32 %v9404_v13  ;;  %v9406_v40 = vmul.f32 -1.442695, %v11669_v17  ;;  %v5692_v57 = vpop.f32.mrb[203].mxu1 }
 0xc8d   : > { %v13823_v20 = vpop.eup %13822  ;;  %v5902_v24 = vadd.f32 1.0, %v13821_v60  ;;  %13842 = vpow2.f32 %v9403_v16  ;;  %11726 = vmatprep.mubr.f32.mxu1 %v5989_v38  ;;  %v9405_v59 = vmul.f32 -1.442695, %v5692_v57 }
 0xc8e   : > { %v13825_v21 = vpop.eup %13824  ;;  %13844 = vrcp.f32 %v5899_v9  ;;  %11727 = vmatmul.mubr.f32.gmra.mrb[220].mxu1 %v5990_v35  ;;  %v5992_v18 = vmul.f32 %v13823_v20, %v16843_v39 }
 0xc8f   : > { %v16901_v52 = vpop.eup %13826  ;;  %13846 = vrcp.f32 %v5902_v24  ;;  %v5901_v34 = vadd.f32 1.0, %v13825_v21  ;;  %v11672_v37 = vpop.f32.mrb[204].mxu1 }
 0xc90   : > { %v13829_v4 = vpop.eup %13828  ;;  %13848 = vpow2.f32 %v9406_v40  ;;  %v9408_v12 = vmul.f32 -1.442695, %v11672_v37  ;;  %v5702_v13 = vpop.f32.mrb[205].mxu1 }
 0xc91   : > { %v13831_v3 = vpop.eup %13830  ;;  %13850 = vrcp.f32 %v5901_v34  ;;  %v9407_v47 = vmul.f32 -1.442695, %v5702_v13  ;;  %v5991_v43 = vmul.f32 %v13829_v4, %v16846_v51 }
 0xc92   : > { %v13833_v16 = vpop.eup %13832  ;;  %13852 = vpow2.f32 %v9405_v59  ;;  %v5994_v5 = vmul.f32 %v13831_v3, %v16849_v46 }
 0xc93   : > { %v13835_v35 = vpop.eup %13834  ;;  %v5904_v39 = vadd.f32 1.0, %v13833_v16  ;;  %13854 = vpow2.f32 %v9408_v12  ;;  %11729 = vmatprep.mubr.f32.mxu1 %v5991_v43  ;;  %v11675_v30 = vpop.f32.mrb[206].mxu1 }
 0xc94   : > { %v13837_v17 = vpop.eup %13836  ;;  %v5903_v38 = vadd.f32 1.0, %v13835_v35  ;;  %13856 = vpow2.f32 %v9407_v47  ;;  %11730 = vmatmul.mubr.f32.gmra.mrb[222].mxu1 %v5992_v18  ;;  %v9410_v60 = vmul.f32 -1.442695, %v11675_v30  ;;  %v5712_v9 = vpop.f32.mrb[207].mxu1 }
 0xc95   : > { %v13839_v40 = vpop.eup %13838  ;;  %13858 = vrcp.f32 %v5904_v39  ;;  %v9409_v57 = vmul.f32 -1.442695, %v5712_v9  ;;  %v5993_v51 = vmul.f32 %v13837_v17, %v16852_v63 }
 0xc96   : > { %v13841_v20 = vpop.eup %13840  ;;  %13860 = vrcp.f32 %v5903_v38  ;;  %v5996_v46 = vmul.f32 %v13839_v40, %v16855_v48 }
 0xc97   : > { %v13843_v24 = vpop.eup %13842  ;;  %v5906_v21 = vadd.f32 1.0, %v13841_v20  ;;  %13862 = vpow2.f32 %v9410_v60  ;;  %11732 = vmatprep.mubr.f32.mxu1 %v5993_v51  ;;  %v11678_v59 = vpop.f32.mrb[208].mxu1 }
 0xc98   : > { %v13845_v34 = vpop.eup %13844  ;;  %v5905_v37 = vadd.f32 1.0, %v13843_v24  ;;  %13864 = vpow2.f32 %v9409_v57  ;;  %11733 = vmatmul.mubr.f32.gmra.mrb[224].mxu1 %v5994_v5  ;;  %v9412_v18 = vmul.f32 -1.442695, %v11678_v59  ;;  %v5722_v4 = vpop.f32.mrb[209].mxu1 }
 0xc99   : > { %v13847_v12 = vpop.eup %13846  ;;  %13866 = vrcp.f32 %v5906_v21  ;;  %v9411_v13 = vmul.f32 -1.442695, %v5722_v4  ;;  %v5995_v63 = vmul.f32 %v13845_v34, %v16857_v62 }
 0xc9a   : > { %v13849_v3 = vpop.eup %13848  ;;  %13868 = vrcp.f32 %v5905_v37  ;;  %v5998_v48 = vmul.f32 %v13847_v12, %v16859_v14 }
 0xc9b   : > { %v13851_v47 = vpop.eup %13850  ;;  %v5908_v43 = vadd.f32 1.0, %v13849_v3  ;;  %13870 = vpow2.f32 %v9412_v18  ;;  %11735 = vmatprep.mubr.f32.mxu1 %v5995_v63  ;;  %v11681_v16 = vpop.f32.mrb[210].mxu1 }
 0xc9c   : > { %v13853_v35 = vpop.eup %13852  ;;  %13872 = vpow2.f32 %v9411_v13  ;;  %11736 = vmatmul.mubr.f32.gmra.mrb[226].mxu1 %v5996_v46  ;;  %v9414_v5 = vmul.f32 -1.442695, %v11681_v16  ;;  %v5732_v39 = vpop.f32.mrb[211].mxu1  ;;  %v5997_v30 = vmul.f32 %v13851_v47, %v16862_v55 }
 0xc9d   : > { %v13855_v17 = vpop.eup %13854  ;;  %13874 = vrcp.f32 %v5908_v43  ;;  %v5907_v38 = vadd.f32 1.0, %v13853_v35  ;;  %v9413_v9 = vmul.f32 -1.442695, %v5732_v39 }
 0xc9e   : > { %v13857_v62 = vpop.eup %13856  ;;  %v5910_v60 = vadd.f32 1.0, %v13855_v17  ;;  %13876 = vpow2.f32 %v9414_v5  ;;  %11738 = vmatprep.mubr.f32.mxu1 %v5997_v30 }
 0xc9f   : > { %v13859_v14 = vpop.eup %13858  ;;  %13878 = vrcp.f32 %v5907_v38  ;;  %v5909_v40 = vadd.f32 1.0, %v13857_v62  ;;  %v11684_v57 = vpop.f32.mrb[212].mxu1 }
 0xca0   : > { %v13861_v51 = vpop.eup %13860  ;;  %13880 = vrcp.f32 %v5910_v60  ;;  %11739 = vmatmul.mubr.f32.gmra.mrb[228].mxu1 %v5998_v48  ;;  %v9416_v20 = vmul.f32 -1.442695, %v11684_v57  ;;  %v5742_v46 = vpop.f32.mrb[213].mxu1  ;;  %v6000_v24 = vmul.f32 %v13859_v14, %v16865_v44 }
 0xca1   : > { %v13863_v55 = vpop.eup %13862  ;;  %13882 = vrcp.f32 %v5909_v40  ;;  %v5999_v21 = vmul.f32 %v13861_v51, %v16867_v15  ;;  %v9415_v37 = vmul.f32 -1.442695, %v5742_v46 }
 0xca2   : > { %v13865_v59 = vpop.eup %13864  ;;  %v5912_v34 = vadd.f32 1.0, %v13863_v55  ;;  %13884 = vpow2.f32 %v9413_v9 }
 0xca3   : > { %v13867_v18 = vpop.eup %13866  ;;  %v5911_v4 = vadd.f32 1.0, %v13865_v59  ;;  %13886 = vpow2.f32 %v9416_v20  ;;  %11741 = vmatprep.mubr.f32.mxu1 %v5999_v21  ;;  %v11687_v12 = vpop.f32.mrb[214].mxu1 }
 0xca4   : > { %v13869_v13 = vpop.eup %13868  ;;  %13888 = vrcp.f32 %v5912_v34  ;;  %11742 = vmatmul.mubr.f32.gmra.mrb[230].mxu1 %v6000_v24  ;;  %v9418_v63 = vmul.f32 -1.442695, %v11687_v12  ;;  %v5752_v3 = vpop.f32.mrb[215].mxu1  ;;  %v6002_v44 = vmul.f32 %v13867_v18, %v16869_v11 }
 0xca5   : > { %v13871_v48 = vpop.eup %13870  ;;  %13890 = vrcp.f32 %v5911_v4  ;;  %v6001_v15 = vmul.f32 %v13869_v13, %v16872_v27  ;;  %v9417_v16 = vmul.f32 -1.442695, %v5752_v3 }
 0xca6   : > { %v13873_v47 = vpop.eup %13872  ;;  %v5914_v43 = vadd.f32 1.0, %v13871_v48  ;;  %13892 = vpow2.f32 %v9415_v37 }
 0xca7   : > { %v13875_v35 = vpop.eup %13874  ;;  %v5913_v5 = vadd.f32 1.0, %v13873_v47  ;;  %13894 = vpow2.f32 %v9418_v63  ;;  %11744 = vmatprep.mubr.f32.mxu1 %v6001_v15 }
 0xca8   : > { %v13877_v39 = vpop.eup %13876  ;;  %13896 = vrcp.f32 %v5914_v43  ;;  %11745 = vmatmul.mubr.f32.gmra.mrb[232].mxu1 %v6002_v44  ;;  %v6004_v30 = vmul.f32 %v13875_v35, %v16875_v1 }
 0xca9   : > { %v13879_v17 = vpop.eup %13878  ;;  %13898 = vrcp.f32 %v5913_v5  ;;  %v5916_v11 = vadd.f32 1.0, %v13877_v39 }
 0xcaa   : > { %v13881_v38 = vpop.eup %13880  ;;  %13900 = vpow2.f32 %v9417_v16  ;;  %v6003_v27 = vmul.f32 %v13879_v17, %v16877_v29 }
 0xcab   : > { %v13883_v62 = vpop.eup %13882  ;;  %13902 = vrcp.f32 %v5916_v11  ;;  %v6006_v60 = vmul.f32 %v13881_v38, %v16881_v26 }
 0xcac   : > { %v13885_v9 = vpop.eup %13884  ;;  %11747 = vmatprep.mubr.f32.mxu1 %v6003_v27  ;;  %v6005_v14 = vmul.f32 %v13883_v62, %v16883_v19  ;;  %13904 = vtanh.f32 %v16781_v28 }
 0xcad   : > { %v13887_v40 = vpop.eup %13886  ;;  %v5915_v57 = vadd.f32 1.0, %v13885_v9  ;;  %11748 = vmatmul.mubr.f32.gmra.mrb[234].mxu1 %v6004_v30  ;;  %13906 = vtanh.f32 %v16785_v53 }
 0xcae   : > { %v13889_v1 = vpop.eup %13888  ;;  %v5918_v51 = vadd.f32 1.0, %v13887_v40  ;;  %11750 = vmatprep.mubr.f32.mxu1 %v6005_v14 }
 0xcaf   : > { %v13891_v20 = vpop.eup %13890  ;;  %13908 = vrcp.f32 %v5915_v57  ;;  %v6008_v29 = vmul.f32 %v13889_v1, %v16885_v32 }
 0xcb0   : > { %v13893_v46 = vpop.eup %13892  ;;  %13910 = vrcp.f32 %v5918_v51  ;;  %v6007_v26 = vmul.f32 %v13891_v20, %v16887_v25 }
 0xcb1   : > { %v13895_v24 = vpop.eup %13894  ;;  %13912 = vtanh.f32 %v16787_v49  ;;  %v5917_v19 = vadd.f32 1.0, %v13893_v46  ;;  %11751 = vmatmul.mubr.f32.gmra.mrb[236].mxu1 %v6006_v60 }
 0xcb2   : > { %v13897_v28 = vpop.eup %13896  ;;  %13914 = vtanh.f32 %v16791_v6  ;;  %v5920_v55 = vadd.f32 1.0, %v13895_v24  ;;  %11753 = vmatprep.mubr.f32.mxu1 %v6007_v26 }
 0xcb3   : > { %v13899_v53 = vpop.eup %13898  ;;  %13916 = vrcp.f32 %v5917_v19  ;;  %v6010_v21 = vmul.f32 %v13897_v28, %v16889_v56  ;;  %v18433_v19 = vld [vmem:[#allocation44_spill] sm:$0xff] }
 0xcb4   : > { %v13901_v59 = vpop.eup %13900  ;;  %13918 = vrcp.f32 %v5920_v55  ;;  %v6009_v32 = vmul.f32 %v13899_v53, %v16891_v31  ;;  %v18435_v53 = vld [vmem:[#allocation45_spill] sm:$0xff] }
 0xcb5   : > { %v13903_v34 = vpop.eup %13902  ;;  %v5919_v25 = vadd.f32 1.0, %v13901_v59  ;;  %11754 = vmatmul.mubr.f32.gmra.mrb[238].mxu1 %v6008_v29  ;;  %13920 = vtanh.f32 %v16793_v50  ;;  %v18437_v59 = vld [vmem:[#allocation46_spill] sm:$0xff] }
 0xcb6   : > { %11756 = vmatprep.mubr.f32.mxu1 %v6009_v32  ;;  %v6012_v49 = vmul.f32 %v13903_v34, %v16901_v52  ;;  %v13905_v37 = vpop.eup %13904 }
 0xcb7   : > { %13922 = vrcp.f32 %v5919_v25  ;;  %v13907_v6 = vpop.eup %13906  ;;  %v18439_v25 = vld [vmem:[#allocation47_spill] sm:$0xff] }
 0xcb9   : > { %v13909_v18 = vpop.eup %13908  ;;  %11757 = vmatmul.mubr.f32.gmra.mrb[240].mxu1 %v6010_v21 }
 0xcba   : > { %v13911_v4 = vpop.eup %13910  ;;  %v6011_v12 = vmul.f32 %v13909_v18, %v13905_v37  ;;  %v18441_v18 = vld [vmem:[#allocation48_spill] sm:$0xff] }
 0xcbb   : > { %v13913_v56 = vpop.eup %13912  ;;  %v6014_v13 = vmul.f32 %v13911_v4, %v13907_v6 }
 0xcbc   : > { %v13915_v63 = vpop.eup %13914  ;;  %11759 = vmatprep.mubr.f32.mxu1 %v6011_v12 }
 0xcbd   : > { %v13917_v31 = vpop.eup %13916  ;;  %11760 = vmatmul.mubr.f32.gmra.mrb[242].mxu1 %v6012_v49 }
 0xcbe   : > { %v13919_v3 = vpop.eup %13918  ;;  %v6013_v44 = vmul.f32 %v13917_v31, %v13913_v56  ;;  %v18443_v56 = vld [vmem:[#allocation49_spill] sm:$0xff] }
 0xcbf   : > { %v6016_v48 = vmul.f32 %v13919_v3, %v13915_v63  ;;  %v13921_v50 = vpop.eup %13920  ;;  %v18445_v3 = vld [vmem:[#allocation50_spill] sm:$0xff] }
 0xcc0   : > { %11762 = vmatprep.mubr.f32.mxu1 %v6013_v44 }
 0xcc1   : > { %v13923_v15 = vpop.eup %13922  ;;  %11763 = vmatmul.mubr.f32.gmra.mrb[244].mxu1 %v6014_v13 }
 0xcc2   : > { %v6015_v52 = vmul.f32 %v13923_v15, %v13921_v50  ;;  %v18447_v50 = vld [vmem:[#allocation51_spill] sm:$0xff] }
 0xcc4   : > { %11765 = vmatprep.mubr.f32.mxu1 %v6015_v52 }
 0xcc5   : > { %11766 = vmatmul.mubr.f32.gmra.mrb[246].mxu1 %v6016_v48 }
 0xd59   : > { %v11722_v47 = vpop.f32.mrb[216].mxu1 }
 0xd5a   : > { %v16929_v43 = vadd.f32 %v11722_v47, %v16163_v61  ;;  %v6100_v16 = vpop.f32.mrb[217].mxu1 }
 0xd5b   : > { %v16932_v35 = vadd.f32 %v6100_v16, %v16166_v33  ;;  %v18449_v16 = vld [vmem:[#allocation52_spill] sm:$0xff] }
 0xd5d   : > { %v12809_v5 = vpack.c.bf16 %v16929_v43, %v16932_v35  ;;  %v11725_v39 = vpop.f32.mrb[218].mxu1 }
 0xd5e   : > { %v16937_v30 = vadd.f32 %v11725_v39, %v16171_v42  ;;  %v6110_v17 = vpop.f32.mrb[219].mxu1 }
 0xd5f   : > { %v16940_v11 = vadd.f32 %v6110_v17, %v16174_v36  ;;  %12810 = vmatpush1.bf16.msra.mxu0 %v12809_v5  ;;  %v18451_v17 = vld [vmem:[#allocation53_spill] sm:$0xff] }
 0xd60   : > { %12811 = vmatprep.subr.bf16.mxu0 %v18300_v8 }
 0xd61   : > { %v12812_v61 = vpack.c.bf16 %v16937_v30, %v16940_v11  ;;  %v11728_v38 = vpop.f32.mrb[220].mxu1 }
 0xd62   : > { %v16946_v33 = vadd.f32 %v11728_v38, %v16180_v0  ;;  %v6120_v27 = vpop.f32.mrb[221].mxu1 }
 0xd63   : > { %v16949_v62 = vadd.f32 %v6120_v27, %v16183_v22  ;;  %12813 = vmatpush1.bf16.msra.mxu0 %v12812_v61 }
 0xd64   : > { %12814 = vmatprep.subr.bf16.mxu0 %v18300_v8 }
 0xd65   : > { %v12815_v42 = vpack.c.bf16 %v16946_v33, %v16949_v62 }
 0xd67   : > { %v11731_v36 = vpop.f32.mrb[222].mxu1  ;;  %12816 = vmatpush1.bf16.msra.mxu0 %v12815_v42  ;;  %v18453_v42 = vld [vmem:[#allocation54_spill] sm:$0xff] }
 0xd68   : > { %v16955_v60 = vadd.f32 %v11731_v36, %v16189_v54  ;;  %v6130_v9 = vpop.f32.mrb[223].mxu1  ;;  %12817 = vmatprep.subr.bf16.mxu0 %v18300_v8 }
 0xd69   : > { %v16959_v0 = vadd.f32 %v6130_v9, %v16193_v7 }
 0xd6b   : > { %v12818_v22 = vpack.c.bf16 %v16955_v60, %v16959_v0  ;;  %v11734_v14 = vpop.f32.mrb[224].mxu1 }
 0xd6c   : > { %v16964_v40 = vadd.f32 %v11734_v14, %v16198_v10  ;;  %v6140_v57 = vpop.f32.mrb[225].mxu1 }
 0xd6d   : > { %v16967_v1 = vadd.f32 %v6140_v57, %v16201_v45  ;;  %12819 = vmatpush1.bf16.msra.mxu0 %v12818_v22  ;;  %v18455_v22 = vld [vmem:[#allocation55_spill] sm:$0xff] }
 0xd6e   : > { %12820 = vmatprep.subr.bf16.mxu0 %v18300_v8 }
 0xd6f   : > { %v12821_v54 = vpack.c.bf16 %v16964_v40, %v16967_v1  ;;  %v11737_v51 = vpop.f32.mrb[226].mxu1 }
 0xd70   : > { %v16973_v7 = vadd.f32 %v11737_v51, %v16207_v58  ;;  %v6150_v20 = vpop.f32.mrb[227].mxu1  ;;  %v18457_v51 = vld [vmem:[#allocation56_spill] sm:$0xff] }
 0xd71   : > { %v16976_v29 = vadd.f32 %v6150_v20, %v16210_v41  ;;  %12822 = vmatpush1.bf16.msra.mxu0 %v12821_v54 }
 0xd72   : > { %12823 = vmatprep.subr.bf16.mxu0 %v18300_v8 }
 0xd73   : > { %v12824_v10 = vpack.c.bf16 %v16973_v7, %v16976_v29  ;;  %v11740_v45 = vpop.f32.mrb[228].mxu1 }
 0xd74   : > { %v16982_v46 = vadd.f32 %v11740_v45, %v16216_v2  ;;  %v6160_v26 = vpop.f32.mrb[229].mxu1  ;;  %v18459_v45 = vld [vmem:[#allocation57_spill] sm:$0xff] }
 0xd75   : > { %v16985_v24 = vadd.f32 %v6160_v26, %v16219_v23  ;;  %12825 = vmatpush1.bf16.msra.mxu0 %v12824_v10 }
 0xd76   : > { %12826 = vmatprep.subr.bf16.mxu0 %v18300_v8 }
 0xd77   : > { %v12827_v58 = vpack.c.bf16 %v16982_v46, %v16985_v24  ;;  %v11743_v41 = vpop.f32.mrb[230].mxu1 }
 0xd78   : > { %v16991_v28 = vadd.f32 %v11743_v41, %v18433_v19  ;;  %v6170_v55 = vpop.f32.mrb[231].mxu1  ;;  %v18461_v19 = vld [vmem:[#allocation58_spill] sm:$0xff] }
 0xd79   : > { %v16994_v21 = vadd.f32 %v6170_v55, %v18435_v53  ;;  %12828 = vmatpush1.bf16.msra.mxu0 %v12827_v58 }
 0xd7a   : > { %18434 = vst [vmem:[#allocation3_spill] sm:$0xff] %v16991_v28  ;;  %12829 = vmatprep.subr.bf16.mxu0 %v18300_v8 }
 0xd7b   : > { %18436 = vst [vmem:[#allocation19_spill] sm:$0xff] %v16994_v21  ;;  %v12830_v2 = vpack.c.bf16 %v16991_v28, %v16994_v21  ;;  %v11746_v23 = vpop.f32.mrb[232].mxu1 }
 0xd7c   : > { %v17000_v32 = vadd.f32 %v11746_v23, %v18437_v59  ;;  %v6180_v34 = vpop.f32.mrb[233].mxu1 }
 0xd7d   : > { %v17003_v49 = vadd.f32 %v6180_v34, %v18439_v25  ;;  %12831 = vmatpush1.bf16.msra.mxu0 %v12830_v2  ;;  %v18463_v2 = vld [vmem:[#allocation59_spill] sm:$0xff]  ;;  %v18465_v25 = vld [vmem:[#allocation60_spill] sm:$0xff] }
 0xd7e   : > { %18438 = vst [vmem:[#allocation44_spill] sm:$0xff] %v17000_v32  ;;  %12832 = vmatprep.subr.bf16.mxu0 %v18300_v8 }
 0xd7f   : > { %18440 = vst [vmem:[#allocation45_spill] sm:$0xff] %v17003_v49  ;;  %v12833_v37 = vpack.c.bf16 %v17000_v32, %v17003_v49 }
 0xd80   : > { %v11749_v6 = vpop.f32.mrb[234].mxu1 }
 0xd81   : > { %v17009_v4 = vadd.f32 %v11749_v6, %v18441_v18  ;;  %v6190_v12 = vpop.f32.mrb[235].mxu1  ;;  %12834 = vmatpush1.bf16.msra.mxu0 %v12833_v37  ;;  %v18467_v18 = vld [vmem:[#allocation61_spill] sm:$0xff] }
 0xd82   : > { %v17012_v13 = vadd.f32 %v6190_v12, %v18443_v56  ;;  %12835 = vmatprep.subr.bf16.mxu0 %v18300_v8 }
 0xd83   : > { %18442 = vst [vmem:[#allocation46_spill] sm:$0xff] %v17009_v4 }
 0xd84   : > { %18444 = vst [vmem:[#allocation47_spill] sm:$0xff] %v17012_v13  ;;  %v12836_v63 = vpack.c.bf16 %v17009_v4, %v17012_v13  ;;  %v11752_v31 = vpop.f32.mrb[236].mxu1 }
 0xd85   : > { %v17018_v44 = vadd.f32 %v11752_v31, %v18445_v3  ;;  %v6200_v48 = vpop.f32.mrb[237].mxu1  ;;  %v9483_v31 = vld [vmem:[%s18074_s3 + $0x188] sm:$0xff]  ;;  %v9484_v3 = vld [vmem:[%s18074_s3 + $0x190] sm:$0xff] }
 0xd86   : > { %v17021_v15 = vadd.f32 %v6200_v48, %v18447_v50  ;;  %12837 = vmatpush1.bf16.msra.mxu0 %v12836_v63  ;;  %v9482_v63 = vld [vmem:[%s18074_s3 + $0x180] sm:$0xff] }
 0xd87   : > { %18446 = vst [vmem:[#allocation48_spill] sm:$0xff] %v17018_v44  ;;  %12838 = vmatprep.subr.bf16.mxu0 %v18300_v8  ;;  %v12856_v48 = vpack.c.bf16 %v9483_v31, %v9482_v63  ;;  %v18481_v63 = vld [vmem:[#allocation8_spill] sm:$0xff] }
 0xd88   : > { %18448 = vst [vmem:[#allocation49_spill] sm:$0xff] %v17021_v15  ;;  %v12839_v52 = vpack.c.bf16 %v17018_v44, %v17021_v15  ;;  %v11755_v47 = vpop.f32.mrb[238].mxu1 }
 0xd89   : > { %v17027_v5 = vadd.f32 %v11755_v47, %v18449_v16  ;;  %v6210_v39 = vpop.f32.mrb[239].mxu1  ;;  %v9487_v47 = vld [vmem:[%s18074_s3 + $0x1a8] sm:$0xff]  ;;  %v18469_v16 = vmov 1.0|1.0   ;;  %12857 = vmatprep.subr.bf16.mxu1 %v12856_v48 }
 0xd8a   : > { %v17030_v61 = vadd.f32 %v6210_v39, %v18451_v17  ;;  %12840 = vmatpush1.bf16.msra.mxu0 %v12839_v52  ;;  %v9486_v52 = vld [vmem:[%s18074_s3 + $0x1a0] sm:$0xff]  ;;  %v18471_v17 = vmov 0.0   ;;  %12859 = vmatpush3.bf16.msra.mxu1 %v12856_v48  ;;  %v18483_v48 = vld [vmem:[#allocation9_spill] sm:$0xff]  ;;  %v18488_v39 = vld [vmem:[#allocation12_spill] sm:$0xff] }
 0xd8b   : > { %18450 = vst [vmem:[#allocation50_spill] sm:$0xff] %v17027_v5  ;;  %12841 = vmatprep.subr.bf16.mxu0 %v18300_v8 }
 0xd8c   : > { %18452 = vst [vmem:[#allocation51_spill] sm:$0xff] %v17030_v61  ;;  %v12842_v38 = vpack.c.bf16 %v17027_v5, %v17030_v61  ;;  %v11758_v27 = vpop.f32.mrb[240].mxu1 }
 0xd8d   : > { %v17036_v36 = vadd.f32 %v11758_v27, %v18453_v42  ;;  %v6220_v9 = vpop.f32.mrb[241].mxu1  ;;  %v12864_v27 = vpack.c.bf16 %v9487_v47, %v9486_v52  ;;  %v9488_v42 = vld [vmem:[%s18074_s3 + $0x1b0] sm:$0xff]  ;;  %v18487_v47 = vld [vmem:[#allocation11_spill] sm:$0xff] }
 0xd8e   : > { %v17039_v14 = vadd.f32 %v6220_v9, %v18455_v22  ;;  %12843 = vmatpush1.bf16.msra.mxu0 %v12842_v38  ;;  %v18472_v38 = vld [vmem:[#allocation4_spill] sm:$0xff]  ;;  %v9489_v9 = vld [vmem:[%s18074_s3 + $0x1b8] sm:$0xff]  ;;  %v18494_v22 = vld [vmem:[#allocation18_spill] sm:$0xff] }
 0xd8f   : > { %18454 = vst [vmem:[#allocation52_spill] sm:$0xff] %v17036_v36  ;;  %12844 = vmatprep.subr.bf16.mxu0 %v18300_v8  ;;  %vm6293_vm1 = vcmp.eq.s32.totalorder %v18472_v38, 8  ;;  %v18489_v38 = vld [vmem:[#allocation13_spill] sm:$0xff]  ;;  %vm6321_vm15 = vcmp.eq.s32.totalorder %v18494_v22, 8 }
 0xd90   : > { %18456 = vst [vmem:[#allocation53_spill] sm:$0xff] %v17039_v14  ;;  %v12845_v57 = vpack.c.bf16 %v17036_v36, %v17039_v14  ;;  %v11761_v54 = vpop.f32.mrb[242].mxu1  ;;  %vm6311_vm8 = vcmp.eq.s32.totalorder %v18489_v38, 8 }
 0xd91   : > { %v17045_v20 = vadd.f32 %v11761_v54, %v18457_v51  ;;  %v6230_v10 = vpop.f32.mrb[243].mxu1  ;;  %v18475_v54 = vld [vmem:[#allocation5_spill] sm:$0xff]  ;;  %v12868_v51 = vpack.c.bf16 %v9489_v9, %v9488_v42  ;;  %v18492_v42 = vld [vmem:[#allocation16_spill] sm:$0xff] }
 0xd92   : > { %v17048_v26 = vadd.f32 %v6230_v10, %v18459_v45  ;;  %12846 = vmatpush1.bf16.msra.mxu0 %v12845_v57  ;;  %v18474_v57 = vmov 1.0   ;;  %vm6295_vm2 = vcmp.eq.s32.totalorder %v18475_v54, 8  ;;  %v9490_v10 = vld [vmem:[%s18074_s3 + $0x1c0] sm:$0xff]  ;;  %v9491_v45 = vld [vmem:[%s18074_s3 + $0x1c8] sm:$0xff]  ;;  %vm6317_vm13 = vcmp.eq.s32.totalorder %v18492_v42, 8  ;;  %v18493_v9 = vld [vmem:[#allocation17_spill] sm:$0xff] }
 0xd93   : > { %18458 = vst [vmem:[#allocation54_spill] sm:$0xff] %v17045_v20  ;;  %12847 = vmatprep.subr.bf16.mxu0 %v18300_v8  ;;  %vm6319_vm14 = vcmp.eq.s32.totalorder %v18493_v9, 8  ;;  %v18495_v54 = vld [vmem:[#allocation20_spill] sm:$0xff]  ;;  %v9470_v42 = vld [vmem:[%s18073_s2 + $0x1a0] sm:$0xff]  ;;  %v9471_v9 = vld [vmem:[%s18073_s2 + $0x1a8] sm:$0xff] }
 0xd94   : > { %18460 = vst [vmem:[#allocation55_spill] sm:$0xff] %v17048_v26  ;;  %v12848_v58 = vpack.c.bf16 %v17045_v20, %v17048_v26  ;;  %v11764_v41 = vpop.f32.mrb[244].mxu1 }
 0xd95   : > { %v17054_v55 = vadd.f32 %v11764_v41, %v18461_v19  ;;  %v6240_v53 = vpop.f32.mrb[245].mxu1  ;;  %v18477_v41 = vld [vmem:[#allocation6_spill] sm:$0xff]  ;;  %v12872_v19 = vpack.c.bf16 %v9491_v45, %v9490_v10  ;;  %v18498_v45 = vld [vmem:[#allocation23_spill] sm:$0xff] }
 0xd96   : > { %v17057_v23 = vadd.f32 %v6240_v53, %v18463_v2  ;;  %12849 = vmatpush1.bf16.msra.mxu0 %v12848_v58  ;;  %v9492_v53 = vld [vmem:[%s18074_s3 + $0x1d0] sm:$0xff]  ;;  %v9493_v2 = vld [vmem:[%s18074_s3 + $0x1d8] sm:$0xff]  ;;  %v18497_v10 = vld [vmem:[#allocation22_spill] sm:$0xff] }
 0xd97   : > { %18462 = vst [vmem:[#allocation56_spill] sm:$0xff] %v17054_v55  ;;  %12850 = vmatprep.subr.bf16.mxu0 %v18300_v8  ;;  %v18499_v58 = vld [vmem:[#allocation24_spill] sm:$0xff] }
 0xd98   : > { %18464 = vst [vmem:[#allocation57_spill] sm:$0xff] %v17057_v23  ;;  %v12851_v59 = vpack.c.bf16 %v17054_v55, %v17057_v23  ;;  %v11767_v34 = vpop.f32.mrb[246].mxu1 }
 0xd99   : > { %v17063_v37 = vadd.f32 %v11767_v34, %v18465_v25  ;;  %v6250_v6 = vpop.f32.mrb[247].mxu1  ;;  %v18479_v34 = vld [vmem:[#allocation7_spill] sm:$0xff]  ;;  %v12876_v25 = vpack.c.bf16 %v9493_v2, %v9492_v53  ;;  %v9497_v53 = vld [vmem:[%s18074_s3 + $0x1f8] sm:$0xff]  ;;  %v18501_v2 = vld [vmem:[#allocation26_spill] sm:$0xff] }
 0xd9a   : > { %v17066_v12 = vadd.f32 %v6250_v6, %v18467_v18  ;;  %12852 = vmatpush1.bf16.msra.mxu0 %v12851_v59  ;;  %v9494_v6 = vld [vmem:[%s18074_s3 + $0x1e0] sm:$0xff]  ;;  %v9495_v18 = vld [vmem:[%s18074_s3 + $0x1e8] sm:$0xff] }
 0xd9b   : > { %18466 = vst [vmem:[#allocation58_spill] sm:$0xff] %v17063_v37  ;;  %12853 = vmatprep.subr.bf16.mxu0 %v18300_v8  ;;  %v9485_v8 = vld [vmem:[%s18074_s3 + $0x198] sm:$0xff]  ;;  %v12880_v31 = vpack.c.bf16 %v9495_v18, %v9494_v6  ;;  %v18505_v18 = vld [vmem:[#allocation30_spill] sm:$0xff] }
 0xd9c   : > { %18468 = vst [vmem:[#allocation59_spill] sm:$0xff] %v17066_v12  ;;  %v12854_v56 = vpack.c.bf16 %v17063_v37, %v17066_v12  ;;  %v12860_v50 = vpack.c.bf16 %v9485_v8, %v9484_v3  ;;  %v18504_v6 = vld [vmem:[#allocation29_spill] sm:$0xff]  ;;  %v18509_v3 = vld [vmem:[#allocation34_spill] sm:$0xff] }
 0xd9d   : > { %v9466_v8 = vld [vmem:[%s18073_s2 + $0x180] sm:$0xff] }
 0xd9e   : > { %12855 = vmatpush1.bf16.msra.mxu0 %v12854_v56  ;;  %12861 = vmatprep.subr.bf16.mxu1 %v12860_v50  ;;  %v18506_v56 = vld [vmem:[#allocation31_spill] sm:$0xff] }
 0xd9f   : > { %12937 = vmatprep.subr.msk.bf16.mxu0 %vm14887_vm7, %v18469_v16  ;;  %12863 = vmatpush3.bf16.msra.mxu1 %v12860_v50  ;;  %v18485_v50 = vld [vmem:[#allocation10_spill] sm:$0xff] }
 0xda0   : > { %12865 = vmatprep.subr.bf16.mxu1 %v12864_v27 }
 0xda1   : > { %6484 = vmatmul.mubr.f32.vlgmr.msra.gmra.mrb[232].mxu0 %v18471_v17 }
 0xda2   : > { %6488 = vmatprep.mubr.f32.mxu0 %v18471_v17  ;;  %12939 = vmatpush3.bf16.msk.msra.mxu0 %vm14887_vm7, %v18469_v16  ;;  %vm6297_vm7 = vcmp.eq.s32.totalorder %v18477_v41, 8  ;;  %v18500_v41 = vld [vmem:[#allocation25_spill] sm:$0xff] }
 0xda3   : > { %12941 = vmatprep.subr.msk.bf16.mxu0 %vm14898_vm12, %v18469_v16  ;;  %12867 = vmatpush3.bf16.msra.mxu1 %v12864_v27  ;;  %v18490_v27 = vld [vmem:[#allocation14_spill] sm:$0xff] }
 0xda4   : > { %12869 = vmatprep.subr.bf16.mxu1 %v12868_v51  ;;  %vm6313_vm9 = vcmp.eq.s32.totalorder %v18490_v27, 8 }
 0xda5   : > { %9435 = vmatmul.mubr.msk.f32.gmra.mrb[234].mxu0 %vm6293_vm1, %v18474_v57  ;;  %vm6323_vm1 = vcmp.eq.s32.totalorder %v18495_v54, 8  ;;  %v12896_v54 = vpack.c.bf16 %v9471_v9, %v9470_v42  ;;  %v9499_v42 = vld [vmem:[%s18075_s4 + $0xc8] sm:$0xff] }
 0xda6   : > { %6493 = vmatprep.mubr.f32.mxu0 %v18471_v17  ;;  %12943 = vmatpush3.bf16.msk.msra.mxu0 %vm14898_vm12, %v18469_v16  ;;  %vm6299_vm12 = vcmp.eq.s32.totalorder %v18479_v34, 8  ;;  %v18502_v34 = vld [vmem:[#allocation27_spill] sm:$0xff] }
 0xda7   : > { %12945 = vmatprep.subr.msk.bf16.mxu0 %vm14916_vm0, %v18469_v16  ;;  %12871 = vmatpush3.bf16.msra.mxu1 %v12868_v51  ;;  %v18496_v51 = vld [vmem:[#allocation21_spill] sm:$0xff] }
 0xda8   : > { %12873 = vmatprep.subr.bf16.mxu1 %v12872_v19 }
 0xda9   : > { %9436 = vmatmul.mubr.msk.f32.gmra.mrb[236].mxu0 %vm6295_vm2, %v18474_v57  ;;  %vm6326_vm2 = vcmp.eq.s32.totalorder %v18496_v51, 8 }
 0xdaa   : > { %6498 = vmatprep.mubr.f32.mxu0 %v18471_v17  ;;  %12947 = vmatpush3.bf16.msk.msra.mxu0 %vm14916_vm0, %v18469_v16  ;;  %vm6301_vm0 = vcmp.eq.s32.totalorder %v18481_v63, 8  ;;  %v18507_v63 = vld [vmem:[#allocation32_spill] sm:$0xff] }
 0xdab   : > { %12949 = vmatprep.subr.msk.bf16.mxu0 %vm14930_vm3, %v18469_v16  ;;  %12875 = vmatpush3.bf16.msra.mxu1 %v12872_v19  ;;  %v9496_v19 = vld [vmem:[%s18074_s3 + $0x1f0] sm:$0xff] }
 0xdac   : > { %12877 = vmatprep.subr.bf16.mxu1 %v12876_v25  ;;  %v12884_v59 = vpack.c.bf16 %v9497_v53, %v9496_v19  ;;  %v9474_v53 = vld [vmem:[%s18073_s2 + $0x1c0] sm:$0xff] }
 0xdad   : > { %9437 = vmatmul.mubr.msk.f32.gmra.mrb[238].mxu0 %vm6297_vm7, %v18474_v57  ;;  %vm6328_vm7 = vcmp.eq.s32.totalorder %v18497_v10, 8  ;;  %v9472_v10 = vld [vmem:[%s18073_s2 + $0x1b0] sm:$0xff] }
 0xdae   : > { %6503 = vmatprep.mubr.f32.mxu0 %v18471_v17  ;;  %12951 = vmatpush3.bf16.msk.msra.mxu0 %vm14930_vm3, %v18469_v16  ;;  %vm6303_vm3 = vcmp.eq.s32.totalorder %v18483_v48, 8  ;;  %v18510_v48 = vld [vmem:[#allocation35_spill] sm:$0xff] }
 0xdaf   : > { %12953 = vmatprep.subr.msk.bf16.mxu0 %vm14973_vm10, %v18469_v16  ;;  %12879 = vmatpush3.bf16.msra.mxu1 %v12876_v25  ;;  %v18503_v25 = vld [vmem:[#allocation28_spill] sm:$0xff] }
 0xdb0   : > { %12881 = vmatprep.subr.bf16.mxu1 %v12880_v31 }
 0xdb1   : > { %9438 = vmatmul.mubr.msk.f32.gmra.mrb[240].mxu0 %vm6299_vm12, %v18474_v57  ;;  %vm6330_vm12 = vcmp.eq.s32.totalorder %v18498_v45, 8  ;;  %v9473_v45 = vld [vmem:[%s18073_s2 + $0x1b8] sm:$0xff] }
 0xdb2   : > { %6508 = vmatprep.mubr.f32.mxu0 %v18471_v17  ;;  %12955 = vmatpush3.bf16.msk.msra.mxu0 %vm14973_vm10, %v18469_v16  ;;  %vm6305_vm10 = vcmp.eq.s32.totalorder %v18485_v50, 8  ;;  %v9467_v50 = vld [vmem:[%s18073_s2 + $0x188] sm:$0xff] }
 0xdb3   : > { %12957 = vmatprep.subr.msk.bf16.mxu0 %vm14882_vm6, %v18469_v16  ;;  %12883 = vmatpush3.bf16.msra.mxu1 %v12880_v31  ;;  %v18508_v31 = vld [vmem:[#allocation33_spill] sm:$0xff]  ;;  %v12888_v52 = vpack.c.bf16 %v9467_v50, %v9466_v8 }
 0xdb4   : > { %12885 = vmatprep.subr.bf16.mxu1 %v12884_v59 }
 0xdb5   : > { %9439 = vmatmul.mubr.msk.f32.gmra.mrb[242].mxu0 %vm6301_vm0, %v18474_v57  ;;  %vm6332_vm0 = vcmp.eq.s32.totalorder %v18499_v58, 8 }
 0xdb6   : > { %6513 = vmatprep.mubr.f32.mxu0 %v18471_v17  ;;  %12959 = vmatpush3.bf16.msk.msra.mxu0 %vm14882_vm6, %v18469_v16  ;;  %vm6307_vm6 = vcmp.eq.s32.totalorder %v18487_v47, 8 }
 0xdb7   : > { %12961 = vmatprep.subr.msk.bf16.mxu0 %vm14939_vm4, %v18469_v16  ;;  %12887 = vmatpush3.bf16.msra.mxu1 %v12884_v59 }
 0xdb8   : > { %12889 = vmatprep.subr.bf16.mxu1 %v12888_v52 }
 0xdb9   : > { %9440 = vmatmul.mubr.msk.f32.gmra.mrb[244].mxu0 %vm6303_vm3, %v18474_v57  ;;  %vm6334_vm3 = vcmp.eq.s32.totalorder %v18500_v41, 8  ;;  %v12900_v41 = vpack.c.bf16 %v9473_v45, %v9472_v10 }
 0xdba   : > { %6518 = vmatprep.mubr.f32.mxu0 %v18471_v17  ;;  %12963 = vmatpush3.bf16.msk.msra.mxu0 %vm14939_vm4, %v18469_v16  ;;  %vm6309_vm4 = vcmp.eq.s32.totalorder %v18488_v39, 8  ;;  %v9468_v39 = vld [vmem:[%s18073_s2 + $0x190] sm:$0xff] }
 0xdbb   : > { %12965 = vmatprep.subr.msk.bf16.mxu0 %vm14952_vm5, %v18469_v16 }
 0xdbd   : > { %9441 = vmatmul.mubr.msk.f32.gmra.mrb[246].mxu0 %vm6305_vm10, %v18474_v57  ;;  %vm6336_vm10 = vcmp.eq.s32.totalorder %v18501_v2, 8  ;;  %v9475_v2 = vld [vmem:[%s18073_s2 + $0x1c8] sm:$0xff] }
 0xdbe   : > { %6523 = vmatprep.mubr.f32.mxu0 %v18471_v17  ;;  %12967 = vmatpush3.bf16.msk.msra.mxu0 %vm14952_vm5, %v18469_v16  ;;  %v18491_v16 = vld [vmem:[#allocation15_spill] sm:$0xff] }
 0xdbf   : > { %vm6315_vm5 = vcmp.eq.s32.totalorder %v18491_v16, 8 }
 0xdc1   : > { %9442 = vmatmul.mubr.msk.f32.gmra.mrb[248].mxu0 %vm6307_vm6, %v18474_v57  ;;  %vm6338_vm6 = vcmp.eq.s32.totalorder %v18502_v34, 8  ;;  %v12904_v34 = vpack.c.bf16 %v9475_v2, %v9474_v53 }
 0xdc2   : > { %6528 = vmatprep.mubr.f32.mxu0 %v18471_v17 }
 0xdc5   : > { %9443 = vmatmul.mubr.msk.f32.gmra.mrb[250].mxu0 %vm6309_vm4, %v18474_v57  ;;  %vm6340_vm4 = vcmp.eq.s32.totalorder %v18503_v25, 8 }
 0xdc6   : > { %6533 = vmatprep.mubr.f32.mxu0 %v18471_v17 }
 0xdc9   : > { %9444 = vmatmul.mubr.msk.f32.gmra.mrb[252].mxu0 %vm6311_vm8, %v18474_v57  ;;  %vm6342_vm8 = vcmp.eq.s32.totalorder %v18504_v6, 8  ;;  %v9476_v6 = vld [vmem:[%s18073_s2 + $0x1d0] sm:$0xff] }
 0xdca   : > { %6538 = vmatprep.mubr.f32.mxu0 %v18471_v17 }
 0xdcd   : > { %9445 = vmatmul.mubr.msk.f32.gmra.mrb[254].mxu0 %vm6313_vm9, %v18474_v57  ;;  %vm6344_vm9 = vcmp.eq.s32.totalorder %v18505_v18, 8  ;;  %v9477_v18 = vld [vmem:[%s18073_s2 + $0x1d8] sm:$0xff] }
 0xdce   : > { %6543 = vmatprep.mubr.f32.mxu0 %v18471_v17 }
 0xdd1   : > { %9446 = vmatmul.mubr.msk.f32.gmra.mrb[0].mxu0 %vm6315_vm5, %v18474_v57  ;;  %vm6346_vm5 = vcmp.eq.s32.totalorder %v18506_v56, 8 }
 0xdd2   : > { %6548 = vmatprep.mubr.f32.mxu0 %v18471_v17 }
 0xdd5   : > { %9447 = vmatmul.mubr.msk.f32.gmra.mrb[2].mxu0 %vm6317_vm13, %v18474_v57  ;;  %vm6348_vm13 = vcmp.eq.s32.totalorder %v18507_v63, 8  ;;  %v12908_v63 = vpack.c.bf16 %v9477_v18, %v9476_v6 }
 0xdd6   : > { %6553 = vmatprep.mubr.f32.mxu0 %v18471_v17 }
 0xdd9   : > { %9448 = vmatmul.mubr.msk.f32.gmra.mrb[4].mxu0 %vm6319_vm14, %v18474_v57  ;;  %vm6350_vm14 = vcmp.eq.s32.totalorder %v18508_v31, 8 }
 0xdda   : > { %6558 = vmatprep.mubr.f32.mxu0 %v18471_v17 }
 0xddd   : > { %9449 = vmatmul.mubr.msk.f32.gmra.mrb[6].mxu0 %vm6321_vm15, %v18474_v57  ;;  %vm6352_vm15 = vcmp.eq.s32.totalorder %v18509_v3, 8  ;;  %v9478_v3 = vld [vmem:[%s18073_s2 + $0x1e0] sm:$0xff] }
 0xdde   : > { %6563 = vmatprep.mubr.f32.mxu0 %v18471_v17 }
 0xde1   : > { %9450 = vmatmul.mubr.msk.f32.gmra.mrb[8].mxu0 %vm6323_vm1, %v18474_v57  ;;  %vm6354_vm1 = vcmp.eq.s32.totalorder %v18510_v48, 8  ;;  %v9479_v48 = vld [vmem:[%s18073_s2 + $0x1e8] sm:$0xff] }
 0xde2   : > { %9451 = vmatprep.mubr.msk.f32.mxu0 %vm6326_vm2, %v18474_v57  ;;  %v12912_v50 = vpack.c.bf16 %v9479_v48, %v9478_v3 }
 0xde5   : > { %6569 = vmatmul.mubr.f32.gmra.mrb[10].mxu0 %v18471_v17 }
 0xde6   : > { %9452 = vmatprep.mubr.msk.f32.mxu0 %vm6328_vm7, %v18474_v57 }
 0xde9   : > { %6574 = vmatmul.mubr.f32.gmra.mrb[12].mxu0 %v18471_v17 }
 0xdea   : > { %9453 = vmatprep.mubr.msk.f32.mxu0 %vm6330_vm12, %v18474_v57 }
 0xded   : > { %6579 = vmatmul.mubr.f32.gmra.mrb[14].mxu0 %v18471_v17 }
 0xdee   : > { %9454 = vmatprep.mubr.msk.f32.mxu0 %vm6332_vm0, %v18474_v57 }
 0xdf1   : > { %6584 = vmatmul.mubr.f32.gmra.mrb[16].mxu0 %v18471_v17 }
 0xdf2   : > { %9455 = vmatprep.mubr.msk.f32.mxu0 %vm6334_vm3, %v18474_v57 }
 0xdf5   : > { %6589 = vmatmul.mubr.f32.gmra.mrb[18].mxu0 %v18471_v17 }
 0xdf6   : > { %9456 = vmatprep.mubr.msk.f32.mxu0 %vm6336_vm10, %v18474_v57 }
 0xdf9   : > { %6594 = vmatmul.mubr.f32.gmra.mrb[20].mxu0 %v18471_v17 }
 0xdfa   : > { %9457 = vmatprep.mubr.msk.f32.mxu0 %vm6338_vm6, %v18474_v57 }
 0xdfd   : > { %6599 = vmatmul.mubr.f32.gmra.mrb[22].mxu0 %v18471_v17 }
 0xdfe   : > { %9458 = vmatprep.mubr.msk.f32.mxu0 %vm6340_vm4, %v18474_v57 }
 0xe01   : > { %6604 = vmatmul.mubr.f32.gmra.mrb[24].mxu0 %v18471_v17 }
 0xe02   : > { %9459 = vmatprep.mubr.msk.f32.mxu0 %vm6342_vm8, %v18474_v57 }
 0xe05   : > { %6609 = vmatmul.mubr.f32.gmra.mrb[26].mxu0 %v18471_v17 }
 0xe06   : > { %9460 = vmatprep.mubr.msk.f32.mxu0 %vm6344_vm9, %v18474_v57 }
 0xe09   : > { %6614 = vmatmul.mubr.f32.gmra.mrb[28].mxu0 %v18471_v17 }
 0xe0a   : > { %9461 = vmatprep.mubr.msk.f32.mxu0 %vm6346_vm5, %v18474_v57 }
 0xe0d   : > { %6619 = vmatmul.mubr.f32.gmra.mrb[30].mxu0 %v18471_v17 }
 0xe0e   : > { %9462 = vmatprep.mubr.msk.f32.mxu0 %vm6348_vm13, %v18474_v57 }
 0xe11   : > { %6624 = vmatmul.mubr.f32.gmra.mrb[32].mxu0 %v18471_v17 }
 0xe12   : > { %9463 = vmatprep.mubr.msk.f32.mxu0 %vm6350_vm14, %v18474_v57 }
 0xe15   : > { %6629 = vmatmul.mubr.f32.gmra.mrb[34].mxu0 %v18471_v17 }
 0xe16   : > { %9464 = vmatprep.mubr.msk.f32.mxu0 %vm6352_vm15, %v18474_v57 }
 0xe19   : > { %6634 = vmatmul.mubr.f32.gmra.mrb[36].mxu0 %v18471_v17 }
 0xe1a   : > { %9465 = vmatprep.mubr.msk.f32.mxu0 %vm6354_vm1, %v18474_v57  ;;  %v9469_v57 = vld [vmem:[%s18073_s2 + $0x198] sm:$0xff] }
 0xe1b   : > { %v12892_v27 = vpack.c.bf16 %v9469_v57, %v9468_v39  ;;  %v9481_v39 = vld [vmem:[%s18073_s2 + $0x1f8] sm:$0xff] }
 0xe1d   : > { %6639 = vmatmul.mubr.f32.gmra.mrb[38].mxu0 %v18471_v17 }
 0xe74   : > { %v6485_v47 = vpop.f32.mrb[232].mxu0 }
 0xe75   : > { %v6487_v38 = vpop.f32.mrb[233].mxu0  ;;  %11800 = vmatprep.mubr.f32.mxu1 %v6485_v47  ;;  %v9480_v47 = vld [vmem:[%s18073_s2 + $0x1f0] sm:$0xff] }
 0xe76   : > { %v12916_v38 = vpack.c.bf16 %v9481_v39, %v9480_v47 }
 0xe78   : > { %v6490_v16 = vpop.f32.mrb[234].mxu0 }
 0xe79   : > { %v6492_v22 = vpop.f32.mrb[235].mxu0  ;;  %11801 = vmatmul.mubr.f32.vlgmr.msra.gmra.mrb[248].mxu1 %v6490_v16  ;;  %v9498_v16 = vld [vmem:[%s18075_s4 + $0xc0] sm:$0xff] }
 0xe7a   : > { %12891 = vmatpush3.bf16.msra.mxu1 %v12888_v52  ;;  %v17315_v22 = vpack.c.bf16 %v9499_v42, %v9498_v16 }
 0xe7b   : > { %12893 = vmatprep.subr.bf16.mxu1 %v12892_v27 }
 0xe7c   : > { %v6495_v51 = vpop.f32.mrb[236].mxu0 }
 0xe7d   : > { %v6497_v58 = vpop.f32.mrb[237].mxu0  ;;  %11803 = vmatprep.mubr.f32.mxu1 %v6495_v51 }
 0xe7e   : > { %12895 = vmatpush3.bf16.msra.mxu1 %v12892_v27 }
 0xe7f   : > { %12897 = vmatprep.subr.bf16.mxu1 %v12896_v54 }
 0xe80   : > { %v6500_v19 = vpop.f32.mrb[238].mxu0 }
 0xe81   : > { %v6502_v59 = vpop.f32.mrb[239].mxu0  ;;  %11804 = vmatmul.mubr.f32.gmra.mrb[250].mxu1 %v6500_v19 }
 0xe82   : > { %12899 = vmatpush3.bf16.msra.mxu1 %v12896_v54 }
 0xe83   : > { %12901 = vmatprep.subr.bf16.mxu1 %v12900_v41 }
 0xe84   : > { %v6505_v25 = vpop.f32.mrb[240].mxu0 }
 0xe85   : > { %v6507_v56 = vpop.f32.mrb[241].mxu0  ;;  %11806 = vmatprep.mubr.f32.mxu1 %v6505_v25 }
 0xe86   : > { %12903 = vmatpush3.bf16.msra.mxu1 %v12900_v41 }
 0xe87   : > { %12905 = vmatprep.subr.bf16.mxu1 %v12904_v34 }
 0xe88   : > { %v6510_v31 = vpop.f32.mrb[242].mxu0 }
 0xe89   : > { %v6512_v8 = vpop.f32.mrb[243].mxu0  ;;  %11807 = vmatmul.mubr.f32.gmra.mrb[252].mxu1 %v6510_v31 }
 0xe8a   : > { %12907 = vmatpush3.bf16.msra.mxu1 %v12904_v34 }
 0xe8b   : > { %12909 = vmatprep.subr.bf16.mxu1 %v12908_v63 }
 0xe8c   : > { %v6515_v52 = vpop.f32.mrb[244].mxu0 }
 0xe8d   : > { %v6517_v57 = vpop.f32.mrb[245].mxu0  ;;  %11809 = vmatprep.mubr.f32.mxu1 %v6515_v52 }
 0xe8e   : > { %12911 = vmatpush3.bf16.msra.mxu1 %v12908_v63 }
 0xe8f   : > { %12913 = vmatprep.subr.bf16.mxu1 %v12912_v50 }
 0xe90   : > { %v6520_v27 = vpop.f32.mrb[246].mxu0 }
 0xe91   : > { %v6522_v9 = vpop.f32.mrb[247].mxu0  ;;  %11810 = vmatmul.mubr.f32.gmra.mrb[254].mxu1 %v6520_v27 }
 0xe92   : > { %12915 = vmatpush3.bf16.msra.mxu1 %v12912_v50 }
 0xe93   : > { %12917 = vmatprep.subr.bf16.mxu1 %v12916_v38 }
 0xe94   : > { %v6525_v54 = vpop.f32.mrb[248].mxu0 }
 0xe95   : > { %v6527_v51 = vpop.f32.mrb[249].mxu0  ;;  %11812 = vmatprep.mubr.f32.mxu1 %v6525_v54 }
 0xe96   : > { %12919 = vmatpush3.bf16.msra.mxu1 %v12916_v38 }
 0xe97   : > { %12921 = vmatprep.subr.bf16.mxu1 %v17315_v22 }
 0xe98   : > { %v6530_v10 = vpop.f32.mrb[250].mxu0 }
 0xe99   : > { %v6532_v45 = vpop.f32.mrb[251].mxu0  ;;  %11813 = vmatmul.mubr.f32.gmra.mrb[0].mxu1 %v6530_v10 }
 0xe9c   : > { %v6535_v58 = vpop.f32.mrb[252].mxu0 }
 0xe9d   : > { %v6537_v41 = vpop.f32.mrb[253].mxu0  ;;  %11815 = vmatprep.mubr.f32.mxu1 %v6535_v58 }
 0xea0   : > { %v6540_v19 = vpop.f32.mrb[254].mxu0 }
 0xea1   : > { %v6542_v53 = vpop.f32.mrb[255].mxu0  ;;  %11816 = vmatmul.mubr.f32.gmra.mrb[2].mxu1 %v6540_v19 }
 0xea4   : > { %v6545_v2 = vpop.f32.mrb[0].mxu0 }
 0xea5   : > { %v6547_v59 = vpop.f32.mrb[1].mxu0  ;;  %11818 = vmatprep.mubr.f32.mxu1 %v6545_v2 }
 0xea8   : > { %v6550_v34 = vpop.f32.mrb[2].mxu0 }
 0xea9   : > { %v6552_v25 = vpop.f32.mrb[3].mxu0  ;;  %11819 = vmatmul.mubr.f32.gmra.mrb[4].mxu1 %v6550_v34 }
 0xeac   : > { %v6555_v6 = vpop.f32.mrb[4].mxu0 }
 0xead   : > { %v6557_v18 = vpop.f32.mrb[5].mxu0  ;;  %11821 = vmatprep.mubr.f32.mxu1 %v6555_v6 }
 0xeb0   : > { %v6560_v56 = vpop.f32.mrb[6].mxu0 }
 0xeb1   : > { %v6562_v63 = vpop.f32.mrb[7].mxu0  ;;  %11822 = vmatmul.mubr.f32.gmra.mrb[6].mxu1 %v6560_v56 }
 0xeb4   : > { %v6565_v31 = vpop.f32.mrb[8].mxu0 }
 0xeb5   : > { %v6567_v3 = vpop.f32.mrb[9].mxu0  ;;  %11824 = vmatprep.mubr.f32.mxu1 %v6565_v31 }
 0xeb6   : > { %v9500_v3 = vld [vmem:[%s18075_s4 + $0xd0] sm:$0xff] }
 0xeb8   : > { %v6570_v48 = vpop.f32.mrb[10].mxu0 }
 0xeb9   : > { %v6572_v8 = vpop.f32.mrb[11].mxu0  ;;  %11825 = vmatmul.mubr.f32.gmra.mrb[8].mxu1 %v6570_v48  ;;  %v9501_v48 = vld [vmem:[%s18075_s4 + $0xd8] sm:$0xff] }
 0xebc   : > { %v6575_v50 = vpop.f32.mrb[12].mxu0 }
 0xebd   : > { %v6577_v52 = vpop.f32.mrb[13].mxu0  ;;  %11827 = vmatprep.mubr.f32.mxu1 %v6575_v50  ;;  %v12924_v50 = vpack.c.bf16 %v9501_v48, %v9500_v3  ;;  %v14233_v3 = vld [vmem:[%s15032_s21 + $0xa8] sm:$0xff]  ;;  %v14234_v48 = vld [vmem:[%s15032_s21 + $0xb0] sm:$0xff] }
 0xebe   : > { %v9502_v52 = vld [vmem:[%s18075_s4 + $0xe0] sm:$0xff] }
 0xec0   : > { %v6580_v47 = vpop.f32.mrb[14].mxu0 }
 0xec1   : > { %v6582_v39 = vpop.f32.mrb[15].mxu0  ;;  %11828 = vmatmul.mubr.f32.gmra.mrb[10].mxu1 %v6580_v47  ;;  %v9503_v47 = vld [vmem:[%s18075_s4 + $0xe8] sm:$0xff] }
 0xec2   : > { %v12928_v39 = vpack.c.bf16 %v9503_v47, %v9502_v52  ;;  %v14237_v52 = vld [vmem:[%s15032_s21 + $0xc8] sm:$0xff]  ;;  %v14238_v47 = vld [vmem:[%s15032_s21 + $0xd0] sm:$0xff] }
 0xec4   : > { %v6585_v57 = vpop.f32.mrb[16].mxu0 }
 0xec5   : > { %v6587_v38 = vpop.f32.mrb[17].mxu0  ;;  %11830 = vmatprep.mubr.f32.mxu1 %v6585_v57  ;;  %v9504_v57 = vld [vmem:[%s18075_s4 + $0xf0] sm:$0xff] }
 0xec6   : > { %v9505_v38 = vld [vmem:[%s18075_s4 + $0xf8] sm:$0xff] }
 0xec8   : > { %v6590_v27 = vpop.f32.mrb[18].mxu0 }
 0xec9   : > { %v6592_v16 = vpop.f32.mrb[19].mxu0  ;;  %11831 = vmatmul.mubr.f32.gmra.mrb[12].mxu1 %v6590_v27  ;;  %v12932_v27 = vpack.c.bf16 %v9505_v38, %v9504_v57  ;;  %v14240_v57 = vld [vmem:[%s15032_s21 + $0xe0] sm:$0xff]  ;;  %v14241_v38 = vld [vmem:[%s15032_s21 + $0xe8] sm:$0xff] }
 0xeca   : > { %v14213_v16 = vld [vmem:[%s15032_s21 + $0x8] sm:$0xff] }
 0xecc   : > { %v6595_v42 = vpop.f32.mrb[20].mxu0 }
 0xecd   : > { %v6597_v9 = vpop.f32.mrb[21].mxu0  ;;  %11833 = vmatprep.mubr.f32.mxu1 %v6595_v42  ;;  %v14214_v42 = vld [vmem:[%s15032_s21 + $0x10] sm:$0xff] }
 0xece   : > { %v14215_v9 = vld [vmem:[%s15032_s21 + $0x18] sm:$0xff] }
 0xed0   : > { %v6600_v54 = vpop.f32.mrb[22].mxu0 }
 0xed1   : > { %v6602_v51 = vpop.f32.mrb[23].mxu0  ;;  %11834 = vmatmul.mubr.f32.gmra.mrb[14].mxu1 %v6600_v54  ;;  %v14216_v54 = vld [vmem:[%s15032_s21 + $0x20] sm:$0xff] }
 0xed2   : > { %v14217_v51 = vld [vmem:[%s15032_s21 + $0x28] sm:$0xff] }
 0xed4   : > { %v6605_v10 = vpop.f32.mrb[24].mxu0 }
 0xed5   : > { %v6607_v45 = vpop.f32.mrb[25].mxu0  ;;  %11836 = vmatprep.mubr.f32.mxu1 %v6605_v10  ;;  %v14218_v10 = vld [vmem:[%s15032_s21 + $0x30] sm:$0xff] }
 0xed6   : > { %v14219_v45 = vld [vmem:[%s15032_s21 + $0x38] sm:$0xff] }
 0xed8   : > { %v6610_v58 = vpop.f32.mrb[26].mxu0 }
 0xed9   : > { %v6612_v41 = vpop.f32.mrb[27].mxu0  ;;  %11837 = vmatmul.mubr.f32.gmra.mrb[16].mxu1 %v6610_v58  ;;  %v14220_v58 = vld [vmem:[%s15032_s21 + $0x40] sm:$0xff] }
 0xeda   : > { %v14221_v41 = vld [vmem:[%s15032_s21 + $0x48] sm:$0xff] }
 0xedc   : > { %v6615_v19 = vpop.f32.mrb[28].mxu0 }
 0xedd   : > { %v6617_v53 = vpop.f32.mrb[29].mxu0  ;;  %11839 = vmatprep.mubr.f32.mxu1 %v6615_v19  ;;  %v14222_v19 = vld [vmem:[%s15032_s21 + $0x50] sm:$0xff] }
 0xede   : > { %v14223_v53 = vld [vmem:[%s15032_s21 + $0x58] sm:$0xff] }
 0xee0   : > { %v6620_v2 = vpop.f32.mrb[30].mxu0 }
 0xee1   : > { %v6622_v59 = vpop.f32.mrb[31].mxu0  ;;  %11840 = vmatmul.mubr.f32.gmra.mrb[18].mxu1 %v6620_v2  ;;  %v14224_v2 = vld [vmem:[%s15032_s21 + $0x60] sm:$0xff] }
 0xee2   : > { %v14225_v59 = vld [vmem:[%s15032_s21 + $0x68] sm:$0xff] }
 0xee4   : > { %v6625_v34 = vpop.f32.mrb[32].mxu0 }
 0xee5   : > { %v6627_v25 = vpop.f32.mrb[33].mxu0  ;;  %11842 = vmatprep.mubr.f32.mxu1 %v6625_v34  ;;  %v14226_v34 = vld [vmem:[%s15032_s21 + $0x70] sm:$0xff] }
 0xee6   : > { %v14227_v25 = vld [vmem:[%s15032_s21 + $0x78] sm:$0xff] }
 0xee8   : > { %v6630_v6 = vpop.f32.mrb[34].mxu0 }
 0xee9   : > { %v6632_v18 = vpop.f32.mrb[35].mxu0  ;;  %11843 = vmatmul.mubr.f32.gmra.mrb[20].mxu1 %v6630_v6  ;;  %v14228_v6 = vld [vmem:[%s15032_s21 + $0x80] sm:$0xff] }
 0xeea   : > { %v14229_v18 = vld [vmem:[%s15032_s21 + $0x88] sm:$0xff] }
 0xeec   : > { %v6635_v56 = vpop.f32.mrb[36].mxu0 }
 0xeed   : > { %v6637_v63 = vpop.f32.mrb[37].mxu0  ;;  %11845 = vmatprep.mubr.f32.mxu1 %v6635_v56  ;;  %v14230_v56 = vld [vmem:[%s15032_s21 + $0x90] sm:$0xff] }
 0xeee   : > { %v14231_v63 = vld [vmem:[%s15032_s21 + $0x98] sm:$0xff] }
 0xef0   : > { %v6640_v31 = vpop.f32.mrb[38].mxu0 }
 0xef1   : > { %v6642_v8 = vpop.f32.mrb[39].mxu0  ;;  %11846 = vmatmul.mubr.f32.gmra.mrb[22].mxu1 %v6640_v31  ;;  %v14232_v31 = vld [vmem:[%s15032_s21 + $0xa0] sm:$0xff] }
 0xef2   : > { %11880 = vmatprep.mubr.f32.mxu1 %v16932_v35  ;;  %v14235_v8 = vld [vmem:[%s15032_s21 + $0xb8] sm:$0xff] }
 0xef5   : > { %11881 = vmatmul.mubr.f32.vlgmr.msra.gmra.mrb[248].mxu1 %v16929_v43 }
 0xef6   : > { %11883 = vmatprep.mubr.f32.mxu1 %v16940_v11  ;;  %12923 = vmatpush3.bf16.msra.mxu1 %v17315_v22  ;;  %v14212_v22 = vld [vmem:[%s15032_s21] sm:$0xff] }
 0xef7   : > { %12925 = vmatprep.subr.bf16.mxu1 %v12924_v50 }
 0xef9   : > { %11884 = vmatmul.mubr.f32.gmra.mrb[250].mxu1 %v16937_v30 }
 0xefa   : > { %11886 = vmatprep.mubr.f32.mxu1 %v16949_v62  ;;  %12927 = vmatpush3.bf16.msra.mxu1 %v12924_v50  ;;  %v14236_v50 = vld [vmem:[%s15032_s21 + $0xc0] sm:$0xff] }
 0xefb   : > { %12929 = vmatprep.subr.bf16.mxu1 %v12928_v39 }
 0xefd   : > { %11887 = vmatmul.mubr.f32.gmra.mrb[252].mxu1 %v16946_v33 }
 0xefe   : > { %11889 = vmatprep.mubr.f32.mxu1 %v16959_v0  ;;  %12931 = vmatpush3.bf16.msra.mxu1 %v12928_v39  ;;  %v14239_v39 = vld [vmem:[%s15032_s21 + $0xd8] sm:$0xff] }
 0xeff   : > { %12933 = vmatprep.subr.bf16.mxu1 %v12932_v27 }
 0xf01   : > { %11890 = vmatmul.mubr.f32.gmra.mrb[254].mxu1 %v16955_v60 }
 0xf02   : > { %11892 = vmatprep.mubr.f32.mxu1 %v16967_v1  ;;  %12935 = vmatpush3.bf16.msra.mxu1 %v12932_v27  ;;  %v14242_v27 = vld [vmem:[%s15032_s21 + $0xf0] sm:$0xff] }
 0xf05   : > { %11893 = vmatmul.mubr.f32.gmra.mrb[0].mxu1 %v16964_v40 }
 0xf06   : > { %11895 = vmatprep.mubr.f32.mxu1 %v16976_v29 }
 0xf09   : > { %11896 = vmatmul.mubr.f32.gmra.mrb[2].mxu1 %v16973_v7 }
 0xf0a   : > { %11898 = vmatprep.mubr.f32.mxu1 %v16985_v24 }
 0xf0d   : > { %11899 = vmatmul.mubr.f32.gmra.mrb[4].mxu1 %v16982_v46 }
 0xf0e   : > { %11901 = vmatprep.mubr.f32.mxu1 %v16994_v21 }
 0xf11   : > { %11902 = vmatmul.mubr.f32.gmra.mrb[6].mxu1 %v16991_v28 }
 0xf12   : > { %11904 = vmatprep.mubr.f32.mxu1 %v17003_v49 }
 0xf15   : > { %11905 = vmatmul.mubr.f32.gmra.mrb[8].mxu1 %v17000_v32 }
 0xf16   : > { %11907 = vmatprep.mubr.f32.mxu1 %v17012_v13 }
 0xf19   : > { %11908 = vmatmul.mubr.f32.gmra.mrb[10].mxu1 %v17009_v4 }
 0xf1a   : > { %11910 = vmatprep.mubr.f32.mxu1 %v17021_v15 }
 0xf1d   : > { %11911 = vmatmul.mubr.f32.gmra.mrb[12].mxu1 %v17018_v44 }
 0xf1e   : > { %11913 = vmatprep.mubr.f32.mxu1 %v17030_v61  ;;  %v8184_v61 = vld [vmem:[%s18077_s6 + $0x18] sm:$0xff] }
 0xf21   : > { %11914 = vmatmul.mubr.f32.gmra.mrb[14].mxu1 %v17027_v5 }
 0xf22   : > { %11916 = vmatprep.mubr.f32.mxu1 %v17039_v14 }
 0xf25   : > { %11917 = vmatmul.mubr.f32.gmra.mrb[16].mxu1 %v17036_v36  ;;  %v9600_v36 = vld [vmem:[%s18076_s5 + $0x1f0] sm:$0xff] }
 0xf26   : > { %11919 = vmatprep.mubr.f32.mxu1 %v17048_v26  ;;  %v9598_v26 = vld [vmem:[%s18076_s5 + $0x1e0] sm:$0xff] }
 0xf29   : > { %11920 = vmatmul.mubr.f32.gmra.mrb[18].mxu1 %v17045_v20  ;;  %v9599_v20 = vld [vmem:[%s18076_s5 + $0x1e8] sm:$0xff] }
 0xf2a   : > { %11922 = vmatprep.mubr.f32.mxu1 %v17057_v23  ;;  %v9597_v23 = vld [vmem:[%s18076_s5 + $0x1d8] sm:$0xff]  ;;  %v12992_v14 = vpack.c.bf16 %v9599_v20, %v9598_v26  ;;  %v8182_v20 = vld [vmem:[%s18077_s6 + $0x8] sm:$0xff] }
 0xf2d   : > { %11923 = vmatmul.mubr.f32.gmra.mrb[20].mxu1 %v17054_v55 }
 0xf2e   : > { %11925 = vmatprep.mubr.f32.mxu1 %v17066_v12 }
 0xf31   : > { %11926 = vmatmul.mubr.f32.gmra.mrb[22].mxu1 %v17063_v37  ;;  %v9596_v37 = vld [vmem:[%s18076_s5 + $0x1d0] sm:$0xff] }
 0xf32   : > { %11944 = vmatprep.mubr.msk.f32.mxu1 %vm1467_vm11, %v14212_v22  ;;  %v14243_v22 = vld [vmem:[%s15032_s21 + $0xf8] sm:$0xff]  ;;  %v12988_v55 = vpack.c.bf16 %v9597_v23, %v9596_v37  ;;  %v8181_v37 = vld [vmem:[%s18077_s6] sm:$0xff] }
 0xf33   : > { %v9601_v23 = vld [vmem:[%s18076_s5 + $0x1f8] sm:$0xff]  ;;  %v13000_v26 = vpack.c.bf16 %v8182_v20, %v8181_v37  ;;  %v8187_v37 = vld [vmem:[%s18077_s6 + $0x30] sm:$0xff] }
 0xf35   : > { %11945 = vmatmul.mubr.msk.f32.vlgmr.msra.gmra.mrb[248].mxu1 %vm1467_vm11, %v14213_v16  ;;  %v9586_v16 = vld [vmem:[%s18076_s5 + $0x180] sm:$0xff]  ;;  %13001 = vmatprep.subr.bf16.mxu1 %v13000_v26 }
 0xf36   : > { %11947 = vmatprep.mubr.msk.f32.mxu1 %vm1467_vm11, %v14214_v42  ;;  %v9587_v42 = vld [vmem:[%s18076_s5 + $0x188] sm:$0xff]  ;;  %13003 = vmatpush3.bf16.msra.mxu1 %v13000_v26 }
 0xf37   : > { %v8190_v26 = vld [vmem:[%s18077_s6 + $0x48] sm:$0xff] }
 0xf39   : > { %11948 = vmatmul.mubr.msk.f32.gmra.mrb[250].mxu1 %vm1467_vm11, %v14215_v9  ;;  %v12968_v9 = vpack.c.bf16 %v9587_v42, %v9586_v16 }
 0xf3a   : > { %11950 = vmatprep.mubr.msk.f32.mxu1 %vm1467_vm11, %v14216_v54  ;;  %v9588_v54 = vld [vmem:[%s18076_s5 + $0x190] sm:$0xff] }
 0xf3b   : > { %12969 = vmatprep.subr.bf16.mxu0 %v12968_v9 }
 0xf3d   : > { %11951 = vmatmul.mubr.msk.f32.gmra.mrb[252].mxu1 %vm1467_vm11, %v14217_v51  ;;  %v9589_v51 = vld [vmem:[%s18076_s5 + $0x198] sm:$0xff] }
 0xf3e   : > { %11953 = vmatprep.mubr.msk.f32.mxu1 %vm1467_vm11, %v14218_v10 }
 0xf41   : > { %11954 = vmatmul.mubr.msk.f32.gmra.mrb[254].mxu1 %vm1467_vm11, %v14219_v45 }
 0xf42   : > { %11956 = vmatprep.mubr.msk.f32.mxu1 %vm1467_vm11, %v14220_v58  ;;  %v12972_v58 = vpack.c.bf16 %v9589_v51, %v9588_v54 }
 0xf45   : > { %11957 = vmatmul.mubr.msk.f32.gmra.mrb[0].mxu1 %vm1467_vm11, %v14221_v41  ;;  %v9590_v41 = vld [vmem:[%s18076_s5 + $0x1a0] sm:$0xff] }
 0xf46   : > { %11959 = vmatprep.mubr.msk.f32.mxu1 %vm1467_vm11, %v14222_v19  ;;  %v9591_v19 = vld [vmem:[%s18076_s5 + $0x1a8] sm:$0xff] }
 0xf49   : > { %11960 = vmatmul.mubr.msk.f32.gmra.mrb[2].mxu1 %vm1467_vm11, %v14223_v53 }
 0xf4a   : > { %11962 = vmatprep.mubr.msk.f32.mxu1 %vm1467_vm11, %v14224_v2 }
 0xf4d   : > { %11963 = vmatmul.mubr.msk.f32.gmra.mrb[4].mxu1 %vm1467_vm11, %v14225_v59  ;;  %v12976_v59 = vpack.c.bf16 %v9591_v19, %v9590_v41 }
 0xf4e   : > { %11965 = vmatprep.mubr.msk.f32.mxu1 %vm1467_vm11, %v14226_v34  ;;  %v9592_v34 = vld [vmem:[%s18076_s5 + $0x1b0] sm:$0xff] }
 0xf51   : > { %11966 = vmatmul.mubr.msk.f32.gmra.mrb[6].mxu1 %vm1467_vm11, %v14227_v25  ;;  %v9593_v25 = vld [vmem:[%s18076_s5 + $0x1b8] sm:$0xff] }
 0xf52   : > { %11968 = vmatprep.mubr.msk.f32.mxu1 %vm1467_vm11, %v14228_v6 }
 0xf55   : > { %11969 = vmatmul.mubr.msk.f32.gmra.mrb[8].mxu1 %vm1467_vm11, %v14229_v18 }
 0xf56   : > { %11971 = vmatprep.mubr.msk.f32.mxu1 %vm1467_vm11, %v14230_v56  ;;  %v12980_v56 = vpack.c.bf16 %v9593_v25, %v9592_v34 }
 0xf59   : > { %11972 = vmatmul.mubr.msk.f32.gmra.mrb[10].mxu1 %vm1467_vm11, %v14231_v63  ;;  %v9594_v63 = vld [vmem:[%s18076_s5 + $0x1c0] sm:$0xff] }
 0xf5a   : > { %11974 = vmatprep.mubr.msk.f32.mxu1 %vm1467_vm11, %v14232_v31  ;;  %v9595_v31 = vld [vmem:[%s18076_s5 + $0x1c8] sm:$0xff] }
 0xf5d   : > { %11975 = vmatmul.mubr.msk.f32.gmra.mrb[12].mxu1 %vm1467_vm11, %v14233_v3 }
 0xf5e   : > { %11977 = vmatprep.mubr.msk.f32.mxu1 %vm1467_vm11, %v14234_v48 }
 0xf61   : > { %11978 = vmatmul.mubr.msk.f32.gmra.mrb[14].mxu1 %vm1467_vm11, %v14235_v8  ;;  %v12984_v8 = vpack.c.bf16 %v9595_v31, %v9594_v63 }
 0xf62   : > { %11980 = vmatprep.mubr.msk.f32.mxu1 %vm1467_vm11, %v14236_v50 }
 0xf65   : > { %11981 = vmatmul.mubr.msk.f32.gmra.mrb[16].mxu1 %vm1467_vm11, %v14237_v52 }
 0xf66   : > { %11983 = vmatprep.mubr.msk.f32.mxu1 %vm1467_vm11, %v14238_v47 }
 0xf69   : > { %11984 = vmatmul.mubr.msk.f32.gmra.mrb[18].mxu1 %vm1467_vm11, %v14239_v39 }
 0xf6a   : > { %11986 = vmatprep.mubr.msk.f32.mxu1 %vm1467_vm11, %v14240_v57 }
 0xf6d   : > { %11987 = vmatmul.mubr.msk.f32.gmra.mrb[20].mxu1 %vm1467_vm11, %v14241_v38 }
 0xf6e   : > { %11989 = vmatprep.mubr.msk.f32.mxu1 %vm1467_vm11, %v14242_v27 }
 0xf71   : > { %11990 = vmatmul.mubr.msk.f32.gmra.mrb[22].mxu1 %vm1467_vm11, %v14243_v22 }
0x1008   : > { %v17445_v10 = vpop.f32.mrb[248].mxu1 }
0x1009   : > { %v17447_v45 = vpop.f32.mrb[249].mxu1  ;;  %13924 = vtanh.f32 %v17445_v10 }
0x100a   : > { %12024 = vmatprep.mubr.f32.mxu0 %v17447_v45  ;;  %13926 = vtanh.f32 %v17447_v45  ;;  %v8195_v45 = vld [vmem:[%s18077_s6 + $0x70] sm:$0xff] }
0x100b   : > { %12025 = vmatmul.mubr.f32.vlgmr.msra.gmra.mrb[40].mxu0 %v17445_v10 }
0x100c   : > { %v17457_v53 = vpop.f32.mrb[250].mxu1  ;;  %12971 = vmatpush3.bf16.msra.mxu0 %v12968_v9 }
0x100d   : > { %v17459_v2 = vpop.f32.mrb[251].mxu1  ;;  %12973 = vmatprep.subr.bf16.mxu0 %v12972_v58  ;;  %13928 = vtanh.f32 %v17457_v53 }
0x100e   : > { %12027 = vmatprep.mubr.f32.mxu0 %v17459_v2  ;;  %13930 = vtanh.f32 %v17459_v2 }
0x100f   : > { %12028 = vmatmul.mubr.f32.gmra.mrb[42].mxu0 %v17457_v53 }
0x1010   : > { %v17469_v6 = vpop.f32.mrb[252].mxu1  ;;  %12975 = vmatpush3.bf16.msra.mxu0 %v12972_v58 }
0x1011   : > { %v17471_v18 = vpop.f32.mrb[253].mxu1  ;;  %12977 = vmatprep.subr.bf16.mxu0 %v12976_v59  ;;  %13932 = vtanh.f32 %v17469_v6 }
0x1012   : > { %12030 = vmatprep.mubr.f32.mxu0 %v17471_v18  ;;  %13934 = vtanh.f32 %v17471_v18 }
0x1013   : > { %12031 = vmatmul.mubr.f32.gmra.mrb[44].mxu0 %v17469_v6  ;;  %v17635_v2 = vpop.eup %13924 }
0x1014   : > { %v17481_v3 = vpop.f32.mrb[254].mxu1  ;;  %12979 = vmatpush3.bf16.msra.mxu0 %v12976_v59  ;;  %v17638_v6 = vpop.eup %13926 }
0x1015   : > { %v17483_v48 = vpop.f32.mrb[255].mxu1  ;;  %12981 = vmatprep.subr.bf16.mxu0 %v12980_v56  ;;  %13936 = vtanh.f32 %v17481_v3 }
0x1016   : > { %12033 = vmatprep.mubr.f32.mxu0 %v17483_v48  ;;  %13938 = vtanh.f32 %v17483_v48 }
0x1017   : > { %12034 = vmatmul.mubr.f32.gmra.mrb[46].mxu0 %v17481_v3  ;;  %v17641_v18 = vpop.eup %13928 }
0x1018   : > { %v17487_v50 = vpop.f32.mrb[0].mxu1  ;;  %12983 = vmatpush3.bf16.msra.mxu0 %v12980_v56  ;;  %v17644_v3 = vpop.eup %13930 }
0x1019   : > { %v17489_v52 = vpop.f32.mrb[1].mxu1  ;;  %12985 = vmatprep.subr.bf16.mxu0 %v12984_v8  ;;  %13940 = vtanh.f32 %v17487_v50 }
0x101a   : > { %12036 = vmatprep.mubr.f32.mxu0 %v17489_v52  ;;  %13942 = vtanh.f32 %v17489_v52 }
0x101b   : > { %12037 = vmatmul.mubr.f32.gmra.mrb[48].mxu0 %v17487_v50  ;;  %v17647_v48 = vpop.eup %13932 }
0x101c   : > { %v17493_v47 = vpop.f32.mrb[2].mxu1  ;;  %12987 = vmatpush3.bf16.msra.mxu0 %v12984_v8  ;;  %v17650_v50 = vpop.eup %13934 }
0x101d   : > { %v17495_v39 = vpop.f32.mrb[3].mxu1  ;;  %12989 = vmatprep.subr.bf16.mxu0 %v12988_v55  ;;  %13944 = vtanh.f32 %v17493_v47 }
0x101e   : > { %12039 = vmatprep.mubr.f32.mxu0 %v17495_v39  ;;  %13946 = vtanh.f32 %v17495_v39 }
0x101f   : > { %12040 = vmatmul.mubr.f32.gmra.mrb[50].mxu0 %v17493_v47  ;;  %v17653_v52 = vpop.eup %13936 }
0x1020   : > { %v17499_v57 = vpop.f32.mrb[4].mxu1  ;;  %12991 = vmatpush3.bf16.msra.mxu0 %v12988_v55  ;;  %v12996_v55 = vpack.c.bf16 %v9601_v23, %v9600_v36  ;;  %v8185_v23 = vld [vmem:[%s18077_s6 + $0x20] sm:$0xff]  ;;  %v17656_v47 = vpop.eup %13938 }
0x1021   : > { %v17501_v38 = vpop.f32.mrb[5].mxu1  ;;  %12993 = vmatprep.subr.bf16.mxu0 %v12992_v14  ;;  %13948 = vtanh.f32 %v17499_v57 }
0x1022   : > { %12042 = vmatprep.mubr.f32.mxu0 %v17501_v38  ;;  %13950 = vtanh.f32 %v17501_v38 }
0x1023   : > { %12043 = vmatmul.mubr.f32.gmra.mrb[52].mxu0 %v17499_v57  ;;  %v17659_v57 = vpop.eup %13940 }
0x1024   : > { %v17505_v27 = vpop.f32.mrb[6].mxu1  ;;  %12995 = vmatpush3.bf16.msra.mxu0 %v12992_v14  ;;  %v8183_v14 = vld [vmem:[%s18077_s6 + $0x10] sm:$0xff] }
0x1025   : > { %v17507_v22 = vpop.f32.mrb[7].mxu1  ;;  %12997 = vmatprep.subr.bf16.mxu0 %v12996_v55  ;;  %v13004_v36 = vpack.c.bf16 %v8184_v61, %v8183_v14  ;;  %v8188_v61 = vld [vmem:[%s18077_s6 + $0x38] sm:$0xff]  ;;  %v8189_v14 = vld [vmem:[%s18077_s6 + $0x40] sm:$0xff]  ;;  %13952 = vtanh.f32 %v17505_v27 }
0x1026   : > { %12045 = vmatprep.mubr.f32.mxu0 %v17507_v22  ;;  %v13012_v20 = vpack.c.bf16 %v8188_v61, %v8187_v37  ;;  %v8194_v61 = vld [vmem:[%s18077_s6 + $0x68] sm:$0xff]  ;;  %13954 = vtanh.f32 %v17507_v22 }
0x1027   : > { %12046 = vmatmul.mubr.f32.gmra.mrb[54].mxu0 %v17505_v27  ;;  %13005 = vmatprep.subr.bf16.mxu1 %v13004_v36 }
0x1028   : > { %v17511_v16 = vpop.f32.mrb[8].mxu1  ;;  %12999 = vmatpush3.bf16.msra.mxu0 %v12996_v55  ;;  %v8186_v55 = vld [vmem:[%s18077_s6 + $0x28] sm:$0xff]  ;;  %13007 = vmatpush3.bf16.msra.mxu1 %v13004_v36  ;;  %v8192_v36 = vld [vmem:[%s18077_s6 + $0x58] sm:$0xff] }
0x1029   : > { %v17513_v42 = vpop.f32.mrb[9].mxu1  ;;  %v13008_v5 = vpack.c.bf16 %v8186_v55, %v8185_v23  ;;  %v13016_v23 = vpack.c.bf16 %v8190_v26, %v8189_v14  ;;  %v8191_v55 = vld [vmem:[%s18077_s6 + $0x50] sm:$0xff]  ;;  %13956 = vtanh.f32 %v17511_v16  ;;  %v17662_v14 = vpop.eup %13942 }
0x102a   : > { %12048 = vmatprep.mubr.f32.mxu0 %v17513_v42  ;;  %v13020_v37 = vpack.c.bf16 %v8192_v36, %v8191_v55  ;;  %13958 = vtanh.f32 %v17513_v42  ;;  %v17665_v26 = vpop.eup %13944 }
0x102b   : > { %12049 = vmatmul.mubr.f32.gmra.mrb[56].mxu0 %v17511_v16  ;;  %13009 = vmatprep.subr.bf16.mxu1 %v13008_v5  ;;  %v17667_v16 = vpop.eup %13946 }
0x102c   : > { %v17517_v9 = vpop.f32.mrb[10].mxu1  ;;  %13011 = vmatpush3.bf16.msra.mxu1 %v13008_v5  ;;  %v8193_v5 = vld [vmem:[%s18077_s6 + $0x60] sm:$0xff]  ;;  %v17669_v42 = vpop.eup %13948 }
0x102d   : > { %v17519_v54 = vpop.f32.mrb[11].mxu1  ;;  %13013 = vmatprep.subr.bf16.mxu1 %v13012_v20  ;;  %v13024_v10 = vpack.c.bf16 %v8194_v61, %v8193_v5  ;;  %13960 = vtanh.f32 %v17517_v9  ;;  %v17672_v36 = vpop.eup %13950 }
0x102e   : > { %12051 = vmatprep.mubr.f32.mxu0 %v17519_v54  ;;  %13962 = vtanh.f32 %v17519_v54 }
0x102f   : > { %12052 = vmatmul.mubr.f32.gmra.mrb[58].mxu0 %v17517_v9  ;;  %v17675_v54 = vpop.eup %13952 }
0x1030   : > { %v17523_v51 = vpop.f32.mrb[12].mxu1  ;;  %13015 = vmatpush3.bf16.msra.mxu1 %v13012_v20  ;;  %v8196_v20 = vld [vmem:[%s18077_s6 + $0x78] sm:$0xff]  ;;  %v17677_v5 = vpop.eup %13954 }
0x1031   : > { %v17525_v58 = vpop.f32.mrb[13].mxu1  ;;  %13017 = vmatprep.subr.bf16.mxu1 %v13016_v23  ;;  %v13028_v53 = vpack.c.bf16 %v8196_v20, %v8195_v45 }
0x1032   : > { %12054 = vmatprep.mubr.f32.mxu0 %v17525_v58 }
0x1033   : > { %12055 = vmatmul.mubr.f32.gmra.mrb[60].mxu0 %v17523_v51 }
0x1034   : > { %v17529_v41 = vpop.f32.mrb[14].mxu1  ;;  %13019 = vmatpush3.bf16.msra.mxu1 %v13016_v23 }
0x1035   : > { %v17531_v19 = vpop.f32.mrb[15].mxu1  ;;  %13021 = vmatprep.subr.bf16.mxu1 %v13020_v37 }
0x1036   : > { %12057 = vmatprep.mubr.f32.mxu0 %v17531_v19 }
0x1037   : > { %12058 = vmatmul.mubr.f32.gmra.mrb[62].mxu0 %v17529_v41 }
0x1038   : > { %v17535_v59 = vpop.f32.mrb[16].mxu1  ;;  %13023 = vmatpush3.bf16.msra.mxu1 %v13020_v37 }
0x1039   : > { %v17537_v34 = vpop.f32.mrb[17].mxu1  ;;  %13025 = vmatprep.subr.bf16.mxu1 %v13024_v10 }
0x103a   : > { %12060 = vmatprep.mubr.f32.mxu0 %v17537_v34 }
0x103b   : > { %12061 = vmatmul.mubr.f32.gmra.mrb[64].mxu0 %v17535_v59 }
0x103c   : > { %v17541_v25 = vpop.f32.mrb[18].mxu1  ;;  %13027 = vmatpush3.bf16.msra.mxu1 %v13024_v10  ;;  %v17679_v10 = vpop.eup %13956 }
0x103d   : > { %v17543_v56 = vpop.f32.mrb[19].mxu1  ;;  %13029 = vmatprep.subr.bf16.mxu1 %v13028_v53  ;;  %v17682_v20 = vpop.eup %13958 }
0x103e   : > { %12063 = vmatprep.mubr.f32.mxu0 %v17543_v56 }
0x103f   : > { %12064 = vmatmul.mubr.f32.gmra.mrb[66].mxu0 %v17541_v25 }
0x1040   : > { %v17547_v63 = vpop.f32.mrb[20].mxu1  ;;  %13031 = vmatpush3.bf16.msra.mxu1 %v13028_v53 }
0x1041   : > { %v17549_v31 = vpop.f32.mrb[21].mxu1 }
0x1042   : > { %12066 = vmatprep.mubr.f32.mxu0 %v17549_v31 }
0x1043   : > { %12067 = vmatmul.mubr.f32.gmra.mrb[68].mxu0 %v17547_v63 }
0x1044   : > { %v17553_v8 = vpop.f32.mrb[22].mxu1 }
0x1045   : > { %v17555_v12 = vpop.f32.mrb[23].mxu1 }
0x1046   : > { %12069 = vmatprep.mubr.f32.mxu0 %v17555_v12 }
0x1047   : > { %12070 = vmatmul.mubr.f32.gmra.mrb[70].mxu0 %v17553_v8 }
0x10de   : > { %v12026_v39 = vpop.f32.mrb[40].mxu0 }
0x10df   : > { %v9555_v38 = vmul.f32 -1.442695, %v12026_v39  ;;  %v7460_v27 = vpop.f32.mrb[41].mxu0 }
0x10e0   : > { %v9554_v22 = vmul.f32 -1.442695, %v7460_v27 }
0x10e1   : > { %13964 = vpow2.f32 %v9555_v38 }
0x10e2   : > { %13966 = vpow2.f32 %v9554_v22  ;;  %v12029_v23 = vpop.f32.mrb[42].mxu0 }
0x10e3   : > { %13968 = vtanh.f32 %v17523_v51  ;;  %v9557_v55 = vmul.f32 -1.442695, %v12029_v23  ;;  %v7470_v9 = vpop.f32.mrb[43].mxu0 }
0x10e4   : > { %13970 = vtanh.f32 %v17525_v58  ;;  %v9556_v37 = vmul.f32 -1.442695, %v7470_v9  ;;  %v17685_v58 = vpop.eup %13960 }
0x10e5   : > { %13972 = vpow2.f32 %v9557_v55  ;;  %v17687_v39 = vpop.eup %13962 }
0x10e6   : > { %13974 = vpow2.f32 %v9556_v37  ;;  %v12032_v61 = vpop.f32.mrb[44].mxu0 }
0x10e7   : > { %13976 = vtanh.f32 %v17529_v41  ;;  %v9559_v45 = vmul.f32 -1.442695, %v12032_v61  ;;  %v7480_v51 = vpop.f32.mrb[45].mxu0 }
0x10e8   : > { %13978 = vtanh.f32 %v17531_v19  ;;  %v9558_v53 = vmul.f32 -1.442695, %v7480_v51 }
0x10e9   : > { %13980 = vpow2.f32 %v9559_v45 }
0x10ea   : > { %13982 = vpow2.f32 %v9558_v53  ;;  %v12035_v38 = vpop.f32.mrb[46].mxu0 }
0x10eb   : > { %v13965_v27 = vpop.eup %13964  ;;  %13984 = vtanh.f32 %v17535_v59  ;;  %v9561_v22 = vmul.f32 -1.442695, %v12035_v38  ;;  %v7490_v23 = vpop.f32.mrb[47].mxu0 }
0x10ec   : > { %v13967_v41 = vpop.eup %13966  ;;  %13986 = vtanh.f32 %v17537_v34  ;;  %v7748_v55 = vadd.f32 1.0, %v13965_v27  ;;  %v9560_v9 = vmul.f32 -1.442695, %v7490_v23 }
0x10ed   : > { %v17691_v37 = vpop.eup %13968  ;;  %v7747_v19 = vadd.f32 1.0, %v13967_v41  ;;  %13988 = vpow2.f32 %v9561_v22 }
0x10ee   : > { %v17693_v61 = vpop.eup %13970  ;;  %13990 = vrcp.f32 %v7748_v55  ;;  %v12038_v45 = vpop.f32.mrb[48].mxu0 }
0x10ef   : > { %v13973_v51 = vpop.eup %13972  ;;  %13992 = vrcp.f32 %v7747_v19  ;;  %v9563_v53 = vmul.f32 -1.442695, %v12038_v45  ;;  %v7500_v15 = vpop.f32.mrb[49].mxu0 }
0x10f0   : > { %v13975_v59 = vpop.eup %13974  ;;  %v7750_v38 = vadd.f32 1.0, %v13973_v51  ;;  %13994 = vpow2.f32 %v9560_v9  ;;  %v9562_v44 = vmul.f32 -1.442695, %v7500_v15 }
0x10f1   : > { %v17695_v13 = vpop.eup %13976  ;;  %v7749_v34 = vadd.f32 1.0, %v13975_v59  ;;  %13996 = vpow2.f32 %v9563_v53 }
0x10f2   : > { %v17697_v27 = vpop.eup %13978  ;;  %13998 = vrcp.f32 %v7750_v38  ;;  %v12041_v22 = vpop.f32.mrb[50].mxu0 }
0x10f3   : > { %v13981_v23 = vpop.eup %13980  ;;  %14000 = vrcp.f32 %v7749_v34  ;;  %v9565_v41 = vmul.f32 -1.442695, %v12041_v22  ;;  %v7510_v55 = vpop.f32.mrb[51].mxu0 }
0x10f4   : > { %v13983_v4 = vpop.eup %13982  ;;  %v7752_v19 = vadd.f32 1.0, %v13981_v23  ;;  %14002 = vpow2.f32 %v9562_v44  ;;  %v9564_v45 = vmul.f32 -1.442695, %v7510_v55 }
0x10f5   : > { %v17699_v49 = vpop.eup %13984  ;;  %v7751_v9 = vadd.f32 1.0, %v13983_v4  ;;  %14004 = vpow2.f32 %v9565_v41 }
0x10f6   : > { %v17701_v15 = vpop.eup %13986  ;;  %14006 = vrcp.f32 %v7752_v19  ;;  %v12044_v51 = vpop.f32.mrb[52].mxu0 }
0x10f7   : > { %v13989_v53 = vpop.eup %13988  ;;  %14008 = vrcp.f32 %v7751_v9  ;;  %v9567_v59 = vmul.f32 -1.442695, %v12044_v51  ;;  %v7520_v38 = vpop.f32.mrb[53].mxu0 }
0x10f8   : > { %v13991_v32 = vpop.eup %13990  ;;  %v7754_v34 = vadd.f32 1.0, %v13989_v53  ;;  %14010 = vpow2.f32 %v9564_v45  ;;  %v9566_v22 = vmul.f32 -1.442695, %v7520_v38 }
0x10f9   : > { %v13993_v21 = vpop.eup %13992  ;;  %v7844_v44 = vmul.f32 %v13991_v32, %v17635_v2  ;;  %14012 = vpow2.f32 %v9567_v59 }
0x10fa   : > { %v13995_v23 = vpop.eup %13994  ;;  %14014 = vrcp.f32 %v7754_v34  ;;  %v12047_v4 = vpop.f32.mrb[54].mxu0  ;;  %v7843_v41 = vmul.f32 %v13993_v21, %v17638_v6 }
0x10fb   : > { %v13997_v55 = vpop.eup %13996  ;;  %v7753_v19 = vadd.f32 1.0, %v13995_v23  ;;  %14016 = vpow2.f32 %v9566_v22  ;;  %v9569_v28 = vmul.f32 -1.442695, %v12047_v4  ;;  %v7530_v9 = vpop.f32.mrb[55].mxu0 }
0x10fc   : > { %v13999_v51 = vpop.eup %13998  ;;  %14018 = vtanh.f32 %v17541_v25  ;;  %v7756_v53 = vadd.f32 1.0, %v13997_v55  ;;  %v9568_v45 = vmul.f32 -1.442695, %v7530_v9  ;;  %12104 = vmatprep.mubr.f32.mxu0 %v7843_v41 }
0x10fd   : > { %v14001_v38 = vpop.eup %14000  ;;  %14020 = vrcp.f32 %v7753_v19  ;;  %12105 = vmatmul.mubr.f32.vlgmr.msra.gmra.mrb[72].mxu0 %v7844_v44  ;;  %v7846_v32 = vmul.f32 %v13999_v51, %v17641_v18 }
0x10fe   : > { %v14003_v2 = vpop.eup %14002  ;;  %14022 = vrcp.f32 %v7756_v53  ;;  %v12050_v59 = vpop.f32.mrb[56].mxu0  ;;  %v7845_v21 = vmul.f32 %v14001_v38, %v17644_v3 }
0x10ff   : > { %v14005_v6 = vpop.eup %14004  ;;  %v7755_v34 = vadd.f32 1.0, %v14003_v2  ;;  %14024 = vpow2.f32 %v9569_v28  ;;  %v9571_v22 = vmul.f32 -1.442695, %v12050_v59  ;;  %v7540_v23 = vpop.f32.mrb[57].mxu0 }
0x1100   : > { %v14007_v4 = vpop.eup %14006  ;;  %v7758_v25 = vadd.f32 1.0, %v14005_v6  ;;  %14026 = vpow2.f32 %v9568_v45  ;;  %v9570_v55 = vmul.f32 -1.442695, %v7540_v23  ;;  %12107 = vmatprep.mubr.f32.mxu0 %v7845_v21 }
0x1101   : > { %v14009_v41 = vpop.eup %14008  ;;  %14028 = vrcp.f32 %v7755_v34  ;;  %12108 = vmatmul.mubr.f32.gmra.mrb[74].mxu0 %v7846_v32  ;;  %v7848_v18 = vmul.f32 %v14007_v4, %v17647_v48 }
0x1102   : > { %v14011_v44 = vpop.eup %14010  ;;  %14030 = vrcp.f32 %v7758_v25  ;;  %v12053_v19 = vpop.f32.mrb[58].mxu0  ;;  %v7847_v3 = vmul.f32 %v14009_v41, %v17650_v50 }
0x1103   : > { %v14013_v9 = vpop.eup %14012  ;;  %v7757_v51 = vadd.f32 1.0, %v14011_v44  ;;  %14032 = vpow2.f32 %v9571_v22  ;;  %v9573_v28 = vmul.f32 -1.442695, %v12053_v19  ;;  %v7550_v53 = vpop.f32.mrb[59].mxu0 }
0x1104   : > { %v14015_v38 = vpop.eup %14014  ;;  %v7760_v2 = vadd.f32 1.0, %v14013_v9  ;;  %14034 = vpow2.f32 %v9570_v55  ;;  %12110 = vmatprep.mubr.f32.mxu0 %v7847_v3  ;;  %v9572_v59 = vmul.f32 -1.442695, %v7550_v53 }
0x1105   : > { %v14017_v45 = vpop.eup %14016  ;;  %14036 = vrcp.f32 %v7757_v51  ;;  %12111 = vmatmul.mubr.f32.gmra.mrb[76].mxu0 %v7848_v18  ;;  %v7850_v48 = vmul.f32 %v14015_v38, %v17653_v52 }
0x1106   : > { %v17711_v32 = vpop.eup %14018  ;;  %14038 = vrcp.f32 %v7760_v2  ;;  %v7759_v21 = vadd.f32 1.0, %v14017_v45  ;;  %v12056_v50 = vpop.f32.mrb[60].mxu0 }
0x1107   : > { %v14021_v6 = vpop.eup %14020  ;;  %14040 = vpow2.f32 %v9573_v28  ;;  %v9575_v34 = vmul.f32 -1.442695, %v12056_v50  ;;  %v7560_v22 = vpop.f32.mrb[61].mxu0 }
0x1108   : > { %v14023_v23 = vpop.eup %14022  ;;  %14042 = vrcp.f32 %v7759_v21  ;;  %v9574_v4 = vmul.f32 -1.442695, %v7560_v22  ;;  %v7849_v25 = vmul.f32 %v14021_v6, %v17656_v47 }
0x1109   : > { %v14025_v55 = vpop.eup %14024  ;;  %14044 = vpow2.f32 %v9572_v59  ;;  %v7852_v41 = vmul.f32 %v14023_v23, %v17659_v57 }
0x110a   : > { %v14027_v18 = vpop.eup %14026  ;;  %v7762_v52 = vadd.f32 1.0, %v14025_v55  ;;  %14046 = vpow2.f32 %v9575_v34  ;;  %12113 = vmatprep.mubr.f32.mxu0 %v7849_v25  ;;  %v12059_v44 = vpop.f32.mrb[62].mxu0 }
0x110b   : > { %v14029_v19 = vpop.eup %14028  ;;  %v7761_v3 = vadd.f32 1.0, %v14027_v18  ;;  %14048 = vpow2.f32 %v9574_v4  ;;  %12114 = vmatmul.mubr.f32.gmra.mrb[78].mxu0 %v7850_v48  ;;  %v9577_v9 = vmul.f32 -1.442695, %v12059_v44  ;;  %v7570_v51 = vpop.f32.mrb[63].mxu0 }
0x110c   : > { %v14031_v28 = vpop.eup %14030  ;;  %14050 = vrcp.f32 %v7762_v52  ;;  %v9576_v53 = vmul.f32 -1.442695, %v7570_v51  ;;  %v7851_v47 = vmul.f32 %v14029_v19, %v17662_v14 }
0x110d   : > { %v14033_v38 = vpop.eup %14032  ;;  %14052 = vrcp.f32 %v7761_v3  ;;  %v7854_v57 = vmul.f32 %v14031_v28, %v17665_v26 }
0x110e   : > { %v14035_v2 = vpop.eup %14034  ;;  %v7764_v45 = vadd.f32 1.0, %v14033_v38  ;;  %14054 = vpow2.f32 %v9577_v9  ;;  %12116 = vmatprep.mubr.f32.mxu0 %v7851_v47  ;;  %v12062_v59 = vpop.f32.mrb[64].mxu0 }
0x110f   : > { %v14037_v21 = vpop.eup %14036  ;;  %v7763_v50 = vadd.f32 1.0, %v14035_v2  ;;  %14056 = vpow2.f32 %v9576_v53  ;;  %12117 = vmatmul.mubr.f32.gmra.mrb[80].mxu0 %v7852_v41  ;;  %v9579_v48 = vmul.f32 -1.442695, %v12062_v59  ;;  %v7580_v6 = vpop.f32.mrb[65].mxu0 }
0x1110   : > { %v14039_v34 = vpop.eup %14038  ;;  %14058 = vrcp.f32 %v7764_v45  ;;  %v9578_v22 = vmul.f32 -1.442695, %v7580_v6  ;;  %v7853_v14 = vmul.f32 %v14037_v21, %v17667_v16 }
0x1111   : > { %v14041_v23 = vpop.eup %14040  ;;  %14060 = vrcp.f32 %v7763_v50  ;;  %v7856_v26 = vmul.f32 %v14039_v34, %v17669_v42 }
0x1112   : > { %v14043_v4 = vpop.eup %14042  ;;  %v7766_v25 = vadd.f32 1.0, %v14041_v23  ;;  %14062 = vpow2.f32 %v9579_v48  ;;  %12119 = vmatprep.mubr.f32.mxu0 %v7853_v14  ;;  %v12065_v55 = vpop.f32.mrb[66].mxu0 }
0x1113   : > { %v14045_v18 = vpop.eup %14044  ;;  %14064 = vpow2.f32 %v9578_v22  ;;  %12120 = vmatmul.mubr.f32.gmra.mrb[82].mxu0 %v7854_v57  ;;  %v9581_v41 = vmul.f32 -1.442695, %v12065_v55  ;;  %v7590_v52 = vpop.f32.mrb[67].mxu0  ;;  %v7855_v44 = vmul.f32 %v14043_v4, %v17672_v36 }
0x1114   : > { %v14047_v19 = vpop.eup %14046  ;;  %14066 = vrcp.f32 %v7766_v25  ;;  %v7765_v3 = vadd.f32 1.0, %v14045_v18  ;;  %v9580_v51 = vmul.f32 -1.442695, %v7590_v52 }
0x1115   : > { %v14049_v16 = vpop.eup %14048  ;;  %v7768_v9 = vadd.f32 1.0, %v14047_v19  ;;  %14068 = vpow2.f32 %v9581_v41  ;;  %12122 = vmatprep.mubr.f32.mxu0 %v7855_v44 }
0x1116   : > { %v14051_v42 = vpop.eup %14050  ;;  %14070 = vrcp.f32 %v7765_v3  ;;  %v7767_v28 = vadd.f32 1.0, %v14049_v16  ;;  %v12068_v53 = vpop.f32.mrb[68].mxu0 }
0x1117   : > { %v14053_v47 = vpop.eup %14052  ;;  %14072 = vrcp.f32 %v7768_v9  ;;  %12123 = vmatmul.mubr.f32.gmra.mrb[84].mxu0 %v7856_v26  ;;  %v9583_v38 = vmul.f32 -1.442695, %v12068_v53  ;;  %v7600_v57 = vpop.f32.mrb[69].mxu0  ;;  %v7858_v2 = vmul.f32 %v14051_v42, %v17675_v54 }
0x1118   : > { %v14055_v36 = vpop.eup %14054  ;;  %14074 = vrcp.f32 %v7767_v28  ;;  %v7857_v45 = vmul.f32 %v14053_v47, %v17677_v5  ;;  %v9582_v50 = vmul.f32 -1.442695, %v7600_v57 }
0x1119   : > { %v14057_v59 = vpop.eup %14056  ;;  %v7770_v21 = vadd.f32 1.0, %v14055_v36  ;;  %14076 = vpow2.f32 %v9580_v51 }
0x111a   : > { %v14059_v48 = vpop.eup %14058  ;;  %v7769_v6 = vadd.f32 1.0, %v14057_v59  ;;  %14078 = vpow2.f32 %v9583_v38  ;;  %12125 = vmatprep.mubr.f32.mxu0 %v7857_v45  ;;  %v12071_v34 = vpop.f32.mrb[70].mxu0 }
0x111b   : > { %v14061_v22 = vpop.eup %14060  ;;  %14080 = vrcp.f32 %v7770_v21  ;;  %12126 = vmatmul.mubr.f32.gmra.mrb[86].mxu0 %v7858_v2  ;;  %v9585_v14 = vmul.f32 -1.442695, %v12071_v34  ;;  %v7610_v23 = vpop.f32.mrb[71].mxu0  ;;  %v7860_v54 = vmul.f32 %v14059_v48, %v17679_v10 }
0x111c   : > { %v14063_v26 = vpop.eup %14062  ;;  %14082 = vrcp.f32 %v7769_v6  ;;  %v7859_v5 = vmul.f32 %v14061_v22, %v17682_v20  ;;  %v9584_v55 = vmul.f32 -1.442695, %v7610_v23 }
0x111d   : > { %v14065_v4 = vpop.eup %14064  ;;  %v7772_v25 = vadd.f32 1.0, %v14063_v26  ;;  %14084 = vpow2.f32 %v9582_v50 }
0x111e   : > { %v14067_v18 = vpop.eup %14066  ;;  %v7771_v41 = vadd.f32 1.0, %v14065_v4  ;;  %14086 = vpow2.f32 %v9585_v14  ;;  %12128 = vmatprep.mubr.f32.mxu0 %v7859_v5  ;;  %v8462_v4 = vld [vmem:[%s18079_s8 + $0x8] sm:$0xff] }
0x111f   : > { %v14069_v52 = vpop.eup %14068  ;;  %14088 = vrcp.f32 %v7772_v25  ;;  %12129 = vmatmul.mubr.f32.gmra.mrb[88].mxu0 %v7860_v54  ;;  %v7862_v44 = vmul.f32 %v14067_v18, %v17685_v58  ;;  %v8464_v25 = vld [vmem:[%s18079_s8 + $0x18] sm:$0xff] }
0x1120   : > { %v14071_v19 = vpop.eup %14070  ;;  %14090 = vrcp.f32 %v7771_v41  ;;  %v7774_v10 = vadd.f32 1.0, %v14069_v52  ;;  %v13032_v18 = vpack.c.bf16 %v8464_v25, %v8462_v4  ;;  %v8463_v41 = vld [vmem:[%s18079_s8 + $0x10] sm:$0xff]  ;;  %v8466_v52 = vld [vmem:[%s18079_s8 + $0x28] sm:$0xff] }
0x1121   : > { %v14073_v3 = vpop.eup %14072  ;;  %14092 = vpow2.f32 %v9584_v55  ;;  %v7861_v20 = vmul.f32 %v14071_v19, %v17687_v39  ;;  %v8461_v55 = vld [vmem:[%s18079_s8] sm:$0xff] }
0x1122   : > { %v14075_v16 = vpop.eup %14074  ;;  %14094 = vrcp.f32 %v7774_v10  ;;  %v7864_v9 = vmul.f32 %v14073_v3, %v17691_v37  ;;  %v13034_v19 = vpack.c.bf16 %v8463_v41, %v8461_v55  ;;  %v8465_v3 = vld [vmem:[%s18079_s8 + $0x20] sm:$0xff]  ;;  %13033 = vmatprep.subr.bf16.mxu0 %v13032_v18 }
0x1123   : > { %v14077_v51 = vpop.eup %14076  ;;  %12131 = vmatprep.mubr.f32.mxu0 %v7861_v20  ;;  %v7863_v42 = vmul.f32 %v14075_v16, %v17693_v61  ;;  %14096 = vtanh.f32 %v17543_v56  ;;  %v8467_v20 = vld [vmem:[%s18079_s8 + $0x30] sm:$0xff]  ;;  %v8470_v16 = vld [vmem:[%s18079_s8 + $0x48] sm:$0xff] }
0x1124   : > { %v14079_v28 = vpop.eup %14078  ;;  %v7773_v53 = vadd.f32 1.0, %v14077_v51  ;;  %12132 = vmatmul.mubr.f32.gmra.mrb[90].mxu0 %v7862_v44  ;;  %14098 = vtanh.f32 %v17547_v63  ;;  %v8468_v44 = vld [vmem:[%s18079_s8 + $0x38] sm:$0xff]  ;;  %v13038_v51 = vpack.c.bf16 %v8467_v20, %v8465_v3  ;;  %v18512_v20 = vld [vmem:[#allocation19_spill] sm:$0xff] }
0x1125   : > { %v14081_v58 = vpop.eup %14080  ;;  %v7776_v47 = vadd.f32 1.0, %v14079_v28  ;;  %12134 = vmatprep.mubr.f32.mxu0 %v7863_v42  ;;  %v13036_v10 = vpack.c.bf16 %v8468_v44, %v8466_v52  ;;  %13035 = vmatpush1.bf16.msra.mxu0 %v13034_v19  ;;  %v8469_v28 = vld [vmem:[%s18079_s8 + $0x40] sm:$0xff] }
0x1126   : > { %v14083_v38 = vpop.eup %14082  ;;  %14100 = vrcp.f32 %v7773_v53  ;;  %v7866_v39 = vmul.f32 %v14081_v58, %v17695_v13  ;;  %v8471_v53 = vld [vmem:[%s18079_s8 + $0x50] sm:$0xff]  ;;  %v8474_v58 = vld [vmem:[%s18079_s8 + $0x68] sm:$0xff] }
0x1127   : > { %v14085_v57 = vpop.eup %14084  ;;  %14102 = vrcp.f32 %v7776_v47  ;;  %v7865_v37 = vmul.f32 %v14083_v38, %v17697_v27  ;;  %13037 = vmatprep.subr.bf16.mxu0 %v13036_v10  ;;  %v8476_v47 = vld [vmem:[%s18079_s8 + $0x78] sm:$0xff]  ;;  %v13042_v38 = vpack.c.bf16 %v8471_v53, %v8469_v28  ;;  %v18511_v10 = vld [vmem:[#allocation3_spill] sm:$0xff] }
0x1128   : > { %v14087_v2 = vpop.eup %14086  ;;  %14104 = vtanh.f32 %v17549_v31  ;;  %v7775_v61 = vadd.f32 1.0, %v14085_v57  ;;  %12135 = vmatmul.mubr.f32.gmra.mrb[92].mxu0 %v7864_v9  ;;  %v8472_v9 = vld [vmem:[%s18079_s8 + $0x58] sm:$0xff]  ;;  %v8473_v57 = vld [vmem:[%s18079_s8 + $0x60] sm:$0xff] }
0x1129   : > { %v14089_v56 = vpop.eup %14088  ;;  %14106 = vtanh.f32 %v17553_v8  ;;  %v7778_v36 = vadd.f32 1.0, %v14087_v2  ;;  %12137 = vmatprep.mubr.f32.mxu0 %v7865_v37  ;;  %v13040_v42 = vpack.c.bf16 %v8472_v9, %v8470_v16  ;;  %13039 = vmatpush1.bf16.msra.mxu0 %v13038_v51  ;;  %v8475_v37 = vld [vmem:[%s18079_s8 + $0x70] sm:$0xff]  ;;  %v18514_v53 = vld [vmem:[#allocation45_spill] sm:$0xff] }
0x112a   : > { %v14091_v63 = vpop.eup %14090  ;;  %14108 = vrcp.f32 %v7775_v61  ;;  %v7868_v45 = vmul.f32 %v14089_v56, %v17699_v49  ;;  %v13046_v2 = vpack.c.bf16 %v8475_v37, %v8473_v57 }
0x112b   : > { %v14093_v59 = vpop.eup %14092  ;;  %14110 = vrcp.f32 %v7778_v36  ;;  %v7867_v13 = vmul.f32 %v14091_v63, %v17701_v15  ;;  %13041 = vmatprep.subr.bf16.mxu0 %v13040_v42  ;;  %v18513_v42 = vld [vmem:[#allocation44_spill] sm:$0xff] }
0x112c   : > { %v14095_v21 = vpop.eup %14094  ;;  %v7777_v27 = vadd.f32 1.0, %v14093_v59  ;;  %12138 = vmatmul.mubr.f32.gmra.mrb[94].mxu0 %v7866_v39  ;;  %14112 = vtanh.f32 %v17555_v12  ;;  %v13044_v39 = vpack.c.bf16 %v8476_v47, %v8474_v58 }
0x112d   : > { %12140 = vmatprep.mubr.f32.mxu0 %v7867_v13  ;;  %v7870_v31 = vmul.f32 %v14095_v21, %v17711_v32  ;;  %v14097_v50 = vpop.eup %14096  ;;  %13043 = vmatpush1.bf16.msra.mxu0 %v13042_v38 }
0x112e   : > { %14114 = vrcp.f32 %v7777_v27  ;;  %v14099_v8 = vpop.eup %14098  ;;  %13045 = vmatprep.subr.bf16.mxu0 %v13044_v39  ;;  %v18515_v39 = vld [vmem:[#allocation46_spill] sm:$0xff] }
0x1130   : > { %v14101_v48 = vpop.eup %14100  ;;  %12141 = vmatmul.mubr.f32.gmra.mrb[96].mxu0 %v7868_v45 }
0x1131   : > { %v14103_v6 = vpop.eup %14102  ;;  %v7869_v34 = vmul.f32 %v14101_v48, %v14097_v50  ;;  %13047 = vmatpush1.bf16.msra.mxu0 %v13046_v2  ;;  %v18516_v2 = vld [vmem:[#allocation47_spill] sm:$0xff] }
0x1132   : > { %v14105_v49 = vpop.eup %14104  ;;  %v7872_v22 = vmul.f32 %v14103_v6, %v14099_v8 }
0x1133   : > { %v14107_v14 = vpop.eup %14106  ;;  %12143 = vmatprep.mubr.f32.mxu0 %v7869_v34 }
0x1134   : > { %v14109_v15 = vpop.eup %14108  ;;  %12144 = vmatmul.mubr.f32.gmra.mrb[98].mxu0 %v7870_v31 }
0x1135   : > { %v14111_v23 = vpop.eup %14110  ;;  %v7871_v54 = vmul.f32 %v14109_v15, %v14105_v49 }
0x1136   : > { %v7874_v26 = vmul.f32 %v14111_v23, %v14107_v14  ;;  %v14113_v12 = vpop.eup %14112 }
0x1137   : > { %12146 = vmatprep.mubr.f32.mxu0 %v7871_v54 }
0x1138   : > { %v14115_v5 = vpop.eup %14114  ;;  %12147 = vmatmul.mubr.f32.gmra.mrb[100].mxu0 %v7872_v22 }
0x1139   : > { %v7873_v32 = vmul.f32 %v14115_v5, %v14113_v12 }
0x113b   : > { %12149 = vmatprep.mubr.f32.mxu0 %v7873_v32 }
0x113c   : > { %12150 = vmatmul.mubr.f32.gmra.mrb[102].mxu0 %v7874_v26 }
0x113d   : > { %8649 = vmatprep.mubr.f32.mxu0 %v18471_v17 }
0x11d0   : > { %v12106_v61 = vpop.f32.mrb[72].mxu0 }
0x11d1   : > { %v8118_v56 = vadd.f32 %v12106_v61, %v16929_v43  ;;  %v7958_v36 = vpop.f32.mrb[73].mxu0 }
0x11d2   : > { %v8117_v63 = vadd.f32 %v7958_v36, %v16932_v35 }
0x11d3   : > { %v8150_v13 = vmax.f32 %v8118_v56, 0.0 }
0x11d4   : > { %v8149_v45 = vmax.f32 %v8117_v63, 0.0  ;;  %v12109_v59 = vpop.f32.mrb[74].mxu0 }
0x11d5   : > { %v8120_v21 = vadd.f32 %v12109_v59, %v16937_v30  ;;  %v7968_v27 = vpop.f32.mrb[75].mxu0 }
0x11d6   : > { %v8119_v31 = vadd.f32 %v7968_v27, %v16940_v11  ;;  %12184 = vmatprep.mubr.f32.mxu1 %v8149_v45  ;;  %v18517_v45 = vld [vmem:[#allocation48_spill] sm:$0xff] }
0x11d7   : > { %12185 = vmatmul.mubr.f32.vlgmr.msra.gmra.mrb[24].mxu1 %v8150_v13  ;;  %v8152_v48 = vmax.f32 %v8120_v21, 0.0  ;;  %v18518_v21 = vld [vmem:[#allocation49_spill] sm:$0xff] }
0x11d8   : > { %v8151_v50 = vmax.f32 %v8119_v31, 0.0  ;;  %v12112_v8 = vpop.f32.mrb[76].mxu0 }
0x11d9   : > { %v8122_v6 = vadd.f32 %v12112_v8, %v16946_v33  ;;  %v7978_v34 = vpop.f32.mrb[77].mxu0 }
0x11da   : > { %v8121_v43 = vadd.f32 %v7978_v34, %v16949_v62  ;;  %12187 = vmatprep.mubr.f32.mxu1 %v8151_v50 }
0x11db   : > { %12188 = vmatmul.mubr.f32.gmra.mrb[26].mxu1 %v8152_v48  ;;  %v8154_v49 = vmax.f32 %v8122_v6, 0.0  ;;  %v18519_v48 = vld [vmem:[#allocation50_spill] sm:$0xff] }
0x11dc   : > { %v8153_v35 = vmax.f32 %v8121_v43, 0.0  ;;  %v18520_v43 = vld [vmem:[#allocation51_spill] sm:$0xff] }
0x11de   : > { %v12115_v22 = vpop.f32.mrb[78].mxu0  ;;  %12190 = vmatprep.mubr.f32.mxu1 %v8153_v35 }
0x11df   : > { %v8124_v30 = vadd.f32 %v12115_v22, %v16955_v60  ;;  %v7988_v14 = vpop.f32.mrb[79].mxu0  ;;  %12191 = vmatmul.mubr.f32.gmra.mrb[28].mxu1 %v8154_v49 }
0x11e0   : > { %v8123_v11 = vadd.f32 %v7988_v14, %v16959_v0  ;;  %v18521_v14 = vld [vmem:[#allocation52_spill] sm:$0xff] }
0x11e1   : > { %v8156_v54 = vmax.f32 %v8124_v30, 0.0 }
0x11e2   : > { %v8155_v15 = vmax.f32 %v8123_v11, 0.0  ;;  %v12118_v23 = vpop.f32.mrb[80].mxu0 }
0x11e3   : > { %v8126_v33 = vadd.f32 %v12118_v23, %v16964_v40  ;;  %v7998_v26 = vpop.f32.mrb[81].mxu0  ;;  %v18522_v23 = vld [vmem:[#allocation53_spill] sm:$0xff] }
0x11e4   : > { %v8125_v62 = vadd.f32 %v7998_v26, %v16967_v1  ;;  %12193 = vmatprep.mubr.f32.mxu1 %v8155_v15 }
0x11e5   : > { %12194 = vmatmul.mubr.f32.gmra.mrb[30].mxu1 %v8156_v54  ;;  %v8158_v32 = vmax.f32 %v8126_v33, 0.0 }
0x11e6   : > { %v8157_v12 = vmax.f32 %v8125_v62, 0.0  ;;  %v12121_v5 = vpop.f32.mrb[82].mxu0 }
0x11e7   : > { %v8128_v4 = vadd.f32 %v12121_v5, %v16973_v7  ;;  %v8008_v60 = vpop.f32.mrb[83].mxu0 }
0x11e8   : > { %v8127_v25 = vadd.f32 %v8008_v60, %v16976_v29  ;;  %12196 = vmatprep.mubr.f32.mxu1 %v8157_v12  ;;  %v18523_v12 = vld [vmem:[#allocation54_spill] sm:$0xff] }
0x11e9   : > { %12197 = vmatmul.mubr.f32.gmra.mrb[32].mxu1 %v8158_v32  ;;  %v8160_v18 = vmax.f32 %v8128_v4, 0.0  ;;  %v18524_v4 = vld [vmem:[#allocation55_spill] sm:$0xff] }
0x11ea   : > { %v8159_v0 = vmax.f32 %v8127_v25, 0.0  ;;  %v12124_v55 = vpop.f32.mrb[84].mxu0 }
0x11eb   : > { %v8130_v40 = vadd.f32 %v12124_v55, %v16982_v46  ;;  %v8018_v41 = vpop.f32.mrb[85].mxu0 }
0x11ec   : > { %v8129_v1 = vadd.f32 %v8018_v41, %v16985_v24  ;;  %12199 = vmatprep.mubr.f32.mxu1 %v8159_v0 }
0x11ed   : > { %12200 = vmatmul.mubr.f32.gmra.mrb[34].mxu1 %v8160_v18  ;;  %v8162_v19 = vmax.f32 %v8130_v40, 0.0  ;;  %v18525_v18 = vld [vmem:[#allocation56_spill] sm:$0xff] }
0x11ee   : > { %v8161_v52 = vmax.f32 %v8129_v1, 0.0  ;;  %v12127_v44 = vpop.f32.mrb[86].mxu0  ;;  %v18526_v1 = vld [vmem:[#allocation57_spill] sm:$0xff] }
0x11ef   : > { %v8132_v7 = vadd.f32 %v12127_v44, %v18511_v10  ;;  %v8028_v3 = vpop.f32.mrb[87].mxu0 }
0x11f0   : > { %v8131_v29 = vadd.f32 %v8028_v3, %v18512_v20  ;;  %12202 = vmatprep.mubr.f32.mxu1 %v8161_v52 }
0x11f1   : > { %12203 = vmatmul.mubr.f32.gmra.mrb[36].mxu1 %v8162_v19  ;;  %v8164_v51 = vmax.f32 %v8132_v7, 0.0  ;;  %v18527_v7 = vld [vmem:[#allocation58_spill] sm:$0xff] }
0x11f2   : > { %v8163_v16 = vmax.f32 %v8131_v29, 0.0  ;;  %v12130_v9 = vpop.f32.mrb[88].mxu0  ;;  %v18528_v29 = vld [vmem:[#allocation59_spill] sm:$0xff] }
0x11f3   : > { %v8134_v46 = vadd.f32 %v12130_v9, %v18513_v42  ;;  %v8038_v28 = vpop.f32.mrb[89].mxu0  ;;  %v17822_v42 = vld [vmem:[%s18078_s7] ss:$0 sm:$0xff] }
0x11f4   : > { %v8133_v24 = vadd.f32 %v8038_v28, %v18514_v53  ;;  %12205 = vmatprep.mubr.f32.mxu1 %v8163_v16 }
0x11f5   : > { %12206 = vmatmul.mubr.f32.gmra.mrb[38].mxu1 %v8164_v51  ;;  %v8166_v47 = vmax.f32 %v8134_v46, 0.0 }
0x11f6   : > { %v8165_v58 = vmax.f32 %v8133_v24, 0.0 }
0x11f7   : > { %v12133_v38 = vpop.f32.mrb[90].mxu0 }
0x11f8   : > { %v8136_v57 = vadd.f32 %v12133_v38, %v18515_v39  ;;  %v8048_v37 = vpop.f32.mrb[91].mxu0  ;;  %12208 = vmatprep.mubr.f32.mxu1 %v8165_v58 }
0x11f9   : > { %v8135_v61 = vadd.f32 %v8048_v37, %v18516_v2  ;;  %12209 = vmatmul.mubr.f32.gmra.mrb[40].mxu1 %v8166_v47 }
0x11fa   : > { %v8168_v63 = vmax.f32 %v8136_v57, 0.0 }
0x11fb   : > { %v8167_v56 = vmax.f32 %v8135_v61, 0.0  ;;  %v12136_v36 = vpop.f32.mrb[92].mxu0 }
0x11fc   : > { %v8138_v59 = vadd.f32 %v12136_v36, %v18517_v45  ;;  %v8058_v13 = vpop.f32.mrb[93].mxu0 }
0x11fd   : > { %v8137_v27 = vadd.f32 %v8058_v13, %v18518_v21  ;;  %12211 = vmatprep.mubr.f32.mxu1 %v8167_v56 }
0x11fe   : > { %12212 = vmatmul.mubr.f32.gmra.mrb[42].mxu1 %v8168_v63  ;;  %v8170_v8 = vmax.f32 %v8138_v59, 0.0 }
0x11ff   : > { %v8169_v31 = vmax.f32 %v8137_v27, 0.0  ;;  %v12139_v50 = vpop.f32.mrb[94].mxu0 }
0x1200   : > { %v8140_v6 = vadd.f32 %v12139_v50, %v18519_v48  ;;  %v8068_v34 = vpop.f32.mrb[95].mxu0 }
0x1201   : > { %v8139_v35 = vadd.f32 %v8068_v34, %v18520_v43  ;;  %12214 = vmatprep.mubr.f32.mxu1 %v8169_v31 }
0x1202   : > { %12215 = vmatmul.mubr.f32.gmra.mrb[44].mxu1 %v8170_v8  ;;  %v8172_v30 = vmax.f32 %v8140_v6, 0.0 }
0x1203   : > { %v8171_v49 = vmax.f32 %v8139_v35, 0.0  ;;  %v12142_v22 = vpop.f32.mrb[96].mxu0 }
0x1204   : > { %v8142_v11 = vadd.f32 %v12142_v22, %v18521_v14  ;;  %v8078_v15 = vpop.f32.mrb[97].mxu0 }
0x1205   : > { %v8141_v54 = vadd.f32 %v8078_v15, %v18522_v23  ;;  %12217 = vmatprep.mubr.f32.mxu1 %v8171_v49 }
0x1206   : > { %12218 = vmatmul.mubr.f32.gmra.mrb[46].mxu1 %v8172_v30  ;;  %v8174_v62 = vmax.f32 %v8142_v11, 0.0 }
0x1207   : > { %v8173_v33 = vmax.f32 %v8141_v54, 0.0  ;;  %v12145_v26 = vpop.f32.mrb[98].mxu0 }
0x1208   : > { %v8144_v5 = vadd.f32 %v12145_v26, %v18523_v12  ;;  %v8088_v32 = vpop.f32.mrb[99].mxu0 }
0x1209   : > { %v8143_v60 = vadd.f32 %v8088_v32, %v18524_v4  ;;  %12220 = vmatprep.mubr.f32.mxu1 %v8173_v33 }
0x120a   : > { %12221 = vmatmul.mubr.f32.gmra.mrb[48].mxu1 %v8174_v62  ;;  %v8176_v55 = vmax.f32 %v8144_v5, 0.0 }
0x120b   : > { %v8175_v25 = vmax.f32 %v8143_v60, 0.0  ;;  %v12148_v0 = vpop.f32.mrb[100].mxu0 }
0x120c   : > { %v8146_v40 = vadd.f32 %v12148_v0, %v18525_v18  ;;  %v8098_v41 = vpop.f32.mrb[101].mxu0 }
0x120d   : > { %v8145_v52 = vadd.f32 %v8098_v41, %v18526_v1  ;;  %12223 = vmatprep.mubr.f32.mxu1 %v8175_v25 }
0x120e   : > { %12224 = vmatmul.mubr.f32.gmra.mrb[50].mxu1 %v8176_v55  ;;  %v8178_v10 = vmax.f32 %v8146_v40, 0.0 }
0x120f   : > { %v8177_v44 = vmax.f32 %v8145_v52, 0.0  ;;  %v12151_v19 = vpop.f32.mrb[102].mxu0 }
0x1210   : > { %v8148_v3 = vadd.f32 %v12151_v19, %v18527_v7  ;;  %v8108_v20 = vpop.f32.mrb[103].mxu0 }
0x1211   : > { %v8147_v16 = vadd.f32 %v8108_v20, %v18528_v29  ;;  %12226 = vmatprep.mubr.f32.mxu1 %v8177_v44 }
0x1212   : > { %12227 = vmatmul.mubr.f32.gmra.mrb[52].mxu1 %v8178_v10  ;;  %v8180_v51 = vmax.f32 %v8148_v3, 0.0 }
0x1213   : > { %v8179_v9 = vmax.f32 %v8147_v16, 0.0 }
0x1215   : > { %12229 = vmatprep.mubr.f32.mxu1 %v8179_v9 }
0x1216   : > { %12230 = vmatmul.mubr.f32.gmra.mrb[54].mxu1 %v8180_v51 }
0x12aa   : > { %v12186_v46 = vpop.f32.mrb[24].mxu1 }
0x12ab   : > { %v8270_v28 = vpop.f32.mrb[25].mxu1  ;;  %v8276_v24 = vadd.f32 %v12186_v46, %v17822_v42 }
0x12ac   : > { %v8271_v53 = vadd.f32 %v17822_v42, %v8270_v28 }
0x12ad   : > { %v8430_v39 = vmax.f32 %v8276_v24, 0.0 }
0x12ae   : > { %v8429_v58 = vmax.f32 %v8271_v53, 0.0  ;;  %v12189_v47 = vpop.f32.mrb[26].mxu1 }
0x12af   : > { %v8280_v38 = vpop.f32.mrb[27].mxu1  ;;  %v8286_v61 = vadd.f32 %v12189_v47, %v17822_v42 }
0x12b0   : > { %9603 = vmatmul.mubr.msk.f32.vlgmr.msra.gmra.mrb[104].mxu0 %vm1467_vm11, %v8429_v58  ;;  %v8281_v57 = vadd.f32 %v17822_v42, %v8280_v38 }
0x12b1   : > { %8655 = vmatprep.mubr.f32.mxu0 %v18471_v17  ;;  %v8432_v45 = vmax.f32 %v8286_v61, 0.0 }
0x12b2   : > { %v12192_v37 = vpop.f32.mrb[28].mxu1  ;;  %v8431_v56 = vmax.f32 %v8281_v57, 0.0 }
0x12b3   : > { %v8290_v2 = vpop.f32.mrb[29].mxu1  ;;  %v8296_v27 = vadd.f32 %v12192_v37, %v17822_v42 }
0x12b4   : > { %9604 = vmatmul.mubr.msk.f32.gmra.mrb[106].mxu0 %vm1467_vm11, %v8430_v39  ;;  %v8291_v59 = vadd.f32 %v17822_v42, %v8290_v2 }
0x12b5   : > { %8661 = vmatprep.mubr.f32.mxu0 %v18471_v17  ;;  %v8434_v48 = vmax.f32 %v8296_v27, 0.0 }
0x12b6   : > { %v8433_v31 = vmax.f32 %v8291_v59, 0.0 }
0x12b8   : > { %v12195_v36 = vpop.f32.mrb[30].mxu1  ;;  %9605 = vmatmul.mubr.msk.f32.gmra.mrb[108].mxu0 %vm1467_vm11, %v8431_v56 }
0x12b9   : > { %v8300_v63 = vpop.f32.mrb[31].mxu1  ;;  %8667 = vmatprep.mubr.f32.mxu0 %v18471_v17  ;;  %v8306_v35 = vadd.f32 %v12195_v36, %v17822_v42 }
0x12ba   : > { %v8301_v6 = vadd.f32 %v17822_v42, %v8300_v63 }
0x12bb   : > { %v8436_v14 = vmax.f32 %v8306_v35, 0.0 }
0x12bc   : > { %v12198_v13 = vpop.f32.mrb[32].mxu1  ;;  %9606 = vmatmul.mubr.msk.f32.gmra.mrb[110].mxu0 %vm1467_vm11, %v8432_v45  ;;  %v8435_v49 = vmax.f32 %v8301_v6, 0.0 }
0x12bd   : > { %v8310_v21 = vpop.f32.mrb[33].mxu1  ;;  %8673 = vmatprep.mubr.f32.mxu0 %v18471_v17  ;;  %v8316_v33 = vadd.f32 %v12198_v13, %v17822_v42 }
0x12be   : > { %v8311_v11 = vadd.f32 %v17822_v42, %v8310_v21 }
0x12bf   : > { %v8438_v5 = vmax.f32 %v8316_v33, 0.0 }
0x12c0   : > { %v12201_v50 = vpop.f32.mrb[34].mxu1  ;;  %9607 = vmatmul.mubr.msk.f32.gmra.mrb[112].mxu0 %vm1467_vm11, %v8433_v31  ;;  %v8437_v26 = vmax.f32 %v8311_v11, 0.0 }
0x12c1   : > { %v8320_v8 = vpop.f32.mrb[35].mxu1  ;;  %8679 = vmatprep.mubr.f32.mxu0 %v18471_v17  ;;  %v8326_v55 = vadd.f32 %v12201_v50, %v17822_v42 }
0x12c2   : > { %v8321_v32 = vadd.f32 %v17822_v42, %v8320_v8 }
0x12c3   : > { %v8440_v44 = vmax.f32 %v8326_v55, 0.0 }
0x12c4   : > { %v12204_v34 = vpop.f32.mrb[36].mxu1  ;;  %9608 = vmatmul.mubr.msk.f32.gmra.mrb[114].mxu0 %vm1467_vm11, %v8434_v48  ;;  %v8439_v18 = vmax.f32 %v8321_v32, 0.0 }
0x12c5   : > { %v8330_v43 = vpop.f32.mrb[37].mxu1  ;;  %8685 = vmatprep.mubr.f32.mxu0 %v18471_v17  ;;  %v8336_v29 = vadd.f32 %v12204_v34, %v17822_v42 }
0x12c6   : > { %v8331_v19 = vadd.f32 %v17822_v42, %v8330_v43 }
0x12c7   : > { %v8442_v53 = vmax.f32 %v8336_v29, 0.0 }
0x12c8   : > { %v12207_v22 = vpop.f32.mrb[38].mxu1  ;;  %9609 = vmatmul.mubr.msk.f32.gmra.mrb[116].mxu0 %vm1467_vm11, %v8435_v49  ;;  %v8441_v16 = vmax.f32 %v8331_v19, 0.0 }
0x12c9   : > { %v8340_v30 = vpop.f32.mrb[39].mxu1  ;;  %8691 = vmatprep.mubr.f32.mxu0 %v18471_v17  ;;  %v8346_v57 = vadd.f32 %v12207_v22, %v17822_v42 }
0x12ca   : > { %v8341_v24 = vadd.f32 %v17822_v42, %v8340_v30 }
0x12cb   : > { %v8444_v63 = vmax.f32 %v8346_v57, 0.0 }
0x12cc   : > { %v12210_v15 = vpop.f32.mrb[40].mxu1  ;;  %9610 = vmatmul.mubr.msk.f32.gmra.mrb[118].mxu0 %vm1467_vm11, %v8436_v14  ;;  %v8443_v37 = vmax.f32 %v8341_v24, 0.0 }
0x12cd   : > { %v17849_v23 = vadd.f32 %v12210_v15, %v17822_v42  ;;  %v8350_v54 = vpop.f32.mrb[41].mxu1  ;;  %8697 = vmatprep.mubr.f32.mxu0 %v18471_v17  ;;  %v18529_v15 = vld [vmem:[#allocation2_spill] sm:$0xff] }
0x12ce   : > { %v8351_v62 = vadd.f32 %v17822_v42, %v8350_v54  ;;  %v8477_v54 = vld [vmem:[%s18080_s9] sm:$0x3]  ;;  %v8485_v33 = vsub.s32 1, %v18529_v15 }
0x12cf   : > { %v8446_v27 = vmax.f32 %v17849_v23, 0.0  ;;  %v8481_v23 = vsub.s32 0, %v18529_v15 }
0x12d0   : > { %9611 = vmatmul.mubr.msk.f32.gmra.mrb[120].mxu0 %vm1467_vm11, %v8437_v26  ;;  %v8445_v21 = vmax.f32 %v8351_v62, 0.0  ;;  %v17933_v62 = vrot.slane %v8477_v54, %v8485_v33 }
0x12d1   : > { %v12213_v12 = vpop.f32.mrb[42].mxu1  ;;  %8703 = vmatprep.mubr.f32.mxu0 %v18471_v17  ;;  %v17931_v26 = vrot.slane %v8477_v54, %v8481_v23 }
0x12d2   : > { %v17858_v4 = vadd.f32 %v12213_v12, %v17822_v42  ;;  %v8360_v60 = vpop.f32.mrb[43].mxu1 }
0x12d3   : > { %v8361_v25 = vadd.f32 %v17822_v42, %v8360_v60 }
0x12d4   : > { %9612 = vmatmul.mubr.msk.f32.gmra.mrb[122].mxu0 %vm1467_vm11, %v8438_v5 }
0x12d5   : > { %v12216_v0 = vpop.f32.mrb[44].mxu1  ;;  %8709 = vmatprep.mubr.f32.mxu0 %v18471_v17  ;;  %v8447_v31 = vmax.f32 %v8361_v25, 0.0 }
0x12d6   : > { %v8376_v40 = vadd.f32 %v12216_v0, %v17822_v42  ;;  %v8370_v41 = vpop.f32.mrb[45].mxu1 }
0x12d7   : > { %v8371_v1 = vadd.f32 %v17822_v42, %v8370_v41 }
0x12d8   : > { %9613 = vmatmul.mubr.msk.f32.gmra.mrb[124].mxu0 %vm1467_vm11, %v8439_v18  ;;  %v8450_v8 = vmax.f32 %v8376_v40, 0.0 }
0x12d9   : > { %v12219_v52 = vpop.f32.mrb[46].mxu1  ;;  %8715 = vmatprep.mubr.f32.mxu0 %v18471_v17  ;;  %v8449_v50 = vmax.f32 %v8371_v1, 0.0 }
0x12da   : > { %v8386_v10 = vadd.f32 %v12219_v52, %v17822_v42  ;;  %v8380_v7 = vpop.f32.mrb[47].mxu1 }
0x12db   : > { %v8381_v3 = vadd.f32 %v17822_v42, %v8380_v7 }
0x12dc   : > { %9614 = vmatmul.mubr.msk.f32.gmra.mrb[126].mxu0 %vm1467_vm11, %v8440_v44  ;;  %v8452_v6 = vmax.f32 %v8386_v10, 0.0 }
0x12dd   : > { %v12222_v20 = vpop.f32.mrb[48].mxu1  ;;  %8721 = vmatprep.mubr.f32.mxu0 %v18471_v17  ;;  %v8451_v48 = vmax.f32 %v8381_v3, 0.0 }
0x12de   : > { %v8396_v9 = vadd.f32 %v12222_v20, %v17822_v42  ;;  %v8390_v51 = vpop.f32.mrb[49].mxu1 }
0x12df   : > { %v8391_v46 = vadd.f32 %v17822_v42, %v8390_v51 }
0x12e0   : > { %9615 = vmatmul.mubr.msk.f32.gmra.mrb[128].mxu0 %vm1467_vm11, %v8441_v16  ;;  %v8454_v43 = vmax.f32 %v8396_v9, 0.0 }
0x12e1   : > { %v12225_v28 = vpop.f32.mrb[50].mxu1  ;;  %8727 = vmatprep.mubr.f32.mxu0 %v18471_v17  ;;  %v8453_v34 = vmax.f32 %v8391_v46, 0.0 }
0x12e2   : > { %v8406_v58 = vadd.f32 %v12225_v28, %v17822_v42  ;;  %v8400_v47 = vpop.f32.mrb[51].mxu1 }
0x12e3   : > { %v8401_v38 = vadd.f32 %v17822_v42, %v8400_v47 }
0x12e4   : > { %9616 = vmatmul.mubr.msk.f32.gmra.mrb[130].mxu0 %vm1467_vm11, %v8442_v53  ;;  %v8456_v49 = vmax.f32 %v8406_v58, 0.0 }
0x12e5   : > { %v12228_v39 = vpop.f32.mrb[52].mxu1  ;;  %8733 = vmatprep.mubr.f32.mxu0 %v18471_v17  ;;  %v8455_v35 = vmax.f32 %v8401_v38, 0.0 }
0x12e6   : > { %v8416_v2 = vadd.f32 %v12228_v39, %v17822_v42  ;;  %v8410_v61 = vpop.f32.mrb[53].mxu1 }
0x12e7   : > { %v8411_v56 = vadd.f32 %v17822_v42, %v8410_v61 }
0x12e8   : > { %9617 = vmatmul.mubr.msk.f32.gmra.mrb[132].mxu0 %vm1467_vm11, %v8443_v37  ;;  %v8458_v30 = vmax.f32 %v8416_v2, 0.0 }
0x12e9   : > { %v12231_v36 = vpop.f32.mrb[54].mxu1  ;;  %8739 = vmatprep.mubr.f32.mxu0 %v18471_v17  ;;  %v8457_v22 = vmax.f32 %v8411_v56, 0.0 }
0x12ea   : > { %v8426_v45 = vadd.f32 %v12231_v36, %v17822_v42  ;;  %v8420_v59 = vpop.f32.mrb[55].mxu1 }
0x12eb   : > { %v8421_v13 = vadd.f32 %v17822_v42, %v8420_v59  ;;  %v8448_v42 = vmax.f32 %v17858_v4, 0.0 }
0x12ec   : > { %9618 = vmatmul.mubr.msk.f32.gmra.mrb[134].mxu0 %vm1467_vm11, %v8444_v63  ;;  %v8460_v11 = vmax.f32 %v8426_v45, 0.0 }
0x12ed   : > { %8745 = vmatprep.mubr.f32.mxu0 %v18471_v17  ;;  %v8459_v14 = vmax.f32 %v8421_v13, 0.0 }
0x12f0   : > { %9619 = vmatmul.mubr.msk.f32.gmra.mrb[136].mxu0 %vm1467_vm11, %v8445_v21 }
0x12f1   : > { %8751 = vmatprep.mubr.f32.mxu0 %v18471_v17 }
0x12f4   : > { %9620 = vmatmul.mubr.msk.f32.gmra.mrb[138].mxu0 %vm1467_vm11, %v8446_v27 }
0x12f5   : > { %8757 = vmatprep.mubr.f32.mxu0 %v18471_v17 }
0x12f8   : > { %9621 = vmatmul.mubr.msk.f32.gmra.mrb[140].mxu0 %vm1467_vm11, %v8447_v31 }
0x12f9   : > { %8763 = vmatprep.mubr.f32.mxu0 %v18471_v17 }
0x12fc   : > { %9622 = vmatmul.mubr.msk.f32.gmra.mrb[142].mxu0 %vm1467_vm11, %v8448_v42 }
0x12fd   : > { %8769 = vmatprep.mubr.f32.mxu0 %v18471_v17 }
0x1300   : > { %9623 = vmatmul.mubr.msk.f32.gmra.mrb[144].mxu0 %vm1467_vm11, %v8449_v50 }
0x1301   : > { %8775 = vmatprep.mubr.f32.mxu0 %v18471_v17 }
0x1304   : > { %9624 = vmatmul.mubr.msk.f32.gmra.mrb[146].mxu0 %vm1467_vm11, %v8450_v8 }
0x1305   : > { %8781 = vmatprep.mubr.f32.mxu0 %v18471_v17 }
0x1308   : > { %9625 = vmatmul.mubr.msk.f32.gmra.mrb[148].mxu0 %vm1467_vm11, %v8451_v48 }
0x1309   : > { %8787 = vmatprep.mubr.f32.mxu0 %v18471_v17 }
0x130c   : > { %9626 = vmatmul.mubr.msk.f32.gmra.mrb[150].mxu0 %vm1467_vm11, %v8452_v6 }
0x130d   : > { %8793 = vmatprep.mubr.f32.mxu0 %v18471_v17 }
0x1310   : > { %9627 = vmatmul.mubr.msk.f32.gmra.mrb[152].mxu0 %vm1467_vm11, %v8453_v34 }
0x1311   : > { %8799 = vmatprep.mubr.f32.mxu0 %v18471_v17 }
0x1314   : > { %9628 = vmatmul.mubr.msk.f32.gmra.mrb[154].mxu0 %vm1467_vm11, %v8454_v43 }
0x1315   : > { %8805 = vmatprep.mubr.f32.mxu0 %v18471_v17 }
0x1318   : > { %9629 = vmatmul.mubr.msk.f32.gmra.mrb[156].mxu0 %vm1467_vm11, %v8455_v35 }
0x1319   : > { %8811 = vmatprep.mubr.f32.mxu0 %v18471_v17 }
0x131c   : > { %9630 = vmatmul.mubr.msk.f32.gmra.mrb[158].mxu0 %vm1467_vm11, %v8456_v49 }
0x131d   : > { %8817 = vmatprep.mubr.f32.mxu0 %v18471_v17 }
0x1320   : > { %9631 = vmatmul.mubr.msk.f32.gmra.mrb[160].mxu0 %vm1467_vm11, %v8457_v22 }
0x1321   : > { %8823 = vmatprep.mubr.f32.mxu0 %v18471_v17 }
0x1324   : > { %9632 = vmatmul.mubr.msk.f32.gmra.mrb[162].mxu0 %vm1467_vm11, %v8458_v30 }
0x1325   : > { %8829 = vmatprep.mubr.f32.mxu0 %v18471_v17 }
0x1328   : > { %9633 = vmatmul.mubr.msk.f32.gmra.mrb[164].mxu0 %vm1467_vm11, %v8459_v14 }
0x1329   : > { %8835 = vmatprep.mubr.f32.mxu0 %v18471_v17 }
0x132c   : > { %9634 = vmatmul.mubr.msk.f32.gmra.mrb[166].mxu0 %vm1467_vm11, %v8460_v11 }
0x1383   : > { %v8651_v17 = vpop.f32.mrb[104].mxu0 }
0x1384   : > { %v8652_v12 = vadd.f32 %v8651_v17, %v17931_v26  ;;  %v8653_v5 = vpop.f32.mrb[105].mxu0 }
0x1385   : > { %v8654_v32 = vadd.f32 %v8653_v5, %v17933_v62 }
0x1386   : > { %8842 = vst [vmem:[%s17938_s30] sm:$0xff] %v8652_v12 }
0x1387   : > { %8843 = vst [vmem:[%s17938_s30 + $0x8] sm:$0xff] %v8654_v32  ;;  %v8657_v4 = vpop.f32.mrb[106].mxu0 }
0x1388   : > { %v8658_v60 = vadd.f32 %v8657_v4, %v17931_v26  ;;  %v8659_v25 = vpop.f32.mrb[107].mxu0 }
0x1389   : > { %v8660_v0 = vadd.f32 %v8659_v25, %v17933_v62 }
0x138a   : > { %8844 = vst [vmem:[%s17938_s30 + $0x10] sm:$0xff] %v8658_v60 }
0x138b   : > { %8845 = vst [vmem:[%s17938_s30 + $0x18] sm:$0xff] %v8660_v0  ;;  %v8663_v55 = vpop.f32.mrb[108].mxu0 }
0x138c   : > { %v8664_v18 = vadd.f32 %v8663_v55, %v17931_v26  ;;  %v8665_v40 = vpop.f32.mrb[109].mxu0 }
0x138d   : > { %v8666_v41 = vadd.f32 %v8665_v40, %v17933_v62 }
0x138e   : > { %8846 = vst [vmem:[%s17938_s30 + $0x20] sm:$0xff] %v8664_v18 }
0x138f   : > { %8847 = vst [vmem:[%s17938_s30 + $0x28] sm:$0xff] %v8666_v41  ;;  %v8669_v1 = vpop.f32.mrb[110].mxu0 }
0x1390   : > { %v8670_v52 = vadd.f32 %v8669_v1, %v17931_v26  ;;  %v8671_v44 = vpop.f32.mrb[111].mxu0 }
0x1391   : > { %v8672_v19 = vadd.f32 %v8671_v44, %v17933_v62 }
0x1392   : > { %8848 = vst [vmem:[%s17938_s30 + $0x30] sm:$0xff] %v8670_v52 }
0x1393   : > { %8849 = vst [vmem:[%s17938_s30 + $0x38] sm:$0xff] %v8672_v19  ;;  %v8675_v10 = vpop.f32.mrb[112].mxu0 }
0x1394   : > { %v8676_v7 = vadd.f32 %v8675_v10, %v17931_v26  ;;  %v8677_v3 = vpop.f32.mrb[113].mxu0 }
0x1395   : > { %v8678_v20 = vadd.f32 %v8677_v3, %v17933_v62 }
0x1396   : > { %8850 = vst [vmem:[%s17938_s30 + $0x40] sm:$0xff] %v8676_v7 }
0x1397   : > { %8851 = vst [vmem:[%s17938_s30 + $0x48] sm:$0xff] %v8678_v20  ;;  %v8681_v29 = vpop.f32.mrb[114].mxu0 }
0x1398   : > { %v8682_v16 = vadd.f32 %v8681_v29, %v17931_v26  ;;  %v8683_v9 = vpop.f32.mrb[115].mxu0 }
0x1399   : > { %v8684_v51 = vadd.f32 %v8683_v9, %v17933_v62 }
0x139a   : > { %8852 = vst [vmem:[%s17938_s30 + $0x50] sm:$0xff] %v8682_v16 }
0x139b   : > { %8853 = vst [vmem:[%s17938_s30 + $0x58] sm:$0xff] %v8684_v51  ;;  %v8687_v46 = vpop.f32.mrb[116].mxu0 }
0x139c   : > { %v8688_v28 = vadd.f32 %v8687_v46, %v17931_v26  ;;  %v8689_v53 = vpop.f32.mrb[117].mxu0 }
0x139d   : > { %v8690_v24 = vadd.f32 %v8689_v53, %v17933_v62 }
0x139e   : > { %8854 = vst [vmem:[%s17938_s30 + $0x60] sm:$0xff] %v8688_v28 }
0x139f   : > { %8855 = vst [vmem:[%s17938_s30 + $0x68] sm:$0xff] %v8690_v24  ;;  %v8693_v58 = vpop.f32.mrb[118].mxu0 }
0x13a0   : > { %v8694_v47 = vadd.f32 %v8693_v58, %v17931_v26  ;;  %v8695_v38 = vpop.f32.mrb[119].mxu0 }
0x13a1   : > { %v8696_v39 = vadd.f32 %v8695_v38, %v17933_v62 }
0x13a2   : > { %8856 = vst [vmem:[%s17938_s30 + $0x70] sm:$0xff] %v8694_v47 }
0x13a3   : > { %8857 = vst [vmem:[%s17938_s30 + $0x78] sm:$0xff] %v8696_v39  ;;  %v8699_v57 = vpop.f32.mrb[120].mxu0 }
0x13a4   : > { %v8700_v37 = vadd.f32 %v8699_v57, %v17931_v26  ;;  %v8701_v2 = vpop.f32.mrb[121].mxu0 }
0x13a5   : > { %v8702_v61 = vadd.f32 %v8701_v2, %v17933_v62 }
0x13a6   : > { %8858 = vst [vmem:[%s17938_s30 + $0x80] sm:$0xff] %v8700_v37 }
0x13a7   : > { %8859 = vst [vmem:[%s17938_s30 + $0x88] sm:$0xff] %v8702_v61  ;;  %v8705_v56 = vpop.f32.mrb[122].mxu0 }
0x13a8   : > { %v8706_v36 = vadd.f32 %v8705_v56, %v17931_v26  ;;  %v8707_v63 = vpop.f32.mrb[123].mxu0 }
0x13a9   : > { %v8708_v45 = vadd.f32 %v8707_v63, %v17933_v62 }
0x13aa   : > { %8860 = vst [vmem:[%s17938_s30 + $0x90] sm:$0xff] %v8706_v36 }
0x13ab   : > { %8861 = vst [vmem:[%s17938_s30 + $0x98] sm:$0xff] %v8708_v45  ;;  %v8711_v59 = vpop.f32.mrb[124].mxu0 }
0x13ac   : > { %v8712_v13 = vadd.f32 %v8711_v59, %v17931_v26  ;;  %v8713_v21 = vpop.f32.mrb[125].mxu0 }
0x13ad   : > { %v8714_v27 = vadd.f32 %v8713_v21, %v17933_v62 }
0x13ae   : > { %8862 = vst [vmem:[%s17938_s30 + $0xa0] sm:$0xff] %v8712_v13 }
0x13af   : > { %8863 = vst [vmem:[%s17938_s30 + $0xa8] sm:$0xff] %v8714_v27  ;;  %v8717_v31 = vpop.f32.mrb[126].mxu0 }
0x13b0   : > { %v8718_v42 = vadd.f32 %v8717_v31, %v17931_v26  ;;  %v8719_v50 = vpop.f32.mrb[127].mxu0 }
0x13b1   : > { %v8720_v8 = vadd.f32 %v8719_v50, %v17933_v62 }
0x13b2   : > { %8864 = vst [vmem:[%s17938_s30 + $0xb0] sm:$0xff] %v8718_v42 }
0x13b3   : > { %8865 = vst [vmem:[%s17938_s30 + $0xb8] sm:$0xff] %v8720_v8  ;;  %v8723_v48 = vpop.f32.mrb[128].mxu0 }
0x13b4   : > { %v8724_v6 = vadd.f32 %v8723_v48, %v17931_v26  ;;  %v8725_v34 = vpop.f32.mrb[129].mxu0 }
0x13b5   : > { %v8726_v43 = vadd.f32 %v8725_v34, %v17933_v62 }
0x13b6   : > { %8866 = vst [vmem:[%s17938_s30 + $0xc0] sm:$0xff] %v8724_v6 }
0x13b7   : > { %8867 = vst [vmem:[%s17938_s30 + $0xc8] sm:$0xff] %v8726_v43  ;;  %v8729_v35 = vpop.f32.mrb[130].mxu0 }
0x13b8   : > { %v8730_v49 = vadd.f32 %v8729_v35, %v17931_v26  ;;  %v8731_v22 = vpop.f32.mrb[131].mxu0 }
0x13b9   : > { %v8732_v30 = vadd.f32 %v8731_v22, %v17933_v62 }
0x13ba   : > { %8868 = vst [vmem:[%s17938_s30 + $0xd0] sm:$0xff] %v8730_v49 }
0x13bb   : > { %8869 = vst [vmem:[%s17938_s30 + $0xd8] sm:$0xff] %v8732_v30  ;;  %v8735_v14 = vpop.f32.mrb[132].mxu0 }
0x13bc   : > { %v8736_v11 = vadd.f32 %v8735_v14, %v17931_v26  ;;  %v8737_v15 = vpop.f32.mrb[133].mxu0 }
0x13bd   : > { %v8738_v23 = vadd.f32 %v8737_v15, %v17933_v62 }
0x13be   : > { %8870 = vst [vmem:[%s17938_s30 + $0xe0] sm:$0xff] %v8736_v11 }
0x13bf   : > { %8871 = vst [vmem:[%s17938_s30 + $0xe8] sm:$0xff] %v8738_v23  ;;  %v8741_v54 = vpop.f32.mrb[134].mxu0 }
0x13c0   : > { %v8742_v33 = vadd.f32 %v8741_v54, %v17931_v26  ;;  %v8743_v17 = vpop.f32.mrb[135].mxu0 }
0x13c1   : > { %v8744_v12 = vadd.f32 %v8743_v17, %v17933_v62 }
0x13c2   : > { %8872 = vst [vmem:[%s17938_s30 + $0xf0] sm:$0xff] %v8742_v33 }
0x13c3   : > { %8873 = vst [vmem:[%s17938_s30 + $0xf8] sm:$0xff] %v8744_v12  ;;  %v8747_v5 = vpop.f32.mrb[136].mxu0 }
0x13c4   : > { %v8748_v32 = vadd.f32 %v8747_v5, %v17931_v26  ;;  %v8749_v4 = vpop.f32.mrb[137].mxu0 }
0x13c5   : > { %v8750_v60 = vadd.f32 %v8749_v4, %v17933_v62 }
0x13c6   : > { %8874 = vst [vmem:[%s17938_s30 + $0x100] sm:$0xff] %v8748_v32 }
0x13c7   : > { %8875 = vst [vmem:[%s17938_s30 + $0x108] sm:$0xff] %v8750_v60  ;;  %v8753_v25 = vpop.f32.mrb[138].mxu0 }
0x13c8   : > { %v8754_v0 = vadd.f32 %v8753_v25, %v17931_v26  ;;  %v8755_v55 = vpop.f32.mrb[139].mxu0 }
0x13c9   : > { %v8756_v18 = vadd.f32 %v8755_v55, %v17933_v62 }
0x13ca   : > { %8876 = vst [vmem:[%s17938_s30 + $0x110] sm:$0xff] %v8754_v0 }
0x13cb   : > { %8877 = vst [vmem:[%s17938_s30 + $0x118] sm:$0xff] %v8756_v18  ;;  %v8759_v40 = vpop.f32.mrb[140].mxu0 }
0x13cc   : > { %v8760_v41 = vadd.f32 %v8759_v40, %v17931_v26  ;;  %v8761_v1 = vpop.f32.mrb[141].mxu0 }
0x13cd   : > { %v8762_v52 = vadd.f32 %v8761_v1, %v17933_v62 }
0x13ce   : > { %8878 = vst [vmem:[%s17938_s30 + $0x120] sm:$0xff] %v8760_v41 }
0x13cf   : > { %8879 = vst [vmem:[%s17938_s30 + $0x128] sm:$0xff] %v8762_v52  ;;  %v8765_v44 = vpop.f32.mrb[142].mxu0 }
0x13d0   : > { %v8766_v19 = vadd.f32 %v8765_v44, %v17931_v26  ;;  %v8767_v10 = vpop.f32.mrb[143].mxu0 }
0x13d1   : > { %v8768_v7 = vadd.f32 %v8767_v10, %v17933_v62 }
0x13d2   : > { %8880 = vst [vmem:[%s17938_s30 + $0x130] sm:$0xff] %v8766_v19 }
0x13d3   : > { %8881 = vst [vmem:[%s17938_s30 + $0x138] sm:$0xff] %v8768_v7  ;;  %v8771_v3 = vpop.f32.mrb[144].mxu0 }
0x13d4   : > { %v8772_v20 = vadd.f32 %v8771_v3, %v17931_v26  ;;  %v8773_v29 = vpop.f32.mrb[145].mxu0 }
0x13d5   : > { %v8774_v16 = vadd.f32 %v8773_v29, %v17933_v62 }
0x13d6   : > { %8882 = vst [vmem:[%s17938_s30 + $0x140] sm:$0xff] %v8772_v20 }
0x13d7   : > { %8883 = vst [vmem:[%s17938_s30 + $0x148] sm:$0xff] %v8774_v16  ;;  %v8777_v9 = vpop.f32.mrb[146].mxu0 }
0x13d8   : > { %v8778_v51 = vadd.f32 %v8777_v9, %v17931_v26  ;;  %v8779_v46 = vpop.f32.mrb[147].mxu0 }
0x13d9   : > { %v8780_v28 = vadd.f32 %v8779_v46, %v17933_v62 }
0x13da   : > { %8884 = vst [vmem:[%s17938_s30 + $0x150] sm:$0xff] %v8778_v51 }
0x13db   : > { %8885 = vst [vmem:[%s17938_s30 + $0x158] sm:$0xff] %v8780_v28  ;;  %v8783_v53 = vpop.f32.mrb[148].mxu0 }
0x13dc   : > { %v8784_v24 = vadd.f32 %v8783_v53, %v17931_v26  ;;  %v8785_v58 = vpop.f32.mrb[149].mxu0 }
0x13dd   : > { %v8786_v47 = vadd.f32 %v8785_v58, %v17933_v62 }
0x13de   : > { %8886 = vst [vmem:[%s17938_s30 + $0x160] sm:$0xff] %v8784_v24 }
0x13df   : > { %8887 = vst [vmem:[%s17938_s30 + $0x168] sm:$0xff] %v8786_v47  ;;  %v8789_v38 = vpop.f32.mrb[150].mxu0 }
0x13e0   : > { %v8790_v39 = vadd.f32 %v8789_v38, %v17931_v26  ;;  %v8791_v57 = vpop.f32.mrb[151].mxu0 }
0x13e1   : > { %v8792_v37 = vadd.f32 %v8791_v57, %v17933_v62 }
0x13e2   : > { %8888 = vst [vmem:[%s17938_s30 + $0x170] sm:$0xff] %v8790_v39 }
0x13e3   : > { %8889 = vst [vmem:[%s17938_s30 + $0x178] sm:$0xff] %v8792_v37  ;;  %v8795_v2 = vpop.f32.mrb[152].mxu0 }
0x13e4   : > { %v8796_v61 = vadd.f32 %v8795_v2, %v17931_v26  ;;  %v8797_v56 = vpop.f32.mrb[153].mxu0 }
0x13e5   : > { %v8798_v36 = vadd.f32 %v8797_v56, %v17933_v62 }
0x13e6   : > { %8890 = vst [vmem:[%s17938_s30 + $0x180] sm:$0xff] %v8796_v61 }
0x13e7   : > { %8891 = vst [vmem:[%s17938_s30 + $0x188] sm:$0xff] %v8798_v36  ;;  %v8801_v63 = vpop.f32.mrb[154].mxu0 }
0x13e8   : > { %v8802_v45 = vadd.f32 %v8801_v63, %v17931_v26  ;;  %v8803_v59 = vpop.f32.mrb[155].mxu0 }
0x13e9   : > { %v8804_v13 = vadd.f32 %v8803_v59, %v17933_v62 }
0x13ea   : > { %8892 = vst [vmem:[%s17938_s30 + $0x190] sm:$0xff] %v8802_v45 }
0x13eb   : > { %8893 = vst [vmem:[%s17938_s30 + $0x198] sm:$0xff] %v8804_v13  ;;  %v8807_v21 = vpop.f32.mrb[156].mxu0 }
0x13ec   : > { %v8808_v27 = vadd.f32 %v8807_v21, %v17931_v26  ;;  %v8809_v31 = vpop.f32.mrb[157].mxu0 }
0x13ed   : > { %v8810_v42 = vadd.f32 %v8809_v31, %v17933_v62 }
0x13ee   : > { %8894 = vst [vmem:[%s17938_s30 + $0x1a0] sm:$0xff] %v8808_v27 }
0x13ef   : > { %8895 = vst [vmem:[%s17938_s30 + $0x1a8] sm:$0xff] %v8810_v42  ;;  %v8813_v50 = vpop.f32.mrb[158].mxu0 }
0x13f0   : > { %v8814_v8 = vadd.f32 %v8813_v50, %v17931_v26  ;;  %v8815_v48 = vpop.f32.mrb[159].mxu0 }
0x13f1   : > { %v8816_v6 = vadd.f32 %v8815_v48, %v17933_v62 }
0x13f2   : > { %8896 = vst [vmem:[%s17938_s30 + $0x1b0] sm:$0xff] %v8814_v8 }
0x13f3   : > { %8897 = vst [vmem:[%s17938_s30 + $0x1b8] sm:$0xff] %v8816_v6  ;;  %v8819_v34 = vpop.f32.mrb[160].mxu0 }
0x13f4   : > { %v8820_v43 = vadd.f32 %v8819_v34, %v17931_v26  ;;  %v8821_v35 = vpop.f32.mrb[161].mxu0 }
0x13f5   : > { %v8822_v49 = vadd.f32 %v8821_v35, %v17933_v62 }
0x13f6   : > { %8898 = vst [vmem:[%s17938_s30 + $0x1c0] sm:$0xff] %v8820_v43 }
0x13f7   : > { %8899 = vst [vmem:[%s17938_s30 + $0x1c8] sm:$0xff] %v8822_v49  ;;  %v8825_v22 = vpop.f32.mrb[162].mxu0 }
0x13f8   : > { %v8826_v30 = vadd.f32 %v8825_v22, %v17931_v26  ;;  %v8827_v14 = vpop.f32.mrb[163].mxu0 }
0x13f9   : > { %v8828_v11 = vadd.f32 %v8827_v14, %v17933_v62 }
0x13fa   : > { %8900 = vst [vmem:[%s17938_s30 + $0x1d0] sm:$0xff] %v8826_v30 }
0x13fb   : > { %8901 = vst [vmem:[%s17938_s30 + $0x1d8] sm:$0xff] %v8828_v11  ;;  %v8831_v15 = vpop.f32.mrb[164].mxu0 }
0x13fc   : > { %v8832_v23 = vadd.f32 %v8831_v15, %v17931_v26  ;;  %v8833_v54 = vpop.f32.mrb[165].mxu0 }
0x13fd   : > { %v8834_v33 = vadd.f32 %v8833_v54, %v17933_v62 }
0x13fe   : > { %8902 = vst [vmem:[%s17938_s30 + $0x1e0] sm:$0xff] %v8832_v23 }
0x13ff   : > { %8903 = vst [vmem:[%s17938_s30 + $0x1e8] sm:$0xff] %v8834_v33  ;;  %v8837_v17 = vpop.f32.mrb[166].mxu0 }
0x1400   : > { %v8838_v12 = vadd.f32 %v8837_v17, %v17931_v26  ;;  %v8839_v5 = vpop.f32.mrb[167].mxu0 }
0x1401   : > { %v8840_v32 = vadd.f32 %v8839_v5, %v17933_v62 }
0x1402   : > { %8904 = vst [vmem:[%s17938_s30 + $0x1f0] sm:$0xff] %v8838_v12 }
0x1403   : > { %8905 = vst [vmem:[%s17938_s30 + $0x1f8] sm:$0xff] %v8840_v32 }
0x1404 PF: > { %s20_s13 = sadd.s32 1, %s14250_s13  }
0x1405   : > { %p17_p4 = scmp.ge.s32.totalorder %s20_s13, 4  }
0x1407   :  { %19 = sbr.rel (!%p17_p4) target bundleno = 1 (0x1), region = 105 }

</bundles_post_ra>
